<compile_context>
chip_gen: v7x
topology: tpu7x:2x2x1
jax: 0.10.0
libtpu: 0.0.40
codegen_flags: <defaults>
</compile_context>

<pallas_src>
import numpy as np
import jax
import jax.numpy as jnp
from jax.experimental import pallas as pl
from jax.experimental.pallas import tpu as pltpu

KERNEL_SIZES = (2, 3)       # args.entity_cnn_kernel_sizes
NUM_FILTERS = 8             # args.entity_cnn_output_channels
ENT_OUTPUT_SIZE = 32        # args.ent_output_size (> 0 -> ent2hidden path)
LABEL_SIZE = 5              # vocab size of 'span2ent'
SPAN_TILE = 256             # spans per grid step (fills MXU M dim on v5e/v6e/v7x)


def _gelu(x):
    # TODO(synk): PyTorch BertLinear uses exact erf-GELU; tanh approximation used
    # here (erf lowering on Mosaic not guaranteed); numerical difference ~1e-3.
    return 0.5 * x * (1.0 + jnp.tanh(0.7978845608028654 * (x + 0.044715 * x * x * x)))


def _make_kernel(kernel_sizes, span_width, span_tile):
    n_conv = len(kernel_sizes)
    W = span_width

    def kernel(*refs):
        it = iter(refs)
        tok_ref = next(it)                                   # (W, TN, D) bf16
        conv_refs = [(next(it), next(it)) for _ in range(n_conv)]
        wh_ref = next(it); bh_ref = next(it)                 # (CNN_OUT, H), (1, H)
        g_ref = next(it); bt_ref = next(it)                  # layernorm gamma/beta
        wd_ref = next(it); bd_ref = next(it)                 # (H, L), (1, L)
        logp_o = next(it)                                    # (TN, L)

        # Load each span position once (leading-axis views of the (W, TN, D) tile).
        taps = [tok_ref[p] for p in range(W)]                # each (TN, D) bf16

        # ---- CNNSpanExtractor: conv1d -> relu -> max over time per ngram size ----
        # Per position: one fused (TN, k*D) x (k*D, F) matmul (taps lane-concatenated).
        pooled_feats = []
        for (w_ref, b_ref), k in zip(conv_refs, kernel_sizes):
            wk = w_ref[...]                                  # (k*D, F) bf16
            bk = b_ref[...]                                  # (1, F)  f32
            pooled = None
            for p in range(W - k + 1):
                xk = jnp.concatenate([taps[p + t] for t in range(k)], axis=-1)
                v = jnp.dot(xk, wk, preferred_element_type=jnp.float32) + bk
                v = jnp.maximum(v, 0.0)                      # ReLU
                pooled = v if pooled is None else jnp.maximum(pooled, v)
            pooled_feats.append(pooled)                      # (TN, F) f32

        # ---- ent2hidden (BertLinear): Linear -> GELU -> LayerNorm ----
        feat = jnp.concatenate(pooled_feats, axis=-1)        # (TN, CNN_OUT) f32
        h = jnp.dot(feat, wh_ref[...], preferred_element_type=jnp.float32) + bh_ref[...]
        h = _gelu(h)
        mu = jnp.mean(h, axis=-1, keepdims=True)
        var = jnp.mean((h - mu) ** 2, axis=-1, keepdims=True)
        h = (h - mu) * jax.lax.rsqrt(var + 1e-12) * g_ref[...] + bt_ref[...]

        # ---- VanillaSoftmaxDecoder: Linear -> log_softmax (pred/NLL done outside) ----
        logits = jnp.dot(h, wd_ref[...], preferred_element_type=jnp.float32) + bd_ref[...]
        m = jnp.max(logits, axis=-1, keepdims=True)
        lse = m + jnp.log(jnp.sum(jnp.exp(logits - m), axis=-1, keepdims=True))
        logp_o[...] = logits - lse

    return kernel


def cnn_ent_forward(span_tokens, labels, params, *, span_tile=SPAN_TILE):
    """Fused CNN entity model forward on gathered span tokens."""
    N, W, D = span_tokens.shape
    H = params['wh'].shape[-1]
    L = params['wd'].shape[-1]

    npad = pl.cdiv(N, span_tile) * span_tile
    # Streamed token input: bf16, layout (W, npad, D) so the kernel indexes the
    # leading (position) axis.
    tok = jnp.pad(span_tokens, ((0, npad - N), (0, 0), (0, 0)))
    tok = jnp.transpose(tok, (1, 0, 2)).astype(jnp.bfloat16)

    args = [tok]
    in_specs = [pl.BlockSpec((W, span_tile, D), lambda i: (0, i, 0))]
    for (w, b), k in zip(params['conv'], KERNEL_SIZES):
        wk = w.reshape(k * D, -1).astype(jnp.bfloat16)       # fused-tap weight (k*D, F)
        args += [wk, b]
        in_specs += [pl.BlockSpec(wk.shape, lambda i: (0, 0)),
                     pl.BlockSpec(b.shape, lambda i: (0, 0))]
    args += [params['wh'], params['bh'], params['gamma'], params['beta'],
             params['wd'], params['bd']]
    in_specs += [pl.BlockSpec(params['wh'].shape, lambda i: (0, 0)),
                 pl.BlockSpec((1, H), lambda i: (0, 0)),
                 pl.BlockSpec((1, H), lambda i: (0, 0)),
                 pl.BlockSpec((1, H), lambda i: (0, 0)),
                 pl.BlockSpec((H, L), lambda i: (0, 0)),
                 pl.BlockSpec((1, L), lambda i: (0, 0))]

    out_specs = pl.BlockSpec((span_tile, L), lambda i: (i, 0))
    out_shape = jax.ShapeDtypeStruct((npad, L), jnp.float32)

    kernel = _make_kernel(KERNEL_SIZES, W, span_tile)
    logp = pl.pallas_call(
        kernel,
        grid=(npad // span_tile,),
        in_specs=in_specs,
        out_specs=out_specs,
        out_shape=out_shape,
        compiler_params=pltpu.CompilerParams(dimension_semantics=("parallel",)),
    )(*args)

    # Cheap L=5 post-processing in plain JAX (keeps kernel outputs dense).
    logp = logp[:N]
    preds = jnp.argmax(logp, axis=-1).astype(jnp.int32)
    nll = -jnp.take_along_axis(logp, labels[:, None].astype(jnp.int32), axis=-1)[:, 0]
    loss = jnp.mean(nll)                 # CrossEntropyLoss(reduction='mean') over real spans
    return {'ent_loss': loss, 'ent_preds': preds, 'ent_log_probs': logp}


# ----------------------------- glue / reference ------------------------------

def gather_span_tokens(seq_encoder_reprs, sent, start, end, W):
    """Gather (start, end)-exclusive spans, zero-padded to width W."""
    # TODO(synk): could be replaced by in-kernel scalar-prefetched row gathers
    # (PrefetchScalarGridSpec) to avoid materializing the (N, W, D) copy in HBM.
    S = seq_encoder_reprs.shape[1]
    pos = start[:, None] + jnp.arange(W, dtype=jnp.int32)[None, :]
    valid = (pos < end[:, None]).astype(seq_encoder_reprs.dtype)
    pos_c = jnp.minimum(pos, S - 1)
    tok = seq_encoder_reprs[sent[:, None], pos_c]            # (N, W, D)
    return tok * valid[:, :, None]


def init_params(key, D, num_filters, hidden, label_size):
    keys = iter(jax.random.split(key, 16))
    conv = []
    for k in KERNEL_SIZES:
        w = 0.1 * jax.random.normal(next(keys), (k, D, num_filters), jnp.float32)
        b = 0.1 * jax.random.normal(next(keys), (1, num_filters), jnp.float32)
        conv.append((w, b))
    cnn_out = num_filters * len(KERNEL_SIZES)
    return {
        'conv': conv,
        'wh': 0.02 * jax.random.normal(next(keys), (cnn_out, hidden), jnp.float32),
        'bh': 0.1 * jax.random.normal(next(keys), (1, hidden), jnp.float32),
        'gamma': 1.0 + 0.1 * jax.random.normal(next(keys), (1, hidden), jnp.float32),
        'beta': 0.1 * jax.random.normal(next(keys), (1, hidden), jnp.float32),
        'wd': 0.02 * jax.random.normal(next(keys), (hidden, label_size), jnp.float32),
        'bd': 0.1 * jax.random.normal(next(keys), (1, label_size), jnp.float32),
    }


def reference_forward(span_tokens, labels, params):
    # Same precision policy as the kernel: bf16 token/conv-weight matmuls with f32
    # accumulation, f32 for everything downstream.
    x = span_tokens.astype(jnp.bfloat16)
    _, W, D = x.shape
    feats = []
    for (w, b), k in zip(params['conv'], KERNEL_SIZES):
        wk = w.reshape(k * D, -1).astype(jnp.bfloat16)
        outs = []
        for p in range(W - k + 1):
            xk = jnp.concatenate([x[:, p + t, :] for t in range(k)], axis=-1)
            acc = jnp.dot(xk, wk, preferred_element_type=jnp.float32) + b
            outs.append(jnp.maximum(acc, 0.0))
        feats.append(jnp.max(jnp.stack(outs, axis=1), axis=1))
    feat = jnp.concatenate(feats, axis=-1)
    h = feat @ params['wh'] + params['bh']
    h = _gelu(h)
    mu = jnp.mean(h, -1, keepdims=True)
    var = jnp.mean((h - mu) ** 2, -1, keepdims=True)
    h = (h - mu) * jax.lax.rsqrt(var + 1e-12) * params['gamma'] + params['beta']
    logits = h @ params['wd'] + params['bd']
    logp = jax.nn.log_softmax(logits, axis=-1)
    preds = jnp.argmax(logits, axis=-1).astype(jnp.int32)
    nll = -jnp.take_along_axis(logp, labels[:, None].astype(jnp.int32), axis=-1)[:, 0]
    return {'ent_loss': jnp.mean(nll), 'ent_preds': preds, 'ent_log_probs': logp}


if __name__ == "__main__":
    key = jax.random.PRNGKey(0)
    k_seq, k_sent, k_start, k_width, k_lab, k_par = jax.random.split(key, 6)

    B, S, D = 2, 24, 32                       # batch, seq_len, seq_encoder_output_size
    N_SPANS = 300                             # candidate spans -> 2 grid steps of 256
    W = 8                                     # max span width (>= max ngram size)

    seq_encoder_reprs = jax.random.normal(k_seq, (B, S, D), jnp.float32)

    # synthetic candidate entity spans (sentence_idx, start, end-exclusive) —
    # replaces generate_all_candi_ents / vocab machinery
    sent = jax.random.randint(k_sent, (N_SPANS,), 0, B, jnp.int32)
    start = jax.random.randint(k_start, (N_SPANS,), 0, S - 1, jnp.int32)
    width = jax.random.randint(k_width, (N_SPANS,), 1, W + 1, jnp.int32)
    end = jnp.minimum(start + width, S)
    labels = jax.random.randint(k_lab, (N_SPANS,), 0, LABEL_SIZE, jnp.int32)

    span_tokens = gather_span_tokens(seq_encoder_reprs, sent, start, end, W)
    params = init_params(k_par, D, NUM_FILTERS, ENT_OUTPUT_SIZE, LABEL_SIZE)

    out = cnn_ent_forward(span_tokens, labels, params)
    jax.block_until_ready(out)

    ref = reference_forward(span_tokens, labels, params)
    np.testing.assert_allclose(np.asarray(out['ent_log_probs']),
                               np.asarray(ref['ent_log_probs']),
                               rtol=1e-2, atol=1e-2)
    np.testing.assert_array_equal(np.asarray(out['ent_preds']),
                                  np.asarray(ref['ent_preds']))
    np.testing.assert_allclose(float(out['ent_loss']), float(ref['ent_loss']),
                               rtol=1e-2, atol=1e-2)
    print("KERNEL_OK")
</pallas_src>

<mosaic_0001>
module attributes {stable_mosaic.version = 11 : i64} {
  func.func @kernel(%arg0: i32, %arg1: memref<8x256x32xbf16, #tpu.memory_space<vmem>>, %arg2: memref<64x8xbf16, #tpu.memory_space<vmem>>, %arg3: memref<1x8xf32, #tpu.memory_space<vmem>>, %arg4: memref<96x8xbf16, #tpu.memory_space<vmem>>, %arg5: memref<1x8xf32, #tpu.memory_space<vmem>>, %arg6: memref<16x32xf32, #tpu.memory_space<vmem>>, %arg7: memref<1x32xf32, #tpu.memory_space<vmem>>, %arg8: memref<1x32xf32, #tpu.memory_space<vmem>>, %arg9: memref<1x32xf32, #tpu.memory_space<vmem>>, %arg10: memref<32x5xf32, #tpu.memory_space<vmem>>, %arg11: memref<1x5xf32, #tpu.memory_space<vmem>>, %arg12: memref<256x5xf32, #tpu.memory_space<vmem>>) attributes {dimension_semantics = [#tpu.dimension_semantics<parallel>], iteration_bounds = array<i64: 2>, scalar_prefetch = 0 : i64, scratch_operands = 0 : i64, tpu.core_type = #tpu.core_type<tc>, window_params = [{transform_indices = @transform_0, window_bounds = array<i64: 8, 256, 32>}, {pipeline_mode = #tpu.pipeline_mode<synchronous>, transform_indices = @transform_1, window_bounds = array<i64: 64, 8>}, {pipeline_mode = #tpu.pipeline_mode<synchronous>, transform_indices = @transform_2, window_bounds = array<i64: 1, 8>}, {pipeline_mode = #tpu.pipeline_mode<synchronous>, transform_indices = @transform_3, window_bounds = array<i64: 96, 8>}, {pipeline_mode = #tpu.pipeline_mode<synchronous>, transform_indices = @transform_4, window_bounds = array<i64: 1, 8>}, {pipeline_mode = #tpu.pipeline_mode<synchronous>, transform_indices = @transform_5, window_bounds = array<i64: 16, 32>}, {pipeline_mode = #tpu.pipeline_mode<synchronous>, transform_indices = @transform_6, window_bounds = array<i64: 1, 32>}, {pipeline_mode = #tpu.pipeline_mode<synchronous>, transform_indices = @transform_7, window_bounds = array<i64: 1, 32>}, {pipeline_mode = #tpu.pipeline_mode<synchronous>, transform_indices = @transform_8, window_bounds = array<i64: 1, 32>}, {pipeline_mode = #tpu.pipeline_mode<synchronous>, transform_indices = @transform_9, window_bounds = array<i64: 32, 5>}, {pipeline_mode = #tpu.pipeline_mode<synchronous>, transform_indices = @transform_10, window_bounds = array<i64: 1, 5>}, {transform_indices = @transform_11, window_bounds = array<i64: 256, 5>}]} {
    %c0 = arith.constant 0 : index
    %c0_0 = arith.constant 0 : index
    %c0_1 = arith.constant 0 : index
    %0 = vector.load %arg1[%c0, %c0_0, %c0_1] : memref<8x256x32xbf16, #tpu.memory_space<vmem>>, vector<1x256x32xbf16>
    %1 = vector.shape_cast %0 : vector<1x256x32xbf16> to vector<256x32xbf16>
    %c1 = arith.constant 1 : index
    %c0_2 = arith.constant 0 : index
    %c0_3 = arith.constant 0 : index
    %2 = vector.load %arg1[%c1, %c0_2, %c0_3] : memref<8x256x32xbf16, #tpu.memory_space<vmem>>, vector<1x256x32xbf16>
    %3 = vector.shape_cast %2 : vector<1x256x32xbf16> to vector<256x32xbf16>
    %c2 = arith.constant 2 : index
    %c0_4 = arith.constant 0 : index
    %c0_5 = arith.constant 0 : index
    %4 = vector.load %arg1[%c2, %c0_4, %c0_5] : memref<8x256x32xbf16, #tpu.memory_space<vmem>>, vector<1x256x32xbf16>
    %5 = vector.shape_cast %4 : vector<1x256x32xbf16> to vector<256x32xbf16>
    %c3 = arith.constant 3 : index
    %c0_6 = arith.constant 0 : index
    %c0_7 = arith.constant 0 : index
    %6 = vector.load %arg1[%c3, %c0_6, %c0_7] : memref<8x256x32xbf16, #tpu.memory_space<vmem>>, vector<1x256x32xbf16>
    %7 = vector.shape_cast %6 : vector<1x256x32xbf16> to vector<256x32xbf16>
    %c4 = arith.constant 4 : index
    %c0_8 = arith.constant 0 : index
    %c0_9 = arith.constant 0 : index
    %8 = vector.load %arg1[%c4, %c0_8, %c0_9] : memref<8x256x32xbf16, #tpu.memory_space<vmem>>, vector<1x256x32xbf16>
    %9 = vector.shape_cast %8 : vector<1x256x32xbf16> to vector<256x32xbf16>
    %c5 = arith.constant 5 : index
    %c0_10 = arith.constant 0 : index
    %c0_11 = arith.constant 0 : index
    %10 = vector.load %arg1[%c5, %c0_10, %c0_11] : memref<8x256x32xbf16, #tpu.memory_space<vmem>>, vector<1x256x32xbf16>
    %11 = vector.shape_cast %10 : vector<1x256x32xbf16> to vector<256x32xbf16>
    %c6 = arith.constant 6 : index
    %c0_12 = arith.constant 0 : index
    %c0_13 = arith.constant 0 : index
    %12 = vector.load %arg1[%c6, %c0_12, %c0_13] : memref<8x256x32xbf16, #tpu.memory_space<vmem>>, vector<1x256x32xbf16>
    %13 = vector.shape_cast %12 : vector<1x256x32xbf16> to vector<256x32xbf16>
    %c7 = arith.constant 7 : index
    %c0_14 = arith.constant 0 : index
    %c0_15 = arith.constant 0 : index
    %14 = vector.load %arg1[%c7, %c0_14, %c0_15] : memref<8x256x32xbf16, #tpu.memory_space<vmem>>, vector<1x256x32xbf16>
    %15 = vector.shape_cast %14 : vector<1x256x32xbf16> to vector<256x32xbf16>
    %c0_16 = arith.constant 0 : index
    %c0_17 = arith.constant 0 : index
    %16 = vector.load %arg2[%c0_16, %c0_17] : memref<64x8xbf16, #tpu.memory_space<vmem>>, vector<64x8xbf16>
    %c0_18 = arith.constant 0 : index
    %c0_19 = arith.constant 0 : index
    %17 = vector.load %arg3[%c0_18, %c0_19] : memref<1x8xf32, #tpu.memory_space<vmem>>, vector<1x8xf32>
    %18 = tpu.concatenate %1, %3 in 1 : vector<256x32xbf16>, vector<256x32xbf16> -> vector<256x64xbf16>
    %cst = arith.constant dense<0.000000e+00> : vector<256x8xf32>
    %19 = tpu.matmul %18, %16, %cst {dimension_numbers = #tpu.dot_dimension_numbers<[1], [0], [0], [1], [0, 0, 1, 1], [], []>} : vector<256x64xbf16>, vector<64x8xbf16>, vector<256x8xf32> -> vector<256x8xf32>
    %20 = vector.broadcast %17 : vector<1x8xf32> to vector<256x8xf32>
    %21 = arith.addf %19, %20 : vector<256x8xf32>
    %cst_20 = arith.constant 0.000000e+00 : f32
    %22 = vector.broadcast %cst_20 : f32 to vector<256x8xf32>
    %23 = arith.maximumf %21, %22 : vector<256x8xf32>
    %24 = tpu.concatenate %3, %5 in 1 : vector<256x32xbf16>, vector<256x32xbf16> -> vector<256x64xbf16>
    %cst_21 = arith.constant dense<0.000000e+00> : vector<256x8xf32>
    %25 = tpu.matmul %24, %16, %cst_21 {dimension_numbers = #tpu.dot_dimension_numbers<[1], [0], [0], [1], [0, 0, 1, 1], [], []>} : vector<256x64xbf16>, vector<64x8xbf16>, vector<256x8xf32> -> vector<256x8xf32>
    %26 = vector.broadcast %17 : vector<1x8xf32> to vector<256x8xf32>
    %27 = arith.addf %25, %26 : vector<256x8xf32>
    %cst_22 = arith.constant 0.000000e+00 : f32
    %28 = vector.broadcast %cst_22 : f32 to vector<256x8xf32>
    %29 = arith.maximumf %27, %28 : vector<256x8xf32>
    %30 = arith.maximumf %23, %29 : vector<256x8xf32>
    %31 = tpu.concatenate %5, %7 in 1 : vector<256x32xbf16>, vector<256x32xbf16> -> vector<256x64xbf16>
    %cst_23 = arith.constant dense<0.000000e+00> : vector<256x8xf32>
    %32 = tpu.matmul %31, %16, %cst_23 {dimension_numbers = #tpu.dot_dimension_numbers<[1], [0], [0], [1], [0, 0, 1, 1], [], []>} : vector<256x64xbf16>, vector<64x8xbf16>, vector<256x8xf32> -> vector<256x8xf32>
    %33 = vector.broadcast %17 : vector<1x8xf32> to vector<256x8xf32>
    %34 = arith.addf %32, %33 : vector<256x8xf32>
    %cst_24 = arith.constant 0.000000e+00 : f32
    %35 = vector.broadcast %cst_24 : f32 to vector<256x8xf32>
    %36 = arith.maximumf %34, %35 : vector<256x8xf32>
    %37 = arith.maximumf %30, %36 : vector<256x8xf32>
    %38 = tpu.concatenate %7, %9 in 1 : vector<256x32xbf16>, vector<256x32xbf16> -> vector<256x64xbf16>
    %cst_25 = arith.constant dense<0.000000e+00> : vector<256x8xf32>
    %39 = tpu.matmul %38, %16, %cst_25 {dimension_numbers = #tpu.dot_dimension_numbers<[1], [0], [0], [1], [0, 0, 1, 1], [], []>} : vector<256x64xbf16>, vector<64x8xbf16>, vector<256x8xf32> -> vector<256x8xf32>
    %40 = vector.broadcast %17 : vector<1x8xf32> to vector<256x8xf32>
    %41 = arith.addf %39, %40 : vector<256x8xf32>
    %cst_26 = arith.constant 0.000000e+00 : f32
    %42 = vector.broadcast %cst_26 : f32 to vector<256x8xf32>
    %43 = arith.maximumf %41, %42 : vector<256x8xf32>
    %44 = arith.maximumf %37, %43 : vector<256x8xf32>
    %45 = tpu.concatenate %9, %11 in 1 : vector<256x32xbf16>, vector<256x32xbf16> -> vector<256x64xbf16>
    %cst_27 = arith.constant dense<0.000000e+00> : vector<256x8xf32>
    %46 = tpu.matmul %45, %16, %cst_27 {dimension_numbers = #tpu.dot_dimension_numbers<[1], [0], [0], [1], [0, 0, 1, 1], [], []>} : vector<256x64xbf16>, vector<64x8xbf16>, vector<256x8xf32> -> vector<256x8xf32>
    %47 = vector.broadcast %17 : vector<1x8xf32> to vector<256x8xf32>
    %48 = arith.addf %46, %47 : vector<256x8xf32>
    %cst_28 = arith.constant 0.000000e+00 : f32
    %49 = vector.broadcast %cst_28 : f32 to vector<256x8xf32>
    %50 = arith.maximumf %48, %49 : vector<256x8xf32>
    %51 = arith.maximumf %44, %50 : vector<256x8xf32>
    %52 = tpu.concatenate %11, %13 in 1 : vector<256x32xbf16>, vector<256x32xbf16> -> vector<256x64xbf16>
    %cst_29 = arith.constant dense<0.000000e+00> : vector<256x8xf32>
    %53 = tpu.matmul %52, %16, %cst_29 {dimension_numbers = #tpu.dot_dimension_numbers<[1], [0], [0], [1], [0, 0, 1, 1], [], []>} : vector<256x64xbf16>, vector<64x8xbf16>, vector<256x8xf32> -> vector<256x8xf32>
    %54 = vector.broadcast %17 : vector<1x8xf32> to vector<256x8xf32>
    %55 = arith.addf %53, %54 : vector<256x8xf32>
    %cst_30 = arith.constant 0.000000e+00 : f32
    %56 = vector.broadcast %cst_30 : f32 to vector<256x8xf32>
    %57 = arith.maximumf %55, %56 : vector<256x8xf32>
    %58 = arith.maximumf %51, %57 : vector<256x8xf32>
    %59 = tpu.concatenate %13, %15 in 1 : vector<256x32xbf16>, vector<256x32xbf16> -> vector<256x64xbf16>
    %cst_31 = arith.constant dense<0.000000e+00> : vector<256x8xf32>
    %60 = tpu.matmul %59, %16, %cst_31 {dimension_numbers = #tpu.dot_dimension_numbers<[1], [0], [0], [1], [0, 0, 1, 1], [], []>} : vector<256x64xbf16>, vector<64x8xbf16>, vector<256x8xf32> -> vector<256x8xf32>
    %61 = vector.broadcast %17 : vector<1x8xf32> to vector<256x8xf32>
    %62 = arith.addf %60, %61 : vector<256x8xf32>
    %cst_32 = arith.constant 0.000000e+00 : f32
    %63 = vector.broadcast %cst_32 : f32 to vector<256x8xf32>
    %64 = arith.maximumf %62, %63 : vector<256x8xf32>
    %65 = arith.maximumf %58, %64 : vector<256x8xf32>
    %c0_33 = arith.constant 0 : index
    %c0_34 = arith.constant 0 : index
    %66 = vector.load %arg4[%c0_33, %c0_34] : memref<96x8xbf16, #tpu.memory_space<vmem>>, vector<96x8xbf16>
    %c0_35 = arith.constant 0 : index
    %c0_36 = arith.constant 0 : index
    %67 = vector.load %arg5[%c0_35, %c0_36] : memref<1x8xf32, #tpu.memory_space<vmem>>, vector<1x8xf32>
    %68 = tpu.concatenate %1, %3, %5 in 1 : vector<256x32xbf16>, vector<256x32xbf16>, vector<256x32xbf16> -> vector<256x96xbf16>
    %cst_37 = arith.constant dense<0.000000e+00> : vector<256x8xf32>
    %69 = tpu.matmul %68, %66, %cst_37 {dimension_numbers = #tpu.dot_dimension_numbers<[1], [0], [0], [1], [0, 0, 1, 1], [], []>} : vector<256x96xbf16>, vector<96x8xbf16>, vector<256x8xf32> -> vector<256x8xf32>
    %70 = vector.broadcast %67 : vector<1x8xf32> to vector<256x8xf32>
    %71 = arith.addf %69, %70 : vector<256x8xf32>
    %cst_38 = arith.constant 0.000000e+00 : f32
    %72 = vector.broadcast %cst_38 : f32 to vector<256x8xf32>
    %73 = arith.maximumf %71, %72 : vector<256x8xf32>
    %74 = tpu.concatenate %3, %5, %7 in 1 : vector<256x32xbf16>, vector<256x32xbf16>, vector<256x32xbf16> -> vector<256x96xbf16>
    %cst_39 = arith.constant dense<0.000000e+00> : vector<256x8xf32>
    %75 = tpu.matmul %74, %66, %cst_39 {dimension_numbers = #tpu.dot_dimension_numbers<[1], [0], [0], [1], [0, 0, 1, 1], [], []>} : vector<256x96xbf16>, vector<96x8xbf16>, vector<256x8xf32> -> vector<256x8xf32>
    %76 = vector.broadcast %67 : vector<1x8xf32> to vector<256x8xf32>
    %77 = arith.addf %75, %76 : vector<256x8xf32>
    %cst_40 = arith.constant 0.000000e+00 : f32
    %78 = vector.broadcast %cst_40 : f32 to vector<256x8xf32>
    %79 = arith.maximumf %77, %78 : vector<256x8xf32>
    %80 = arith.maximumf %73, %79 : vector<256x8xf32>
    %81 = tpu.concatenate %5, %7, %9 in 1 : vector<256x32xbf16>, vector<256x32xbf16>, vector<256x32xbf16> -> vector<256x96xbf16>
    %cst_41 = arith.constant dense<0.000000e+00> : vector<256x8xf32>
    %82 = tpu.matmul %81, %66, %cst_41 {dimension_numbers = #tpu.dot_dimension_numbers<[1], [0], [0], [1], [0, 0, 1, 1], [], []>} : vector<256x96xbf16>, vector<96x8xbf16>, vector<256x8xf32> -> vector<256x8xf32>
    %83 = vector.broadcast %67 : vector<1x8xf32> to vector<256x8xf32>
    %84 = arith.addf %82, %83 : vector<256x8xf32>
    %cst_42 = arith.constant 0.000000e+00 : f32
    %85 = vector.broadcast %cst_42 : f32 to vector<256x8xf32>
    %86 = arith.maximumf %84, %85 : vector<256x8xf32>
    %87 = arith.maximumf %80, %86 : vector<256x8xf32>
    %88 = tpu.concatenate %7, %9, %11 in 1 : vector<256x32xbf16>, vector<256x32xbf16>, vector<256x32xbf16> -> vector<256x96xbf16>
    %cst_43 = arith.constant dense<0.000000e+00> : vector<256x8xf32>
    %89 = tpu.matmul %88, %66, %cst_43 {dimension_numbers = #tpu.dot_dimension_numbers<[1], [0], [0], [1], [0, 0, 1, 1], [], []>} : vector<256x96xbf16>, vector<96x8xbf16>, vector<256x8xf32> -> vector<256x8xf32>
    %90 = vector.broadcast %67 : vector<1x8xf32> to vector<256x8xf32>
    %91 = arith.addf %89, %90 : vector<256x8xf32>
    %cst_44 = arith.constant 0.000000e+00 : f32
    %92 = vector.broadcast %cst_44 : f32 to vector<256x8xf32>
    %93 = arith.maximumf %91, %92 : vector<256x8xf32>
    %94 = arith.maximumf %87, %93 : vector<256x8xf32>
    %95 = tpu.concatenate %9, %11, %13 in 1 : vector<256x32xbf16>, vector<256x32xbf16>, vector<256x32xbf16> -> vector<256x96xbf16>
    %cst_45 = arith.constant dense<0.000000e+00> : vector<256x8xf32>
    %96 = tpu.matmul %95, %66, %cst_45 {dimension_numbers = #tpu.dot_dimension_numbers<[1], [0], [0], [1], [0, 0, 1, 1], [], []>} : vector<256x96xbf16>, vector<96x8xbf16>, vector<256x8xf32> -> vector<256x8xf32>
    %97 = vector.broadcast %67 : vector<1x8xf32> to vector<256x8xf32>
    %98 = arith.addf %96, %97 : vector<256x8xf32>
    %cst_46 = arith.constant 0.000000e+00 : f32
    %99 = vector.broadcast %cst_46 : f32 to vector<256x8xf32>
    %100 = arith.maximumf %98, %99 : vector<256x8xf32>
    %101 = arith.maximumf %94, %100 : vector<256x8xf32>
    %102 = tpu.concatenate %11, %13, %15 in 1 : vector<256x32xbf16>, vector<256x32xbf16>, vector<256x32xbf16> -> vector<256x96xbf16>
    %cst_47 = arith.constant dense<0.000000e+00> : vector<256x8xf32>
    %103 = tpu.matmul %102, %66, %cst_47 {dimension_numbers = #tpu.dot_dimension_numbers<[1], [0], [0], [1], [0, 0, 1, 1], [], []>} : vector<256x96xbf16>, vector<96x8xbf16>, vector<256x8xf32> -> vector<256x8xf32>
    %104 = vector.broadcast %67 : vector<1x8xf32> to vector<256x8xf32>
    %105 = arith.addf %103, %104 : vector<256x8xf32>
    %cst_48 = arith.constant 0.000000e+00 : f32
    %106 = vector.broadcast %cst_48 : f32 to vector<256x8xf32>
    %107 = arith.maximumf %105, %106 : vector<256x8xf32>
    %108 = arith.maximumf %101, %107 : vector<256x8xf32>
    %109 = tpu.concatenate %65, %108 in 1 : vector<256x8xf32>, vector<256x8xf32> -> vector<256x16xf32>
    %c0_49 = arith.constant 0 : index
    %c0_50 = arith.constant 0 : index
    %110 = vector.load %arg6[%c0_49, %c0_50] : memref<16x32xf32, #tpu.memory_space<vmem>>, vector<16x32xf32>
    %cst_51 = arith.constant dense<0.000000e+00> : vector<256x32xf32>
    %111 = tpu.matmul %109, %110, %cst_51 {dimension_numbers = #tpu.dot_dimension_numbers<[1], [0], [0], [1], [0, 0, 1, 1], [], []>} : vector<256x16xf32>, vector<16x32xf32>, vector<256x32xf32> -> vector<256x32xf32>
    %c0_52 = arith.constant 0 : index
    %c0_53 = arith.constant 0 : index
    %112 = vector.load %arg7[%c0_52, %c0_53] : memref<1x32xf32, #tpu.memory_space<vmem>>, vector<1x32xf32>
    %113 = vector.broadcast %112 : vector<1x32xf32> to vector<256x32xf32>
    %114 = arith.addf %111, %113 : vector<256x32xf32>
    %cst_54 = arith.constant 5.000000e-01 : f32
    %115 = vector.broadcast %cst_54 : f32 to vector<256x32xf32>
    %116 = arith.mulf %115, %114 : vector<256x32xf32>
    %cst_55 = arith.constant 4.471500e-02 : f32
    %117 = vector.broadcast %cst_55 : f32 to vector<256x32xf32>
    %118 = arith.mulf %117, %114 : vector<256x32xf32>
    %119 = arith.mulf %118, %114 : vector<256x32xf32>
    %120 = arith.mulf %119, %114 : vector<256x32xf32>
    %121 = arith.addf %114, %120 : vector<256x32xf32>
    %cst_56 = arith.constant 0.797884583 : f32
    %122 = vector.broadcast %cst_56 : f32 to vector<256x32xf32>
    %123 = arith.mulf %122, %121 : vector<256x32xf32>
    %124 = math.tanh %123 : vector<256x32xf32>
    %cst_57 = arith.constant 1.000000e+00 : f32
    %125 = vector.broadcast %cst_57 : f32 to vector<256x32xf32>
    %126 = arith.addf %125, %124 : vector<256x32xf32>
    %127 = arith.mulf %116, %126 : vector<256x32xf32>
    %cst_58 = arith.constant dense<0.000000e+00> : vector<256xf32>
    %128 = vector.multi_reduction <add>, %127, %cst_58 [1] : vector<256x32xf32> to vector<256xf32>
    %129 = vector.shape_cast %128 : vector<256xf32> to vector<256x1xf32>
    %cst_59 = arith.constant 3.200000e+01 : f32
    %130 = vector.broadcast %cst_59 : f32 to vector<256x1xf32>
    %131 = arith.divf %129, %130 : vector<256x1xf32>
    %132 = vector.broadcast %131 : vector<256x1xf32> to vector<256x32xf32>
    %133 = arith.subf %127, %132 : vector<256x32xf32>
    %134 = arith.mulf %133, %133 : vector<256x32xf32>
    %cst_60 = arith.constant dense<0.000000e+00> : vector<256xf32>
    %135 = vector.multi_reduction <add>, %134, %cst_60 [1] : vector<256x32xf32> to vector<256xf32>
    %136 = vector.shape_cast %135 : vector<256xf32> to vector<256x1xf32>
    %cst_61 = arith.constant 3.200000e+01 : f32
    %137 = vector.broadcast %cst_61 : f32 to vector<256x1xf32>
    %138 = arith.divf %136, %137 : vector<256x1xf32>
    %139 = vector.broadcast %131 : vector<256x1xf32> to vector<256x32xf32>
    %140 = arith.subf %127, %139 : vector<256x32xf32>
    %cst_62 = arith.constant 9.99999996E-13 : f32
    %141 = vector.broadcast %cst_62 : f32 to vector<256x1xf32>
    %142 = arith.addf %138, %141 : vector<256x1xf32>
    %143 = math.rsqrt %142 : vector<256x1xf32>
    %144 = vector.broadcast %143 : vector<256x1xf32> to vector<256x32xf32>
    %145 = arith.mulf %140, %144 : vector<256x32xf32>
    %c0_63 = arith.constant 0 : index
    %c0_64 = arith.constant 0 : index
    %146 = vector.load %arg8[%c0_63, %c0_64] : memref<1x32xf32, #tpu.memory_space<vmem>>, vector<1x32xf32>
    %147 = vector.broadcast %146 : vector<1x32xf32> to vector<256x32xf32>
    %148 = arith.mulf %145, %147 : vector<256x32xf32>
    %c0_65 = arith.constant 0 : index
    %c0_66 = arith.constant 0 : index
    %149 = vector.load %arg9[%c0_65, %c0_66] : memref<1x32xf32, #tpu.memory_space<vmem>>, vector<1x32xf32>
    %150 = vector.broadcast %149 : vector<1x32xf32> to vector<256x32xf32>
    %151 = arith.addf %148, %150 : vector<256x32xf32>
    %c0_67 = arith.constant 0 : index
    %c0_68 = arith.constant 0 : index
    %152 = vector.load %arg10[%c0_67, %c0_68] : memref<32x5xf32, #tpu.memory_space<vmem>>, vector<32x5xf32>
    %cst_69 = arith.constant dense<0.000000e+00> : vector<256x5xf32>
    %153 = tpu.matmul %151, %152, %cst_69 {dimension_numbers = #tpu.dot_dimension_numbers<[1], [0], [0], [1], [0, 0, 1, 1], [], []>} : vector<256x32xf32>, vector<32x5xf32>, vector<256x5xf32> -> vector<256x5xf32>
    %c0_70 = arith.constant 0 : index
    %c0_71 = arith.constant 0 : index
    %154 = vector.load %arg11[%c0_70, %c0_71] : memref<1x5xf32, #tpu.memory_space<vmem>>, vector<1x5xf32>
    %155 = vector.broadcast %154 : vector<1x5xf32> to vector<256x5xf32>
    %156 = arith.addf %153, %155 : vector<256x5xf32>
    %cst_72 = arith.constant dense<0xFF800000> : vector<256xf32>
    %157 = vector.multi_reduction <maximumf>, %156, %cst_72 [1] : vector<256x5xf32> to vector<256xf32>
    %158 = vector.shape_cast %157 : vector<256xf32> to vector<256x1xf32>
    %159 = vector.broadcast %158 : vector<256x1xf32> to vector<256x5xf32>
    %160 = arith.subf %156, %159 : vector<256x5xf32>
    %161 = math.exp %160 : vector<256x5xf32>
    %cst_73 = arith.constant dense<0.000000e+00> : vector<256xf32>
    %162 = vector.multi_reduction <add>, %161, %cst_73 [1] : vector<256x5xf32> to vector<256xf32>
    %163 = vector.shape_cast %162 : vector<256xf32> to vector<256x1xf32>
    %164 = math.log %163 : vector<256x1xf32>
    %165 = arith.addf %158, %164 : vector<256x1xf32>
    %166 = vector.broadcast %165 : vector<256x1xf32> to vector<256x5xf32>
    %167 = arith.subf %156, %166 : vector<256x5xf32>
    %c0_74 = arith.constant 0 : index
    %c0_75 = arith.constant 0 : index
    %168 = vector.load %arg12[%c0_74, %c0_75] : memref<256x5xf32, #tpu.memory_space<vmem>>, vector<256x5xf32>
    tpu.vector_store %arg12[%c0_74, %c0_75], %167 {strides = array<i32>} : memref<256x5xf32, #tpu.memory_space<vmem>>, vector<256x5xf32>,
    return
  }
  func.func @transform_0(%arg0: i32) -> (i32, i32, i32) {
    %c0_i32 = arith.constant 0 : i32
    %c0_i32_0 = arith.constant 0 : i32
    %c0_i32_1 = arith.constant 0 : i32
    return %c0_i32, %arg0, %c0_i32_0 : i32, i32, i32
  }
  func.func @transform_1(%arg0: i32) -> (i32, i32) {
    %c0_i32 = arith.constant 0 : i32
    %c0_i32_0 = arith.constant 0 : i32
    %c0_i32_1 = arith.constant 0 : i32
    return %c0_i32, %c0_i32_0 : i32, i32
  }
  func.func @transform_2(%arg0: i32) -> (i32, i32) {
    %c0_i32 = arith.constant 0 : i32
    %c0_i32_0 = arith.constant 0 : i32
    %c0_i32_1 = arith.constant 0 : i32
    return %c0_i32, %c0_i32_0 : i32, i32
  }
  func.func @transform_3(%arg0: i32) -> (i32, i32) {
    %c0_i32 = arith.constant 0 : i32
    %c0_i32_0 = arith.constant 0 : i32
    %c0_i32_1 = arith.constant 0 : i32
    return %c0_i32, %c0_i32_0 : i32, i32
  }
  func.func @transform_4(%arg0: i32) -> (i32, i32) {
    %c0_i32 = arith.constant 0 : i32
    %c0_i32_0 = arith.constant 0 : i32
    %c0_i32_1 = arith.constant 0 : i32
    return %c0_i32, %c0_i32_0 : i32, i32
  }
  func.func @transform_5(%arg0: i32) -> (i32, i32) {
    %c0_i32 = arith.constant 0 : i32
    %c0_i32_0 = arith.constant 0 : i32
    %c0_i32_1 = arith.constant 0 : i32
    return %c0_i32, %c0_i32_0 : i32, i32
  }
  func.func @transform_6(%arg0: i32) -> (i32, i32) {
    %c0_i32 = arith.constant 0 : i32
    %c0_i32_0 = arith.constant 0 : i32
    %c0_i32_1 = arith.constant 0 : i32
    return %c0_i32, %c0_i32_0 : i32, i32
  }
  func.func @transform_7(%arg0: i32) -> (i32, i32) {
    %c0_i32 = arith.constant 0 : i32
    %c0_i32_0 = arith.constant 0 : i32
    %c0_i32_1 = arith.constant 0 : i32
    return %c0_i32, %c0_i32_0 : i32, i32
  }
  func.func @transform_8(%arg0: i32) -> (i32, i32) {
    %c0_i32 = arith.constant 0 : i32
    %c0_i32_0 = arith.constant 0 : i32
    %c0_i32_1 = arith.constant 0 : i32
    return %c0_i32, %c0_i32_0 : i32, i32
  }
  func.func @transform_9(%arg0: i32) -> (i32, i32) {
    %c0_i32 = arith.constant 0 : i32
    %c0_i32_0 = arith.constant 0 : i32
    %c0_i32_1 = arith.constant 0 : i32
    return %c0_i32, %c0_i32_0 : i32, i32
  }
  func.func @transform_10(%arg0: i32) -> (i32, i32) {
    %c0_i32 = arith.constant 0 : i32
    %c0_i32_0 = arith.constant 0 : i32
    %c0_i32_1 = arith.constant 0 : i32
    return %c0_i32, %c0_i32_0 : i32, i32
  }
  func.func @transform_11(%arg0: i32) -> (i32, i32) {
    %c0_i32 = arith.constant 0 : i32
    %c0_i32_0 = arith.constant 0 : i32
    return %arg0, %c0_i32 : i32, i32
  }
}

</mosaic_0001>

<bundles_post_ra>
// kernel: tpu_custom_call.1
= control target key start
LH: loop header
LB: loop body
LE: loop exit
PB: predicated region body
PF: predicated region fallthrough
CT: control target
= control target key end

     0   :  { %s11077_s17 = smov 0   ;;  %s11079_s18 = smov 0   ;;  %s15523_s0 = inlined_call_operand.vmem [shape: bf16[8,512,32], index: 0, kind: input, shape index: {}]   ;;  %s15524_s1 = inlined_call_operand.vmem [shape: bf16[64,8], index: 1, kind: input, shape index: {}]   ;;  %s15525_s2 = inlined_call_operand.vmem [shape: f32[1,8], index: 2, kind: input, shape index: {}]   ;;  %s15526_s3 = inlined_call_operand.vmem [shape: bf16[96,8], index: 3, kind: input, shape index: {}]   ;;  %s15527_s4 = inlined_call_operand.vmem [shape: f32[1,8], index: 4, kind: input, shape index: {}]   ;;  %s15528_s5 = inlined_call_operand.vmem [shape: f32[16,32], index: 5, kind: input, shape index: {}]   ;;  %s15529_s6 = inlined_call_operand.vmem [shape: f32[1,32], index: 6, kind: input, shape index: {}]   ;;  %s15530_s7 = inlined_call_operand.vmem [shape: f32[1,32], index: 7, kind: input, shape index: {}]   ;;  %s15531_s8 = inlined_call_operand.vmem [shape: f32[1,32], index: 8, kind: input, shape index: {}]   ;;  %s15532_s9 = inlined_call_operand.vmem [shape: f32[32,5], index: 9, kind: input, shape index: {}]   ;;  %s15533_s10 = inlined_call_operand.vmem [shape: f32[1,5], index: 10, kind: input, shape index: {}]   ;;  %s15534_s11 = inlined_call_operand.vmem [shape: f32[512,5], index: 11, kind: output, shape index: {}]  }
   0x1   :  { %s11081_s19 = smov 0  }
   0x2 LB: > { %s8791_s20 = sadd.s32 4294967295, %s11012_s19   ;;  %s11094_s21 = sadd.s32 1, %s11012_s19   ;;  %s11012_s19 = sphi %s11081_s19, %s15864_s19   ;;  %s11008_s18 = sphi %s11079_s18, %s15863_s18   ;;  %s11004_s17 = sphi %s11077_s17, %s15862_s17  }
   0x3   : > { %s25_s22 = ssub.s32 %s11012_s19, %s11094_s21  ;;  %s28_s23 = sadd.s32 1, %s11008_s18 }
   0x4   : > { %p26_p0 = scmp.eq.s32.totalorder %s25_s22, 0  ;;  %p35_p1 = scmp.ne.s32.totalorder %s11008_s18, %s11004_s17 }
   0x5   : > { %p36_p2 = scmp.eq.s32.totalorder %s11012_s19, 0  ;;  %p8794_p4 = scmp.ge.s32.totalorder %s11012_s19, 2 }
   0x6   : > { %s11103_s24 = scalar_select %p26_p0, %s11008_s18, %s28_s23  }
   0x7   : > { %p37_p3 = por %p36_p2, %p35_p1  ;;  %327 = sbr.rel (%p8794_p4) target bundleno = 82 (0x52), region = 56 }
   0xe   : > { %330 = sbr.rel (!%p37_p3) target bundleno = 82 (0x52), region = 60  ;;  %s332_s25 = sand.u32 (%p37_p3), 1, %s11008_s18  }
   0xf   : > { %s9444_s26 = sshll.u32 (%p37_p3), %s11012_s19, 7  ;;  %s8795_s27 = sshll.u32 (%p37_p3), %s332_s25, 10 }
  0x10   : > { %s11111_s30 = scalar_lea.vmem (%p37_p3), %s15523_s0, %s9444_s26  ;;  %s11116_s12 = scalar_lea.vmem (%p37_p3), [#allocation2], %s8795_s27 }
  0x11   : > { %v353_v0 = vld [vmem:[%s11111_s30] sm:$0xff] (%p37_p3)   ;;  %v357_v1 = vld [vmem:[%s11111_s30 + $0x8] sm:$0xff] (%p37_p3)   ;;  %v361_v2 = vld [vmem:[%s11111_s30 + $0x10] sm:$0xff] (%p37_p3)  }
  0x12   : > { %354 = vst [vmem:[%s11116_s12] sm:$0xff] (%p37_p3), %v353_v0   ;;  %358 = vst [vmem:[%s11116_s12 + $0x8] sm:$0xff] (%p37_p3), %v357_v1   ;;  %v365_v3 = vld [vmem:[%s11111_s30 + $0x18] sm:$0xff] (%p37_p3)   ;;  %v369_v4 = vld [vmem:[%s11111_s30 + $0x20] sm:$0xff] (%p37_p3)  }
  0x13   : > { %362 = vst [vmem:[%s11116_s12 + $0x10] sm:$0xff] (%p37_p3), %v361_v2   ;;  %v373_v5 = vld [vmem:[%s11111_s30 + $0x28] sm:$0xff] (%p37_p3)   ;;  %366 = vst [vmem:[%s11116_s12 + $0x18] sm:$0xff] (%p37_p3), %v365_v3   ;;  %v377_v6 = vld [vmem:[%s11111_s30 + $0x30] sm:$0xff] (%p37_p3)  }
  0x14   : > { %370 = vst [vmem:[%s11116_s12 + $0x20] sm:$0xff] (%p37_p3), %v369_v4   ;;  %374 = vst [vmem:[%s11116_s12 + $0x28] sm:$0xff] (%p37_p3), %v373_v5   ;;  %v381_v7 = vld [vmem:[%s11111_s30 + $0x38] sm:$0xff] (%p37_p3)   ;;  %v385_v8 = vld [vmem:[%s11111_s30 + $0x40] sm:$0xff] (%p37_p3)  }
  0x15   : > { %378 = vst [vmem:[%s11116_s12 + $0x30] sm:$0xff] %v377_v6   ;;  %382 = vst [vmem:[%s11116_s12 + $0x38] sm:$0xff] %v381_v7   ;;  %v389_v9 = vld [vmem:[%s11111_s30 + $0x48] sm:$0xff]   ;;  %v393_v10 = vld [vmem:[%s11111_s30 + $0x50] sm:$0xff]  }
  0x16   : > { %386 = vst [vmem:[%s11116_s12 + $0x40] sm:$0xff] %v385_v8   ;;  %v397_v11 = vld [vmem:[%s11111_s30 + $0x58] sm:$0xff]   ;;  %390 = vst [vmem:[%s11116_s12 + $0x48] sm:$0xff] %v389_v9   ;;  %v401_v12 = vld [vmem:[%s11111_s30 + $0x60] sm:$0xff]  }
  0x17   : > { %394 = vst [vmem:[%s11116_s12 + $0x50] sm:$0xff] %v393_v10   ;;  %398 = vst [vmem:[%s11116_s12 + $0x58] sm:$0xff] %v397_v11   ;;  %v405_v13 = vld [vmem:[%s11111_s30 + $0x68] sm:$0xff]   ;;  %v409_v14 = vld [vmem:[%s11111_s30 + $0x70] sm:$0xff]  }
  0x18   : > { %402 = vst [vmem:[%s11116_s12 + $0x60] sm:$0xff] %v401_v12   ;;  %406 = vst [vmem:[%s11116_s12 + $0x68] sm:$0xff] %v405_v13   ;;  %v413_v15 = vld [vmem:[%s11111_s30 + $0x78] sm:$0xff]   ;;  %v417_v16 = vld [vmem:[%s11111_s30 + $0x100] sm:$0xff]  }
  0x19   : > { %410 = vst [vmem:[%s11116_s12 + $0x70] sm:$0xff] %v409_v14   ;;  %v421_v17 = vld [vmem:[%s11111_s30 + $0x108] sm:$0xff]   ;;  %414 = vst [vmem:[%s11116_s12 + $0x78] sm:$0xff] %v413_v15   ;;  %v425_v18 = vld [vmem:[%s11111_s30 + $0x110] sm:$0xff]  }
  0x1a   : > { %418 = vst [vmem:[%s11116_s12 + $0x80] sm:$0xff] %v417_v16   ;;  %422 = vst [vmem:[%s11116_s12 + $0x88] sm:$0xff] %v421_v17   ;;  %v429_v19 = vld [vmem:[%s11111_s30 + $0x118] sm:$0xff]   ;;  %v433_v20 = vld [vmem:[%s11111_s30 + $0x120] sm:$0xff]  }
  0x1b   : > { %426 = vst [vmem:[%s11116_s12 + $0x90] sm:$0xff] %v425_v18   ;;  %430 = vst [vmem:[%s11116_s12 + $0x98] sm:$0xff] %v429_v19   ;;  %v437_v21 = vld [vmem:[%s11111_s30 + $0x128] sm:$0xff]   ;;  %v441_v22 = vld [vmem:[%s11111_s30 + $0x130] sm:$0xff]  }
  0x1c   : > { %434 = vst [vmem:[%s11116_s12 + $0xa0] sm:$0xff] %v433_v20   ;;  %v445_v23 = vld [vmem:[%s11111_s30 + $0x138] sm:$0xff]   ;;  %438 = vst [vmem:[%s11116_s12 + $0xa8] sm:$0xff] %v437_v21   ;;  %v449_v24 = vld [vmem:[%s11111_s30 + $0x140] sm:$0xff]  }
  0x1d   : > { %442 = vst [vmem:[%s11116_s12 + $0xb0] sm:$0xff] %v441_v22   ;;  %446 = vst [vmem:[%s11116_s12 + $0xb8] sm:$0xff] %v445_v23   ;;  %v453_v25 = vld [vmem:[%s11111_s30 + $0x148] sm:$0xff]   ;;  %v457_v26 = vld [vmem:[%s11111_s30 + $0x150] sm:$0xff]  }
  0x1e   : > { %450 = vst [vmem:[%s11116_s12 + $0xc0] sm:$0xff] %v449_v24   ;;  %454 = vst [vmem:[%s11116_s12 + $0xc8] sm:$0xff] %v453_v25   ;;  %v461_v27 = vld [vmem:[%s11111_s30 + $0x158] sm:$0xff]   ;;  %v465_v28 = vld [vmem:[%s11111_s30 + $0x160] sm:$0xff]  }
  0x1f   : > { %458 = vst [vmem:[%s11116_s12 + $0xd0] sm:$0xff] %v457_v26   ;;  %v469_v29 = vld [vmem:[%s11111_s30 + $0x168] sm:$0xff]   ;;  %462 = vst [vmem:[%s11116_s12 + $0xd8] sm:$0xff] %v461_v27   ;;  %v473_v30 = vld [vmem:[%s11111_s30 + $0x170] sm:$0xff]  }
  0x20   : > { %466 = vst [vmem:[%s11116_s12 + $0xe0] sm:$0xff] %v465_v28   ;;  %470 = vst [vmem:[%s11116_s12 + $0xe8] sm:$0xff] %v469_v29   ;;  %v477_v31 = vld [vmem:[%s11111_s30 + $0x178] sm:$0xff]   ;;  %v481_v32 = vld [vmem:[%s11111_s30 + $0x200] sm:$0xff]  }
  0x21   : > { %474 = vst [vmem:[%s11116_s12 + $0xf0] sm:$0xff] %v473_v30   ;;  %478 = vst [vmem:[%s11116_s12 + $0xf8] sm:$0xff] %v477_v31   ;;  %v485_v33 = vld [vmem:[%s11111_s30 + $0x208] sm:$0xff]   ;;  %v489_v34 = vld [vmem:[%s11111_s30 + $0x210] sm:$0xff]  }
  0x22   : > { %482 = vst [vmem:[%s11116_s12 + $0x100] sm:$0xff] %v481_v32   ;;  %v493_v35 = vld [vmem:[%s11111_s30 + $0x218] sm:$0xff]   ;;  %486 = vst [vmem:[%s11116_s12 + $0x108] sm:$0xff] %v485_v33   ;;  %v497_v36 = vld [vmem:[%s11111_s30 + $0x220] sm:$0xff]  }
  0x23   : > { %490 = vst [vmem:[%s11116_s12 + $0x110] sm:$0xff] %v489_v34   ;;  %494 = vst [vmem:[%s11116_s12 + $0x118] sm:$0xff] %v493_v35   ;;  %v501_v37 = vld [vmem:[%s11111_s30 + $0x228] sm:$0xff]   ;;  %v505_v38 = vld [vmem:[%s11111_s30 + $0x230] sm:$0xff]  }
  0x24   : > { %498 = vst [vmem:[%s11116_s12 + $0x120] sm:$0xff] %v497_v36   ;;  %502 = vst [vmem:[%s11116_s12 + $0x128] sm:$0xff] %v501_v37   ;;  %v509_v39 = vld [vmem:[%s11111_s30 + $0x238] sm:$0xff]   ;;  %v513_v40 = vld [vmem:[%s11111_s30 + $0x240] sm:$0xff]  }
  0x25   : > { %506 = vst [vmem:[%s11116_s12 + $0x130] sm:$0xff] %v505_v38   ;;  %v517_v41 = vld [vmem:[%s11111_s30 + $0x248] sm:$0xff]   ;;  %510 = vst [vmem:[%s11116_s12 + $0x138] sm:$0xff] %v509_v39   ;;  %v521_v42 = vld [vmem:[%s11111_s30 + $0x250] sm:$0xff]  }
  0x26   : > { %514 = vst [vmem:[%s11116_s12 + $0x140] sm:$0xff] %v513_v40   ;;  %518 = vst [vmem:[%s11116_s12 + $0x148] sm:$0xff] %v517_v41   ;;  %v525_v43 = vld [vmem:[%s11111_s30 + $0x258] sm:$0xff]   ;;  %v529_v44 = vld [vmem:[%s11111_s30 + $0x260] sm:$0xff]  }
  0x27   : > { %522 = vst [vmem:[%s11116_s12 + $0x150] sm:$0xff] %v521_v42   ;;  %526 = vst [vmem:[%s11116_s12 + $0x158] sm:$0xff] %v525_v43   ;;  %v533_v45 = vld [vmem:[%s11111_s30 + $0x268] sm:$0xff]   ;;  %v537_v46 = vld [vmem:[%s11111_s30 + $0x270] sm:$0xff]  }
  0x28   : > { %530 = vst [vmem:[%s11116_s12 + $0x160] sm:$0xff] %v529_v44   ;;  %v541_v47 = vld [vmem:[%s11111_s30 + $0x278] sm:$0xff]   ;;  %534 = vst [vmem:[%s11116_s12 + $0x168] sm:$0xff] %v533_v45   ;;  %v545_v48 = vld [vmem:[%s11111_s30 + $0x300] sm:$0xff]  }
  0x29   : > { %538 = vst [vmem:[%s11116_s12 + $0x170] sm:$0xff] %v537_v46   ;;  %542 = vst [vmem:[%s11116_s12 + $0x178] sm:$0xff] %v541_v47   ;;  %v549_v49 = vld [vmem:[%s11111_s30 + $0x308] sm:$0xff]   ;;  %v553_v50 = vld [vmem:[%s11111_s30 + $0x310] sm:$0xff]  }
  0x2a   : > { %546 = vst [vmem:[%s11116_s12 + $0x180] sm:$0xff] %v545_v48   ;;  %550 = vst [vmem:[%s11116_s12 + $0x188] sm:$0xff] %v549_v49   ;;  %v557_v51 = vld [vmem:[%s11111_s30 + $0x318] sm:$0xff]   ;;  %v561_v52 = vld [vmem:[%s11111_s30 + $0x320] sm:$0xff]  }
  0x2b   : > { %554 = vst [vmem:[%s11116_s12 + $0x190] sm:$0xff] %v553_v50   ;;  %v565_v53 = vld [vmem:[%s11111_s30 + $0x328] sm:$0xff]   ;;  %558 = vst [vmem:[%s11116_s12 + $0x198] sm:$0xff] %v557_v51   ;;  %v569_v54 = vld [vmem:[%s11111_s30 + $0x330] sm:$0xff]  }
  0x2c   : > { %562 = vst [vmem:[%s11116_s12 + $0x1a0] sm:$0xff] %v561_v52   ;;  %566 = vst [vmem:[%s11116_s12 + $0x1a8] sm:$0xff] %v565_v53   ;;  %v573_v55 = vld [vmem:[%s11111_s30 + $0x338] sm:$0xff]   ;;  %v577_v56 = vld [vmem:[%s11111_s30 + $0x340] sm:$0xff]  }
  0x2d   : > { %570 = vst [vmem:[%s11116_s12 + $0x1b0] sm:$0xff] %v569_v54   ;;  %574 = vst [vmem:[%s11116_s12 + $0x1b8] sm:$0xff] %v573_v55   ;;  %v581_v57 = vld [vmem:[%s11111_s30 + $0x348] sm:$0xff]   ;;  %v585_v58 = vld [vmem:[%s11111_s30 + $0x350] sm:$0xff]  }
  0x2e   : > { %578 = vst [vmem:[%s11116_s12 + $0x1c0] sm:$0xff] %v577_v56   ;;  %v589_v59 = vld [vmem:[%s11111_s30 + $0x358] sm:$0xff]   ;;  %582 = vst [vmem:[%s11116_s12 + $0x1c8] sm:$0xff] %v581_v57   ;;  %v593_v60 = vld [vmem:[%s11111_s30 + $0x360] sm:$0xff]  }
  0x2f   : > { %586 = vst [vmem:[%s11116_s12 + $0x1d0] sm:$0xff] %v585_v58   ;;  %590 = vst [vmem:[%s11116_s12 + $0x1d8] sm:$0xff] %v589_v59   ;;  %v597_v61 = vld [vmem:[%s11111_s30 + $0x368] sm:$0xff]   ;;  %v601_v62 = vld [vmem:[%s11111_s30 + $0x370] sm:$0xff]  }
  0x30   : > { %594 = vst [vmem:[%s11116_s12 + $0x1e0] sm:$0xff] %v593_v60   ;;  %598 = vst [vmem:[%s11116_s12 + $0x1e8] sm:$0xff] %v597_v61   ;;  %v605_v63 = vld [vmem:[%s11111_s30 + $0x378] sm:$0xff]   ;;  %v609_v0 = vld [vmem:[%s11111_s30 + $0x400] sm:$0xff]  }
  0x31   : > { %602 = vst [vmem:[%s11116_s12 + $0x1f0] sm:$0xff] %v601_v62   ;;  %v613_v1 = vld [vmem:[%s11111_s30 + $0x408] sm:$0xff]   ;;  %606 = vst [vmem:[%s11116_s12 + $0x1f8] sm:$0xff] %v605_v63   ;;  %v617_v2 = vld [vmem:[%s11111_s30 + $0x410] sm:$0xff]  }
  0x32   : > { %610 = vst [vmem:[%s11116_s12 + $0x200] sm:$0xff] %v609_v0   ;;  %614 = vst [vmem:[%s11116_s12 + $0x208] sm:$0xff] %v613_v1   ;;  %v621_v3 = vld [vmem:[%s11111_s30 + $0x418] sm:$0xff]   ;;  %v625_v4 = vld [vmem:[%s11111_s30 + $0x420] sm:$0xff]  }
  0x33   : > { %618 = vst [vmem:[%s11116_s12 + $0x210] sm:$0xff] %v617_v2   ;;  %622 = vst [vmem:[%s11116_s12 + $0x218] sm:$0xff] %v621_v3   ;;  %v629_v5 = vld [vmem:[%s11111_s30 + $0x428] sm:$0xff]   ;;  %v633_v6 = vld [vmem:[%s11111_s30 + $0x430] sm:$0xff]  }
  0x34   : > { %626 = vst [vmem:[%s11116_s12 + $0x220] sm:$0xff] %v625_v4   ;;  %v637_v7 = vld [vmem:[%s11111_s30 + $0x438] sm:$0xff]   ;;  %630 = vst [vmem:[%s11116_s12 + $0x228] sm:$0xff] %v629_v5   ;;  %v641_v8 = vld [vmem:[%s11111_s30 + $0x440] sm:$0xff]  }
  0x35   : > { %634 = vst [vmem:[%s11116_s12 + $0x230] sm:$0xff] %v633_v6   ;;  %638 = vst [vmem:[%s11116_s12 + $0x238] sm:$0xff] %v637_v7   ;;  %v645_v9 = vld [vmem:[%s11111_s30 + $0x448] sm:$0xff]   ;;  %v649_v10 = vld [vmem:[%s11111_s30 + $0x450] sm:$0xff]  }
  0x36   : > { %642 = vst [vmem:[%s11116_s12 + $0x240] sm:$0xff] %v641_v8   ;;  %646 = vst [vmem:[%s11116_s12 + $0x248] sm:$0xff] %v645_v9   ;;  %v653_v11 = vld [vmem:[%s11111_s30 + $0x458] sm:$0xff]   ;;  %v657_v12 = vld [vmem:[%s11111_s30 + $0x460] sm:$0xff]  }
  0x37   : > { %650 = vst [vmem:[%s11116_s12 + $0x250] sm:$0xff] %v649_v10   ;;  %v661_v13 = vld [vmem:[%s11111_s30 + $0x468] sm:$0xff]   ;;  %654 = vst [vmem:[%s11116_s12 + $0x258] sm:$0xff] %v653_v11   ;;  %v665_v14 = vld [vmem:[%s11111_s30 + $0x470] sm:$0xff]  }
  0x38   : > { %658 = vst [vmem:[%s11116_s12 + $0x260] sm:$0xff] %v657_v12   ;;  %662 = vst [vmem:[%s11116_s12 + $0x268] sm:$0xff] %v661_v13   ;;  %v669_v15 = vld [vmem:[%s11111_s30 + $0x478] sm:$0xff]   ;;  %v673_v16 = vld [vmem:[%s11111_s30 + $0x500] sm:$0xff]  }
  0x39   : > { %666 = vst [vmem:[%s11116_s12 + $0x270] sm:$0xff] %v665_v14   ;;  %670 = vst [vmem:[%s11116_s12 + $0x278] sm:$0xff] %v669_v15   ;;  %v677_v17 = vld [vmem:[%s11111_s30 + $0x508] sm:$0xff]   ;;  %v681_v18 = vld [vmem:[%s11111_s30 + $0x510] sm:$0xff]  }
  0x3a   : > { %674 = vst [vmem:[%s11116_s12 + $0x280] sm:$0xff] %v673_v16   ;;  %v685_v19 = vld [vmem:[%s11111_s30 + $0x518] sm:$0xff]   ;;  %678 = vst [vmem:[%s11116_s12 + $0x288] sm:$0xff] %v677_v17   ;;  %v689_v20 = vld [vmem:[%s11111_s30 + $0x520] sm:$0xff]  }
  0x3b   : > { %682 = vst [vmem:[%s11116_s12 + $0x290] sm:$0xff] %v681_v18   ;;  %686 = vst [vmem:[%s11116_s12 + $0x298] sm:$0xff] %v685_v19   ;;  %v693_v21 = vld [vmem:[%s11111_s30 + $0x528] sm:$0xff]   ;;  %v697_v22 = vld [vmem:[%s11111_s30 + $0x530] sm:$0xff]  }
  0x3c   : > { %690 = vst [vmem:[%s11116_s12 + $0x2a0] sm:$0xff] %v689_v20   ;;  %694 = vst [vmem:[%s11116_s12 + $0x2a8] sm:$0xff] %v693_v21   ;;  %v701_v23 = vld [vmem:[%s11111_s30 + $0x538] sm:$0xff]   ;;  %v705_v24 = vld [vmem:[%s11111_s30 + $0x540] sm:$0xff]  }
  0x3d   : > { %698 = vst [vmem:[%s11116_s12 + $0x2b0] sm:$0xff] %v697_v22   ;;  %v709_v25 = vld [vmem:[%s11111_s30 + $0x548] sm:$0xff]   ;;  %702 = vst [vmem:[%s11116_s12 + $0x2b8] sm:$0xff] %v701_v23   ;;  %v713_v26 = vld [vmem:[%s11111_s30 + $0x550] sm:$0xff]  }
  0x3e   : > { %706 = vst [vmem:[%s11116_s12 + $0x2c0] sm:$0xff] %v705_v24   ;;  %710 = vst [vmem:[%s11116_s12 + $0x2c8] sm:$0xff] %v709_v25   ;;  %v717_v27 = vld [vmem:[%s11111_s30 + $0x558] sm:$0xff]   ;;  %v721_v28 = vld [vmem:[%s11111_s30 + $0x560] sm:$0xff]  }
  0x3f   : > { %714 = vst [vmem:[%s11116_s12 + $0x2d0] sm:$0xff] %v713_v26   ;;  %718 = vst [vmem:[%s11116_s12 + $0x2d8] sm:$0xff] %v717_v27   ;;  %v725_v29 = vld [vmem:[%s11111_s30 + $0x568] sm:$0xff]   ;;  %v729_v30 = vld [vmem:[%s11111_s30 + $0x570] sm:$0xff]  }
  0x40   : > { %722 = vst [vmem:[%s11116_s12 + $0x2e0] sm:$0xff] %v721_v28   ;;  %v733_v31 = vld [vmem:[%s11111_s30 + $0x578] sm:$0xff]   ;;  %726 = vst [vmem:[%s11116_s12 + $0x2e8] sm:$0xff] %v725_v29   ;;  %v737_v32 = vld [vmem:[%s11111_s30 + $0x600] sm:$0xff]  }
  0x41   : > { %730 = vst [vmem:[%s11116_s12 + $0x2f0] sm:$0xff] %v729_v30   ;;  %734 = vst [vmem:[%s11116_s12 + $0x2f8] sm:$0xff] %v733_v31   ;;  %v741_v33 = vld [vmem:[%s11111_s30 + $0x608] sm:$0xff]   ;;  %v745_v34 = vld [vmem:[%s11111_s30 + $0x610] sm:$0xff]  }
  0x42   : > { %738 = vst [vmem:[%s11116_s12 + $0x300] sm:$0xff] %v737_v32   ;;  %742 = vst [vmem:[%s11116_s12 + $0x308] sm:$0xff] %v741_v33   ;;  %v749_v35 = vld [vmem:[%s11111_s30 + $0x618] sm:$0xff]   ;;  %v753_v36 = vld [vmem:[%s11111_s30 + $0x620] sm:$0xff]  }
  0x43   : > { %746 = vst [vmem:[%s11116_s12 + $0x310] sm:$0xff] %v745_v34   ;;  %v757_v37 = vld [vmem:[%s11111_s30 + $0x628] sm:$0xff]   ;;  %750 = vst [vmem:[%s11116_s12 + $0x318] sm:$0xff] %v749_v35   ;;  %v761_v38 = vld [vmem:[%s11111_s30 + $0x630] sm:$0xff]  }
  0x44   : > { %754 = vst [vmem:[%s11116_s12 + $0x320] sm:$0xff] %v753_v36   ;;  %758 = vst [vmem:[%s11116_s12 + $0x328] sm:$0xff] %v757_v37   ;;  %v765_v39 = vld [vmem:[%s11111_s30 + $0x638] sm:$0xff]   ;;  %v769_v40 = vld [vmem:[%s11111_s30 + $0x640] sm:$0xff]  }
  0x45   : > { %762 = vst [vmem:[%s11116_s12 + $0x330] sm:$0xff] %v761_v38   ;;  %766 = vst [vmem:[%s11116_s12 + $0x338] sm:$0xff] %v765_v39   ;;  %v773_v41 = vld [vmem:[%s11111_s30 + $0x648] sm:$0xff]   ;;  %v777_v42 = vld [vmem:[%s11111_s30 + $0x650] sm:$0xff]  }
  0x46   : > { %770 = vst [vmem:[%s11116_s12 + $0x340] sm:$0xff] %v769_v40   ;;  %v781_v43 = vld [vmem:[%s11111_s30 + $0x658] sm:$0xff]   ;;  %774 = vst [vmem:[%s11116_s12 + $0x348] sm:$0xff] %v773_v41   ;;  %v785_v44 = vld [vmem:[%s11111_s30 + $0x660] sm:$0xff]  }
  0x47   : > { %778 = vst [vmem:[%s11116_s12 + $0x350] sm:$0xff] %v777_v42   ;;  %782 = vst [vmem:[%s11116_s12 + $0x358] sm:$0xff] %v781_v43   ;;  %v789_v45 = vld [vmem:[%s11111_s30 + $0x668] sm:$0xff]   ;;  %v793_v46 = vld [vmem:[%s11111_s30 + $0x670] sm:$0xff]  }
  0x48   : > { %786 = vst [vmem:[%s11116_s12 + $0x360] sm:$0xff] %v785_v44   ;;  %790 = vst [vmem:[%s11116_s12 + $0x368] sm:$0xff] %v789_v45   ;;  %v797_v47 = vld [vmem:[%s11111_s30 + $0x678] sm:$0xff]   ;;  %v801_v48 = vld [vmem:[%s11111_s30 + $0x700] sm:$0xff]  }
  0x49   : > { %794 = vst [vmem:[%s11116_s12 + $0x370] sm:$0xff] %v793_v46   ;;  %v805_v49 = vld [vmem:[%s11111_s30 + $0x708] sm:$0xff]   ;;  %798 = vst [vmem:[%s11116_s12 + $0x378] sm:$0xff] %v797_v47   ;;  %v809_v50 = vld [vmem:[%s11111_s30 + $0x710] sm:$0xff]  }
  0x4a   : > { %802 = vst [vmem:[%s11116_s12 + $0x380] sm:$0xff] %v801_v48   ;;  %806 = vst [vmem:[%s11116_s12 + $0x388] sm:$0xff] %v805_v49   ;;  %v813_v51 = vld [vmem:[%s11111_s30 + $0x718] sm:$0xff]   ;;  %v817_v52 = vld [vmem:[%s11111_s30 + $0x720] sm:$0xff]  }
  0x4b   : > { %810 = vst [vmem:[%s11116_s12 + $0x390] sm:$0xff] %v809_v50   ;;  %814 = vst [vmem:[%s11116_s12 + $0x398] sm:$0xff] %v813_v51   ;;  %v821_v53 = vld [vmem:[%s11111_s30 + $0x728] sm:$0xff]   ;;  %v825_v54 = vld [vmem:[%s11111_s30 + $0x730] sm:$0xff]  }
  0x4c   : > { %818 = vst [vmem:[%s11116_s12 + $0x3a0] sm:$0xff] %v817_v52   ;;  %v829_v55 = vld [vmem:[%s11111_s30 + $0x738] sm:$0xff]   ;;  %822 = vst [vmem:[%s11116_s12 + $0x3a8] sm:$0xff] %v821_v53   ;;  %v833_v56 = vld [vmem:[%s11111_s30 + $0x740] sm:$0xff]  }
  0x4d   : > { %826 = vst [vmem:[%s11116_s12 + $0x3b0] sm:$0xff] %v825_v54   ;;  %830 = vst [vmem:[%s11116_s12 + $0x3b8] sm:$0xff] %v829_v55   ;;  %v837_v57 = vld [vmem:[%s11111_s30 + $0x748] sm:$0xff]   ;;  %v841_v58 = vld [vmem:[%s11111_s30 + $0x750] sm:$0xff]  }
  0x4e   : > { %834 = vst [vmem:[%s11116_s12 + $0x3c0] sm:$0xff] %v833_v56   ;;  %838 = vst [vmem:[%s11116_s12 + $0x3c8] sm:$0xff] %v837_v57   ;;  %v845_v59 = vld [vmem:[%s11111_s30 + $0x758] sm:$0xff]   ;;  %v849_v60 = vld [vmem:[%s11111_s30 + $0x760] sm:$0xff]  }
  0x4f   : > { %842 = vst [vmem:[%s11116_s12 + $0x3d0] sm:$0xff] %v841_v58   ;;  %v853_v61 = vld [vmem:[%s11111_s30 + $0x768] sm:$0xff]   ;;  %846 = vst [vmem:[%s11116_s12 + $0x3d8] sm:$0xff] %v845_v59   ;;  %v857_v62 = vld [vmem:[%s11111_s30 + $0x770] sm:$0xff]  }
  0x50   : > { %850 = vst [vmem:[%s11116_s12 + $0x3e0] sm:$0xff] %v849_v60   ;;  %854 = vst [vmem:[%s11116_s12 + $0x3e8] sm:$0xff] %v853_v61   ;;  %v861_v63 = vld [vmem:[%s11111_s30 + $0x778] sm:$0xff]  }
  0x51   : > { %858 = vst [vmem:[%s11116_s12 + $0x3f0] sm:$0xff] %v857_v62   ;;  %862 = vst [vmem:[%s11116_s12 + $0x3f8] sm:$0xff] %v861_v63  }
  0x52 PF: > { %p8798_p5 = scmp.ge.s32.totalorder %s11012_s19, 1  ;;  %p1398_p6 = scmp.lt.s32.totalorder %s11012_s19, 3 }
  0x54   : > { %p1399_p7 = pnand %p8798_p5, %p1398_p6 }
  0x56   : > { %1402 = sbr.rel (%p1399_p7) target bundleno = 2077 (0x81d), region = 101 }
  0x5d   : > { %s1405_s13 = sand.u32 1, %s11004_s17   ;;  %v11377_v0 = vld [vmem:[%s15524_s1] sm:$0xff]   ;;  %v11382_v1 = vld [vmem:[%s15524_s1 + $0x8] sm:$0xff]   ;;  %s11014_s17 = smov 32   ;;  %v11486_v32 = vld [vmem:[%s15524_s1 + $0x10] sm:$0xff]   ;;  %vm1916_vm0 = vcmask 261120  }
  0x5e   : > { %s8799_s14 = sshll.u32 %s1405_s13, 10  ;;  %10451 = vmatprep.subr.bf16.mxu1 %v11377_v0  ;;  %9787 = vmatprep.subr.bf16.mxu0 %v11377_v0  ;;  %v11499_v35 = vld [vmem:[%s15524_s1 + $0x18] sm:$0xff]   ;;  %vm1995_vm1 = vcmask 523264   ;;  %s11015_s22 = smov 64   ;;  %vm4842_vm2 = vcmask 785408   ;;  %vm6801_vm3 = vcmask 64512  }
  0x5f   : > { %s11384_s25 = scalar_lea.vmem [#allocation2], %s8799_s14  ;;  %10455 = vmatpush3.bf16.msra.mxu1 %v11377_v0  ;;  %9788 = vmatpush3.bf16.msra.mxu0 %v11377_v0  ;;  %s11016_s23 = smov 8   ;;  %vm6843_vm4 = vcmask 130048   ;;  %vm8280_vm5 = vcmask 39936  }
  0x60   : > { %v10486_v2 = vld [vmem:[%s11384_s25 + $0xc0] sm:$0xff]   ;;  %v10488_v4 = vld [vmem:[%s11384_s25 + $0xc8] sm:$0xff]   ;;  %10452 = vmatprep.subr.bf16.mxu1 %v11382_v1  ;;  %9789 = vmatprep.subr.bf16.mxu0 %v11382_v1  ;;  %v10490_v6 = vld [vmem:[%s11384_s25 + $0xd0] sm:$0xff]   ;;  %s8800_s27 = sshll.u32 %s8791_s20, 5 }
  0x61   : > { %v10487_v3 = vld [vmem:[%s11384_s25 + $0x80] sm:$0xff]   ;;  %1900 = vrot.lane.b32.xlu0 %v10486_v2, %s11014_s17  ;;  %v10489_v5 = vld [vmem:[%s11384_s25 + $0x88] sm:$0xff]   ;;  %v10491_v7 = vld [vmem:[%s11384_s25 + $0xd8] sm:$0xff]   ;;  %p1446_p8 = scmp.lt.s32.totalorder %s8800_s27, 63 }
  0x62   : > { %1884 = vrot.lane.b32.xlu1 %v10487_v3, %s11014_s17  ;;  %v11406_v8 = vld [vmem:[%s11384_s25 + $0x90] sm:$0xff]   ;;  %v10493_v9 = vld [vmem:[%s11384_s25 + $0x98] sm:$0xff]   ;;  %v10494_v10 = vld [vmem:[%s11384_s25 + $0xe0] sm:$0xff]  }
  0x63   : > { %10456 = vmatpush3.bf16.msra.mxu1 %v11382_v1  ;;  %9790 = vmatpush3.bf16.msra.mxu0 %v11382_v1  ;;  %v10495_v11 = vld [vmem:[%s11384_s25 + $0xe8] sm:$0xff]   ;;  %v11417_v12 = vld [vmem:[%s11384_s25 + $0xa0] sm:$0xff]   ;;  %v10498_v14 = vld [vmem:[%s11384_s25 + $0xf0] sm:$0xff]   ;;  %s15866_s27 = smov (!%p1446_p8, %s8800_s27), 63 }
  0x64   : > { %v10497_v13 = vld [vmem:[%s11384_s25 + $0xa8] sm:$0xff]   ;;  %v10499_v15 = vld [vmem:[%s11384_s25 + $0xf8] sm:$0xff]   ;;  %v11428_v16 = vld [vmem:[%s11384_s25 + $0xb0] sm:$0xff]   ;;  %10453 = vmatprep.subr.bf16.mxu1 %v11486_v32  ;;  %9791 = vmatprep.subr.bf16.mxu0 %v11486_v32  ;;  %s8801_s28 = sshll.u32 %s15866_s27, 3 }
  0x65   : > { %1902 = vrot.lane.b32.xlu0 %v10488_v4, %s11014_s17  ;;  %v10501_v17 = vld [vmem:[%s11384_s25 + $0xb8] sm:$0xff]   ;;  %v11435_v18 = vld [vmem:[%s11384_s25 + $0x100] sm:$0xff]   ;;  %v11439_v19 = vld [vmem:[%s11384_s25 + $0x108] sm:$0xff]   ;;  %s15384_s29 = scalar_lea.vmem %s15534_s11, %s8801_s28 }
  0x66   : > { %1886 = vrot.lane.b32.xlu1 %v10489_v5, %s11014_s17  ;;  %v10504_v20 = vld [vmem:[%s11384_s25 + $0x180] sm:$0xff]   ;;  %v10505_v21 = vld [vmem:[%s11384_s25 + $0x188] sm:$0xff]   ;;  %v11449_v22 = vld [vmem:[%s11384_s25 + $0x110] sm:$0xff]  }
  0x67   : > { %v11453_v23 = vld [vmem:[%s11384_s25 + $0x118] sm:$0xff]   ;;  %v10508_v24 = vld [vmem:[%s11384_s25 + $0x190] sm:$0xff]   ;;  %v11463_v26 = vld [vmem:[%s11384_s25 + $0x120] sm:$0xff]   ;;  %10457 = vmatpush3.bf16.msra.mxu1 %v11486_v32  ;;  %9792 = vmatpush3.bf16.msra.mxu0 %v11486_v32 }
  0x68   : > { %v10509_v25 = vld [vmem:[%s11384_s25 + $0x198] sm:$0xff]   ;;  %v11467_v27 = vld [vmem:[%s11384_s25 + $0x128] sm:$0xff]   ;;  %v10512_v28 = vld [vmem:[%s11384_s25 + $0x1a0] sm:$0xff]   ;;  %10454 = vmatprep.subr.bf16.mxu1 %v11499_v35  ;;  %9793 = vmatprep.subr.bf16.mxu0 %v11499_v35 }
  0x69   : > { %1904 = vrot.lane.b32.xlu0 %v10490_v6, %s11014_s17  ;;  %v10513_v29 = vld [vmem:[%s11384_s25 + $0x1a8] sm:$0xff]   ;;  %v11477_v30 = vld [vmem:[%s11384_s25 + $0x130] sm:$0xff]   ;;  %v11481_v31 = vld [vmem:[%s11384_s25 + $0x138] sm:$0xff]  }
  0x6a   : > { %1906 = vrot.lane.b32.xlu1 %v10491_v7, %s11014_s17  ;;  %v10516_v33 = vld [vmem:[%s11384_s25 + $0x1b0] sm:$0xff]   ;;  %v10517_v34 = vld [vmem:[%s11384_s25 + $0x1b8] sm:$0xff]   ;;  %v11507_v36 = vld [vmem:[%s11384_s25 + $0x140] sm:$0xff]  }
  0x6b   : > { %v11511_v37 = vld [vmem:[%s11384_s25 + $0x148] sm:$0xff]   ;;  %10458 = vmatpush3.bf16.msra.mxu1 %v11499_v35  ;;  %9794 = vmatpush3.bf16.msra.mxu0 %v11499_v35  ;;  %v10520_v38 = vld [vmem:[%s11384_s25 + $0x1c0] sm:$0xff]   ;;  %v11525_v40 = vld [vmem:[%s11384_s25 + $0x150] sm:$0xff]  }
  0x6c   : > { %9827 = vmatprep.subr.bf16.mxu1 %v11377_v0  ;;  %9867 = vmatprep.subr.bf16.mxu0 %v11377_v0  ;;  %v10521_v39 = vld [vmem:[%s11384_s25 + $0x1c8] sm:$0xff]   ;;  %v11529_v41 = vld [vmem:[%s11384_s25 + $0x158] sm:$0xff]   ;;  %v10524_v42 = vld [vmem:[%s11384_s25 + $0x1d0] sm:$0xff]  }
  0x6d   : > { %1888 = vrot.lane.b32.xlu0 %v11406_v8, %s11014_s17  ;;  %v10525_v43 = vld [vmem:[%s11384_s25 + $0x1d8] sm:$0xff]   ;;  %v11539_v44 = vld [vmem:[%s11384_s25 + $0x160] sm:$0xff]   ;;  %v11543_v45 = vld [vmem:[%s11384_s25 + $0x168] sm:$0xff]  }
  0x6e   : > { %1890 = vrot.lane.b32.xlu1 %v10493_v9, %s11014_s17  ;;  %v10528_v46 = vld [vmem:[%s11384_s25 + $0x1e0] sm:$0xff]   ;;  %v10529_v47 = vld [vmem:[%s11384_s25 + $0x1e8] sm:$0xff]   ;;  %v11553_v48 = vld [vmem:[%s11384_s25 + $0x170] sm:$0xff]  }
  0x6f   : > { %v11557_v49 = vld [vmem:[%s11384_s25 + $0x178] sm:$0xff]   ;;  %v10532_v50 = vld [vmem:[%s11384_s25 + $0x1f0] sm:$0xff]   ;;  %v11567_v52 = vld [vmem:[%s11384_s25 + $0x200] sm:$0xff]  }
  0x70   : > { %v10533_v51 = vld [vmem:[%s11384_s25 + $0x1f8] sm:$0xff]   ;;  %v11571_v53 = vld [vmem:[%s11384_s25 + $0x208] sm:$0xff]   ;;  %v10536_v54 = vld [vmem:[%s11384_s25 + $0x280] sm:$0xff]  }
  0x71   : > { %1908 = vrot.lane.b32.xlu0 %v10494_v10, %s11014_s17  ;;  %v10537_v55 = vld [vmem:[%s11384_s25 + $0x288] sm:$0xff]   ;;  %v11581_v56 = vld [vmem:[%s11384_s25 + $0x210] sm:$0xff]   ;;  %v11585_v57 = vld [vmem:[%s11384_s25 + $0x218] sm:$0xff]  }
  0x72   : > { %1910 = vrot.lane.b32.xlu1 %v10495_v11, %s11014_s17  ;;  %v10542_v58 = vld [vmem:[%s11384_s25 + $0x290] sm:$0xff]   ;;  %v10543_v59 = vld [vmem:[%s11384_s25 + $0x298] sm:$0xff]   ;;  %v11595_v60 = vld [vmem:[%s11384_s25 + $0x220] sm:$0xff]  }
  0x73   : > { %v11599_v61 = vld [vmem:[%s11384_s25 + $0x228] sm:$0xff]   ;;  %v10548_v62 = vld [vmem:[%s11384_s25 + $0x2a0] sm:$0xff]   ;;  %v11621_v11 = vld [vmem:[%s11384_s25 + $0x230] sm:$0xff]  }
  0x74   : > { %v10550_v63 = vld [vmem:[%s11384_s25 + $0x40] sm:$0xff]   ;;  %v10549_v3 = vld [vmem:[%s11384_s25 + $0x2a8] sm:$0xff]  }
  0x75   : > { %1892 = vrot.lane.b32.xlu0 %v11417_v12, %s11014_s17  ;;  %v10553_v2 = vld [vmem:[%s11384_s25] sm:$0xff]   ;;  %v10551_v5 = vld [vmem:[%s11384_s25 + $0x48] sm:$0xff]  }
  0x76   : > { %1894 = vrot.lane.b32.xlu1 %v10497_v13, %s11014_s17  ;;  %v10552_v9 = vld [vmem:[%s11384_s25 + $0x8] sm:$0xff]   ;;  %v11627_v13 = vld [vmem:[%s11384_s25 + $0x238] sm:$0xff]  }
  0x79   : > { %1912 = vrot.lane.b32.xlu0 %v10498_v14, %s11014_s17 }
  0x7a   : > { %1914 = vrot.lane.b32.xlu1 %v10499_v15, %s11014_s17  ;;  %v10556_v15 = vld [vmem:[%s11384_s25 + $0x50] sm:$0xff]  }
  0x7d   : > { %1896 = vrot.lane.b32.xlu0 %v11428_v16, %s11014_s17 }
  0x7e   : > { %1898 = vrot.lane.b32.xlu1 %v10501_v17, %s11014_s17 }
  0x81   : > { %2301 = vrot.lane.b32.xlu0 %v11435_v18, %s11014_s17 }
  0x82   : > { %2303 = vrot.lane.b32.xlu1 %v11439_v19, %s11014_s17 }
  0x85   : > { %2718 = vrot.lane.b32.xlu0 %v10504_v20, %s11014_s17 }
  0x86   : > { %2720 = vrot.lane.b32.xlu1 %v10505_v21, %s11014_s17  ;;  %v10558_v21 = vld [vmem:[%s11384_s25 + $0x2b0] sm:$0xff]  }
  0x89   : > { %2305 = vrot.lane.b32.xlu0 %v11449_v22, %s11014_s17 }
  0x8a   : > { %2307 = vrot.lane.b32.xlu1 %v11453_v23, %s11014_s17 }
  0x8d   : > { %2722 = vrot.lane.b32.xlu0 %v10508_v24, %s11014_s17 }
  0x8e   : > { %2724 = vrot.lane.b32.xlu1 %v10509_v25, %s11014_s17  ;;  %v10559_v25 = vld [vmem:[%s11384_s25 + $0x2b8] sm:$0xff]  }
  0x91   : > { %2309 = vrot.lane.b32.xlu0 %v11463_v26, %s11014_s17 }
  0x92   : > { %2311 = vrot.lane.b32.xlu1 %v11467_v27, %s11014_s17 }
  0x95   : > { %2726 = vrot.lane.b32.xlu0 %v10512_v28, %s11014_s17  ;;  %v10560_v28 = vld [vmem:[%s11384_s25 + $0x10] sm:$0xff]  }
  0x96   : > { %2728 = vrot.lane.b32.xlu1 %v10513_v29, %s11014_s17 }
  0x99   : > { %2313 = vrot.lane.b32.xlu0 %v11477_v30, %s11014_s17 }
  0x9a   : > { %2315 = vrot.lane.b32.xlu1 %v11481_v31, %s11014_s17 }
  0x9d   : > { %2730 = vrot.lane.b32.xlu0 %v10516_v33, %s11014_s17  ;;  %v10557_v33 = vld [vmem:[%s11384_s25 + $0x58] sm:$0xff]  }
  0x9e   : > { %2732 = vrot.lane.b32.xlu1 %v10517_v34, %s11014_s17  ;;  %v10561_v34 = vld [vmem:[%s11384_s25 + $0x18] sm:$0xff]  }
  0xa1   : > { %2317 = vrot.lane.b32.xlu0 %v11507_v36, %s11014_s17 }
  0xa2   : > { %2319 = vrot.lane.b32.xlu1 %v11511_v37, %s11014_s17 }
  0xa5   : > { %2734 = vrot.lane.b32.xlu0 %v10520_v38, %s11014_s17 }
  0xa6   : > { %2736 = vrot.lane.b32.xlu1 %v10521_v39, %s11014_s17 }
  0xa9   : > { %2321 = vrot.lane.b32.xlu0 %v11525_v40, %s11014_s17 }
  0xaa   : > { %2323 = vrot.lane.b32.xlu1 %v11529_v41, %s11014_s17 }
  0xad   : > { %2738 = vrot.lane.b32.xlu0 %v10524_v42, %s11014_s17  ;;  %v11656_v42 = vld [vmem:[%s11384_s25 + $0x240] sm:$0xff]  }
  0xae   : > { %2740 = vrot.lane.b32.xlu1 %v10525_v43, %s11014_s17  ;;  %v11663_v43 = vld [vmem:[%s11384_s25 + $0x248] sm:$0xff]  }
  0xb1   : > { %2325 = vrot.lane.b32.xlu0 %v11539_v44, %s11014_s17 }
  0xb2   : > { %2327 = vrot.lane.b32.xlu1 %v11543_v45, %s11014_s17 }
  0xb5   : > { %2742 = vrot.lane.b32.xlu0 %v10528_v46, %s11014_s17  ;;  %v10564_v46 = vld [vmem:[%s11384_s25 + $0x60] sm:$0xff]  }
  0xb6   : > { %2744 = vrot.lane.b32.xlu1 %v10529_v47, %s11014_s17 }
  0xb9   : > { %2329 = vrot.lane.b32.xlu0 %v11553_v48, %s11014_s17 }
  0xba   : > { %2331 = vrot.lane.b32.xlu1 %v11557_v49, %s11014_s17 }
  0xbd   : > { %2746 = vrot.lane.b32.xlu0 %v10532_v50, %s11014_s17  ;;  %v11670_v50 = vld [vmem:[%s11384_s25 + $0x2c0] sm:$0xff]  }
  0xbe   : > { %2748 = vrot.lane.b32.xlu1 %v10533_v51, %s11014_s17 }
  0xc1   : > { %3135 = vrot.lane.b32.xlu0 %v11567_v52, %s11014_s17 }
  0xc2   : > { %3137 = vrot.lane.b32.xlu1 %v11571_v53, %s11014_s17 }
  0xc5   : > { %3552 = vrot.lane.b32.xlu0 %v10536_v54, %s11014_s17 }
  0xc6   : > { %3554 = vrot.lane.b32.xlu1 %v10537_v55, %s11014_s17  ;;  %v11676_v55 = vld [vmem:[%s11384_s25 + $0x2c8] sm:$0xff]  }
  0xc9   : > { %3139 = vrot.lane.b32.xlu0 %v11581_v56, %s11014_s17 }
  0xca   : > { %3141 = vrot.lane.b32.xlu1 %v11585_v57, %s11014_s17 }
  0xcd   : > { %3556 = vrot.lane.b32.xlu0 %v10542_v58, %s11014_s17 }
  0xce   : > { %3558 = vrot.lane.b32.xlu1 %v10543_v59, %s11014_s17 }
  0xd1   : > { %3143 = vrot.lane.b32.xlu0 %v11595_v60, %s11014_s17 }
  0xd2   : > { %3145 = vrot.lane.b32.xlu1 %v11599_v61, %s11014_s17 }
  0xd3   : > { %v1901_v4 = vpop.permute.xlu0 %1900 }
  0xd4   : > { %v1885_v6 = vpop.permute.xlu1 %1884  ;;  %v11611_v7 = vsel %vm1916_vm0, %v10550_v63, %v1901_v4  ;;  %v10569_v4 = vld [vmem:[%s11384_s25 + $0x28] sm:$0xff]  }
  0xd5   : > { %15624 = vst [vmem:[#allocation3_spill] sm:$0xff] %v11611_v7  ;;  %3560 = vrot.lane.b32.xlu0 %v10548_v62, %s11014_s17  ;;  %9811 = vmatprep.mubr.msk.bf16.mxu1 %vm1995_vm1, %v11611_v7  ;;  %v11618_v10 = vsel %vm1916_vm0, %v10553_v2, %v1885_v6  ;;  %v10568_v2 = vld [vmem:[%s11384_s25 + $0x20] sm:$0xff]   ;;  %v11715_v6 = vld [vmem:[%s11384_s25 + $0x258] sm:$0xff]  }
  0xd6   : > { %3562 = vrot.lane.b32.xlu1 %v10549_v3, %s11014_s17  ;;  %9795 = vmatprep.mubr.msk.bf16.mxu0 %vm1995_vm1, %v11618_v10  ;;  %v10565_v3 = vld [vmem:[%s11384_s25 + $0x68] sm:$0xff]  }
  0xd7   : > { %v1903_v14 = vpop.permute.xlu0 %1902 }
  0xd8   : > { %v11631_v17 = vsel %vm1916_vm0, %v10551_v5, %v1903_v14  ;;  %v1887_v20 = vpop.permute.xlu1 %1886  ;;  %v11710_v5 = vld [vmem:[%s11384_s25 + $0x250] sm:$0xff]  }
  0xd9   : > { %15625 = vst [vmem:[#allocation4_spill] sm:$0xff] %v11631_v17  ;;  %v11635_v24 = vsel %vm1916_vm0, %v10552_v9, %v1887_v20  ;;  %3147 = vrot.lane.b32.xlu0 %v11621_v11, %s11014_s17  ;;  %9812 = vmatmul.mubr.msk.bf16.vlgmr.msra.gmra.mrb[0].mxu1 %vm1995_vm1, %v11631_v17  ;;  %v10572_v20 = vld [vmem:[%s11384_s25 + $0x70] sm:$0xff]  }
  0xda   : > { %3149 = vrot.lane.b32.xlu1 %v11627_v13, %s11014_s17  ;;  %9796 = vmatmul.mubr.msk.bf16.vlgmr.msra.gmra.mrb[0].mxu0 %vm1995_vm1, %v11635_v24 }
  0xdb   : > { %9828 = vmatpush3.bf16.msra.mxu1 %v11377_v0  ;;  %v1905_v29 = vpop.permute.xlu0 %1904  ;;  %9868 = vmatpush3.bf16.msra.mxu0 %v11377_v0 }
  0xdc   : > { %v11652_v38 = vsel %vm1916_vm0, %v10556_v15, %v1905_v29  ;;  %v1907_v39 = vpop.permute.xlu1 %1906  ;;  %9829 = vmatprep.subr.bf16.mxu1 %v11382_v1  ;;  %9869 = vmatprep.subr.bf16.mxu0 %v11382_v1  ;;  %v11743_v29 = vld [vmem:[%s11384_s25 + $0x2d8] sm:$0xff]  }
  0xdd   : > { %15626 = vst [vmem:[#allocation5_spill] sm:$0xff] %v11652_v38  ;;  %3564 = vrot.lane.b32.xlu0 %v10558_v21, %s11014_s17  ;;  %9815 = vmatprep.mubr.msk.bf16.mxu1 %vm1995_vm1, %v11652_v38  ;;  %v11681_v58 = vsel %vm1916_vm0, %v10557_v33, %v1907_v39  ;;  %v10884_v38 = vld [vmem:[%s11384_s25 + $0x98] sm:$0xff]  }
  0xde   : > { %3566 = vrot.lane.b32.xlu1 %v10559_v25, %s11014_s17  ;;  %15627 = vst [vmem:[#allocation6_spill] sm:$0xff] %v11681_v58 }
  0xdf   : > { %v1889_v47 = vpop.permute.xlu0 %1888  ;;  %9830 = vmatpush3.bf16.msra.mxu1 %v11382_v1  ;;  %9870 = vmatpush3.bf16.msra.mxu0 %v11382_v1 }
  0xe0   : > { %v11673_v51 = vsel %vm1916_vm0, %v10560_v28, %v1889_v47  ;;  %v1891_v54 = vpop.permute.xlu1 %1890  ;;  %9831 = vmatprep.subr.bf16.mxu1 %v11486_v32  ;;  %9871 = vmatprep.subr.bf16.mxu0 %v11486_v32  ;;  %v11736_v28 = vld [vmem:[%s11384_s25 + $0x2d0] sm:$0xff]   ;;  %v10573_v47 = vld [vmem:[%s11384_s25 + $0x78] sm:$0xff]  }
  0xe1   : > { %v11684_v59 = vsel %vm1916_vm0, %v10561_v34, %v1891_v54  ;;  %3151 = vrot.lane.b32.xlu0 %v11656_v42, %s11014_s17  ;;  %9799 = vmatprep.mubr.msk.bf16.mxu0 %vm1995_vm1, %v11673_v51  ;;  %v10577_v54 = vld [vmem:[%s11384_s25 + $0x38] sm:$0xff]  }
  0xe2   : > { %3153 = vrot.lane.b32.xlu1 %v11663_v43, %s11014_s17  ;;  %9816 = vmatmul.mubr.msk.bf16.gmra.mrb[4].mxu1 %vm1995_vm1, %v11681_v58 }
  0xe3   : > { %9800 = vmatmul.mubr.msk.bf16.gmra.mrb[4].mxu0 %vm1995_vm1, %v11684_v59  ;;  %v1909_v1 = vpop.permute.xlu0 %1908  ;;  %9832 = vmatpush3.bf16.msra.mxu1 %v11486_v32 }
  0xe4   : > { %v11698_v62 = vsel %vm1916_vm0, %v10564_v46, %v1909_v1  ;;  %v1911_v63 = vpop.permute.xlu1 %1910  ;;  %9872 = vmatpush3.bf16.msra.mxu0 %v11486_v32  ;;  %9833 = vmatprep.subr.bf16.mxu1 %v11499_v35  ;;  %v10576_v46 = vld [vmem:[%s11384_s25 + $0x30] sm:$0xff]   ;;  %v11759_v1 = vld [vmem:[%s11384_s25 + $0x260] sm:$0xff]  }
  0xe5   : > { %15628 = vst [vmem:[#allocation7_spill] sm:$0xff] %v11698_v62  ;;  %3568 = vrot.lane.b32.xlu0 %v11670_v50, %s11014_s17  ;;  %9819 = vmatprep.mubr.msk.bf16.mxu1 %vm1995_vm1, %v11698_v62  ;;  %v11726_v21 = vsel %vm1916_vm0, %v10565_v3, %v1911_v63  ;;  %v11824_v62 = vld [vmem:[%s11384_s25 + $0x2f0] sm:$0xff]  }
  0xe6   : > { %3570 = vrot.lane.b32.xlu1 %v11676_v55, %s11014_s17  ;;  %9873 = vmatprep.subr.bf16.mxu0 %v11499_v35  ;;  %15629 = vst [vmem:[#allocation8_spill] sm:$0xff] %v11726_v21 }
  0xe7   : > { %v1893_v9 = vpop.permute.xlu0 %1892  ;;  %9834 = vmatpush3.bf16.msra.mxu1 %v11499_v35 }
  0xe8   : > { %v11720_v14 = vsel %vm1916_vm0, %v10568_v2, %v1893_v9  ;;  %v1895_v15 = vpop.permute.xlu1 %1894  ;;  %9874 = vmatpush3.bf16.msra.mxu0 %v11499_v35  ;;  %9907 = vmatprep.subr.bf16.mxu1 %v11377_v0 }
  0xe9   : > { %v11729_v25 = vsel %vm1916_vm0, %v10569_v4, %v1895_v15  ;;  %3155 = vrot.lane.b32.xlu0 %v11710_v5, %s11014_s17  ;;  %9803 = vmatprep.mubr.msk.bf16.mxu0 %vm1995_vm1, %v11720_v14  ;;  %v11780_v15 = vld [vmem:[%s11384_s25 + $0x2e0] sm:$0xff]  }
  0xea   : > { %3157 = vrot.lane.b32.xlu1 %v11715_v6, %s11014_s17  ;;  %9820 = vmatmul.mubr.msk.bf16.gmra.mrb[8].mxu1 %vm1995_vm1, %v11726_v21 }
  0xeb   : > { %9804 = vmatmul.mubr.msk.bf16.gmra.mrb[8].mxu0 %vm1995_vm1, %v11729_v25  ;;  %v1913_v33 = vpop.permute.xlu0 %1912  ;;  %9947 = vmatprep.subr.bf16.mxu0 %v11377_v0  ;;  %v11764_v0 = vld [vmem:[%s11384_s25 + $0x268] sm:$0xff]  }
  0xec   : > { %v11749_v34 = vsel %vm1916_vm0, %v10572_v20, %v1913_v33  ;;  %v1915_v39 = vpop.permute.xlu1 %1914  ;;  %v11787_v20 = vld [vmem:[%s11384_s25 + $0x2e8] sm:$0xff]  }
  0xed   : > { %15630 = vst [vmem:[#allocation9_spill] sm:$0xff] %v11749_v34  ;;  %3572 = vrot.lane.b32.xlu0 %v11736_v28, %s11014_s17  ;;  %9823 = vmatprep.mubr.msk.bf16.mxu1 %vm1995_vm1, %v11749_v34  ;;  %v11770_v4 = vsel %vm1916_vm0, %v10573_v47, %v1915_v39  ;;  %v10880_v39 = vld [vmem:[%s11384_s25 + $0x80] sm:$0xff]  }
  0xee   : > { %3574 = vrot.lane.b32.xlu1 %v11743_v29, %s11014_s17  ;;  %15631 = vst [vmem:[#allocation10_spill] sm:$0xff] %v11770_v4 }
  0xef   : > { %v1897_v63 = vpop.permute.xlu0 %1896 }
  0xf0   : > { %v11767_v2 = vsel %vm1916_vm0, %v10576_v46, %v1897_v63  ;;  %v1899_v3 = vpop.permute.xlu1 %1898  ;;  %v11805_v63 = vld [vmem:[%s11384_s25 + $0x278] sm:$0xff]  }
  0xf1   : > { %v11773_v9 = vsel %vm1916_vm0, %v10577_v54, %v1899_v3  ;;  %3159 = vrot.lane.b32.xlu0 %v11759_v1, %s11014_s17  ;;  %9807 = vmatprep.mubr.msk.bf16.mxu0 %vm1995_vm1, %v11767_v2  ;;  %v11800_v54 = vld [vmem:[%s11384_s25 + $0x270] sm:$0xff]  }
  0xf2   : > { %15632 = vst [vmem:[#allocation11_spill] sm:$0xff] %v11773_v9  ;;  %3161 = vrot.lane.b32.xlu1 %v11764_v0, %s11014_s17  ;;  %9824 = vmatmul.mubr.msk.bf16.gmra.mrb[12].mxu1 %vm1995_vm1, %v11770_v4  ;;  %v10881_v4 = vld [vmem:[%s11384_s25 + $0x88] sm:$0xff]  }
  0xf3   : > { %9808 = vmatmul.mubr.msk.bf16.gmra.mrb[12].mxu0 %vm1995_vm1, %v11773_v9  ;;  %v2302_v33 = vpop.permute.xlu0 %2301  ;;  %v10896_v9 = vld [vmem:[%s11384_s25 + $0x188] sm:$0xff]  }
  0xf4   : > { %v11793_v46 = vsel %vm1916_vm0, %v10880_v39, %v2302_v33  ;;  %v2304_v47 = vpop.permute.xlu1 %2303 }
  0xf5   : > { %3576 = vrot.lane.b32.xlu0 %v11780_v15, %s11014_s17  ;;  %9835 = vmatprep.mubr.msk.bf16.mxu1 %vm1995_vm1, %v11793_v46  ;;  %v11813_v34 = vsel %vm1916_vm0, %v10881_v4, %v2304_v47 }
  0xf6   : > { %3578 = vrot.lane.b32.xlu1 %v11787_v20, %s11014_s17 }
  0xf7   : > { %v2719_v3 = vpop.permute.xlu0 %2718 }
  0xf8   : > { %v11809_v33 = vsel %vm1916_vm0, %v11435_v18, %v2719_v3  ;;  %v2721_v39 = vpop.permute.xlu1 %2720  ;;  %v11831_v18 = vld [vmem:[%s11384_s25 + $0x2f8] sm:$0xff]  }
  0xf9   : > { %15633 = vst [vmem:[#allocation12_spill] sm:$0xff] %v11809_v33  ;;  %v11817_v21 = vsel %vm1916_vm0, %v11439_v19, %v2721_v39  ;;  %3163 = vrot.lane.b32.xlu0 %v11800_v54, %s11014_s17  ;;  %9875 = vmatprep.mubr.msk.bf16.mxu0 %vm1995_vm1, %v11809_v33  ;;  %v11836_v19 = vld [vmem:[%s15524_s1] sm:$0xff]   ;;  %v11849_v39 = vld [vmem:[%s15524_s1 + $0x8] sm:$0xff]  }
  0xfa   : > { %15634 = vst [vmem:[#allocation13_spill] sm:$0xff] %v11817_v21  ;;  %3165 = vrot.lane.b32.xlu1 %v11805_v63, %s11014_s17  ;;  %9836 = vmatmul.mubr.msk.bf16.vlgmr.msra.gmra.mrb[16].mxu1 %vm1995_vm1, %v11813_v34 }
  0xfb   : > { %9908 = vmatpush3.bf16.msra.mxu1 %v11836_v19  ;;  %9876 = vmatmul.mubr.msk.bf16.vlgmr.msra.gmra.mrb[16].mxu0 %vm1995_vm1, %v11817_v21  ;;  %v2306_v4 = vpop.permute.xlu0 %2305 }
  0xfc   : > { %v11843_v47 = vsel %vm1916_vm0, %v11406_v8, %v2306_v4  ;;  %v2308_v3 = vpop.permute.xlu1 %2307  ;;  %9948 = vmatpush3.bf16.msra.mxu0 %v11836_v19  ;;  %9909 = vmatprep.subr.bf16.mxu1 %v11849_v39  ;;  %v11857_v8 = vld [vmem:[%s11384_s25 + $0x300] sm:$0xff]   ;;  %v11862_v4 = vld [vmem:[%s11384_s25 + $0x308] sm:$0xff]  }
  0xfd   : > { %3580 = vrot.lane.b32.xlu0 %v11824_v62, %s11014_s17  ;;  %9839 = vmatprep.mubr.msk.bf16.mxu1 %vm1995_vm1, %v11843_v47  ;;  %v11874_v17 = vsel %vm1916_vm0, %v10884_v38, %v2308_v3  ;;  %v10589_v38 = vld [vmem:[%s11384_s25 + $0x388] sm:$0xff]   ;;  %v11903_v3 = vld [vmem:[%s11384_s25 + $0x310] sm:$0xff]  }
  0xfe   : > { %3582 = vrot.lane.b32.xlu1 %v11831_v18, %s11014_s17  ;;  %9949 = vmatprep.subr.bf16.mxu0 %v11849_v39 }
  0xff   : > { %v2723_v21 = vpop.permute.xlu0 %2722  ;;  %9910 = vmatpush3.bf16.msra.mxu1 %v11849_v39 }
 0x100   : > { %v11868_v33 = vsel %vm1916_vm0, %v11449_v22, %v2723_v21  ;;  %v2725_v58 = vpop.permute.xlu1 %2724  ;;  %9950 = vmatpush3.bf16.msra.mxu0 %v11849_v39  ;;  %9911 = vmatprep.subr.bf16.mxu1 %v11486_v32  ;;  %v10588_v22 = vld [vmem:[%s11384_s25 + $0x380] sm:$0xff]  }
 0x101   : > { %15635 = vst [vmem:[#allocation14_spill] sm:$0xff] %v11868_v33  ;;  %v11878_v7 = vsel %vm1916_vm0, %v11453_v23, %v2725_v58  ;;  %3969 = vrot.lane.b32.xlu0 %v11857_v8, %s11014_s17  ;;  %9879 = vmatprep.mubr.msk.bf16.mxu0 %vm1995_vm1, %v11868_v33  ;;  %v10885_v33 = vld [vmem:[%s11384_s25 + $0xa8] sm:$0xff]  }
 0x102   : > { %15636 = vst [vmem:[#allocation15_spill] sm:$0xff] %v11878_v7  ;;  %3971 = vrot.lane.b32.xlu1 %v11862_v4, %s11014_s17  ;;  %9840 = vmatmul.mubr.msk.bf16.gmra.mrb[20].mxu1 %vm1995_vm1, %v11874_v17 }
 0x103   : > { %9880 = vmatmul.mubr.msk.bf16.gmra.mrb[20].mxu0 %vm1995_vm1, %v11878_v7  ;;  %v2310_v23 = vpop.permute.xlu0 %2309  ;;  %9912 = vmatpush3.bf16.msra.mxu1 %v11486_v32  ;;  %v11907_v7 = vld [vmem:[%s11384_s25 + $0x318] sm:$0xff]  }
 0x104   : > { %v11895_v58 = vsel %vm1916_vm0, %v11417_v12, %v2310_v23  ;;  %v2312_v21 = vpop.permute.xlu1 %2311  ;;  %9951 = vmatprep.subr.bf16.mxu0 %v11486_v32  ;;  %9913 = vmatprep.subr.bf16.mxu1 %v11499_v35 }
 0x105   : > { %4386 = vrot.lane.b32.xlu0 %v10588_v22, %s11014_s17  ;;  %9843 = vmatprep.mubr.msk.bf16.mxu1 %vm1995_vm1, %v11895_v58 }
 0x106   : > { %4388 = vrot.lane.b32.xlu1 %v10589_v38, %s11014_s17  ;;  %9952 = vmatpush3.bf16.msra.mxu0 %v11486_v32  ;;  %v11919_v38 = vsel %vm1916_vm0, %v10885_v33, %v2312_v21  ;;  %v10593_v33 = vld [vmem:[%s11384_s25 + $0x398] sm:$0xff]  }
 0x107   : > { %v2727_v12 = vpop.permute.xlu0 %2726  ;;  %9914 = vmatpush3.bf16.msra.mxu1 %v11499_v35  ;;  %9953 = vmatprep.subr.bf16.mxu0 %v11499_v35 }
 0x108   : > { %v11914_v22 = vsel %vm1916_vm0, %v11463_v26, %v2727_v12  ;;  %v2729_v23 = vpop.permute.xlu1 %2728  ;;  %9987 = vmatprep.subr.bf16.mxu1 %v11836_v19  ;;  %v10592_v26 = vld [vmem:[%s11384_s25 + $0x390] sm:$0xff]  }
 0x109   : > { %15637 = vst [vmem:[#allocation16_spill] sm:$0xff] %v11914_v22  ;;  %v11923_v32 = vsel %vm1916_vm0, %v11467_v27, %v2729_v23  ;;  %3973 = vrot.lane.b32.xlu0 %v11903_v3, %s11014_s17  ;;  %9883 = vmatprep.mubr.msk.bf16.mxu0 %vm1995_vm1, %v11914_v22  ;;  %v11946_v23 = vld [vmem:[%s11384_s25 + $0x320] sm:$0xff]  }
 0x10a   : > { %15638 = vst [vmem:[#allocation17_spill] sm:$0xff] %v11923_v32  ;;  %3975 = vrot.lane.b32.xlu1 %v11907_v7, %s11014_s17  ;;  %9844 = vmatmul.mubr.msk.bf16.gmra.mrb[24].mxu1 %vm1995_vm1, %v11919_v38 }
 0x10b   : > { %9884 = vmatmul.mubr.msk.bf16.gmra.mrb[24].mxu0 %vm1995_vm1, %v11923_v32  ;;  %v2314_v27 = vpop.permute.xlu0 %2313  ;;  %v11950_v32 = vld [vmem:[%s11384_s25 + $0x328] sm:$0xff]  }
 0x10c   : > { %v11939_v21 = vsel %vm1916_vm0, %v11428_v16, %v2314_v27  ;;  %v2316_v12 = vpop.permute.xlu1 %2315  ;;  %9954 = vmatpush3.bf16.msra.mxu0 %v11499_v35 }
 0x10d   : > { %15639 = vst [vmem:[#allocation18_spill] sm:$0xff] %v11939_v21  ;;  %4390 = vrot.lane.b32.xlu0 %v10592_v26, %s11014_s17  ;;  %9847 = vmatprep.mubr.msk.bf16.mxu1 %vm1995_vm1, %v11939_v21  ;;  %v10886_v26 = vld [vmem:[%s11384_s25 + $0xb8] sm:$0xff]  }
 0x10e   : > { %4392 = vrot.lane.b32.xlu1 %v10593_v33, %s11014_s17  ;;  %10027 = vmatprep.subr.bf16.mxu0 %v11836_v19  ;;  %v11959_v22 = vsel %vm1916_vm0, %v10886_v26, %v2316_v12  ;;  %v10596_v33 = vld [vmem:[%s11384_s25 + $0x3a0] sm:$0xff]   ;;  %v11985_v26 = vld [vmem:[%s11384_s25 + $0x330] sm:$0xff]  }
 0x10f   : > { %v2731_v16 = vpop.permute.xlu0 %2730  ;;  %15641 = vst [vmem:[#allocation20_spill] sm:$0xff] %v11959_v22  ;;  %v10887_v12 = vld [vmem:[%s11384_s25 + $0xc0] sm:$0xff]  }
 0x110   : > { %v11955_v27 = vsel %vm1916_vm0, %v11477_v30, %v2731_v16  ;;  %v2733_v35 = vpop.permute.xlu1 %2732  ;;  %v10597_v30 = vld [vmem:[%s11384_s25 + $0x3a8] sm:$0xff]  }
 0x111   : > { %15640 = vst [vmem:[#allocation19_spill] sm:$0xff] %v11955_v27  ;;  %v11963_v21 = vsel %vm1916_vm0, %v11481_v31, %v2733_v35  ;;  %3977 = vrot.lane.b32.xlu0 %v11946_v23, %s11014_s17  ;;  %9887 = vmatprep.mubr.msk.bf16.mxu0 %vm1995_vm1, %v11955_v27  ;;  %v11989_v27 = vld [vmem:[%s11384_s25 + $0x338] sm:$0xff]  }
 0x112   : > { %15642 = vst [vmem:[#allocation21_spill] sm:$0xff] %v11963_v21  ;;  %3979 = vrot.lane.b32.xlu1 %v11950_v32, %s11014_s17  ;;  %9848 = vmatmul.mubr.msk.bf16.gmra.mrb[28].mxu1 %vm1995_vm1, %v11959_v22 }
 0x113   : > { %9888 = vmatmul.mubr.msk.bf16.gmra.mrb[28].mxu0 %vm1995_vm1, %v11963_v21  ;;  %v2318_v31 = vpop.permute.xlu0 %2317 }
 0x114   : > { %v11979_v16 = vsel %vm1916_vm0, %v10887_v12, %v2318_v31  ;;  %v2320_v35 = vpop.permute.xlu1 %2319  ;;  %v10888_v12 = vld [vmem:[%s11384_s25 + $0xc8] sm:$0xff]  }
 0x115   : > { %15643 = vst [vmem:[#allocation22_spill] sm:$0xff] %v11979_v16  ;;  %4394 = vrot.lane.b32.xlu0 %v10596_v33, %s11014_s17  ;;  %9851 = vmatprep.mubr.msk.bf16.mxu1 %vm1995_vm1, %v11979_v16  ;;  %v11997_v33 = vsel %vm1916_vm0, %v10888_v12, %v2320_v35  ;;  %v12023_v12 = vld [vmem:[%s11384_s25 + $0x340] sm:$0xff]  }
 0x116   : > { %4396 = vrot.lane.b32.xlu1 %v10597_v30, %s11014_s17  ;;  %15645 = vst [vmem:[#allocation24_spill] sm:$0xff] %v11997_v33  ;;  %v10600_v30 = vld [vmem:[%s11384_s25 + $0x3b0] sm:$0xff]  }
 0x117   : > { %v2735_v21 = vpop.permute.xlu0 %2734 }
 0x118   : > { %v11993_v22 = vsel %vm1916_vm0, %v11507_v36, %v2735_v21  ;;  %v2737_v31 = vpop.permute.xlu1 %2736  ;;  %v10601_v36 = vld [vmem:[%s11384_s25 + $0x3b8] sm:$0xff]   ;;  %v10889_v21 = vld [vmem:[%s11384_s25 + $0xd0] sm:$0xff]  }
 0x119   : > { %15644 = vst [vmem:[#allocation23_spill] sm:$0xff] %v11993_v22  ;;  %v12001_v16 = vsel %vm1916_vm0, %v11511_v37, %v2737_v31  ;;  %3981 = vrot.lane.b32.xlu0 %v11985_v26, %s11014_s17  ;;  %9891 = vmatprep.mubr.msk.bf16.mxu0 %vm1995_vm1, %v11993_v22  ;;  %v12027_v22 = vld [vmem:[%s11384_s25 + $0x348] sm:$0xff]  }
 0x11a   : > { %15646 = vst [vmem:[#allocation25_spill] sm:$0xff] %v12001_v16  ;;  %3983 = vrot.lane.b32.xlu1 %v11989_v27, %s11014_s17  ;;  %9852 = vmatmul.mubr.msk.bf16.gmra.mrb[32].mxu1 %vm1995_vm1, %v11997_v33 }
 0x11b   : > { %9892 = vmatmul.mubr.msk.bf16.gmra.mrb[32].mxu0 %vm1995_vm1, %v12001_v16  ;;  %v2322_v37 = vpop.permute.xlu0 %2321 }
 0x11c   : > { %v12017_v35 = vsel %vm1916_vm0, %v10889_v21, %v2322_v37  ;;  %v2324_v31 = vpop.permute.xlu1 %2323  ;;  %v10890_v21 = vld [vmem:[%s11384_s25 + $0xd8] sm:$0xff]  }
 0x11d   : > { %15647 = vst [vmem:[#allocation26_spill] sm:$0xff] %v12017_v35  ;;  %4398 = vrot.lane.b32.xlu0 %v10600_v30, %s11014_s17  ;;  %9855 = vmatprep.mubr.msk.bf16.mxu1 %vm1995_vm1, %v12017_v35  ;;  %v12035_v30 = vsel %vm1916_vm0, %v10890_v21, %v2324_v31  ;;  %v12061_v21 = vld [vmem:[%s11384_s25 + $0x350] sm:$0xff]  }
 0x11e   : > { %4400 = vrot.lane.b32.xlu1 %v10601_v36, %s11014_s17  ;;  %15649 = vst [vmem:[#allocation28_spill] sm:$0xff] %v12035_v30  ;;  %v10604_v36 = vld [vmem:[%s11384_s25 + $0x3c0] sm:$0xff]  }
 0x11f   : > { %v2739_v16 = vpop.permute.xlu0 %2738 }
 0x120   : > { %v12031_v33 = vsel %vm1916_vm0, %v11525_v40, %v2739_v16  ;;  %v2741_v37 = vpop.permute.xlu1 %2740  ;;  %v10605_v40 = vld [vmem:[%s11384_s25 + $0x3c8] sm:$0xff]   ;;  %v10891_v16 = vld [vmem:[%s11384_s25 + $0xe0] sm:$0xff]  }
 0x121   : > { %15648 = vst [vmem:[#allocation27_spill] sm:$0xff] %v12031_v33  ;;  %v12039_v35 = vsel %vm1916_vm0, %v11529_v41, %v2741_v37  ;;  %3985 = vrot.lane.b32.xlu0 %v12023_v12, %s11014_s17  ;;  %9895 = vmatprep.mubr.msk.bf16.mxu0 %vm1995_vm1, %v12031_v33  ;;  %v12065_v33 = vld [vmem:[%s11384_s25 + $0x358] sm:$0xff]  }
 0x122   : > { %15650 = vst [vmem:[#allocation29_spill] sm:$0xff] %v12039_v35  ;;  %3987 = vrot.lane.b32.xlu1 %v12027_v22, %s11014_s17  ;;  %9856 = vmatmul.mubr.msk.bf16.gmra.mrb[36].mxu1 %vm1995_vm1, %v12035_v30 }
 0x123   : > { %9896 = vmatmul.mubr.msk.bf16.gmra.mrb[36].mxu0 %vm1995_vm1, %v12039_v35  ;;  %v2326_v41 = vpop.permute.xlu0 %2325 }
 0x124   : > { %v12055_v31 = vsel %vm1916_vm0, %v10891_v16, %v2326_v41  ;;  %v2328_v37 = vpop.permute.xlu1 %2327  ;;  %v10892_v16 = vld [vmem:[%s11384_s25 + $0xe8] sm:$0xff]  }
 0x125   : > { %15651 = vst [vmem:[#allocation30_spill] sm:$0xff] %v12055_v31  ;;  %4402 = vrot.lane.b32.xlu0 %v10604_v36, %s11014_s17  ;;  %9859 = vmatprep.mubr.msk.bf16.mxu1 %vm1995_vm1, %v12055_v31  ;;  %v12073_v36 = vsel %vm1916_vm0, %v10892_v16, %v2328_v37  ;;  %v12099_v16 = vld [vmem:[%s11384_s25 + $0x360] sm:$0xff]  }
 0x126   : > { %4404 = vrot.lane.b32.xlu1 %v10605_v40, %s11014_s17  ;;  %15653 = vst [vmem:[#allocation32_spill] sm:$0xff] %v12073_v36  ;;  %v10608_v40 = vld [vmem:[%s11384_s25 + $0x3d0] sm:$0xff]  }
 0x127   : > { %v2743_v35 = vpop.permute.xlu0 %2742 }
 0x128   : > { %v12069_v30 = vsel %vm1916_vm0, %v11539_v44, %v2743_v35  ;;  %v2745_v41 = vpop.permute.xlu1 %2744  ;;  %v10609_v44 = vld [vmem:[%s11384_s25 + $0x3d8] sm:$0xff]   ;;  %v10893_v35 = vld [vmem:[%s11384_s25 + $0xf0] sm:$0xff]  }
 0x129   : > { %15652 = vst [vmem:[#allocation31_spill] sm:$0xff] %v12069_v30  ;;  %v12077_v31 = vsel %vm1916_vm0, %v11543_v45, %v2745_v41  ;;  %3989 = vrot.lane.b32.xlu0 %v12061_v21, %s11014_s17  ;;  %9899 = vmatprep.mubr.msk.bf16.mxu0 %vm1995_vm1, %v12069_v30  ;;  %v12103_v30 = vld [vmem:[%s11384_s25 + $0x368] sm:$0xff]  }
 0x12a   : > { %15654 = vst [vmem:[#allocation33_spill] sm:$0xff] %v12077_v31  ;;  %3991 = vrot.lane.b32.xlu1 %v12065_v33, %s11014_s17  ;;  %9860 = vmatmul.mubr.msk.bf16.gmra.mrb[40].mxu1 %vm1995_vm1, %v12073_v36 }
 0x12b   : > { %9900 = vmatmul.mubr.msk.bf16.gmra.mrb[40].mxu0 %vm1995_vm1, %v12077_v31  ;;  %v2330_v45 = vpop.permute.xlu0 %2329 }
 0x12c   : > { %v12093_v37 = vsel %vm1916_vm0, %v10893_v35, %v2330_v45  ;;  %v2332_v41 = vpop.permute.xlu1 %2331  ;;  %v10894_v35 = vld [vmem:[%s11384_s25 + $0xf8] sm:$0xff]  }
 0x12d   : > { %15655 = vst [vmem:[#allocation34_spill] sm:$0xff] %v12093_v37  ;;  %4406 = vrot.lane.b32.xlu0 %v10608_v40, %s11014_s17  ;;  %9863 = vmatprep.mubr.msk.bf16.mxu1 %vm1995_vm1, %v12093_v37  ;;  %v12111_v40 = vsel %vm1916_vm0, %v10894_v35, %v2332_v41  ;;  %v12137_v35 = vld [vmem:[%s11384_s25 + $0x370] sm:$0xff]  }
 0x12e   : > { %4408 = vrot.lane.b32.xlu1 %v10609_v44, %s11014_s17  ;;  %15657 = vst [vmem:[#allocation36_spill] sm:$0xff] %v12111_v40  ;;  %v10612_v44 = vld [vmem:[%s11384_s25 + $0x3e0] sm:$0xff]  }
 0x12f   : > { %v2747_v31 = vpop.permute.xlu0 %2746 }
 0x130   : > { %v12107_v36 = vsel %vm1916_vm0, %v11553_v48, %v2747_v31  ;;  %v2749_v45 = vpop.permute.xlu1 %2748  ;;  %v10613_v48 = vld [vmem:[%s11384_s25 + $0x3e8] sm:$0xff]   ;;  %v10895_v31 = vld [vmem:[%s11384_s25 + $0x180] sm:$0xff]  }
 0x131   : > { %15656 = vst [vmem:[#allocation35_spill] sm:$0xff] %v12107_v36  ;;  %v12115_v37 = vsel %vm1916_vm0, %v11557_v49, %v2749_v45  ;;  %3993 = vrot.lane.b32.xlu0 %v12099_v16, %s11014_s17  ;;  %9903 = vmatprep.mubr.msk.bf16.mxu0 %vm1995_vm1, %v12107_v36  ;;  %v12141_v36 = vld [vmem:[%s11384_s25 + $0x378] sm:$0xff]  }
 0x132   : > { %15658 = vst [vmem:[#allocation37_spill] sm:$0xff] %v12115_v37  ;;  %3995 = vrot.lane.b32.xlu1 %v12103_v30, %s11014_s17  ;;  %9864 = vmatmul.mubr.msk.bf16.gmra.mrb[44].mxu1 %vm1995_vm1, %v12111_v40 }
 0x133   : > { %9904 = vmatmul.mubr.msk.bf16.gmra.mrb[44].mxu0 %vm1995_vm1, %v12115_v37  ;;  %v3136_v49 = vpop.permute.xlu0 %3135 }
 0x134   : > { %v12131_v41 = vsel %vm1916_vm0, %v10895_v31, %v3136_v49  ;;  %v3138_v45 = vpop.permute.xlu1 %3137 }
 0x135   : > { %15659 = vst [vmem:[#allocation38_spill] sm:$0xff] %v12131_v41  ;;  %4410 = vrot.lane.b32.xlu0 %v10612_v44, %s11014_s17  ;;  %9915 = vmatprep.mubr.msk.bf16.mxu1 %vm1995_vm1, %v12131_v41  ;;  %v12149_v44 = vsel %vm1916_vm0, %v10896_v9, %v3138_v45 }
 0x136   : > { %4412 = vrot.lane.b32.xlu1 %v10613_v48, %s11014_s17  ;;  %15661 = vst [vmem:[#allocation40_spill] sm:$0xff] %v12149_v44  ;;  %v10616_v48 = vld [vmem:[%s11384_s25 + $0x3f0] sm:$0xff]  }
 0x137   : > { %v3553_v37 = vpop.permute.xlu0 %3552 }
 0x138   : > { %v12145_v40 = vsel %vm1916_vm0, %v11567_v52, %v3553_v37  ;;  %v3555_v49 = vpop.permute.xlu1 %3554  ;;  %v10617_v52 = vld [vmem:[%s11384_s25 + $0x3f8] sm:$0xff]   ;;  %v10897_v37 = vld [vmem:[%s11384_s25 + $0x190] sm:$0xff]  }
 0x139   : > { %15660 = vst [vmem:[#allocation39_spill] sm:$0xff] %v12145_v40  ;;  %v12153_v41 = vsel %vm1916_vm0, %v11571_v53, %v3555_v49  ;;  %3997 = vrot.lane.b32.xlu0 %v12137_v35, %s11014_s17  ;;  %9955 = vmatprep.mubr.msk.bf16.mxu0 %vm1995_vm1, %v12145_v40 }
 0x13a   : > { %15662 = vst [vmem:[#allocation41_spill] sm:$0xff] %v12153_v41  ;;  %3999 = vrot.lane.b32.xlu1 %v12141_v36, %s11014_s17  ;;  %9916 = vmatmul.mubr.msk.bf16.vlgmr.msra.gmra.mrb[48].mxu1 %vm1995_vm1, %v12149_v44  ;;  %v10900_v44 = vld [vmem:[%s11384_s25 + $0x100] sm:$0xff]  }
 0x13b   : > { %9988 = vmatpush3.bf16.msra.mxu1 %v11836_v19  ;;  %9956 = vmatmul.mubr.msk.bf16.vlgmr.msra.gmra.mrb[48].mxu0 %vm1995_vm1, %v12153_v41  ;;  %v3140_v53 = vpop.permute.xlu0 %3139 }
 0x13c   : > { %v12170_v45 = vsel %vm1916_vm0, %v10897_v37, %v3140_v53  ;;  %v3142_v49 = vpop.permute.xlu1 %3141  ;;  %10028 = vmatpush3.bf16.msra.mxu0 %v11836_v19  ;;  %9989 = vmatprep.subr.bf16.mxu1 %v11849_v39 }
 0x13d   : > { %15663 = vst [vmem:[#allocation42_spill] sm:$0xff] %v12170_v45  ;;  %4414 = vrot.lane.b32.xlu0 %v10616_v48, %s11014_s17  ;;  %9919 = vmatprep.mubr.msk.bf16.mxu1 %vm1995_vm1, %v12170_v45  ;;  %v10898_v48 = vld [vmem:[%s15524_s1 + $0x10] sm:$0xff]  }
 0x13e   : > { %4416 = vrot.lane.b32.xlu1 %v10617_v52, %s11014_s17  ;;  %10029 = vmatprep.subr.bf16.mxu0 %v11849_v39  ;;  %v10899_v52 = vld [vmem:[%s11384_s25 + $0x198] sm:$0xff]  }
 0x13f   : > { %v3557_v41 = vpop.permute.xlu0 %3556  ;;  %9990 = vmatpush3.bf16.msra.mxu1 %v11849_v39  ;;  %v12190_v40 = vsel %vm1916_vm0, %v10899_v52, %v3142_v49  ;;  %v10903_v49 = vld [vmem:[%s15524_s1 + $0x18] sm:$0xff]  }
 0x140   : > { %v12182_v53 = vsel %vm1916_vm0, %v11581_v56, %v3557_v41  ;;  %v3559_v19 = vpop.permute.xlu1 %3558  ;;  %10030 = vmatpush3.bf16.msra.mxu0 %v11849_v39  ;;  %9991 = vmatprep.subr.bf16.mxu1 %v10898_v48  ;;  %v10901_v56 = vld [vmem:[%s11384_s25 + $0x108] sm:$0xff]  }
 0x141   : > { %15664 = vst [vmem:[#allocation43_spill] sm:$0xff] %v12182_v53  ;;  %v12194_v45 = vsel %vm1916_vm0, %v11585_v57, %v3559_v19  ;;  %4736 = vrot.lane.b32.xlu0 %v10900_v44, %s11015_s22  ;;  %9959 = vmatprep.mubr.msk.bf16.mxu0 %vm1995_vm1, %v12182_v53  ;;  %v10902_v57 = vld [vmem:[%s11384_s25 + $0x1a0] sm:$0xff]   ;;  %v10904_v53 = vld [vmem:[%s11384_s25 + $0x1a8] sm:$0xff]  }
 0x142   : > { %15665 = vst [vmem:[#allocation44_spill] sm:$0xff] %v12194_v45  ;;  %4738 = vrot.lane.b32.xlu1 %v10901_v56, %s11015_s22  ;;  %9920 = vmatmul.mubr.msk.bf16.gmra.mrb[52].mxu1 %vm1995_vm1, %v12190_v40  ;;  %v12216_v19 = vld [vmem:[%s15526_s3] sm:$0xff]  }
 0x143   : > { %9960 = vmatmul.mubr.msk.bf16.gmra.mrb[52].mxu0 %vm1995_vm1, %v12194_v45  ;;  %v3144_v39 = vpop.permute.xlu0 %3143  ;;  %9992 = vmatpush3.bf16.msra.mxu1 %v10898_v48 }
 0x144   : > { %v12208_v41 = vsel %vm1916_vm0, %v10902_v57, %v3144_v39  ;;  %v3146_v44 = vpop.permute.xlu1 %3145  ;;  %10031 = vmatprep.subr.bf16.mxu0 %v10898_v48  ;;  %9993 = vmatprep.subr.bf16.mxu1 %v10903_v49 }
 0x145   : > { %15666 = vst [vmem:[#allocation45_spill] sm:$0xff] %v12208_v41  ;;  %5068 = vrot.lane.b32.xlu0 %v10895_v31, %s11015_s22  ;;  %9923 = vmatprep.mubr.msk.bf16.mxu1 %vm1995_vm1, %v12208_v41  ;;  %v12229_v31 = vsel %vm1916_vm0, %v10904_v53, %v3146_v44 }
 0x146   : > { %5070 = vrot.lane.b32.xlu1 %v10896_v9, %s11015_s22  ;;  %10032 = vmatpush3.bf16.msra.mxu0 %v10898_v48  ;;  %v10905_v9 = vld [vmem:[%s11384_s25 + $0x110] sm:$0xff]   ;;  %v10906_v48 = vld [vmem:[%s11384_s25 + $0x118] sm:$0xff]  }
 0x147   : > { %v3561_v56 = vpop.permute.xlu0 %3560  ;;  %9994 = vmatpush3.bf16.msra.mxu1 %v10903_v49  ;;  %10033 = vmatprep.subr.bf16.mxu0 %v10903_v49 }
 0x148   : > { %v12224_v39 = vsel %vm1916_vm0, %v11595_v60, %v3561_v56  ;;  %v3563_v45 = vpop.permute.xlu1 %3562  ;;  %10067 = vmatprep.subr.bf16.mxu1 %v12216_v19 }
 0x149   : > { %15667 = vst [vmem:[#allocation46_spill] sm:$0xff] %v12224_v39  ;;  %v12233_v41 = vsel %vm1916_vm0, %v11599_v61, %v3563_v45  ;;  %4740 = vrot.lane.b32.xlu0 %v10905_v9, %s11015_s22  ;;  %9963 = vmatprep.mubr.msk.bf16.mxu0 %vm1995_vm1, %v12224_v39  ;;  %v10907_v61 = vld [vmem:[%s11384_s25 + $0x1b0] sm:$0xff]   ;;  %v10920_v39 = vld [vmem:[%s11384_s25 + $0x1e8] sm:$0xff]  }
 0x14a   : > { %15668 = vst [vmem:[#allocation47_spill] sm:$0xff] %v12233_v41  ;;  %4742 = vrot.lane.b32.xlu1 %v10906_v48, %s11015_s22  ;;  %9924 = vmatmul.mubr.msk.bf16.gmra.mrb[56].mxu1 %vm1995_vm1, %v12229_v31 }
 0x14b   : > { %9964 = vmatmul.mubr.msk.bf16.gmra.mrb[56].mxu0 %vm1995_vm1, %v12233_v41  ;;  %v3148_v60 = vpop.permute.xlu0 %3147 }
 0x14c   : > { %v12247_v45 = vsel %vm1916_vm0, %v10907_v61, %v3148_v60  ;;  %v3150_v44 = vpop.permute.xlu1 %3149  ;;  %10034 = vmatpush3.bf16.msra.mxu0 %v10903_v49  ;;  %v10908_v60 = vld [vmem:[%s11384_s25 + $0x1b8] sm:$0xff]   ;;  %v10909_v49 = vld [vmem:[%s11384_s25 + $0x120] sm:$0xff]  }
 0x14d   : > { %5072 = vrot.lane.b32.xlu0 %v10897_v37, %s11015_s22  ;;  %9927 = vmatprep.mubr.msk.bf16.mxu1 %vm1995_vm1, %v12247_v45  ;;  %v12260_v41 = vsel %vm1916_vm0, %v10908_v60, %v3150_v44 }
 0x14e   : > { %5074 = vrot.lane.b32.xlu1 %v10899_v52, %s11015_s22  ;;  %10111 = vmatprep.subr.bf16.mxu0 %v12216_v19  ;;  %v10910_v52 = vld [vmem:[%s11384_s25 + $0x128] sm:$0xff]  }
 0x14f   : > { %v3565_v56 = vpop.permute.xlu0 %3564 }
 0x150   : > { %v12256_v9 = vsel %vm1916_vm0, %v11621_v11, %v3565_v56  ;;  %v3567_v48 = vpop.permute.xlu1 %3566 }
 0x151   : > { %15669 = vst [vmem:[#allocation48_spill] sm:$0xff] %v12256_v9  ;;  %v12264_v37 = vsel %vm1916_vm0, %v11627_v13, %v3567_v48  ;;  %4744 = vrot.lane.b32.xlu0 %v10909_v49, %s11015_s22  ;;  %9967 = vmatprep.mubr.msk.bf16.mxu0 %vm1995_vm1, %v12256_v9  ;;  %v10911_v13 = vld [vmem:[%s11384_s25 + $0x1c0] sm:$0xff]  }
 0x152   : > { %15670 = vst [vmem:[#allocation49_spill] sm:$0xff] %v12264_v37  ;;  %4746 = vrot.lane.b32.xlu1 %v10910_v52, %s11015_s22  ;;  %9928 = vmatmul.mubr.msk.bf16.gmra.mrb[60].mxu1 %vm1995_vm1, %v12260_v41 }
 0x153   : > { %9968 = vmatmul.mubr.msk.bf16.gmra.mrb[60].mxu0 %vm1995_vm1, %v12264_v37  ;;  %v3152_v11 = vpop.permute.xlu0 %3151  ;;  %v10912_v37 = vld [vmem:[%s11384_s25 + $0x1c8] sm:$0xff]  }
 0x154   : > { %v12278_v44 = vsel %vm1916_vm0, %v10911_v13, %v3152_v11  ;;  %v3154_v56 = vpop.permute.xlu1 %3153 }
 0x155   : > { %5076 = vrot.lane.b32.xlu0 %v10902_v57, %s11015_s22  ;;  %9931 = vmatprep.mubr.msk.bf16.mxu1 %vm1995_vm1, %v12278_v44  ;;  %v12290_v9 = vsel %vm1916_vm0, %v10912_v37, %v3154_v56  ;;  %v10913_v57 = vld [vmem:[%s11384_s25 + $0x130] sm:$0xff]  }
 0x156   : > { %5078 = vrot.lane.b32.xlu1 %v10904_v53, %s11015_s22  ;;  %v10914_v53 = vld [vmem:[%s11384_s25 + $0x138] sm:$0xff]  }
 0x157   : > { %v3569_v48 = vpop.permute.xlu0 %3568 }
 0x158   : > { %v12286_v49 = vsel %vm1916_vm0, %v11656_v42, %v3569_v48  ;;  %v3571_v52 = vpop.permute.xlu1 %3570 }
 0x159   : > { %15671 = vst [vmem:[#allocation50_spill] sm:$0xff] %v12286_v49  ;;  %v12294_v11 = vsel %vm1916_vm0, %v11663_v43, %v3571_v52  ;;  %4748 = vrot.lane.b32.xlu0 %v10913_v57, %s11015_s22  ;;  %9971 = vmatprep.mubr.msk.bf16.mxu0 %vm1995_vm1, %v12286_v49  ;;  %v10915_v43 = vld [vmem:[%s11384_s25 + $0x1d0] sm:$0xff]  }
 0x15a   : > { %15672 = vst [vmem:[#allocation51_spill] sm:$0xff] %v12294_v11  ;;  %4750 = vrot.lane.b32.xlu1 %v10914_v53, %s11015_s22  ;;  %9932 = vmatmul.mubr.msk.bf16.gmra.mrb[64].mxu1 %vm1995_vm1, %v12290_v9 }
 0x15b   : > { %9972 = vmatmul.mubr.msk.bf16.gmra.mrb[64].mxu0 %vm1995_vm1, %v12294_v11  ;;  %v3156_v42 = vpop.permute.xlu0 %3155  ;;  %v10916_v11 = vld [vmem:[%s11384_s25 + $0x1d8] sm:$0xff]  }
 0x15c   : > { %v12308_v56 = vsel %vm1916_vm0, %v10915_v43, %v3156_v42  ;;  %v3158_v48 = vpop.permute.xlu1 %3157 }
 0x15d   : > { %5080 = vrot.lane.b32.xlu0 %v10907_v61, %s11015_s22  ;;  %9935 = vmatprep.mubr.msk.bf16.mxu1 %vm1995_vm1, %v12308_v56  ;;  %v12320_v49 = vsel %vm1916_vm0, %v10916_v11, %v3158_v48  ;;  %v10917_v61 = vld [vmem:[%s11384_s25 + $0x140] sm:$0xff]  }
 0x15e   : > { %5082 = vrot.lane.b32.xlu1 %v10908_v60, %s11015_s22  ;;  %15674 = vst [vmem:[#allocation53_spill] sm:$0xff] %v12320_v49  ;;  %v10918_v60 = vld [vmem:[%s11384_s25 + $0x148] sm:$0xff]  }
 0x15f   : > { %v3573_v52 = vpop.permute.xlu0 %3572 }
 0x160   : > { %v12316_v57 = vsel %vm1916_vm0, %v11710_v5, %v3573_v52  ;;  %v3575_v53 = vpop.permute.xlu1 %3574  ;;  %v10919_v52 = vld [vmem:[%s11384_s25 + $0x1e0] sm:$0xff]  }
 0x161   : > { %15673 = vst [vmem:[#allocation52_spill] sm:$0xff] %v12316_v57  ;;  %v12324_v42 = vsel %vm1916_vm0, %v11715_v6, %v3575_v53  ;;  %4752 = vrot.lane.b32.xlu0 %v10917_v61, %s11015_s22  ;;  %9975 = vmatprep.mubr.msk.bf16.mxu0 %vm1995_vm1, %v12316_v57 }
 0x162   : > { %15675 = vst [vmem:[#allocation54_spill] sm:$0xff] %v12324_v42  ;;  %4754 = vrot.lane.b32.xlu1 %v10918_v60, %s11015_s22  ;;  %9936 = vmatmul.mubr.msk.bf16.gmra.mrb[68].mxu1 %vm1995_vm1, %v12320_v49 }
 0x163   : > { %9976 = vmatmul.mubr.msk.bf16.gmra.mrb[68].mxu0 %vm1995_vm1, %v12324_v42  ;;  %v3160_v48 = vpop.permute.xlu0 %3159 }
 0x164   : > { %v12338_v53 = vsel %vm1916_vm0, %v10919_v52, %v3160_v48  ;;  %v3162_v61 = vpop.permute.xlu1 %3161 }
 0x165   : > { %15676 = vst [vmem:[#allocation55_spill] sm:$0xff] %v12338_v53  ;;  %5084 = vrot.lane.b32.xlu0 %v10911_v13, %s11015_s22  ;;  %9939 = vmatprep.mubr.msk.bf16.mxu1 %vm1995_vm1, %v12338_v53  ;;  %v12350_v49 = vsel %vm1916_vm0, %v10920_v39, %v3162_v61  ;;  %v10921_v13 = vld [vmem:[%s11384_s25 + $0x150] sm:$0xff]  }
 0x166   : > { %5086 = vrot.lane.b32.xlu1 %v10912_v37, %s11015_s22  ;;  %15678 = vst [vmem:[#allocation57_spill] sm:$0xff] %v12350_v49  ;;  %v10922_v37 = vld [vmem:[%s11384_s25 + $0x158] sm:$0xff]  }
 0x167   : > { %v3577_v60 = vpop.permute.xlu0 %3576 }
 0x168   : > { %v12346_v57 = vsel %vm1916_vm0, %v11759_v1, %v3577_v60  ;;  %v3579_v42 = vpop.permute.xlu1 %3578 }
 0x169   : > { %15677 = vst [vmem:[#allocation56_spill] sm:$0xff] %v12346_v57  ;;  %v12354_v48 = vsel %vm1916_vm0, %v11764_v0, %v3579_v42  ;;  %4756 = vrot.lane.b32.xlu0 %v10921_v13, %s11015_s22  ;;  %9979 = vmatprep.mubr.msk.bf16.mxu0 %vm1995_vm1, %v12346_v57  ;;  %v10923_v42 = vld [vmem:[%s11384_s25 + $0x1f0] sm:$0xff]  }
 0x16a   : > { %15679 = vst [vmem:[#allocation58_spill] sm:$0xff] %v12354_v48  ;;  %4758 = vrot.lane.b32.xlu1 %v10922_v37, %s11015_s22  ;;  %9940 = vmatmul.mubr.msk.bf16.gmra.mrb[72].mxu1 %vm1995_vm1, %v12350_v49  ;;  %v10924_v49 = vld [vmem:[%s11384_s25 + $0x1f8] sm:$0xff]  }
 0x16b   : > { %9980 = vmatmul.mubr.msk.bf16.gmra.mrb[72].mxu0 %vm1995_vm1, %v12354_v48  ;;  %v3164_v61 = vpop.permute.xlu0 %3163 }
 0x16c   : > { %v12368_v60 = vsel %vm1916_vm0, %v10923_v42, %v3164_v61  ;;  %v3166_v13 = vpop.permute.xlu1 %3165 }
 0x16d   : > { %15680 = vst [vmem:[#allocation59_spill] sm:$0xff] %v12368_v60  ;;  %5088 = vrot.lane.b32.xlu0 %v10915_v43, %s11015_s22  ;;  %9943 = vmatprep.mubr.msk.bf16.mxu1 %vm1995_vm1, %v12368_v60  ;;  %v12380_v53 = vsel %vm1916_vm0, %v10924_v49, %v3166_v13  ;;  %v10925_v43 = vld [vmem:[%s11384_s25 + $0x160] sm:$0xff]  }
 0x16e   : > { %5090 = vrot.lane.b32.xlu1 %v10916_v11, %s11015_s22  ;;  %15682 = vst [vmem:[#allocation61_spill] sm:$0xff] %v12380_v53  ;;  %v10926_v11 = vld [vmem:[%s11384_s25 + $0x168] sm:$0xff]  }
 0x16f   : > { %v3581_v37 = vpop.permute.xlu0 %3580 }
 0x170   : > { %v12376_v57 = vsel %vm1916_vm0, %v11800_v54, %v3581_v37  ;;  %v3583_v48 = vpop.permute.xlu1 %3582 }
 0x171   : > { %15681 = vst [vmem:[#allocation60_spill] sm:$0xff] %v12376_v57  ;;  %v12384_v61 = vsel %vm1916_vm0, %v11805_v63, %v3583_v48  ;;  %4760 = vrot.lane.b32.xlu0 %v10925_v43, %s11015_s22  ;;  %9983 = vmatprep.mubr.msk.bf16.mxu0 %vm1995_vm1, %v12376_v57  ;;  %v10927_v48 = vld [vmem:[%s11384_s25 + $0x280] sm:$0xff]  }
 0x172   : > { %15683 = vst [vmem:[#allocation62_spill] sm:$0xff] %v12384_v61  ;;  %4762 = vrot.lane.b32.xlu1 %v10926_v11, %s11015_s22  ;;  %9944 = vmatmul.mubr.msk.bf16.gmra.mrb[76].mxu1 %vm1995_vm1, %v12380_v53  ;;  %v12409_v53 = vld [vmem:[%s15526_s3 + $0x8] sm:$0xff]  }
 0x173   : > { %9984 = vmatmul.mubr.msk.bf16.gmra.mrb[76].mxu0 %vm1995_vm1, %v12384_v61  ;;  %v3970_v13 = vpop.permute.xlu0 %3969 }
 0x174   : > { %v12398_v37 = vsel %vm1916_vm0, %v10927_v48, %v3970_v13  ;;  %v3972_v43 = vpop.permute.xlu1 %3971  ;;  %v10928_v13 = vld [vmem:[%s11384_s25 + $0x288] sm:$0xff]  }
 0x175   : > { %15684 = vst [vmem:[#allocation63_spill] sm:$0xff] %v12398_v37  ;;  %5092 = vrot.lane.b32.xlu0 %v10919_v52, %s11015_s22  ;;  %9995 = vmatprep.mubr.msk.bf16.mxu1 %vm1995_vm1, %v12398_v37  ;;  %v12413_v60 = vsel %vm1916_vm0, %v10928_v13, %v3972_v43  ;;  %v10929_v37 = vld [vmem:[%s11384_s25 + $0x170] sm:$0xff]  }
 0x176   : > { %5094 = vrot.lane.b32.xlu1 %v10920_v39, %s11015_s22  ;;  %15685 = vst [vmem:[#allocation64_spill] sm:$0xff] %v12413_v60  ;;  %v10930_v39 = vld [vmem:[%s11384_s25 + $0x178] sm:$0xff]   ;;  %v10931_v43 = vld [vmem:[%s11384_s25 + $0x290] sm:$0xff]  }
 0x177   : > { %v4387_v11 = vpop.permute.xlu0 %4386 }
 0x178   : > { %v4420_v57 = vsel %vm1916_vm0, %v11857_v8, %v4387_v11  ;;  %v4389_v61 = vpop.permute.xlu1 %4388 }
 0x179   : > { %v4423_v52 = vsel %vm1916_vm0, %v11862_v4, %v4389_v61  ;;  %4764 = vrot.lane.b32.xlu0 %v10929_v37, %s11015_s22  ;;  %10035 = vmatprep.mubr.msk.bf16.mxu0 %vm1995_vm1, %v4420_v57  ;;  %v12435_v57 = vld [vmem:[%s15526_s3 + $0x10] sm:$0xff]  }
 0x17a   : > { %4766 = vrot.lane.b32.xlu1 %v10930_v39, %s11015_s22  ;;  %9996 = vmatmul.mubr.msk.bf16.vlgmr.msra.gmra.mrb[80].mxu1 %vm1995_vm1, %v12413_v60 }
 0x17b   : > { %10068 = vmatpush3.bf16.msra.mxu1 %v12216_v19  ;;  %10036 = vmatmul.mubr.msk.bf16.vlgmr.msra.gmra.mrb[80].mxu0 %vm1995_vm1, %v4423_v52  ;;  %v3974_v8 = vpop.permute.xlu0 %3973 }
 0x17c   : > { %v12428_v11 = vsel %vm1916_vm0, %v10931_v43, %v3974_v8  ;;  %v3976_v4 = vpop.permute.xlu1 %3975  ;;  %10112 = vmatpush3.bf16.msra.mxu0 %v12216_v19  ;;  %10069 = vmatprep.subr.bf16.mxu1 %v12409_v53 }
 0x17d   : > { %15686 = vst [vmem:[#allocation65_spill] sm:$0xff] %v12428_v11  ;;  %5096 = vrot.lane.b32.xlu0 %v10923_v42, %s11015_s22  ;;  %9999 = vmatprep.mubr.msk.bf16.mxu1 %vm1995_vm1, %v12428_v11  ;;  %v12450_v42 = vld [vmem:[%s15526_s3 + $0x18] sm:$0xff]   ;;  %v10933_v11 = vld [vmem:[%s11384_s25 + $0x200] sm:$0xff]  }
 0x17e   : > { %5098 = vrot.lane.b32.xlu1 %v10924_v49, %s11015_s22  ;;  %10113 = vmatprep.subr.bf16.mxu0 %v12409_v53  ;;  %v10932_v49 = vld [vmem:[%s11384_s25 + $0x298] sm:$0xff]  }
 0x17f   : > { %v4391_v61 = vpop.permute.xlu0 %4390  ;;  %10070 = vmatpush3.bf16.msra.mxu1 %v12409_v53  ;;  %v12454_v39 = vsel %vm1916_vm0, %v10932_v49, %v3976_v4  ;;  %v10935_v4 = vld [vmem:[%s11384_s25 + $0x2a0] sm:$0xff]  }
 0x180   : > { %v4426_v37 = vsel %vm1916_vm0, %v11903_v3, %v4391_v61  ;;  %v4393_v52 = vpop.permute.xlu1 %4392  ;;  %10114 = vmatpush3.bf16.msra.mxu0 %v12409_v53  ;;  %10071 = vmatprep.subr.bf16.mxu1 %v12435_v57  ;;  %15687 = vst [vmem:[#allocation66_spill] sm:$0xff] %v12454_v39  ;;  %v10934_v3 = vld [vmem:[%s11384_s25 + $0x208] sm:$0xff]  }
 0x181   : > { %v4429_v8 = vsel %vm1916_vm0, %v11907_v7, %v4393_v52  ;;  %5389 = vrot.lane.b32.xlu0 %v10933_v11, %s11015_s22  ;;  %10039 = vmatprep.mubr.msk.bf16.mxu0 %vm1995_vm1, %v4426_v37  ;;  %v12476_v11 = vld [vmem:[%s15526_s3 + $0x20] sm:$0xff]  }
 0x182   : > { %5391 = vrot.lane.b32.xlu1 %v10934_v3, %s11015_s22  ;;  %10000 = vmatmul.mubr.msk.bf16.gmra.mrb[84].mxu1 %vm1995_vm1, %v12454_v39  ;;  %v10958_v39 = vld [vmem:[%s11384_s25 + $0x328] sm:$0xff]  }
 0x183   : > { %10040 = vmatmul.mubr.msk.bf16.gmra.mrb[84].mxu0 %vm1995_vm1, %v4429_v8  ;;  %v3978_v61 = vpop.permute.xlu0 %3977  ;;  %10072 = vmatpush3.bf16.msra.mxu1 %v12435_v57 }
 0x184   : > { %v12469_v60 = vsel %vm1916_vm0, %v10935_v4, %v3978_v61  ;;  %v3980_v7 = vpop.permute.xlu1 %3979  ;;  %10115 = vmatprep.subr.bf16.mxu0 %v12435_v57  ;;  %10073 = vmatprep.subr.bf16.mxu1 %v12450_v42 }
 0x185   : > { %15688 = vst [vmem:[#allocation67_spill] sm:$0xff] %v12469_v60  ;;  %5710 = vrot.lane.b32.xlu0 %v10927_v48, %s11015_s22  ;;  %10003 = vmatprep.mubr.msk.bf16.mxu1 %vm1995_vm1, %v12469_v60  ;;  %v12491_v48 = vld [vmem:[%s15526_s3 + $0x28] sm:$0xff]   ;;  %v10937_v60 = vld [vmem:[%s11384_s25 + $0x210] sm:$0xff]  }
 0x186   : > { %5712 = vrot.lane.b32.xlu1 %v10928_v13, %s11015_s22  ;;  %10116 = vmatpush3.bf16.msra.mxu0 %v12435_v57  ;;  %v10936_v13 = vld [vmem:[%s11384_s25 + $0x2a8] sm:$0xff]  }
 0x187   : > { %v4395_v37 = vpop.permute.xlu0 %4394  ;;  %10074 = vmatpush3.bf16.msra.mxu1 %v12450_v42  ;;  %10117 = vmatprep.subr.bf16.mxu0 %v12450_v42  ;;  %v12495_v3 = vsel %vm1916_vm0, %v10936_v13, %v3980_v7  ;;  %v10939_v7 = vld [vmem:[%s11384_s25 + $0x2b0] sm:$0xff]  }
 0x188   : > { %v4432_v52 = vsel %vm1916_vm0, %v11946_v23, %v4395_v37  ;;  %v4397_v8 = vpop.permute.xlu1 %4396  ;;  %10075 = vmatprep.subr.bf16.mxu1 %v12476_v11  ;;  %15689 = vst [vmem:[#allocation68_spill] sm:$0xff] %v12495_v3  ;;  %v10938_v23 = vld [vmem:[%s11384_s25 + $0x218] sm:$0xff]  }
 0x189   : > { %v4435_v61 = vsel %vm1916_vm0, %v11950_v32, %v4397_v8  ;;  %5393 = vrot.lane.b32.xlu0 %v10937_v60, %s11015_s22  ;;  %10043 = vmatprep.mubr.msk.bf16.mxu0 %vm1995_vm1, %v4432_v52 }
 0x18a   : > { %5395 = vrot.lane.b32.xlu1 %v10938_v23, %s11015_s22  ;;  %10004 = vmatmul.mubr.msk.bf16.gmra.mrb[88].mxu1 %vm1995_vm1, %v12495_v3 }
 0x18b   : > { %10044 = vmatmul.mubr.msk.bf16.gmra.mrb[88].mxu0 %vm1995_vm1, %v4435_v61  ;;  %v3982_v37 = vpop.permute.xlu0 %3981  ;;  %10076 = vmatpush3.bf16.msra.mxu1 %v12476_v11 }
 0x18c   : > { %v12510_v32 = vsel %vm1916_vm0, %v10939_v7, %v3982_v37  ;;  %v3984_v8 = vpop.permute.xlu1 %3983  ;;  %10118 = vmatpush3.bf16.msra.mxu0 %v12450_v42  ;;  %10077 = vmatprep.subr.bf16.mxu1 %v12491_v48  ;;  %v10941_v37 = vld [vmem:[%s11384_s25 + $0x220] sm:$0xff]  }
 0x18d   : > { %15690 = vst [vmem:[#allocation69_spill] sm:$0xff] %v12510_v32  ;;  %5714 = vrot.lane.b32.xlu0 %v10931_v43, %s11015_s22  ;;  %10007 = vmatprep.mubr.msk.bf16.mxu1 %vm1995_vm1, %v12510_v32  ;;  %v10940_v43 = vld [vmem:[%s11384_s25 + $0x2b8] sm:$0xff]   ;;  %v10942_v32 = vld [vmem:[%s11384_s25 + $0x228] sm:$0xff]  }
 0x18e   : > { %5716 = vrot.lane.b32.xlu1 %v10932_v49, %s11015_s22  ;;  %10119 = vmatprep.subr.bf16.mxu0 %v12476_v11  ;;  %v12526_v23 = vsel %vm1916_vm0, %v10940_v43, %v3984_v8 }
 0x18f   : > { %v4399_v60 = vpop.permute.xlu0 %4398  ;;  %10078 = vmatpush3.bf16.msra.mxu1 %v12491_v48  ;;  %15691 = vst [vmem:[#allocation70_spill] sm:$0xff] %v12526_v23 }
 0x190   : > { %v4438_v52 = vsel %vm1916_vm0, %v11985_v26, %v4399_v60  ;;  %v4401_v61 = vpop.permute.xlu1 %4400  ;;  %10120 = vmatpush3.bf16.msra.mxu0 %v12476_v11  ;;  %10155 = vmatprep.subr.bf16.mxu1 %v12216_v19 }
 0x191   : > { %v4441_v49 = vsel %vm1916_vm0, %v11989_v27, %v4401_v61  ;;  %5397 = vrot.lane.b32.xlu0 %v10941_v37, %s11015_s22  ;;  %10047 = vmatprep.mubr.msk.bf16.mxu0 %vm1995_vm1, %v4438_v52 }
 0x192   : > { %5399 = vrot.lane.b32.xlu1 %v10942_v32, %s11015_s22  ;;  %10008 = vmatmul.mubr.msk.bf16.gmra.mrb[92].mxu1 %vm1995_vm1, %v12526_v23 }
 0x193   : > { %10048 = vmatmul.mubr.msk.bf16.gmra.mrb[92].mxu0 %vm1995_vm1, %v4441_v49  ;;  %v3986_v26 = vpop.permute.xlu0 %3985  ;;  %10121 = vmatprep.subr.bf16.mxu0 %v12491_v48 }
 0x194   : > { %v12541_v27 = vsel %vm1916_vm0, %v11670_v50, %v3986_v26  ;;  %v3988_v8 = vpop.permute.xlu1 %3987  ;;  %10122 = vmatpush3.bf16.msra.mxu0 %v12491_v48 }
 0x195   : > { %15692 = vst [vmem:[#allocation71_spill] sm:$0xff] %v12541_v27  ;;  %5718 = vrot.lane.b32.xlu0 %v10935_v4, %s11015_s22  ;;  %10011 = vmatprep.mubr.msk.bf16.mxu1 %vm1995_vm1, %v12541_v27  ;;  %v12553_v50 = vsel %vm1916_vm0, %v11676_v55, %v3988_v8  ;;  %v10943_v4 = vld [vmem:[%s11384_s25 + $0x230] sm:$0xff]  }
 0x196   : > { %5720 = vrot.lane.b32.xlu1 %v10936_v13, %s11015_s22  ;;  %10199 = vmatprep.subr.bf16.mxu0 %v12216_v19  ;;  %15693 = vst [vmem:[#allocation72_spill] sm:$0xff] %v12553_v50  ;;  %v10944_v13 = vld [vmem:[%s11384_s25 + $0x238] sm:$0xff]  }
 0x197   : > { %v4403_v32 = vpop.permute.xlu0 %4402 }
 0x198   : > { %v4444_v60 = vsel %vm1916_vm0, %v12023_v12, %v4403_v32  ;;  %v4405_v52 = vpop.permute.xlu1 %4404 }
 0x199   : > { %v4447_v61 = vsel %vm1916_vm0, %v12027_v22, %v4405_v52  ;;  %5401 = vrot.lane.b32.xlu0 %v10943_v4, %s11015_s22  ;;  %10051 = vmatprep.mubr.msk.bf16.mxu0 %vm1995_vm1, %v4444_v60 }
 0x19a   : > { %5403 = vrot.lane.b32.xlu1 %v10944_v13, %s11015_s22  ;;  %10012 = vmatmul.mubr.msk.bf16.gmra.mrb[96].mxu1 %vm1995_vm1, %v12553_v50  ;;  %v15702_v50 = vld [vmem:[#allocation20_spill] sm:$0xff] }
 0x19b   : > { %10052 = vmatmul.mubr.msk.bf16.gmra.mrb[96].mxu0 %vm1995_vm1, %v4447_v61  ;;  %v3990_v55 = vpop.permute.xlu0 %3989  ;;  %v10948_v61 = vld [vmem:[%s11384_s25 + $0x2c8] sm:$0xff]  }
 0x19c   : > { %v12567_v12 = vsel %vm1916_vm0, %v11736_v28, %v3990_v55  ;;  %v3992_v22 = vpop.permute.xlu1 %3991 }
 0x19d   : > { %15694 = vst [vmem:[#allocation73_spill] sm:$0xff] %v12567_v12  ;;  %5722 = vrot.lane.b32.xlu0 %v10939_v7, %s11015_s22  ;;  %10015 = vmatprep.mubr.msk.bf16.mxu1 %vm1995_vm1, %v12567_v12  ;;  %v12577_v8 = vsel %vm1916_vm0, %v11743_v29, %v3992_v22  ;;  %v10945_v7 = vld [vmem:[%s11384_s25 + $0x240] sm:$0xff]  }
 0x19e   : > { %5724 = vrot.lane.b32.xlu1 %v10940_v43, %s11015_s22  ;;  %15695 = vst [vmem:[#allocation74_spill] sm:$0xff] %v12577_v8  ;;  %v10946_v43 = vld [vmem:[%s11384_s25 + $0x248] sm:$0xff]  }
 0x19f   : > { %v4407_v49 = vpop.permute.xlu0 %4406 }
 0x1a0   : > { %v4450_v37 = vsel %vm1916_vm0, %v12061_v21, %v4407_v49  ;;  %v4409_v26 = vpop.permute.xlu1 %4408 }
 0x1a1   : > { %v4453_v32 = vsel %vm1916_vm0, %v12065_v33, %v4409_v26  ;;  %5405 = vrot.lane.b32.xlu0 %v10945_v7, %s11015_s22  ;;  %10055 = vmatprep.mubr.msk.bf16.mxu0 %vm1995_vm1, %v4450_v37  ;;  %v10947_v33 = vld [vmem:[%s11384_s25 + $0x2c0] sm:$0xff]  }
 0x1a2   : > { %5407 = vrot.lane.b32.xlu1 %v10946_v43, %s11015_s22  ;;  %10016 = vmatmul.mubr.msk.bf16.gmra.mrb[100].mxu1 %vm1995_vm1, %v12577_v8 }
 0x1a3   : > { %10056 = vmatmul.mubr.msk.bf16.gmra.mrb[100].mxu0 %vm1995_vm1, %v4453_v32  ;;  %v3994_v21 = vpop.permute.xlu0 %3993 }
 0x1a4   : > { %v12591_v60 = vsel %vm1916_vm0, %v11780_v15, %v3994_v21  ;;  %v3996_v52 = vpop.permute.xlu1 %3995 }
 0x1a5   : > { %15696 = vst [vmem:[#allocation75_spill] sm:$0xff] %v12591_v60  ;;  %5726 = vrot.lane.b32.xlu0 %v10947_v33, %s11015_s22  ;;  %10019 = vmatprep.mubr.msk.bf16.mxu1 %vm1995_vm1, %v12591_v60  ;;  %v12603_v22 = vsel %vm1916_vm0, %v11787_v20, %v3996_v52 }
 0x1a6   : > { %5728 = vrot.lane.b32.xlu1 %v10948_v61, %s11015_s22  ;;  %15697 = vst [vmem:[#allocation76_spill] sm:$0xff] %v12603_v22 }
 0x1a7   : > { %v4411_v4 = vpop.permute.xlu0 %4410 }
 0x1a8   : > { %v4456_v13 = vsel %vm1916_vm0, %v12099_v16, %v4411_v4  ;;  %v4413_v55 = vpop.permute.xlu1 %4412 }
 0x1a9   : > { %v4459_v49 = vsel %vm1916_vm0, %v12103_v30, %v4413_v55  ;;  %5409 = vrot.lane.b32.xlu0 %v11710_v5, %s11015_s22  ;;  %10059 = vmatprep.mubr.msk.bf16.mxu0 %vm1995_vm1, %v4456_v13 }
 0x1aa   : > { %5411 = vrot.lane.b32.xlu1 %v11715_v6, %s11015_s22  ;;  %10020 = vmatmul.mubr.msk.bf16.gmra.mrb[104].mxu1 %vm1995_vm1, %v12603_v22 }
 0x1ab   : > { %10060 = vmatmul.mubr.msk.bf16.gmra.mrb[104].mxu0 %vm1995_vm1, %v4459_v49  ;;  %v3998_v16 = vpop.permute.xlu0 %3997 }
 0x1ac   : > { %v12617_v37 = vsel %vm1916_vm0, %v11824_v62, %v3998_v16  ;;  %v4000_v26 = vpop.permute.xlu1 %3999  ;;  %v12619_v30 = vpop.f32.mrb[0].mxu1 }
 0x1ad   : > { %15698 = vst [vmem:[#allocation77_spill] sm:$0xff] %v12617_v37  ;;  %v12621_v32 = vpop.f32.mrb[0].mxu0  ;;  %5730 = vrot.lane.b32.xlu0 %v11736_v28, %s11015_s22  ;;  %v12625_v5 = vpop.f32.mrb[1].mxu1  ;;  %10023 = vmatprep.mubr.msk.bf16.mxu1 %vm1995_vm1, %v12617_v37  ;;  %v12643_v61 = vsel %vm1916_vm0, %v11831_v18, %v4000_v26  ;;  %v10953_v37 = vld [vmem:[%s11384_s25 + $0x310] sm:$0xff]  }
 0x1ae   : > { %5732 = vrot.lane.b32.xlu1 %v11743_v29, %s11015_s22  ;;  %v12631_v6 = vpop.f32.mrb[1].mxu0  ;;  %v12633_v7 = vpop.f32.mrb[2].mxu1  ;;  %15699 = vst [vmem:[#allocation78_spill] sm:$0xff] %v12643_v61 }
 0x1af   : > { %v12635_v43 = vpop.f32.mrb[2].mxu0  ;;  %v4415_v21 = vpop.permute.xlu0 %4414 }
 0x1b0   : > { %v4462_v52 = vsel %vm1916_vm0, %v12137_v35, %v4415_v21  ;;  %v4417_v33 = vpop.permute.xlu1 %4416  ;;  %v12639_v28 = vpop.f32.mrb[3].mxu0 }
 0x1b1   : > { %v4465_v29 = vsel %vm1916_vm0, %v12141_v36, %v4417_v33  ;;  %v12647_v4 = vpop.f32.mrb[3].mxu1  ;;  %5413 = vrot.lane.b32.xlu0 %v11759_v1, %s11015_s22  ;;  %10063 = vmatprep.mubr.msk.bf16.mxu0 %vm1995_vm1, %v4462_v52 }
 0x1b2   : > { %5415 = vrot.lane.b32.xlu1 %v11764_v0, %s11015_s22  ;;  %10024 = vmatmul.mubr.msk.bf16.gmra.mrb[108].mxu1 %vm1995_vm1, %v12643_v61  ;;  %v10950_v61 = vld [vmem:[%s11384_s25 + $0x308] sm:$0xff]  }
 0x1b3   : > { %10064 = vmatmul.mubr.msk.bf16.gmra.mrb[108].mxu0 %vm1995_vm1, %v4465_v29  ;;  %v4737_v35 = vpop.permute.xlu0 %4736 }
 0x1b4   : > { %v4769_v36 = vsel %vm1995_vm1, %v11618_v10, %v4737_v35  ;;  %v4739_v13 = vpop.permute.xlu1 %4738 }
 0x1b5   : > { %v12659_v55 = vpop.f32.mrb[4].mxu1  ;;  %5734 = vrot.lane.b32.xlu0 %v11780_v15, %s11015_s22  ;;  %10079 = vmatprep.mubr.msk.bf16.mxu1 %vm4842_vm2, %v4769_v36  ;;  %v4771_v21 = vsel %vm1995_vm1, %v11635_v24, %v4739_v13 }
 0x1b6   : > { %5736 = vrot.lane.b32.xlu1 %v11787_v20, %s11015_s22  ;;  %v12666_v1 = vpop.f32.mrb[4].mxu0  ;;  %v12668_v0 = vpop.f32.mrb[5].mxu1 }
 0x1b7   : > { %v12670_v49 = vpop.f32.mrb[5].mxu0  ;;  %v12672_v16 = vpop.f32.mrb[6].mxu1 }
 0x1b8   : > { %v5069_v10 = vpop.permute.xlu0 %5068  ;;  %v5071_v26 = vpop.permute.xlu1 %5070 }
 0x1b9   : > { %v5101_v15 = vsel %vm1995_vm1, %v11793_v46, %v5069_v10  ;;  %v5103_v52 = vsel %vm1995_vm1, %v11813_v34, %v5071_v26  ;;  %v12680_v20 = vpop.f32.mrb[6].mxu0  ;;  %v12682_v33 = vpop.f32.mrb[7].mxu1  ;;  %5417 = vrot.lane.b32.xlu0 %v11800_v54, %s11015_s22 }
 0x1ba   : > { %v12686_v29 = vpop.f32.mrb[7].mxu0  ;;  %5419 = vrot.lane.b32.xlu1 %v11805_v63, %s11015_s22  ;;  %10080 = vmatmul.mubr.msk.bf16.vlgmr.msra.gmra.mrb[112].mxu1 %vm4842_vm2, %v4771_v21 }
 0x1bb   : > { %10123 = vmatprep.mubr.msk.bf16.mxu0 %vm4842_vm2, %v5101_v15  ;;  %10156 = vmatpush3.bf16.msra.mxu1 %v12216_v19 }
 0x1bc   : > { %10124 = vmatmul.mubr.msk.bf16.vlgmr.msra.gmra.mrb[112].mxu0 %vm4842_vm2, %v5103_v52  ;;  %v4741_v24 = vpop.permute.xlu0 %4740  ;;  %v4743_v34 = vpop.permute.xlu1 %4742  ;;  %10157 = vmatprep.subr.bf16.mxu1 %v12409_v53 }
 0x1bd   : > { %v4773_v46 = vsel %vm1995_vm1, %v11673_v51, %v4741_v24  ;;  %10200 = vmatpush3.bf16.msra.mxu0 %v12216_v19  ;;  %v12698_v54 = vpop.f32.mrb[8].mxu1  ;;  %5738 = vrot.lane.b32.xlu0 %v11824_v62, %s11015_s22  ;;  %v12718_v62 = vld [vmem:[%s15525_s2] ss:$0 sm:$0xff]  ;;  %v4775_v10 = vsel %vm1995_vm1, %v11684_v59, %v4743_v34 }
 0x1be   : > { %5740 = vrot.lane.b32.xlu1 %v11831_v18, %s11015_s22  ;;  %v12704_v63 = vpop.f32.mrb[8].mxu0  ;;  %v12706_v35 = vpop.f32.mrb[9].mxu1  ;;  %10083 = vmatprep.mubr.msk.bf16.mxu1 %vm4842_vm2, %v4773_v46  ;;  %v10949_v24 = vld [vmem:[%s11384_s25 + $0x300] sm:$0xff]  }
 0x1bf   : > { %v12709_v36 = vpop.f32.mrb[9].mxu0  ;;  %v12711_v51 = vpop.f32.mrb[10].mxu1  ;;  %10158 = vmatpush3.bf16.msra.mxu1 %v12409_v53  ;;  %10201 = vmatprep.subr.bf16.mxu0 %v12409_v53 }
 0x1c0   : > { %v5073_v18 = vpop.permute.xlu0 %5072  ;;  %v5075_v13 = vpop.permute.xlu1 %5074  ;;  %10159 = vmatprep.subr.bf16.mxu1 %v12435_v57 }
 0x1c1   : > { %v5105_v26 = vsel %vm1995_vm1, %v11843_v47, %v5073_v18  ;;  %v5107_v21 = vsel %vm1995_vm1, %v11874_v17, %v5075_v13  ;;  %v12727_v15 = vpop.f32.mrb[10].mxu0  ;;  %v12729_v52 = vpop.f32.mrb[11].mxu1  ;;  %6031 = vrot.lane.b32.xlu0 %v10949_v24, %s11015_s22  ;;  %10202 = vmatpush3.bf16.msra.mxu0 %v12409_v53  ;;  %v12741_v17 = vadd.f32 %v12619_v30, %v12718_v62  ;;  %v10951_v18 = vld [vmem:[%s11384_s25 + $0x380] sm:$0xff]  }
 0x1c2   : > { %v12734_v46 = vpop.f32.mrb[11].mxu0  ;;  %6033 = vrot.lane.b32.xlu1 %v10950_v61, %s11015_s22  ;;  %10084 = vmatmul.mubr.msk.bf16.gmra.mrb[116].mxu1 %vm4842_vm2, %v4775_v10  ;;  %v12749_v53 = vadd.f32 %v12621_v32, %v12718_v62  ;;  %v12753_v61 = vadd.f32 %v12718_v62, %v12625_v5  ;;  %v12764_v13 = vadd.f32 %v12718_v62, %v12631_v6 }
 0x1c3   : > { %10127 = vmatprep.mubr.msk.bf16.mxu0 %vm4842_vm2, %v5105_v26  ;;  %10160 = vmatpush3.bf16.msra.mxu1 %v12435_v57  ;;  %v12768_v32 = vadd.f32 %v12635_v43, %v12718_v62  ;;  %v12772_v5 = vadd.f32 %v12633_v7, %v12718_v62  ;;  %v12784_v6 = vadd.f32 %v12718_v62, %v12639_v28 }
 0x1c4   : > { %10128 = vmatmul.mubr.msk.bf16.gmra.mrb[116].mxu0 %vm4842_vm2, %v5107_v21  ;;  %v4745_v59 = vpop.permute.xlu0 %4744  ;;  %v4747_v47 = vpop.permute.xlu1 %4746  ;;  %10203 = vmatprep.subr.bf16.mxu0 %v12435_v57  ;;  %v12788_v43 = vadd.f32 %v12718_v62, %v12647_v4  ;;  %v12792_v7 = vadd.f32 %v12659_v55, %v12718_v62  ;;  %v12802_v28 = vadd.f32 %v12666_v1, %v12718_v62 }
 0x1c5   : > { %v4777_v30 = vsel %vm1995_vm1, %v11720_v14, %v4745_v59  ;;  %v12757_v34 = vpop.f32.mrb[12].mxu1  ;;  %6352 = vrot.lane.b32.xlu0 %v10951_v18, %s11015_s22  ;;  %10204 = vmatpush3.bf16.msra.mxu0 %v12435_v57  ;;  %v10952_v14 = vld [vmem:[%s11384_s25 + $0x388] sm:$0xff]   ;;  %v12806_v4 = vadd.f32 %v12718_v62, %v12668_v0  ;;  %v12810_v55 = vadd.f32 %v12718_v62, %v12670_v49 }
 0x1c6   : > { %6354 = vrot.lane.b32.xlu1 %v10952_v14, %s11015_s22  ;;  %v12776_v10 = vpop.f32.mrb[12].mxu0  ;;  %v12778_v26 = vpop.f32.mrb[13].mxu1  ;;  %10087 = vmatprep.mubr.msk.bf16.mxu1 %vm4842_vm2, %v4777_v30  ;;  %v12814_v59 = vadd.f32 %v12672_v16, %v12718_v62  ;;  %v4779_v14 = vsel %vm1995_vm1, %v11729_v25, %v4747_v47  ;;  %v10954_v47 = vld [vmem:[%s11384_s25 + $0x318] sm:$0xff]  }
 0x1c7   : > { %v12794_v21 = vpop.f32.mrb[13].mxu0  ;;  %v12796_v24 = vpop.f32.mrb[14].mxu1  ;;  %10161 = vmatprep.subr.bf16.mxu1 %v12450_v42  ;;  %10205 = vmatprep.subr.bf16.mxu0 %v12450_v42 }
 0x1c8   : > { %v5077_v30 = vpop.permute.xlu0 %5076  ;;  %v5079_v18 = vpop.permute.xlu1 %5078  ;;  %10162 = vmatpush3.bf16.msra.mxu1 %v12450_v42 }
 0x1c9   : > { %v5109_v0 = vsel %vm1995_vm1, %v11895_v58, %v5077_v30  ;;  %v5111_v49 = vsel %vm1995_vm1, %v11919_v38, %v5079_v18  ;;  %v12824_v57 = vpop.f32.mrb[14].mxu0  ;;  %v12826_v16 = vpop.f32.mrb[15].mxu1  ;;  %6035 = vrot.lane.b32.xlu0 %v10953_v37, %s11015_s22  ;;  %10206 = vmatpush3.bf16.msra.mxu0 %v12450_v42  ;;  %v12836_v58 = vadd.f32 %v12680_v20, %v12718_v62  ;;  %v10956_v42 = vld [vmem:[%s11384_s25 + $0x398] sm:$0xff]  }
 0x1ca   : > { %v12838_v38 = vpop.f32.mrb[15].mxu0  ;;  %6037 = vrot.lane.b32.xlu1 %v10954_v47, %s11015_s22  ;;  %10088 = vmatmul.mubr.msk.bf16.gmra.mrb[120].mxu1 %vm4842_vm2, %v4779_v14  ;;  %v12848_v18 = vadd.f32 %v12718_v62, %v12686_v29  ;;  %v12865_v20 = vadd.f32 %v12698_v54, %v12718_v62  ;;  %v12875_v29 = vadd.f32 %v12704_v63, %v12718_v62 }
 0x1cb   : > { %10131 = vmatprep.mubr.msk.bf16.mxu0 %vm4842_vm2, %v5109_v0  ;;  %10163 = vmatprep.subr.bf16.mxu1 %v12476_v11  ;;  %v12861_v0 = vadd.f32 %v12718_v62, %v12682_v33  ;;  %v12879_v33 = vadd.f32 %v12718_v62, %v12709_v36  ;;  %v12888_v47 = vadd.f32 %v12727_v15, %v12718_v62 }
 0x1cc   : > { %10132 = vmatmul.mubr.msk.bf16.gmra.mrb[120].mxu0 %vm4842_vm2, %v5111_v49  ;;  %v4749_v30 = vpop.permute.xlu0 %4748  ;;  %v4751_v22 = vpop.permute.xlu1 %4750  ;;  %10164 = vmatpush3.bf16.msra.mxu1 %v12476_v11  ;;  %v10955_v49 = vld [vmem:[%s11384_s25 + $0x390] sm:$0xff]  }
 0x1cd   : > { %v4781_v14 = vsel %vm1995_vm1, %v11767_v2, %v4749_v30  ;;  %v9837_v25 = vpop.f32.mrb[16].mxu1  ;;  %6356 = vrot.lane.b32.xlu0 %v10955_v49, %s11015_s22  ;;  %10207 = vmatprep.subr.bf16.mxu0 %v12476_v11 }
 0x1ce   : > { %v2456_v54 = vadd.f32 %v9837_v25, %v12718_v62  ;;  %6358 = vrot.lane.b32.xlu1 %v10956_v42, %s11015_s22  ;;  %v2447_v2 = vpop.f32.mrb[17].mxu1  ;;  %v9877_v30 = vpop.f32.mrb[16].mxu0  ;;  %10091 = vmatprep.mubr.msk.bf16.mxu1 %vm4842_vm2, %v4781_v14  ;;  %v15700_v25 = vld [vmem:[#allocation11_spill] sm:$0xff] }
 0x1cf   : > { %v2448_v63 = vadd.f32 %v12718_v62, %v2447_v2  ;;  %v2873_v36 = vadd.f32 %v9877_v30, %v12718_v62  ;;  %v9838_v37 = vpop.f32.mrb[18].mxu1  ;;  %v2864_v1 = vpop.f32.mrb[17].mxu0  ;;  %10208 = vmatpush3.bf16.msra.mxu0 %v12476_v11  ;;  %10165 = vmatprep.subr.bf16.mxu1 %v12491_v48  ;;  %v4783_v42 = vsel %vm1995_vm1, %v15700_v25, %v4751_v22  ;;  %v15701_v30 = vld [vmem:[#allocation18_spill] sm:$0xff] }
 0x1d0   : > { %v2576_v14 = vmax.f32 %v2456_v54, 0.0  ;;  %v2459_v49 = vadd.f32 %v9838_v37, %v12718_v62  ;;  %v2865_v15 = vadd.f32 %v12718_v62, %v2864_v1  ;;  %v5081_v60 = vpop.permute.xlu0 %5080  ;;  %v5083_v8 = vpop.permute.xlu1 %5082  ;;  %10166 = vmatpush3.bf16.msra.mxu1 %v12491_v48  ;;  %10209 = vmatprep.subr.bf16.mxu0 %v12491_v48  ;;  %v10957_v37 = vld [vmem:[%s11384_s25 + $0x320] sm:$0xff]   ;;  %v15703_v1 = vmax.f32 %v12749_v53, 0.0 }
 0x1d1   : > { %v2574_v2 = vmax.f32 %v2448_v63, 0.0  ;;  %v2993_v11 = vmax.f32 %v2873_v36, 0.0  ;;  %v5113_v12 = vsel %vm1995_vm1, %v15701_v30, %v5081_v60  ;;  %v5115_v22 = vsel %vm1995_vm1, %v15702_v50, %v5083_v8  ;;  %v2450_v54 = vpop.f32.mrb[19].mxu1  ;;  %v9878_v25 = vpop.f32.mrb[18].mxu0  ;;  %6039 = vrot.lane.b32.xlu0 %v10957_v37, %s11015_s22  ;;  %10243 = vmatprep.subr.bf16.mxu1 %v12216_v19 }
 0x1d2   : > { %v2608_v27 = vmax.f32 %v15703_v1, %v2576_v14  ;;  %v2577_v23 = vmax.f32 %v2459_v49, 0.0  ;;  %v2991_v3 = vmax.f32 %v2865_v15, 0.0  ;;  %v2451_v63 = vadd.f32 %v12718_v62, %v2450_v54  ;;  %v2867_v36 = vpop.f32.mrb[19].mxu0  ;;  %6041 = vrot.lane.b32.xlu1 %v10958_v39, %s11015_s22  ;;  %10092 = vmatmul.mubr.msk.bf16.gmra.mrb[124].mxu1 %vm4842_vm2, %v4783_v42  ;;  %v10960_v1 = vld [vmem:[%s11384_s25 + $0x3a8] sm:$0xff]  }
 0x1d3   : > { %v2199_v50 = vmax.f32 %v12875_v29, 0.0  ;;  %v15704_v8 = vmax.f32 %v12764_v13, 0.0  ;;  %v2876_v30 = vadd.f32 %v9878_v25, %v12718_v62  ;;  %v2868_v53 = vadd.f32 %v12718_v62, %v2867_v36  ;;  %10135 = vmatprep.mubr.msk.bf16.mxu0 %vm4842_vm2, %v5113_v12  ;;  %10210 = vmatpush3.bf16.msra.mxu0 %v12491_v48  ;;  %v15706_v48 = vld [vmem:[#allocation3_spill] sm:$0xff] }
 0x1d4   : > { %v2197_v49 = vmax.f32 %v12879_v33, 0.0  ;;  %v12921_v14 = vmax.f32 %v2608_v27, %v2993_v11  ;;  %v15705_v39 = vmax.f32 %v12768_v32, 0.0  ;;  %v2575_v15 = vmax.f32 %v2451_v63, 0.0  ;;  %10136 = vmatmul.mubr.msk.bf16.gmra.mrb[124].mxu0 %vm4842_vm2, %v5115_v22  ;;  %v4753_v13 = vpop.permute.xlu0 %4752  ;;  %10287 = vmatprep.subr.bf16.mxu0 %v12216_v19  ;;  %v10959_v11 = vld [vmem:[%s11384_s25 + $0x3a0] sm:$0xff]  }
 0x1d5   : > { %v2606_v60 = vmax.f32 %v15704_v8, %v2574_v2  ;;  %v4755_v2 = vpop.permute.xlu1 %4754  ;;  %v2994_v12 = vmax.f32 %v2876_v30, 0.0  ;;  %v2992_v25 = vmax.f32 %v2868_v53, 0.0  ;;  %v4785_v37 = vsel %vm1995_vm1, %v15706_v48, %v4753_v13  ;;  %v9841_v27 = vpop.f32.mrb[20].mxu1  ;;  %6360 = vrot.lane.b32.xlu0 %v10959_v11, %s11015_s22 }
 0x1d6   : > { %v2609_v42 = vmax.f32 %v15705_v39, %v2577_v23  ;;  %v12936_v32 = vadd.f32 %v12718_v62, %v12734_v46  ;;  %v15707_v22 = vmax.f32 %v12784_v6, 0.0  ;;  %6362 = vrot.lane.b32.xlu1 %v10960_v1, %s11015_s22  ;;  %v2463_v63 = vpop.f32.mrb[21].mxu1  ;;  %v9881_v36 = vpop.f32.mrb[20].mxu0  ;;  %10095 = vmatprep.mubr.msk.bf16.mxu1 %vm4842_vm2, %v4785_v37  ;;  %v15710_v1 = vld [vmem:[#allocation24_spill] sm:$0xff] }
 0x1d7   : > { %v12927_v54 = vmax.f32 %v2606_v60, %v2991_v3  ;;  %v2472_v3 = vadd.f32 %v9841_v27, %v12718_v62  ;;  %v15708_v60 = vld [vmem:[#allocation4_spill] sm:$0xff]  ;;  %v2464_v46 = vadd.f32 %v12718_v62, %v2463_v63  ;;  %v2889_v6 = vadd.f32 %v9881_v36, %v12718_v62  ;;  %v9842_v53 = vpop.f32.mrb[22].mxu1  ;;  %v2880_v39 = vpop.f32.mrb[21].mxu0 }
 0x1d8   : > { %v2607_v19 = vmax.f32 %v15707_v22, %v2575_v15  ;;  %v12944_v8 = vmax.f32 %v2609_v42, %v2994_v12  ;;  %v4787_v30 = vsel %vm1995_vm1, %v15708_v60, %v4755_v2  ;;  %v2475_v48 = vadd.f32 %v9842_v53, %v12718_v62  ;;  %v5085_v42 = vpop.permute.xlu0 %5084  ;;  %v15709_v2 = vld [vmem:[#allocation22_spill] sm:$0xff]  ;;  %v2466_v36 = vpop.f32.mrb[23].mxu1 }
 0x1d9   : > { %v2580_v13 = vmax.f32 %v2472_v3, 0.0  ;;  %v2881_v27 = vadd.f32 %v12718_v62, %v2880_v39  ;;  %v5087_v12 = vpop.permute.xlu1 %5086  ;;  %v2578_v37 = vmax.f32 %v2464_v46, 0.0  ;;  %v2997_v11 = vmax.f32 %v2889_v6, 0.0  ;;  %v9882_v60 = vpop.f32.mrb[22].mxu0  ;;  %v10962_v6 = vld [vmem:[%s11384_s25 + $0x338] sm:$0xff]  }
 0x1da   : > { %v12950_v15 = vmax.f32 %v2607_v19, %v2992_v25  ;;  %v5117_v22 = vsel %vm1995_vm1, %v15709_v2, %v5085_v42  ;;  %v5119_v63 = vsel %vm1995_vm1, %v15710_v1, %v5087_v12  ;;  %v10961_v25 = vld [vmem:[%s11384_s25 + $0x330] sm:$0xff]   ;;  %v15711_v19 = vmax.f32 %v12802_v28, 0.0  ;;  %v2883_v46 = vpop.f32.mrb[23].mxu0  ;;  %6045 = vrot.lane.b32.xlu1 %v10962_v6, %s11015_s22  ;;  %10096 = vmatmul.mubr.msk.bf16.gmra.mrb[128].mxu1 %vm4842_vm2, %v4787_v30 }
 0x1db   : > { %6043 = vrot.lane.b32.xlu0 %v10961_v25, %s11015_s22  ;;  %v2581_v53 = vmax.f32 %v2475_v48, 0.0  ;;  %v2995_v39 = vmax.f32 %v2881_v27, 0.0  ;;  %v2467_v23 = vadd.f32 %v12718_v62, %v2466_v36  ;;  %v12968_v42 = vadd.f32 %v12776_v10, %v12718_v62  ;;  %10139 = vmatprep.mubr.msk.bf16.mxu0 %vm4842_vm2, %v5117_v22  ;;  %v15714_v22 = vld [vmem:[#allocation5_spill] sm:$0xff] }
 0x1dc   : > { %v2612_v3 = vmax.f32 %v15711_v19, %v2580_v13  ;;  %v15712_v12 = vmax.f32 %v12810_v55, 0.0  ;;  %v2892_v28 = vadd.f32 %v9882_v60, %v12718_v62  ;;  %v2884_v13 = vadd.f32 %v12718_v62, %v2883_v46  ;;  %10140 = vmatmul.mubr.msk.bf16.gmra.mrb[128].mxu0 %vm4842_vm2, %v5119_v63  ;;  %v4757_v55 = vpop.permute.xlu0 %4756  ;;  %v10963_v46 = vld [vmem:[%s11384_s25 + $0x3b0] sm:$0xff]  }
 0x1dd   : > { %v12977_v48 = vadd.f32 %v12718_v62, %v12794_v21  ;;  %v15713_v30 = vmax.f32 %v12836_v58, 0.0  ;;  %v2579_v1 = vmax.f32 %v2467_v23, 0.0  ;;  %v4789_v19 = vsel %vm1995_vm1, %v15714_v22, %v4757_v55  ;;  %v9845_v21 = vpop.f32.mrb[24].mxu1 }
 0x1de   : > { %v2610_v2 = vmax.f32 %v15712_v12, %v2578_v37  ;;  %v12979_v27 = vmax.f32 %v2612_v3, %v2997_v11  ;;  %v4759_v37 = vpop.permute.xlu1 %4758  ;;  %v2998_v60 = vmax.f32 %v2892_v28, 0.0  ;;  %v2996_v25 = vmax.f32 %v2884_v13, 0.0  ;;  %v9885_v6 = vpop.f32.mrb[24].mxu0  ;;  %10099 = vmatprep.mubr.msk.bf16.mxu1 %vm4842_vm2, %v4789_v19 }
 0x1df   : > { %v2613_v10 = vmax.f32 %v15713_v30, %v2581_v53  ;;  %6364 = vrot.lane.b32.xlu0 %v10963_v46, %s11015_s22  ;;  %v2198_v58 = vmax.f32 %v12936_v32, 0.0  ;;  %v12993_v23 = vadd.f32 %v12824_v57, %v12718_v62  ;;  %v15715_v11 = vmax.f32 %v12848_v18, 0.0  ;;  %v10964_v53 = vld [vmem:[%s11384_s25 + $0x3b8] sm:$0xff]   ;;  %v2896_v13 = vpop.f32.mrb[25].mxu0 }
 0x1e0   : > { %v12984_v36 = vmax.f32 %v2610_v2, %v2995_v39  ;;  %v2488_v3 = vadd.f32 %v9845_v21, %v12718_v62  ;;  %6366 = vrot.lane.b32.xlu1 %v10964_v53, %s11015_s22  ;;  %v2479_v39 = vpop.f32.mrb[25].mxu1  ;;  %v15716_v2 = vld [vmem:[#allocation6_spill] sm:$0xff]  ;;  %v2905_v18 = vadd.f32 %v9885_v6, %v12718_v62  ;;  %v2897_v22 = vadd.f32 %v12718_v62, %v2896_v13  ;;  %v9886_v6 = vpop.f32.mrb[26].mxu0 }
 0x1e1   : > { %v2611_v63 = vmax.f32 %v15715_v11, %v2579_v1  ;;  %v13001_v12 = vmax.f32 %v2613_v10, %v2998_v60  ;;  %v4791_v32 = vsel %vm1995_vm1, %v15716_v2, %v4759_v37  ;;  %v2480_v57 = vadd.f32 %v12718_v62, %v2479_v39  ;;  %v9846_v28 = vpop.f32.mrb[26].mxu1  ;;  %v5089_v10 = vpop.permute.xlu0 %5088  ;;  %v15717_v37 = vld [vmem:[#allocation26_spill] sm:$0xff]  ;;  %v15718_v11 = vld [vmem:[#allocation28_spill] sm:$0xff] }
 0x1e2   : > { %v2584_v1 = vmax.f32 %v2488_v3, 0.0  ;;  %v2491_v55 = vadd.f32 %v9846_v28, %v12718_v62  ;;  %v5091_v60 = vpop.permute.xlu1 %5090  ;;  %v3001_v21 = vmax.f32 %v2905_v18, 0.0  ;;  %v5121_v46 = vsel %vm1995_vm1, %v15717_v37, %v5089_v10  ;;  %v2482_v39 = vpop.f32.mrb[27].mxu1  ;;  %v10966_v18 = vld [vmem:[%s11384_s25 + $0x348] sm:$0xff]   ;;  %10100 = vmatmul.mubr.msk.bf16.gmra.mrb[132].mxu1 %vm4842_vm2, %v4791_v32 }
 0x1e3   : > { %v13007_v30 = vmax.f32 %v2611_v63, %v2996_v25  ;;  %v2582_v19 = vmax.f32 %v2480_v57, 0.0  ;;  %v5123_v53 = vsel %vm1995_vm1, %v15718_v11, %v5091_v60  ;;  %v10965_v25 = vld [vmem:[%s11384_s25 + $0x340] sm:$0xff]   ;;  %v2999_v2 = vmax.f32 %v2897_v22, 0.0  ;;  %v2899_v57 = vpop.f32.mrb[27].mxu0  ;;  %10143 = vmatprep.mubr.msk.bf16.mxu0 %vm4842_vm2, %v5121_v46 }
 0x1e4   : > { %6047 = vrot.lane.b32.xlu0 %v10965_v25, %s11015_s22  ;;  %v2616_v63 = vmax.f32 %v2199_v50, %v2584_v1  ;;  %v2585_v3 = vmax.f32 %v2491_v55, 0.0  ;;  %v2483_v28 = vadd.f32 %v12718_v62, %v2482_v39  ;;  %6049 = vrot.lane.b32.xlu1 %v10966_v18, %s11015_s22  ;;  %v2203_v13 = vmax.f32 %v12968_v42, 0.0  ;;  %v15720_v11 = vld [vmem:[#allocation7_spill] sm:$0xff]  ;;  %v10968_v25 = vld [vmem:[%s11384_s25 + $0x3c8] sm:$0xff]  }
 0x1e5   : > { %v2614_v10 = vmax.f32 %v2197_v49, %v2582_v19  ;;  %v2908_v60 = vadd.f32 %v9886_v6, %v12718_v62  ;;  %v2900_v29 = vadd.f32 %v12718_v62, %v2899_v57  ;;  %v2201_v50 = vmax.f32 %v12977_v48, 0.0  ;;  %10144 = vmatmul.mubr.msk.bf16.gmra.mrb[132].mxu0 %vm4842_vm2, %v5123_v53  ;;  %v4761_v33 = vpop.permute.xlu0 %4760  ;;  %v9849_v39 = vpop.f32.mrb[28].mxu1  ;;  %v10967_v48 = vld [vmem:[%s11384_s25 + $0x3c0] sm:$0xff]  }
 0x1e6   : > { %v13030_v1 = vmax.f32 %v2616_v63, %v3001_v21  ;;  %v15719_v55 = vmax.f32 %v12888_v47, 0.0  ;;  %v2583_v32 = vmax.f32 %v2483_v28, 0.0  ;;  %v4763_v49 = vpop.permute.xlu1 %4762  ;;  %v4793_v46 = vsel %vm1995_vm1, %v15720_v11, %v4761_v33  ;;  %v2495_v63 = vpop.f32.mrb[29].mxu1  ;;  %v15721_v28 = vld [vmem:[#allocation8_spill] sm:$0xff] }
 0x1e7   : > { %v13035_v42 = vmax.f32 %v2614_v10, %v2999_v2  ;;  %v3002_v19 = vmax.f32 %v2908_v60, 0.0  ;;  %v3000_v37 = vmax.f32 %v2900_v29, 0.0  ;;  %v2204_v47 = vmax.f32 %v12993_v23, 0.0  ;;  %10103 = vmatprep.mubr.msk.bf16.mxu1 %vm4842_vm2, %v4793_v46  ;;  %v15723_v46 = vld [vmem:[#allocation32_spill] sm:$0xff] }
 0x1e8   : > { %v2617_v22 = vmax.f32 %v15719_v55, %v2585_v3  ;;  %6368 = vrot.lane.b32.xlu0 %v10967_v48, %s11015_s22  ;;  %v2114_v21 = vadd.f32 %v12718_v62, %v12838_v38  ;;  %v2615_v6 = vmax.f32 %v2198_v58, %v2583_v32  ;;  %v2504_v53 = vadd.f32 %v9849_v39, %v12718_v62  ;;  %v9889_v3 = vpop.f32.mrb[28].mxu0  ;;  %v9850_v58 = vpop.f32.mrb[30].mxu1 }
 0x1e9   : > { %6370 = vrot.lane.b32.xlu1 %v10968_v25, %s11015_s22  ;;  %v4795_v57 = vsel %vm1995_vm1, %v15721_v28, %v4763_v49  ;;  %v2496_v23 = vadd.f32 %v12718_v62, %v2495_v63  ;;  %v2921_v38 = vadd.f32 %v9889_v3, %v12718_v62  ;;  %v2912_v18 = vpop.f32.mrb[29].mxu0  ;;  %v2507_v29 = vadd.f32 %v9850_v58, %v12718_v62  ;;  %v15722_v49 = vld [vmem:[#allocation30_spill] sm:$0xff]  ;;  %v2498_v48 = vpop.f32.mrb[31].mxu1 }
 0x1ea   : > { %v13048_v2 = vmax.f32 %v2617_v22, %v3002_v19  ;;  %v13054_v10 = vmax.f32 %v2615_v6, %v3000_v37  ;;  %v2588_v60 = vmax.f32 %v2504_v53, 0.0  ;;  %v2913_v55 = vadd.f32 %v12718_v62, %v2912_v18  ;;  %v5093_v22 = vpop.permute.xlu0 %5092  ;;  %v5095_v32 = vpop.permute.xlu1 %5094  ;;  %v10969_v37 = vld [vmem:[%s11384_s25 + $0x350] sm:$0xff]   ;;  %v10970_v58 = vld [vmem:[%s11384_s25 + $0x358] sm:$0xff]   ;;  %10104 = vmatmul.mubr.msk.bf16.gmra.mrb[136].mxu1 %vm4842_vm2, %v4795_v57 }
 0x1eb   : > { %v2586_v33 = vmax.f32 %v2496_v23, 0.0  ;;  %v3005_v19 = vmax.f32 %v2921_v38, 0.0  ;;  %v5125_v11 = vsel %vm1995_vm1, %v15722_v49, %v5093_v22  ;;  %v5127_v39 = vsel %vm1995_vm1, %v15723_v46, %v5095_v32  ;;  %v9890_v25 = vpop.f32.mrb[30].mxu0  ;;  %v15724_v49 = vld [vmem:[#allocation9_spill] sm:$0xff] }
 0x1ec   : > { %6051 = vrot.lane.b32.xlu0 %v10969_v37, %s11015_s22  ;;  %v2620_v6 = vmax.f32 %v2203_v13, %v2588_v60  ;;  %v2589_v53 = vmax.f32 %v2507_v29, 0.0  ;;  %v3003_v63 = vmax.f32 %v2913_v55, 0.0  ;;  %v2499_v3 = vadd.f32 %v12718_v62, %v2498_v48  ;;  %v2915_v28 = vpop.f32.mrb[31].mxu0  ;;  %10147 = vmatprep.mubr.msk.bf16.mxu0 %vm4842_vm2, %v5125_v11 }
 0x1ed   : > { %6053 = vrot.lane.b32.xlu1 %v10970_v58, %s11015_s22  ;;  %v13070_v23 = vadd.f32 %v12718_v62, %v12706_v35  ;;  %v2618_v38 = vmax.f32 %v2201_v50, %v2586_v33  ;;  %v2924_v18 = vadd.f32 %v9890_v25, %v12718_v62  ;;  %v2916_v13 = vadd.f32 %v12718_v62, %v2915_v28  ;;  %v9853_v48 = vpop.f32.mrb[32].mxu1  ;;  %v10971_v25 = vld [vmem:[%s11384_s25 + $0x3d0] sm:$0xff]  }
 0x1ee   : > { %v2202_v60 = vmax.f32 %v2114_v21, 0.0  ;;  %v13075_v29 = vmax.f32 %v2620_v6, %v3005_v19  ;;  %v2621_v55 = vmax.f32 %v2204_v47, %v2589_v53  ;;  %v2587_v22 = vmax.f32 %v2499_v3, 0.0  ;;  %10148 = vmatmul.mubr.msk.bf16.gmra.mrb[136].mxu0 %vm4842_vm2, %v5127_v39  ;;  %v4765_v57 = vpop.permute.xlu0 %4764  ;;  %v4767_v32 = vpop.permute.xlu1 %4766  ;;  %v10972_v39 = vld [vmem:[%s11384_s25 + $0x3d8] sm:$0xff]  }
 0x1ef   : > { %v13078_v35 = vmax.f32 %v2618_v38, %v3003_v63  ;;  %v3006_v50 = vmax.f32 %v2924_v18, 0.0  ;;  %v3004_v33 = vmax.f32 %v2916_v13, 0.0  ;;  %v4797_v46 = vsel %vm1995_vm1, %v15724_v49, %v4765_v57  ;;  %v2511_v37 = vpop.f32.mrb[33].mxu1  ;;  %v9893_v6 = vpop.f32.mrb[32].mxu0  ;;  %v15725_v63 = vld [vmem:[#allocation10_spill] sm:$0xff] }
 0x1f0   : > { %6372 = vrot.lane.b32.xlu0 %v10971_v25, %s11015_s22  ;;  %v2210_v21 = vmax.f32 %v12861_v0, 0.0  ;;  %v13087_v47 = vadd.f32 %v12711_v51, %v12718_v62  ;;  %v2619_v19 = vmax.f32 %v2202_v60, %v2587_v22  ;;  %v2520_v11 = vadd.f32 %v9853_v48, %v12718_v62  ;;  %10107 = vmatprep.mubr.msk.bf16.mxu1 %vm4842_vm2, %v4797_v46  ;;  %v9854_v58 = vpop.f32.mrb[34].mxu1  ;;  %v2928_v38 = vpop.f32.mrb[33].mxu0  ;;  %v15727_v48 = vld [vmem:[#allocation36_spill] sm:$0xff] }
 0x1f1   : > { %6374 = vrot.lane.b32.xlu1 %v10972_v39, %s11015_s22  ;;  %v13093_v53 = vmax.f32 %v2621_v55, %v3006_v50  ;;  %v4799_v3 = vsel %vm1995_vm1, %v15725_v63, %v4767_v32  ;;  %v2512_v28 = vadd.f32 %v12718_v62, %v2511_v37  ;;  %v2937_v51 = vadd.f32 %v9893_v6, %v12718_v62  ;;  %v15726_v32 = vld [vmem:[#allocation34_spill] sm:$0xff]  ;;  %v2514_v39 = vpop.f32.mrb[35].mxu1  ;;  %v9894_v37 = vpop.f32.mrb[34].mxu0 }
 0x1f2   : > { %v13099_v18 = vmax.f32 %v2619_v19, %v3004_v33  ;;  %v2592_v13 = vmax.f32 %v2520_v11, 0.0  ;;  %v2523_v60 = vadd.f32 %v9854_v58, %v12718_v62  ;;  %v2929_v22 = vadd.f32 %v12718_v62, %v2928_v38  ;;  %v5097_v55 = vpop.permute.xlu0 %5096  ;;  %v5099_v57 = vpop.permute.xlu1 %5098  ;;  %v10973_v33 = vld [vmem:[%s11384_s25 + $0x360] sm:$0xff]   ;;  %10108 = vmatmul.mubr.msk.bf16.gmra.mrb[140].mxu1 %vm4842_vm2, %v4799_v3 }
 0x1f3   : > { %v2590_v50 = vmax.f32 %v2512_v28, 0.0  ;;  %v3009_v49 = vmax.f32 %v2937_v51, 0.0  ;;  %v5129_v46 = vsel %vm1995_vm1, %v15726_v32, %v5097_v55  ;;  %v5131_v25 = vsel %vm1995_vm1, %v15727_v48, %v5099_v57  ;;  %v2931_v28 = vpop.f32.mrb[35].mxu0  ;;  %v10974_v51 = vld [vmem:[%s11384_s25 + $0x368] sm:$0xff]  }
 0x1f4   : > { %6055 = vrot.lane.b32.xlu0 %v10973_v33, %s11015_s22  ;;  %v15728_v19 = vmax.f32 %v12741_v17, 0.0  ;;  %v2593_v6 = vmax.f32 %v2523_v60, 0.0  ;;  %v3007_v63 = vmax.f32 %v2929_v22, 0.0  ;;  %v2515_v58 = vadd.f32 %v12718_v62, %v2514_v39  ;;  %10151 = vmatprep.mubr.msk.bf16.mxu0 %vm4842_vm2, %v5129_v46  ;;  %v15731_v46 = vld [vmem:[#allocation12_spill] sm:$0xff] }
 0x1f5   : > { %6057 = vrot.lane.b32.xlu1 %v10974_v51, %s11015_s22  ;;  %v13117_v38 = vadd.f32 %v12718_v62, %v12729_v52  ;;  %v15729_v55 = vmax.f32 %v12753_v61, 0.0  ;;  %v2940_v17 = vadd.f32 %v9894_v37, %v12718_v62  ;;  %v13126_v60 = vadd.f32 %v12757_v34, %v12718_v62  ;;  %v9857_v34 = vpop.f32.mrb[36].mxu1 }
 0x1f6   : > { %v2624_v11 = vmax.f32 %v15728_v19, %v2592_v13  ;;  %v2932_v13 = vadd.f32 %v12718_v62, %v2931_v28  ;;  %v15730_v3 = vmax.f32 %v12772_v5, 0.0  ;;  %v2591_v32 = vmax.f32 %v2515_v58, 0.0  ;;  %10152 = vmatmul.mubr.msk.bf16.gmra.mrb[140].mxu0 %vm4842_vm2, %v5131_v25  ;;  %v5390_v61 = vpop.permute.xlu0 %5389  ;;  %v10975_v19 = vld [vmem:[%s11384_s25 + $0x3e0] sm:$0xff]   ;;  %v2527_v58 = vpop.f32.mrb[37].mxu1 }
 0x1f7   : > { %v2622_v57 = vmax.f32 %v15729_v55, %v2590_v50  ;;  %v5392_v50 = vpop.permute.xlu1 %5391  ;;  %v3010_v39 = vmax.f32 %v2940_v17, 0.0  ;;  %v5422_v33 = vsel %vm1995_vm1, %v15731_v46, %v5390_v61  ;;  %v2215_v5 = vmax.f32 %v12865_v20, 0.0  ;;  %v9897_v28 = vpop.f32.mrb[36].mxu0  ;;  %v15733_v55 = vld [vmem:[#allocation13_spill] sm:$0xff] }
 0x1f8   : > { %v13128_v22 = vmax.f32 %v2624_v11, %v3009_v49  ;;  %v2625_v52 = vmax.f32 %v15730_v3, %v2593_v6  ;;  %v3008_v37 = vmax.f32 %v2932_v13, 0.0  ;;  %6376 = vrot.lane.b32.xlu0 %v10975_v19, %s11015_s22  ;;  %v13142_v49 = vadd.f32 %v12718_v62, %v12778_v26  ;;  %10167 = vmatprep.mubr.msk.bf16.mxu1 %vm4842_vm2, %v5422_v33  ;;  %v9858_v17 = vpop.f32.mrb[38].mxu1  ;;  %v2944_v13 = vpop.f32.mrb[37].mxu0 }
 0x1f9   : > { %v13133_v48 = vmax.f32 %v2622_v57, %v3007_v63  ;;  %v15732_v25 = vmax.f32 %v12788_v43, 0.0  ;;  %v2536_v6 = vadd.f32 %v9857_v34, %v12718_v62  ;;  %v10976_v63 = vld [vmem:[%s11384_s25 + $0x3e8] sm:$0xff]   ;;  %v5424_v57 = vsel %vm1995_vm1, %v15733_v55, %v5392_v50  ;;  %v15734_v50 = vld [vmem:[#allocation38_spill] sm:$0xff] }
 0x1fa   : > { %6378 = vrot.lane.b32.xlu1 %v10976_v63, %s11015_s22  ;;  %v13150_v51 = vmax.f32 %v2625_v52, %v3010_v39  ;;  %v2528_v26 = vadd.f32 %v12718_v62, %v2527_v58  ;;  %v2953_v43 = vadd.f32 %v9897_v28, %v12718_v62  ;;  %v2539_v61 = vadd.f32 %v9858_v17, %v12718_v62  ;;  %v5711_v52 = vpop.permute.xlu0 %5710  ;;  %v2530_v58 = vpop.f32.mrb[39].mxu1 }
 0x1fb   : > { %v2623_v11 = vmax.f32 %v15732_v25, %v2591_v32  ;;  %v2596_v32 = vmax.f32 %v2536_v6, 0.0  ;;  %v2945_v46 = vadd.f32 %v12718_v62, %v2944_v13  ;;  %v5713_v39 = vpop.permute.xlu1 %5712  ;;  %v5743_v19 = vsel %vm1995_vm1, %v15734_v50, %v5711_v52  ;;  %v15735_v25 = vld [vmem:[#allocation40_spill] sm:$0xff]  ;;  %v9898_v28 = vpop.f32.mrb[38].mxu0  ;;  %10168 = vmatmul.mubr.msk.bf16.vlgmr.msra.gmra.mrb[144].mxu1 %vm4842_vm2, %v5424_v57 }
 0x1fc   : > { %v2594_v33 = vmax.f32 %v2528_v26, 0.0  ;;  %v3013_v34 = vmax.f32 %v2953_v43, 0.0  ;;  %v5745_v63 = vsel %vm1995_vm1, %v15735_v25, %v5713_v39  ;;  %v2597_v55 = vmax.f32 %v2539_v61, 0.0  ;;  %v2947_v26 = vpop.f32.mrb[39].mxu0  ;;  %v10978_v43 = vld [vmem:[%s11384_s25 + $0x378] sm:$0xff]   ;;  %10211 = vmatprep.mubr.msk.bf16.mxu0 %vm4842_vm2, %v5743_v19 }
 0x1fd   : > { %v13156_v3 = vmax.f32 %v2623_v11, %v3008_v37  ;;  %v10977_v37 = vld [vmem:[%s11384_s25 + $0x370] sm:$0xff]   ;;  %v15736_v11 = vmax.f32 %v12792_v7, 0.0  ;;  %v3011_v17 = vmax.f32 %v2945_v46, 0.0  ;;  %v2531_v13 = vadd.f32 %v12718_v62, %v2530_v58 }
 0x1fe   : > { %6059 = vrot.lane.b32.xlu0 %v10977_v37, %s11015_s22  ;;  %6061 = vrot.lane.b32.xlu1 %v10978_v43, %s11015_s22  ;;  %v2213_v52 = vmax.f32 %v13070_v23, 0.0  ;;  %v15737_v39 = vmax.f32 %v12806_v4, 0.0  ;;  %v2956_v25 = vadd.f32 %v9898_v28, %v12718_v62  ;;  %v2948_v7 = vadd.f32 %v12718_v62, %v2947_v26  ;;  %v5394_v58 = vpop.permute.xlu0 %5393  ;;  %v10980_v28 = vld [vmem:[%s15526_s3 + $0x8] sm:$0xff]   ;;  %v15740_v26 = vld [vmem:[#allocation15_spill] sm:$0xff]  ;;  %v10984_v23 = vld [vmem:[%s15526_s3 + $0x18] sm:$0xff]  }
 0x1ff   : > { %v2628_v6 = vmax.f32 %v15736_v11, %v2596_v32  ;;  %v10979_v32 = vld [vmem:[%s15526_s3] sm:$0xff]   ;;  %v13183_v57 = vadd.f32 %v12796_v24, %v12718_v62  ;;  %v15738_v4 = vmax.f32 %v12814_v59, 0.0  ;;  %10212 = vmatmul.mubr.msk.bf16.vlgmr.msra.gmra.mrb[144].mxu0 %vm4842_vm2, %v5745_v63  ;;  %v5396_v19 = vpop.permute.xlu1 %5395  ;;  %v9861_v59 = vpop.f32.mrb[40].mxu1  ;;  %v2216_v63 = vmax.f32 %v13087_v47, 0.0 }
 0x200   : > { %v2626_v50 = vmax.f32 %v15737_v39, %v2594_v33  ;;  %10244 = vmatpush3.bf16.msra.mxu1 %v10979_v32  ;;  %v2595_v33 = vmax.f32 %v2531_v13, 0.0  ;;  %v3014_v24 = vmax.f32 %v2956_v25, 0.0  ;;  %v3012_v11 = vmax.f32 %v2948_v7, 0.0  ;;  %10288 = vmatpush3.bf16.msra.mxu0 %v10979_v32  ;;  %v10982_v39 = vld [vmem:[%s11384_s25 + $0x3f8] sm:$0xff]   ;;  %v9901_v25 = vpop.f32.mrb[40].mxu0 }
 0x201   : > { %v13185_v61 = vmax.f32 %v2628_v6, %v3013_v34  ;;  %v2629_v46 = vmax.f32 %v15738_v4, %v2597_v55  ;;  %10245 = vmatprep.subr.bf16.mxu1 %v10980_v28  ;;  %v15739_v34 = vld [vmem:[#allocation14_spill] sm:$0xff]  ;;  %v10981_v55 = vld [vmem:[%s11384_s25 + $0x3f0] sm:$0xff]   ;;  %v5428_v43 = vsel %vm1995_vm1, %v15740_v26, %v5396_v19  ;;  %v2214_v7 = vmax.f32 %v13117_v38, 0.0  ;;  %v2960_v4 = vpop.f32.mrb[41].mxu0  ;;  %10289 = vmatprep.subr.bf16.mxu0 %v10980_v28 }
 0x202   : > { %v13193_v37 = vmax.f32 %v2626_v50, %v3011_v17  ;;  %v5426_v6 = vsel %vm1995_vm1, %v15739_v34, %v5394_v58  ;;  %6380 = vrot.lane.b32.xlu0 %v10981_v55, %s11015_s22  ;;  %v2627_v13 = vmax.f32 %v2210_v21, %v2595_v33  ;;  %v2552_v17 = vadd.f32 %v9861_v59, %v12718_v62  ;;  %v2543_v50 = vpop.f32.mrb[41].mxu1  ;;  %v10983_v38 = vld [vmem:[%s15526_s3 + $0x10] sm:$0xff]   ;;  %v15741_v55 = vld [vmem:[#allocation42_spill] sm:$0xff] }
 0x203   : > { %6382 = vrot.lane.b32.xlu1 %v10982_v39, %s11015_s22  ;;  %10171 = vmatprep.mubr.msk.bf16.mxu1 %vm4842_vm2, %v5426_v6  ;;  %v13209_v32 = vmax.f32 %v2629_v46, %v3014_v24  ;;  %v2544_v47 = vadd.f32 %v12718_v62, %v2543_v50  ;;  %v2969_v0 = vadd.f32 %v9901_v25, %v12718_v62  ;;  %v9862_v21 = vpop.f32.mrb[42].mxu1  ;;  %v5715_v6 = vpop.permute.xlu0 %5714  ;;  %v2217_v20 = vmax.f32 %v13142_v49, 0.0 }
 0x204   : > { %10246 = vmatpush3.bf16.msra.mxu1 %v10980_v28  ;;  %v13213_v33 = vmax.f32 %v2627_v13, %v3012_v11  ;;  %v2600_v58 = vmax.f32 %v2552_v17, 0.0  ;;  %v2555_v19 = vadd.f32 %v9862_v21, %v12718_v62  ;;  %v2961_v34 = vadd.f32 %v12718_v62, %v2960_v4  ;;  %v5717_v59 = vpop.permute.xlu1 %5716  ;;  %v2546_v13 = vpop.f32.mrb[43].mxu1  ;;  %10290 = vmatpush3.bf16.msra.mxu0 %v10980_v28 }
 0x205   : > { %10247 = vmatprep.subr.bf16.mxu1 %v10983_v38  ;;  %v2598_v46 = vmax.f32 %v2544_v47, 0.0  ;;  %v3017_v24 = vmax.f32 %v2969_v0, 0.0  ;;  %v5747_v26 = vsel %vm1995_vm1, %v15741_v55, %v5715_v6  ;;  %v5749_v11 = vsel %vm1995_vm1, %v12190_v40, %v5717_v59  ;;  %v9902_v17 = vpop.f32.mrb[42].mxu0  ;;  %10172 = vmatmul.mubr.msk.bf16.gmra.mrb[148].mxu1 %vm4842_vm2, %v5428_v43  ;;  %v15742_v59 = vld [vmem:[#allocation16_spill] sm:$0xff] }
 0x206   : > { %v2632_v39 = vmax.f32 %v2215_v5, %v2600_v58  ;;  %v2601_v50 = vmax.f32 %v2555_v19, 0.0  ;;  %v3015_v25 = vmax.f32 %v2961_v34, 0.0  ;;  %v2547_v21 = vadd.f32 %v12718_v62, %v2546_v13  ;;  %v2963_v4 = vpop.f32.mrb[43].mxu0  ;;  %10215 = vmatprep.mubr.msk.bf16.mxu0 %vm4842_vm2, %v5747_v26  ;;  %10291 = vmatprep.subr.bf16.mxu0 %v10983_v38 }
 0x207   : > { %v2219_v47 = vmax.f32 %v13126_v60, 0.0  ;;  %v2630_v40 = vmax.f32 %v2213_v52, %v2598_v46  ;;  %v2972_v0 = vadd.f32 %v9902_v17, %v12718_v62  ;;  %v2964_v28 = vadd.f32 %v12718_v62, %v2963_v4  ;;  %10216 = vmatmul.mubr.msk.bf16.gmra.mrb[148].mxu0 %vm4842_vm2, %v5749_v11  ;;  %v5398_v43 = vpop.permute.xlu0 %5397  ;;  %v9865_v46 = vpop.f32.mrb[44].mxu1 }
 0x208   : > { %10248 = vmatpush3.bf16.msra.mxu1 %v10983_v38  ;;  %v13235_v5 = vmax.f32 %v2632_v39, %v3017_v24  ;;  %v2633_v58 = vmax.f32 %v2216_v63, %v2601_v50  ;;  %v2599_v19 = vmax.f32 %v2547_v21, 0.0  ;;  %v5400_v34 = vpop.permute.xlu1 %5399  ;;  %v5430_v49 = vsel %vm1995_vm1, %v15742_v59, %v5398_v43  ;;  %10292 = vmatpush3.bf16.msra.mxu0 %v10983_v38  ;;  %v2559_v11 = vpop.f32.mrb[45].mxu1  ;;  %v15743_v39 = vld [vmem:[#allocation17_spill] sm:$0xff] }
 0x209   : > { %10249 = vmatprep.subr.bf16.mxu1 %v10984_v23  ;;  %v13241_v60 = vmax.f32 %v2630_v40, %v3015_v25  ;;  %v3018_v52 = vmax.f32 %v2972_v0, 0.0  ;;  %v3016_v6 = vmax.f32 %v2964_v28, 0.0  ;;  %v2220_v63 = vmax.f32 %v13183_v57, 0.0  ;;  %v9905_v13 = vpop.f32.mrb[44].mxu0  ;;  %10175 = vmatprep.mubr.msk.bf16.mxu1 %vm4842_vm2, %v5430_v49  ;;  %v9866_v25 = vpop.f32.mrb[46].mxu1 }
 0x20a   : > { %v2178_v24 = vadd.f32 %v12718_v62, %v12826_v16  ;;  %v2631_v55 = vmax.f32 %v2214_v7, %v2599_v19  ;;  %v2568_v26 = vadd.f32 %v9865_v46, %v12718_v62  ;;  %10293 = vmatprep.subr.bf16.mxu0 %v10984_v23  ;;  %v5432_v50 = vsel %vm1995_vm1, %v15743_v39, %v5400_v34  ;;  %v2976_v21 = vpop.f32.mrb[45].mxu0  ;;  %v15744_v34 = vld [vmem:[#allocation45_spill] sm:$0xff]  ;;  %v2562_v59 = vpop.f32.mrb[47].mxu1 }
 0x20b   : > { %v13250_v17 = vmax.f32 %v2633_v58, %v3018_v52  ;;  %v2560_v38 = vadd.f32 %v12718_v62, %v2559_v11  ;;  %v2985_v57 = vadd.f32 %v9905_v13, %v12718_v62  ;;  %v2571_v4 = vadd.f32 %v9866_v25, %v12718_v62  ;;  %v5719_v0 = vpop.permute.xlu0 %5718  ;;  %v10985_v58 = vld [vmem:[%s15526_s3 + $0x20] sm:$0xff]   ;;  %v9906_v49 = vpop.f32.mrb[46].mxu0 }
 0x20c   : > { %10250 = vmatpush3.bf16.msra.mxu1 %v10984_v23  ;;  %v13256_v16 = vmax.f32 %v2631_v55, %v3016_v6  ;;  %v2604_v7 = vmax.f32 %v2568_v26, 0.0  ;;  %v2977_v40 = vadd.f32 %v12718_v62, %v2976_v21  ;;  %v5721_v28 = vpop.permute.xlu1 %5720  ;;  %v5751_v52 = vsel %vm1995_vm1, %v15744_v34, %v5719_v0  ;;  %10294 = vmatpush3.bf16.msra.mxu0 %v10984_v23  ;;  %v2979_v13 = vpop.f32.mrb[47].mxu0 }
 0x20d   : > { %10251 = vmatprep.subr.bf16.mxu1 %v10985_v58  ;;  %v2602_v19 = vmax.f32 %v2560_v38, 0.0  ;;  %v3021_v43 = vmax.f32 %v2985_v57, 0.0  ;;  %v5753_v6 = vsel %vm1995_vm1, %v12229_v31, %v5721_v28  ;;  %v2605_v55 = vmax.f32 %v2571_v4, 0.0  ;;  %10176 = vmatmul.mubr.msk.bf16.gmra.mrb[152].mxu1 %vm4842_vm2, %v5432_v50  ;;  %v10986_v50 = vld [vmem:[%s15526_s3 + $0x28] sm:$0xff]   ;;  %v9917_v0 = vpop.f32.mrb[48].mxu1 }
 0x20e   : > { %v2636_v46 = vmax.f32 %v2219_v47, %v2604_v7  ;;  %v3019_v26 = vmax.f32 %v2977_v40, 0.0  ;;  %v2563_v11 = vadd.f32 %v12718_v62, %v2562_v59  ;;  %10219 = vmatprep.mubr.msk.bf16.mxu0 %vm4842_vm2, %v5751_v52  ;;  %v2988_v38 = vadd.f32 %v9906_v49, %v12718_v62  ;;  %10295 = vmatprep.subr.bf16.mxu0 %v10985_v58  ;;  %v15745_v40 = vld [vmem:[#allocation19_spill] sm:$0xff]  ;;  %v9957_v34 = vpop.f32.mrb[48].mxu0 }
 0x20f   : > { %v2634_v39 = vmax.f32 %v2217_v20, %v2602_v19  ;;  %v2980_v57 = vadd.f32 %v12718_v62, %v2979_v13  ;;  %v2218_v31 = vmax.f32 %v2178_v24, 0.0  ;;  %v2637_v47 = vmax.f32 %v2220_v63, %v2605_v55  ;;  %10220 = vmatmul.mubr.msk.bf16.gmra.mrb[152].mxu0 %vm4842_vm2, %v5753_v6  ;;  %v5402_v21 = vpop.permute.xlu0 %5401  ;;  %v13285_v28 = vld [vmem:[%s15525_s2] ss:$0 sm:$0xff]  ;;  %v15746_v6 = vld [vmem:[#allocation21_spill] sm:$0xff]  ;;  %v3698_v55 = vpop.f32.mrb[49].mxu0 }
 0x210   : > { %10252 = vmatpush3.bf16.msra.mxu1 %v10985_v58  ;;  %v13272_v25 = vmax.f32 %v2636_v46, %v3021_v43  ;;  %v2603_v23 = vmax.f32 %v2563_v11, 0.0  ;;  %v5404_v7 = vpop.permute.xlu1 %5403  ;;  %v3022_v4 = vmax.f32 %v2988_v38, 0.0  ;;  %v5434_v24 = vsel %vm1995_vm1, %v15745_v40, %v5402_v21  ;;  %10296 = vmatpush3.bf16.msra.mxu0 %v10985_v58  ;;  %v3281_v43 = vpop.f32.mrb[49].mxu1 }
 0x211   : > { %10253 = vmatprep.subr.bf16.mxu1 %v10986_v50  ;;  %v13278_v20 = vmax.f32 %v2634_v39, %v3019_v26  ;;  %v3020_v62 = vmax.f32 %v2980_v57, 0.0  ;;  %v3290_v19 = vadd.f32 %v13285_v28, %v9917_v0  ;;  %10179 = vmatprep.mubr.msk.bf16.mxu1 %vm4842_vm2, %v5434_v24  ;;  %v5436_v59 = vsel %vm1995_vm1, %v15746_v6, %v5404_v7  ;;  %v9918_v46 = vpop.f32.mrb[50].mxu1 }
 0x212   : > { %v2635_v63 = vmax.f32 %v2218_v31, %v2603_v23  ;;  %10297 = vmatprep.subr.bf16.mxu0 %v10986_v50  ;;  %v13289_v52 = vmax.f32 %v2637_v47, %v3022_v4  ;;  %v3282_v58 = vadd.f32 %v13285_v28, %v3281_v43  ;;  %v3707_v49 = vadd.f32 %v13285_v28, %v9957_v34  ;;  %v3284_v7 = vpop.f32.mrb[51].mxu1  ;;  %v9958_v4 = vpop.f32.mrb[50].mxu0 }
 0x213   : > { %v3410_v11 = vmax.f32 %v3290_v19, 0.0  ;;  %v3293_v13 = vadd.f32 %v13285_v28, %v9918_v46  ;;  %v3699_v39 = vadd.f32 %v13285_v28, %v3698_v55  ;;  %v5723_v38 = vpop.permute.xlu0 %5722  ;;  %v3285_v0 = vadd.f32 %v13285_v28, %v3284_v7  ;;  %v15747_v46 = vld [vmem:[#allocation23_spill] sm:$0xff] }
 0x214   : > { %10254 = vmatpush3.bf16.msra.mxu1 %v10986_v50  ;;  %v13295_v26 = vmax.f32 %v2635_v63, %v3020_v62  ;;  %v5725_v57 = vpop.permute.xlu1 %5724  ;;  %v3408_v31 = vmax.f32 %v3282_v58, 0.0  ;;  %v3827_v47 = vmax.f32 %v3707_v49, 0.0  ;;  %v5755_v23 = vsel %vm1995_vm1, %v12247_v45, %v5723_v38  ;;  %10298 = vmatpush3.bf16.msra.mxu0 %v10986_v50  ;;  %v3701_v63 = vpop.f32.mrb[51].mxu0 }
 0x215   : > { %v5757_v21 = vsel %vm1995_vm1, %v12260_v41, %v5725_v57  ;;  %v3442_v62 = vmax.f32 %v12921_v14, %v3410_v11  ;;  %v3411_v40 = vmax.f32 %v3293_v13, 0.0  ;;  %v3825_v24 = vmax.f32 %v3699_v39, 0.0  ;;  %10180 = vmatmul.mubr.msk.bf16.gmra.mrb[156].mxu1 %vm4842_vm2, %v5436_v59  ;;  %10223 = vmatprep.mubr.msk.bf16.mxu0 %vm4842_vm2, %v5755_v23  ;;  %v9921_v55 = vpop.f32.mrb[52].mxu1  ;;  %v15748_v57 = vld [vmem:[#allocation25_spill] sm:$0xff] }
 0x216   : > { %v3440_v19 = vmax.f32 %v12927_v54, %v3408_v31  ;;  %v3710_v45 = vadd.f32 %v13285_v28, %v9958_v4  ;;  %v3702_v41 = vadd.f32 %v13285_v28, %v3701_v63  ;;  %v3409_v14 = vmax.f32 %v3285_v0, 0.0  ;;  %v3297_v39 = vpop.f32.mrb[53].mxu1  ;;  %v9961_v38 = vpop.f32.mrb[52].mxu0 }
 0x217   : > { %v13310_v43 = vmax.f32 %v3442_v62, %v3827_v47  ;;  %v3443_v50 = vmax.f32 %v12944_v8, %v3411_v40  ;;  %10224 = vmatmul.mubr.msk.bf16.gmra.mrb[156].mxu0 %vm4842_vm2, %v5757_v21  ;;  %v5406_v34 = vpop.permute.xlu0 %5405  ;;  %v3306_v13 = vadd.f32 %v13285_v28, %v9921_v55  ;;  %v3298_v47 = vadd.f32 %v13285_v28, %v3297_v39  ;;  %v9922_v21 = vpop.f32.mrb[54].mxu1 }
 0x218   : > { %v5408_v6 = vpop.permute.xlu1 %5407  ;;  %v13314_v58 = vmax.f32 %v3440_v19, %v3825_v24  ;;  %v3828_v59 = vmax.f32 %v3710_v45, 0.0  ;;  %v3826_v49 = vmax.f32 %v3702_v41, 0.0  ;;  %v5438_v54 = vsel %vm1995_vm1, %v15747_v46, %v5406_v34  ;;  %v3714_v7 = vpop.f32.mrb[53].mxu0 }
 0x219   : > { %v3441_v11 = vmax.f32 %v12950_v15, %v3409_v14  ;;  %10183 = vmatprep.mubr.msk.bf16.mxu1 %vm4842_vm2, %v5438_v54  ;;  %v5440_v31 = vsel %vm1995_vm1, %v15748_v57, %v5408_v6  ;;  %v3723_v23 = vadd.f32 %v13285_v28, %v9961_v38  ;;  %v3414_v15 = vmax.f32 %v3306_v13, 0.0  ;;  %v9962_v14 = vpop.f32.mrb[54].mxu0 }
 0x21a   : > { %v13321_v8 = vmax.f32 %v3443_v50, %v3828_v59  ;;  %v3309_v62 = vadd.f32 %v13285_v28, %v9922_v21  ;;  %v3715_v40 = vadd.f32 %v13285_v28, %v3714_v7  ;;  %v3412_v63 = vmax.f32 %v3298_v47, 0.0  ;;  %v3300_v50 = vpop.f32.mrb[55].mxu1  ;;  %v3717_v46 = vpop.f32.mrb[55].mxu0  ;;  %v15749_v47 = vld [vmem:[#allocation27_spill] sm:$0xff] }
 0x21b   : > { %v13327_v4 = vmax.f32 %v3441_v11, %v3826_v49  ;;  %v5727_v24 = vpop.permute.xlu0 %5726  ;;  %v3831_v19 = vmax.f32 %v3723_v23, 0.0  ;;  %v3446_v34 = vmax.f32 %v12979_v27, %v3414_v15  ;;  %v3301_v49 = vadd.f32 %v13285_v28, %v3300_v50 }
 0x21c   : > { %v5729_v0 = vpop.permute.xlu1 %5728  ;;  %v5759_v45 = vsel %vm1995_vm1, %v12278_v44, %v5727_v24  ;;  %v3415_v6 = vmax.f32 %v3309_v62, 0.0  ;;  %v3829_v59 = vmax.f32 %v3715_v40, 0.0  ;;  %v3444_v54 = vmax.f32 %v12984_v36, %v3412_v63  ;;  %v15750_v40 = vld [vmem:[#allocation29_spill] sm:$0xff] }
 0x21d   : > { %v5761_v41 = vsel %vm1995_vm1, %v12290_v9, %v5729_v0  ;;  %10184 = vmatmul.mubr.msk.bf16.gmra.mrb[160].mxu1 %vm4842_vm2, %v5440_v31  ;;  %10227 = vmatprep.mubr.msk.bf16.mxu0 %vm4842_vm2, %v5759_v45  ;;  %v3726_v44 = vadd.f32 %v13285_v28, %v9962_v14  ;;  %v3718_v55 = vadd.f32 %v13285_v28, %v3717_v46  ;;  %v3413_v27 = vmax.f32 %v3301_v49, 0.0  ;;  %v9925_v23 = vpop.f32.mrb[56].mxu1 }
 0x21e   : > { %v13342_v9 = vmax.f32 %v3446_v34, %v3831_v19  ;;  %v3447_v11 = vmax.f32 %v13001_v12, %v3415_v6  ;;  %v13346_v38 = vmax.f32 %v3444_v54, %v3829_v59  ;;  %v3322_v7 = vadd.f32 %v13285_v28, %v9925_v23  ;;  %v3313_v15 = vpop.f32.mrb[57].mxu1  ;;  %v9965_v62 = vpop.f32.mrb[56].mxu0  ;;  %v15751_v54 = vld [vmem:[#allocation53_spill] sm:$0xff] }
 0x21f   : > { %10228 = vmatmul.mubr.msk.bf16.gmra.mrb[160].mxu0 %vm4842_vm2, %v5761_v41  ;;  %v5410_v13 = vpop.permute.xlu0 %5409  ;;  %v3832_v57 = vmax.f32 %v3726_v44, 0.0  ;;  %v3830_v31 = vmax.f32 %v3718_v55, 0.0  ;;  %v3445_v21 = vmax.f32 %v13007_v30, %v3413_v27  ;;  %v3314_v0 = vadd.f32 %v13285_v28, %v3313_v15  ;;  %v9926_v19 = vpop.f32.mrb[58].mxu1 }
 0x220   : > { %v5412_v39 = vpop.permute.xlu1 %5411  ;;  %v5442_v36 = vsel %vm1995_vm1, %v15749_v47, %v5410_v13  ;;  %v3739_v63 = vadd.f32 %v13285_v28, %v9965_v62  ;;  %v3730_v45 = vpop.f32.mrb[57].mxu0  ;;  %v3418_v30 = vmax.f32 %v3322_v7, 0.0  ;;  %v3325_v50 = vadd.f32 %v13285_v28, %v9926_v19 }
 0x221   : > { %10187 = vmatprep.mubr.msk.bf16.mxu1 %vm4842_vm2, %v5442_v36  ;;  %v13353_v12 = vmax.f32 %v3447_v11, %v3832_v57  ;;  %v5444_v24 = vsel %vm1995_vm1, %v15750_v40, %v5412_v39  ;;  %v13359_v41 = vmax.f32 %v3445_v21, %v3830_v31  ;;  %v3731_v14 = vadd.f32 %v13285_v28, %v3730_v45  ;;  %v3316_v55 = vpop.f32.mrb[59].mxu1  ;;  %v9966_v11 = vpop.f32.mrb[58].mxu0 }
 0x222   : > { %v3416_v59 = vmax.f32 %v3314_v0, 0.0  ;;  %v3835_v49 = vmax.f32 %v3739_v63, 0.0  ;;  %v3450_v27 = vmax.f32 %v13030_v1, %v3418_v30  ;;  %v3419_v13 = vmax.f32 %v3325_v50, 0.0  ;;  %v3733_v31 = vpop.f32.mrb[59].mxu0  ;;  %v15752_v0 = vld [vmem:[#allocation31_spill] sm:$0xff] }
 0x223   : > { %v5731_v34 = vpop.permute.xlu0 %5730  ;;  %v3833_v39 = vmax.f32 %v3731_v14, 0.0  ;;  %v3317_v57 = vadd.f32 %v13285_v28, %v3316_v55  ;;  %v3734_v36 = vadd.f32 %v13285_v28, %v3733_v31  ;;  %v15753_v14 = vld [vmem:[#allocation33_spill] sm:$0xff] }
 0x224   : > { %v5733_v6 = vpop.permute.xlu1 %5732  ;;  %v5763_v46 = vsel %vm1995_vm1, %v12308_v56, %v5731_v34  ;;  %v3448_v47 = vmax.f32 %v13035_v42, %v3416_v59  ;;  %v3742_v56 = vadd.f32 %v13285_v28, %v9966_v11  ;;  %v13374_v23 = vmax.f32 %v3450_v27, %v3835_v49 }
 0x225   : > { %v5765_v44 = vsel %vm1995_vm1, %v15751_v54, %v5733_v6  ;;  %10188 = vmatmul.mubr.msk.bf16.gmra.mrb[164].mxu1 %vm4842_vm2, %v5444_v24  ;;  %10231 = vmatprep.mubr.msk.bf16.mxu0 %vm4842_vm2, %v5763_v46  ;;  %v3451_v21 = vmax.f32 %v13048_v2, %v3419_v13  ;;  %v3417_v1 = vmax.f32 %v3317_v57, 0.0  ;;  %v3834_v24 = vmax.f32 %v3734_v36, 0.0  ;;  %v9929_v63 = vpop.f32.mrb[60].mxu1  ;;  %v15754_v57 = vld [vmem:[#allocation55_spill] sm:$0xff] }
 0x226   : > { %v13378_v62 = vmax.f32 %v3448_v47, %v3833_v39  ;;  %v3836_v40 = vmax.f32 %v3742_v56, 0.0  ;;  %v3338_v45 = vadd.f32 %v13285_v28, %v9929_v63  ;;  %v3329_v30 = vpop.f32.mrb[61].mxu1  ;;  %v9969_v50 = vpop.f32.mrb[60].mxu0  ;;  %v15755_v47 = vld [vmem:[#allocation57_spill] sm:$0xff] }
 0x227   : > { %10232 = vmatmul.mubr.msk.bf16.gmra.mrb[164].mxu0 %vm4842_vm2, %v5765_v44  ;;  %v5414_v7 = vpop.permute.xlu0 %5413  ;;  %v3449_v19 = vmax.f32 %v13054_v10, %v3417_v1  ;;  %v3330_v6 = vadd.f32 %v13285_v28, %v3329_v30  ;;  %v3755_v59 = vadd.f32 %v13285_v28, %v9969_v50  ;;  %v9930_v49 = vpop.f32.mrb[62].mxu1 }
 0x228   : > { %v5416_v15 = vpop.permute.xlu1 %5415  ;;  %v5446_v42 = vsel %vm1995_vm1, %v15752_v0, %v5414_v7  ;;  %v13385_v2 = vmax.f32 %v3451_v21, %v3836_v40  ;;  %v3746_v46 = vpop.f32.mrb[61].mxu0  ;;  %v3422_v10 = vmax.f32 %v3338_v45, 0.0  ;;  %v3341_v44 = vadd.f32 %v13285_v28, %v9930_v49 }
 0x229   : > { %10191 = vmatprep.mubr.msk.bf16.mxu1 %vm4842_vm2, %v5446_v42  ;;  %v5448_v34 = vsel %vm1995_vm1, %v15753_v14, %v5416_v15  ;;  %v13391_v54 = vmax.f32 %v3449_v19, %v3834_v24  ;;  %v3747_v55 = vadd.f32 %v13285_v28, %v3746_v46  ;;  %v3420_v13 = vmax.f32 %v3330_v6, 0.0  ;;  %v3332_v36 = vpop.f32.mrb[63].mxu1  ;;  %v9970_v21 = vpop.f32.mrb[62].mxu0 }
 0x22a   : > { %v3839_v39 = vmax.f32 %v3755_v59, 0.0  ;;  %v3454_v1 = vmax.f32 %v13075_v29, %v3422_v10  ;;  %v3423_v7 = vmax.f32 %v3341_v44, 0.0  ;;  %v3333_v40 = vadd.f32 %v13285_v28, %v3332_v36  ;;  %v3749_v24 = vpop.f32.mrb[63].mxu0  ;;  %v15756_v59 = vld [vmem:[#allocation35_spill] sm:$0xff] }
 0x22b   : > { %v5735_v11 = vpop.permute.xlu0 %5734  ;;  %v3837_v15 = vmax.f32 %v3747_v55, 0.0  ;;  %v3452_v0 = vmax.f32 %v13078_v35, %v3420_v13  ;;  %v3758_v42 = vadd.f32 %v13285_v28, %v9970_v21  ;;  %v3750_v63 = vadd.f32 %v13285_v28, %v3749_v24 }
 0x22c   : > { %v5737_v27 = vpop.permute.xlu1 %5736  ;;  %v5767_v31 = vsel %vm1995_vm1, %v15754_v57, %v5735_v11  ;;  %v13406_v19 = vmax.f32 %v3454_v1, %v3839_v39  ;;  %v3455_v45 = vmax.f32 %v13093_v53, %v3423_v7  ;;  %v3421_v29 = vmax.f32 %v3333_v40, 0.0  ;;  %v15757_v11 = vld [vmem:[#allocation37_spill] sm:$0xff]  ;;  %v15758_v40 = vld [vmem:[#allocation59_spill] sm:$0xff] }
 0x22d   : > { %v5769_v56 = vsel %vm1995_vm1, %v15755_v47, %v5737_v27  ;;  %10192 = vmatmul.mubr.msk.bf16.gmra.mrb[168].mxu1 %vm4842_vm2, %v5448_v34  ;;  %10235 = vmatprep.mubr.msk.bf16.mxu0 %vm4842_vm2, %v5767_v31  ;;  %v13410_v14 = vmax.f32 %v3452_v0, %v3837_v15  ;;  %v3840_v34 = vmax.f32 %v3758_v42, 0.0  ;;  %v3838_v6 = vmax.f32 %v3750_v63, 0.0  ;;  %v9933_v49 = vpop.f32.mrb[64].mxu1  ;;  %v15759_v0 = vld [vmem:[#allocation61_spill] sm:$0xff] }
 0x22e   : > { %v3453_v46 = vmax.f32 %v13099_v18, %v3421_v29  ;;  %v3354_v10 = vadd.f32 %v13285_v28, %v9933_v49  ;;  %v3345_v44 = vpop.f32.mrb[65].mxu1  ;;  %v9973_v55 = vpop.f32.mrb[64].mxu0 }
 0x22f   : > { %10236 = vmatmul.mubr.msk.bf16.gmra.mrb[168].mxu0 %vm4842_vm2, %v5769_v56  ;;  %v5418_v30 = vpop.permute.xlu0 %5417  ;;  %v13417_v53 = vmax.f32 %v3455_v45, %v3840_v34  ;;  %v3346_v13 = vadd.f32 %v13285_v28, %v3345_v44  ;;  %v3771_v39 = vadd.f32 %v13285_v28, %v9973_v55  ;;  %v9934_v57 = vpop.f32.mrb[66].mxu1 }
 0x230   : > { %v5420_v50 = vpop.permute.xlu1 %5419  ;;  %v5450_v35 = vsel %vm1995_vm1, %v15756_v59, %v5418_v30  ;;  %v3762_v31 = vpop.f32.mrb[65].mxu0  ;;  %v13423_v47 = vmax.f32 %v3453_v46, %v3838_v6  ;;  %v3426_v18 = vmax.f32 %v3354_v10, 0.0  ;;  %v3357_v56 = vadd.f32 %v13285_v28, %v9934_v57 }
 0x231   : > { %10195 = vmatprep.mubr.msk.bf16.mxu1 %vm4842_vm2, %v5450_v35  ;;  %v5452_v27 = vsel %vm1995_vm1, %v15757_v11, %v5420_v50  ;;  %v3763_v36 = vadd.f32 %v13285_v28, %v3762_v31  ;;  %v3424_v7 = vmax.f32 %v3346_v13, 0.0  ;;  %v3843_v15 = vmax.f32 %v3771_v39, 0.0  ;;  %v3348_v63 = vpop.f32.mrb[67].mxu1  ;;  %v9974_v45 = vpop.f32.mrb[66].mxu0  ;;  %v15760_v39 = vld [vmem:[#allocation39_spill] sm:$0xff] }
 0x232   : > { %v3458_v29 = vmax.f32 %v13128_v22, %v3426_v18  ;;  %v3427_v30 = vmax.f32 %v3357_v56, 0.0  ;;  %v3349_v34 = vadd.f32 %v13285_v28, %v3348_v63  ;;  %v3765_v6 = vpop.f32.mrb[67].mxu0  ;;  %v3774_v35 = vadd.f32 %v13285_v28, %v9974_v45 }
 0x233   : > { %v5739_v21 = vpop.permute.xlu0 %5738  ;;  %v3841_v50 = vmax.f32 %v3763_v36, 0.0  ;;  %v3456_v59 = vmax.f32 %v13133_v48, %v3424_v7  ;;  %v3766_v49 = vadd.f32 %v13285_v28, %v3765_v6 }
 0x234   : > { %v5741_v1 = vpop.permute.xlu1 %5740  ;;  %v5771_v24 = vsel %vm1995_vm1, %v15758_v40, %v5739_v21  ;;  %v13438_v46 = vmax.f32 %v3458_v29, %v3843_v15  ;;  %v3459_v10 = vmax.f32 %v13150_v51, %v3427_v30  ;;  %v3425_v22 = vmax.f32 %v3349_v34, 0.0  ;;  %v15761_v21 = vld [vmem:[#allocation41_spill] sm:$0xff]  ;;  %v15762_v34 = vld [vmem:[#allocation63_spill] sm:$0xff] }
 0x235   : > { %v5773_v42 = vsel %vm1995_vm1, %v15759_v0, %v5741_v1  ;;  %10196 = vmatmul.mubr.msk.bf16.gmra.mrb[172].mxu1 %vm4842_vm2, %v5452_v27  ;;  %10239 = vmatprep.mubr.msk.bf16.mxu0 %vm4842_vm2, %v5771_v24  ;;  %v13442_v11 = vmax.f32 %v3456_v59, %v3841_v50  ;;  %v3844_v27 = vmax.f32 %v3774_v35, 0.0  ;;  %v3842_v13 = vmax.f32 %v3766_v49, 0.0  ;;  %v9937_v57 = vpop.f32.mrb[68].mxu1  ;;  %v15763_v59 = vld [vmem:[#allocation64_spill] sm:$0xff] }
 0x236   : > { %v3457_v31 = vmax.f32 %v13156_v3, %v3425_v22  ;;  %v3370_v18 = vadd.f32 %v13285_v28, %v9937_v57  ;;  %v3361_v56 = vpop.f32.mrb[69].mxu1  ;;  %v9977_v36 = vpop.f32.mrb[68].mxu0 }
 0x237   : > { %10240 = vmatmul.mubr.msk.bf16.gmra.mrb[172].mxu0 %vm4842_vm2, %v5773_v42  ;;  %v6032_v44 = vpop.permute.xlu0 %6031  ;;  %v13449_v51 = vmax.f32 %v3459_v10, %v3844_v27  ;;  %v3362_v7 = vadd.f32 %v13285_v28, %v3361_v56  ;;  %v3787_v15 = vadd.f32 %v13285_v28, %v9977_v36  ;;  %v9938_v40 = vpop.f32.mrb[70].mxu1 }
 0x238   : > { %v6034_v55 = vpop.permute.xlu1 %6033  ;;  %v6064_v48 = vsel %vm1995_vm1, %v15760_v39, %v6032_v44  ;;  %v3778_v24 = vpop.f32.mrb[69].mxu0  ;;  %v13455_v0 = vmax.f32 %v3457_v31, %v3842_v13  ;;  %v3430_v3 = vmax.f32 %v3370_v18, 0.0  ;;  %v3373_v42 = vadd.f32 %v13285_v28, %v9938_v40 }
 0x239   : > { %10255 = vmatprep.mubr.msk.bf16.mxu1 %vm4842_vm2, %v6064_v48  ;;  %v6066_v1 = vsel %vm1995_vm1, %v15761_v21, %v6034_v55  ;;  %v3779_v63 = vadd.f32 %v13285_v28, %v3778_v24  ;;  %v3428_v30 = vmax.f32 %v3362_v7, 0.0  ;;  %v3847_v50 = vmax.f32 %v3787_v15, 0.0  ;;  %v3364_v49 = vpop.f32.mrb[71].mxu1  ;;  %v9978_v10 = vpop.f32.mrb[70].mxu0  ;;  %v15764_v15 = vld [vmem:[#allocation43_spill] sm:$0xff] }
 0x23a   : > { %v3462_v22 = vmax.f32 %v13185_v61, %v3430_v3  ;;  %v3431_v44 = vmax.f32 %v3373_v42, 0.0  ;;  %v3365_v27 = vadd.f32 %v13285_v28, %v3364_v49  ;;  %v3781_v13 = vpop.f32.mrb[71].mxu0  ;;  %v3790_v48 = vadd.f32 %v13285_v28, %v9978_v10 }
 0x23b   : > { %v6353_v45 = vpop.permute.xlu0 %6352  ;;  %v3845_v55 = vmax.f32 %v3779_v63, 0.0  ;;  %v3460_v39 = vmax.f32 %v13193_v37, %v3428_v30  ;;  %v3782_v57 = vadd.f32 %v13285_v28, %v3781_v13 }
 0x23c   : > { %v6355_v29 = vpop.permute.xlu1 %6354  ;;  %v6385_v6 = vsel %vm1995_vm1, %v15762_v34, %v6353_v45  ;;  %v13470_v31 = vmax.f32 %v3462_v22, %v3847_v50  ;;  %v3463_v18 = vmax.f32 %v13209_v32, %v3431_v44  ;;  %v3429_v61 = vmax.f32 %v3365_v27, 0.0  ;;  %v15765_v45 = vld [vmem:[#allocation44_spill] sm:$0xff]  ;;  %v15766_v27 = vld [vmem:[#allocation65_spill] sm:$0xff] }
 0x23d   : > { %v6387_v35 = vsel %vm1995_vm1, %v15763_v59, %v6355_v29  ;;  %10256 = vmatmul.mubr.msk.bf16.vlgmr.msra.gmra.mrb[176].mxu1 %vm4842_vm2, %v6066_v1  ;;  %10299 = vmatprep.mubr.msk.bf16.mxu0 %vm4842_vm2, %v6385_v6  ;;  %v13474_v21 = vmax.f32 %v3460_v39, %v3845_v55  ;;  %v3848_v1 = vmax.f32 %v3790_v48, 0.0  ;;  %v3846_v7 = vmax.f32 %v3782_v57, 0.0  ;;  %v9941_v40 = vpop.f32.mrb[72].mxu1  ;;  %v15767_v39 = vld [vmem:[#allocation66_spill] sm:$0xff] }
 0x23e   : > { %v3461_v24 = vmax.f32 %v13213_v33, %v3429_v61  ;;  %v3386_v3 = vadd.f32 %v13285_v28, %v9941_v40  ;;  %v3377_v42 = vpop.f32.mrb[73].mxu1  ;;  %v9981_v63 = vpop.f32.mrb[72].mxu0 }
 0x23f   : > { %10300 = vmatmul.mubr.msk.bf16.vlgmr.msra.gmra.mrb[176].mxu0 %vm4842_vm2, %v6387_v35  ;;  %v6036_v56 = vpop.permute.xlu0 %6035  ;;  %v13481_v32 = vmax.f32 %v3463_v18, %v3848_v1  ;;  %v3378_v30 = vadd.f32 %v13285_v28, %v3377_v42  ;;  %v3803_v50 = vadd.f32 %v13285_v28, %v9981_v63  ;;  %v9942_v34 = vpop.f32.mrb[74].mxu1 }
 0x240   : > { %v6038_v36 = vpop.permute.xlu1 %6037  ;;  %v6068_v37 = vsel %vm1995_vm1, %v15764_v15, %v6036_v56  ;;  %v3794_v6 = vpop.f32.mrb[73].mxu0  ;;  %v13487_v59 = vmax.f32 %v3461_v24, %v3846_v7  ;;  %v3434_v33 = vmax.f32 %v3386_v3, 0.0  ;;  %v3389_v35 = vadd.f32 %v13285_v28, %v9942_v34 }
 0x241   : > { %10259 = vmatprep.mubr.msk.bf16.mxu1 %vm4842_vm2, %v6068_v37  ;;  %v6070_v29 = vsel %vm1995_vm1, %v15765_v45, %v6038_v36  ;;  %v3795_v49 = vadd.f32 %v13285_v28, %v3794_v6  ;;  %v3432_v44 = vmax.f32 %v3378_v30, 0.0  ;;  %v3851_v55 = vmax.f32 %v3803_v50, 0.0  ;;  %v3380_v57 = vpop.f32.mrb[75].mxu1  ;;  %v9982_v18 = vpop.f32.mrb[74].mxu0  ;;  %v15768_v50 = vld [vmem:[#allocation46_spill] sm:$0xff] }
 0x242   : > { %v3466_v61 = vmax.f32 %v13235_v5, %v3434_v33  ;;  %v3435_v56 = vmax.f32 %v3389_v35, 0.0  ;;  %v3381_v1 = vadd.f32 %v13285_v28, %v3380_v57  ;;  %v3797_v7 = vpop.f32.mrb[75].mxu0  ;;  %v3806_v37 = vadd.f32 %v13285_v28, %v9982_v18 }
 0x243   : > { %v6357_v10 = vpop.permute.xlu0 %6356  ;;  %v3849_v36 = vmax.f32 %v3795_v49, 0.0  ;;  %v3464_v15 = vmax.f32 %v13241_v60, %v3432_v44  ;;  %v3798_v40 = vadd.f32 %v13285_v28, %v3797_v7 }
 0x244   : > { %v6359_v22 = vpop.permute.xlu1 %6358  ;;  %v6389_v13 = vsel %vm1995_vm1, %v15766_v27, %v6357_v10  ;;  %v13502_v24 = vmax.f32 %v3466_v61, %v3851_v55  ;;  %v3467_v3 = vmax.f32 %v13250_v17, %v3435_v56  ;;  %v3433_v5 = vmax.f32 %v3381_v1, 0.0  ;;  %v15769_v10 = vld [vmem:[#allocation47_spill] sm:$0xff] }
 0x245   : > { %v6391_v48 = vsel %vm1995_vm1, %v15767_v39, %v6359_v22  ;;  %10260 = vmatmul.mubr.msk.bf16.gmra.mrb[180].mxu1 %vm4842_vm2, %v6070_v29  ;;  %10303 = vmatprep.mubr.msk.bf16.mxu0 %vm4842_vm2, %v6389_v13  ;;  %v13506_v45 = vmax.f32 %v3464_v15, %v3849_v36  ;;  %v3852_v29 = vmax.f32 %v3806_v37, 0.0  ;;  %v3850_v30 = vmax.f32 %v3798_v40, 0.0  ;;  %v9945_v34 = vpop.f32.mrb[76].mxu1  ;;  %v15770_v1 = vld [vmem:[#allocation67_spill] sm:$0xff]  ;;  %v15771_v15 = vld [vmem:[#allocation68_spill] sm:$0xff] }
 0x246   : > { %v3465_v6 = vmax.f32 %v13256_v16, %v3433_v5  ;;  %v3402_v33 = vadd.f32 %v13285_v28, %v9945_v34  ;;  %v3393_v35 = vpop.f32.mrb[77].mxu1  ;;  %v9985_v49 = vpop.f32.mrb[76].mxu0 }
 0x247   : > { %10304 = vmatmul.mubr.msk.bf16.gmra.mrb[180].mxu0 %vm4842_vm2, %v6391_v48  ;;  %v6040_v42 = vpop.permute.xlu0 %6039  ;;  %v13513_v17 = vmax.f32 %v3467_v3, %v3852_v29  ;;  %v3394_v44 = vadd.f32 %v13285_v28, %v3393_v35  ;;  %v3819_v55 = vadd.f32 %v13285_v28, %v9985_v49  ;;  %v9946_v27 = vpop.f32.mrb[78].mxu1 }
 0x248   : > { %v6042_v63 = vpop.permute.xlu1 %6041  ;;  %v6072_v60 = vsel %vm1995_vm1, %v15768_v50, %v6040_v42  ;;  %v3810_v13 = vpop.f32.mrb[77].mxu0  ;;  %v13519_v39 = vmax.f32 %v3465_v6, %v3850_v30  ;;  %v3438_v16 = vmax.f32 %v3402_v33, 0.0  ;;  %v3405_v48 = vadd.f32 %v13285_v28, %v9946_v27 }
 0x249   : > { %10263 = vmatprep.mubr.msk.bf16.mxu1 %vm4842_vm2, %v6072_v60  ;;  %v6074_v22 = vsel %vm1995_vm1, %v15769_v10, %v6042_v63  ;;  %v3811_v57 = vadd.f32 %v13285_v28, %v3810_v13  ;;  %v3436_v56 = vmax.f32 %v3394_v44, 0.0  ;;  %v3855_v36 = vmax.f32 %v3819_v55, 0.0  ;;  %v3396_v40 = vpop.f32.mrb[79].mxu1  ;;  %v9986_v3 = vpop.f32.mrb[78].mxu0  ;;  %v15772_v55 = vld [vmem:[#allocation48_spill] sm:$0xff] }
 0x24a   : > { %v3470_v5 = vmax.f32 %v13272_v25, %v3438_v16  ;;  %v3439_v42 = vmax.f32 %v3405_v48, 0.0  ;;  %v3397_v29 = vadd.f32 %v13285_v28, %v3396_v40  ;;  %v3813_v30 = vpop.f32.mrb[79].mxu0  ;;  %v3822_v60 = vadd.f32 %v13285_v28, %v9986_v3 }
 0x24b   : > { %v6361_v18 = vpop.permute.xlu0 %6360  ;;  %v3853_v63 = vmax.f32 %v3811_v57, 0.0  ;;  %v3468_v50 = vmax.f32 %v13278_v20, %v3436_v56  ;;  %v3814_v34 = vadd.f32 %v13285_v28, %v3813_v30 }
 0x24c   : > { %v6363_v61 = vpop.permute.xlu1 %6362  ;;  %v6393_v7 = vsel %vm1995_vm1, %v15770_v1, %v6361_v18  ;;  %v13534_v6 = vmax.f32 %v3470_v5, %v3855_v36  ;;  %v3471_v33 = vmax.f32 %v13289_v52, %v3439_v42  ;;  %v3437_v25 = vmax.f32 %v3397_v29, 0.0  ;;  %v15773_v18 = vld [vmem:[#allocation49_spill] sm:$0xff] }
 0x24d   : > { %v6395_v37 = vsel %vm1995_vm1, %v15771_v15, %v6363_v61  ;;  %10264 = vmatmul.mubr.msk.bf16.gmra.mrb[184].mxu1 %vm4842_vm2, %v6074_v22  ;;  %10307 = vmatprep.mubr.msk.bf16.mxu0 %vm4842_vm2, %v6393_v7  ;;  %v13538_v10 = vmax.f32 %v3468_v50, %v3853_v63  ;;  %v3856_v22 = vmax.f32 %v3822_v60, 0.0  ;;  %v3854_v44 = vmax.f32 %v3814_v34, 0.0  ;;  %v9997_v27 = vpop.f32.mrb[80].mxu1  ;;  %v15774_v29 = vld [vmem:[#allocation69_spill] sm:$0xff]  ;;  %v15775_v50 = vld [vmem:[#allocation70_spill] sm:$0xff] }
 0x24e   : > { %v3469_v13 = vmax.f32 %v13295_v26, %v3437_v25  ;;  %v4124_v16 = vadd.f32 %v13285_v28, %v9997_v27  ;;  %v4115_v48 = vpop.f32.mrb[81].mxu1  ;;  %v10037_v57 = vpop.f32.mrb[80].mxu0 }
 0x24f   : > { %10308 = vmatmul.mubr.msk.bf16.gmra.mrb[184].mxu0 %vm4842_vm2, %v6395_v37  ;;  %v6044_v35 = vpop.permute.xlu0 %6043  ;;  %v13545_v52 = vmax.f32 %v3471_v33, %v3856_v22  ;;  %v4116_v56 = vadd.f32 %v13285_v28, %v4115_v48  ;;  %v4541_v36 = vadd.f32 %v13285_v28, %v10037_v57  ;;  %v9998_v1 = vpop.f32.mrb[82].mxu1 }
 0x250   : > { %v6046_v49 = vpop.permute.xlu1 %6045  ;;  %v6076_v20 = vsel %vm1995_vm1, %v15772_v55, %v6044_v35  ;;  %v4532_v7 = vpop.f32.mrb[81].mxu0  ;;  %v13551_v15 = vmax.f32 %v3469_v13, %v3854_v44  ;;  %v4244_v26 = vmax.f32 %v4124_v16, 0.0  ;;  %v4127_v37 = vadd.f32 %v13285_v28, %v9998_v1 }
 0x251   : > { %10267 = vmatprep.mubr.msk.bf16.mxu1 %vm4842_vm2, %v6076_v20  ;;  %v6078_v61 = vsel %vm1995_vm1, %v15773_v18, %v6046_v49  ;;  %v4533_v40 = vadd.f32 %v13285_v28, %v4532_v7  ;;  %v4242_v42 = vmax.f32 %v4116_v56, 0.0  ;;  %v4661_v63 = vmax.f32 %v4541_v36, 0.0  ;;  %v4118_v34 = vpop.f32.mrb[83].mxu1  ;;  %v10038_v33 = vpop.f32.mrb[82].mxu0  ;;  %v15776_v36 = vld [vmem:[#allocation50_spill] sm:$0xff] }
 0x252   : > { %v4276_v25 = vmax.f32 %v13310_v43, %v4244_v26  ;;  %v4245_v35 = vmax.f32 %v4127_v37, 0.0  ;;  %v4119_v22 = vadd.f32 %v13285_v28, %v4118_v34  ;;  %v4535_v44 = vpop.f32.mrb[83].mxu0  ;;  %v4544_v20 = vadd.f32 %v13285_v28, %v10038_v33 }
 0x253   : > { %v6365_v3 = vpop.permute.xlu0 %6364  ;;  %v4659_v49 = vmax.f32 %v4533_v40, 0.0  ;;  %v4274_v55 = vmax.f32 %v13314_v58, %v4242_v42  ;;  %v4536_v27 = vadd.f32 %v13285_v28, %v4535_v44 }
 0x254   : > { %v6367_v5 = vpop.permute.xlu1 %6366  ;;  %v6397_v30 = vsel %vm1995_vm1, %v15774_v29, %v6365_v3  ;;  %v13566_v13 = vmax.f32 %v4276_v25, %v4661_v63  ;;  %v4277_v16 = vmax.f32 %v13321_v8, %v4245_v35  ;;  %v4243_v43 = vmax.f32 %v4119_v22, 0.0  ;;  %v15777_v3 = vld [vmem:[#allocation51_spill] sm:$0xff] }
 0x255   : > { %v6399_v60 = vsel %vm1995_vm1, %v15775_v50, %v6367_v5  ;;  %10268 = vmatmul.mubr.msk.bf16.gmra.mrb[188].mxu1 %vm4842_vm2, %v6078_v61  ;;  %10311 = vmatprep.mubr.msk.bf16.mxu0 %vm4842_vm2, %v6397_v30  ;;  %v13570_v18 = vmax.f32 %v4274_v55, %v4659_v49  ;;  %v4662_v61 = vmax.f32 %v4544_v20, 0.0  ;;  %v4660_v56 = vmax.f32 %v4536_v27, 0.0  ;;  %v10001_v1 = vpop.f32.mrb[84].mxu1  ;;  %v15778_v22 = vld [vmem:[#allocation71_spill] sm:$0xff]  ;;  %v15779_v55 = vld [vmem:[#allocation72_spill] sm:$0xff] }
 0x256   : > { %v4275_v7 = vmax.f32 %v13327_v4, %v4243_v43  ;;  %v4140_v26 = vadd.f32 %v13285_v28, %v10001_v1  ;;  %v4131_v37 = vpop.f32.mrb[85].mxu1  ;;  %v10041_v40 = vpop.f32.mrb[84].mxu0 }
 0x257   : > { %10312 = vmatmul.mubr.msk.bf16.gmra.mrb[188].mxu0 %vm4842_vm2, %v6399_v60  ;;  %v6048_v48 = vpop.permute.xlu0 %6047  ;;  %v13577_v8 = vmax.f32 %v4277_v16, %v4662_v61  ;;  %v4132_v42 = vadd.f32 %v13285_v28, %v4131_v37  ;;  %v4557_v63 = vadd.f32 %v13285_v28, %v10041_v40  ;;  %v10002_v29 = vpop.f32.mrb[86].mxu1 }
 0x258   : > { %v6050_v57 = vpop.permute.xlu1 %6049  ;;  %v6080_v58 = vsel %vm1995_vm1, %v15776_v36, %v6048_v48  ;;  %v4548_v30 = vpop.f32.mrb[85].mxu0  ;;  %v13583_v50 = vmax.f32 %v4275_v7, %v4660_v56  ;;  %v4248_v4 = vmax.f32 %v4140_v26, 0.0  ;;  %v4143_v60 = vadd.f32 %v13285_v28, %v10002_v29 }
 0x259   : > { %10271 = vmatprep.mubr.msk.bf16.mxu1 %vm4842_vm2, %v6080_v58  ;;  %v6082_v5 = vsel %vm1995_vm1, %v15777_v3, %v6050_v57  ;;  %v4549_v34 = vadd.f32 %v13285_v28, %v4548_v30  ;;  %v4246_v35 = vmax.f32 %v4132_v42, 0.0  ;;  %v4665_v49 = vmax.f32 %v4557_v63, 0.0  ;;  %v4134_v27 = vpop.f32.mrb[87].mxu1  ;;  %v10042_v16 = vpop.f32.mrb[86].mxu0  ;;  %v15780_v63 = vld [vmem:[#allocation52_spill] sm:$0xff] }
 0x25a   : > { %v4280_v43 = vmax.f32 %v13342_v9, %v4248_v4  ;;  %v4249_v48 = vmax.f32 %v4143_v60, 0.0  ;;  %v4135_v61 = vadd.f32 %v13285_v28, %v4134_v27  ;;  %v4551_v56 = vpop.f32.mrb[87].mxu0  ;;  %v4560_v58 = vadd.f32 %v13285_v28, %v10042_v16 }
 0x25b   : > { %v6369_v33 = vpop.permute.xlu0 %6368  ;;  %v4663_v57 = vmax.f32 %v4549_v34, 0.0  ;;  %v4278_v36 = vmax.f32 %v13346_v38, %v4246_v35  ;;  %v4552_v1 = vadd.f32 %v13285_v28, %v4551_v56 }
 0x25c   : > { %v6371_v25 = vpop.permute.xlu1 %6370  ;;  %v6401_v44 = vsel %vm1995_vm1, %v15778_v22, %v6369_v33  ;;  %v13598_v7 = vmax.f32 %v4280_v43, %v4665_v49  ;;  %v4281_v26 = vmax.f32 %v13353_v12, %v4249_v48  ;;  %v4247_v9 = vmax.f32 %v4135_v61, 0.0  ;;  %v15781_v33 = vld [vmem:[#allocation54_spill] sm:$0xff]  ;;  %v15782_v61 = vld [vmem:[#allocation73_spill] sm:$0xff] }
 0x25d   : > { %v6403_v20 = vsel %vm1995_vm1, %v15779_v55, %v6371_v25  ;;  %10272 = vmatmul.mubr.msk.bf16.gmra.mrb[192].mxu1 %vm4842_vm2, %v6082_v5  ;;  %10315 = vmatprep.mubr.msk.bf16.mxu0 %vm4842_vm2, %v6401_v44  ;;  %v13602_v3 = vmax.f32 %v4278_v36, %v4663_v57  ;;  %v4666_v5 = vmax.f32 %v4560_v58, 0.0  ;;  %v4664_v42 = vmax.f32 %v4552_v1, 0.0  ;;  %v10005_v29 = vpop.f32.mrb[88].mxu1  ;;  %v15783_v36 = vld [vmem:[#allocation74_spill] sm:$0xff] }
 0x25e   : > { %v4279_v30 = vmax.f32 %v13359_v41, %v4247_v9  ;;  %v4156_v4 = vadd.f32 %v13285_v28, %v10005_v29  ;;  %v4147_v60 = vpop.f32.mrb[89].mxu1  ;;  %v10045_v34 = vpop.f32.mrb[88].mxu0 }
 0x25f   : > { %10316 = vmatmul.mubr.msk.bf16.gmra.mrb[192].mxu0 %vm4842_vm2, %v6403_v20  ;;  %v6052_v37 = vpop.permute.xlu0 %6051  ;;  %v13609_v12 = vmax.f32 %v4281_v26, %v4666_v5  ;;  %v4148_v35 = vadd.f32 %v13285_v28, %v4147_v60  ;;  %v4573_v49 = vadd.f32 %v13285_v28, %v10045_v34  ;;  %v10006_v22 = vpop.f32.mrb[90].mxu1 }
 0x260   : > { %v6054_v40 = vpop.permute.xlu1 %6053  ;;  %v6084_v38 = vsel %vm1995_vm1, %v15780_v63, %v6052_v37  ;;  %v4564_v44 = vpop.f32.mrb[89].mxu0  ;;  %v13615_v55 = vmax.f32 %v4279_v30, %v4664_v42  ;;  %v4252_v41 = vmax.f32 %v4156_v4, 0.0  ;;  %v4159_v20 = vadd.f32 %v13285_v28, %v10006_v22 }
 0x261   : > { %10275 = vmatprep.mubr.msk.bf16.mxu1 %vm4842_vm2, %v6084_v38  ;;  %v6086_v25 = vsel %vm1995_vm1, %v15781_v33, %v6054_v40  ;;  %v4565_v27 = vadd.f32 %v13285_v28, %v4564_v44  ;;  %v4250_v48 = vmax.f32 %v4148_v35, 0.0  ;;  %v4669_v57 = vmax.f32 %v4573_v49, 0.0  ;;  %v4150_v1 = vpop.f32.mrb[91].mxu1  ;;  %v10046_v26 = vpop.f32.mrb[90].mxu0  ;;  %v15785_v49 = vld [vmem:[#allocation56_spill] sm:$0xff] }
 0x262   : > { %v4284_v9 = vmax.f32 %v13374_v23, %v4252_v41  ;;  %v4253_v37 = vmax.f32 %v4159_v20, 0.0  ;;  %v4151_v5 = vadd.f32 %v13285_v28, %v4150_v1  ;;  %v4567_v42 = vpop.f32.mrb[91].mxu0  ;;  %v4576_v38 = vadd.f32 %v13285_v28, %v10046_v26 }
 0x263   : > { %v6373_v16 = vpop.permute.xlu0 %6372  ;;  %v4667_v40 = vmax.f32 %v4565_v27, 0.0  ;;  %v4282_v63 = vmax.f32 %v13378_v62, %v4250_v48  ;;  %v4568_v29 = vadd.f32 %v13285_v28, %v4567_v42 }
 0x264   : > { %v6375_v43 = vpop.permute.xlu1 %6374  ;;  %v6405_v56 = vsel %vm1995_vm1, %v15782_v61, %v6373_v16  ;;  %v13630_v30 = vmax.f32 %v4284_v9, %v4669_v57  ;;  %v4285_v4 = vmax.f32 %v13385_v2, %v4253_v37  ;;  %v4251_v23 = vmax.f32 %v4151_v5, 0.0  ;;  %v15787_v16 = vld [vmem:[#allocation58_spill] sm:$0xff]  ;;  %v15788_v5 = vld [vmem:[#allocation75_spill] sm:$0xff] }
 0x265   : > { %v6407_v58 = vsel %vm1995_vm1, %v15783_v36, %v6375_v43  ;;  %10276 = vmatmul.mubr.msk.bf16.gmra.mrb[196].mxu1 %vm4842_vm2, %v6086_v25  ;;  %10319 = vmatprep.mubr.msk.bf16.mxu0 %vm4842_vm2, %v6405_v56  ;;  %v13634_v33 = vmax.f32 %v4282_v63, %v4667_v40  ;;  %v4670_v25 = vmax.f32 %v4576_v38, 0.0  ;;  %v4668_v35 = vmax.f32 %v4568_v29, 0.0  ;;  %v10009_v22 = vpop.f32.mrb[92].mxu1  ;;  %v15789_v63 = vld [vmem:[#allocation76_spill] sm:$0xff] }
 0x266   : > { %15784 = vst [vmem:[#allocation11_spill] sm:$0xff] %v13630_v30  ;;  %v4283_v44 = vmax.f32 %v13391_v54, %v4251_v23  ;;  %v4172_v41 = vadd.f32 %v13285_v28, %v10009_v22  ;;  %v4163_v20 = vpop.f32.mrb[93].mxu1  ;;  %v10049_v27 = vpop.f32.mrb[92].mxu0 }
 0x267   : > { %10320 = vmatmul.mubr.msk.bf16.gmra.mrb[196].mxu0 %vm4842_vm2, %v6407_v58  ;;  %v6056_v60 = vpop.permute.xlu0 %6055  ;;  %v13641_v2 = vmax.f32 %v4285_v4, %v4670_v25  ;;  %v4164_v48 = vadd.f32 %v13285_v28, %v4163_v20  ;;  %v4589_v57 = vadd.f32 %v13285_v28, %v10049_v27  ;;  %v10010_v61 = vpop.f32.mrb[94].mxu1 }
 0x268   : > { %v6058_v34 = vpop.permute.xlu1 %6057  ;;  %v6088_v62 = vsel %vm1995_vm1, %v15785_v49, %v6056_v60  ;;  %v4580_v56 = vpop.f32.mrb[93].mxu0  ;;  %v13647_v36 = vmax.f32 %v4283_v44, %v4668_v35  ;;  %v4256_v54 = vmax.f32 %v4172_v41, 0.0  ;;  %v4175_v58 = vadd.f32 %v13285_v28, %v10010_v61 }
 0x269   : > { %10279 = vmatprep.mubr.msk.bf16.mxu1 %vm4842_vm2, %v6088_v62  ;;  %15786 = vst [vmem:[#allocation18_spill] sm:$0xff] %v13641_v2  ;;  %v6090_v43 = vsel %vm1995_vm1, %v15787_v16, %v6058_v34  ;;  %v4581_v1 = vadd.f32 %v13285_v28, %v4580_v56  ;;  %v4254_v37 = vmax.f32 %v4164_v48, 0.0  ;;  %v4673_v40 = vmax.f32 %v4589_v57, 0.0  ;;  %v4166_v29 = vpop.f32.mrb[95].mxu1  ;;  %v10050_v4 = vpop.f32.mrb[94].mxu0  ;;  %v15792_v57 = vld [vmem:[#allocation60_spill] sm:$0xff] }
 0x26a   : > { %v4288_v23 = vmax.f32 %v13406_v19, %v4256_v54  ;;  %v4257_v60 = vmax.f32 %v4175_v58, 0.0  ;;  %v13659_v28 = vld [vmem:[%s15525_s2] ss:$0 sm:$0xff]  ;;  %v4583_v35 = vpop.f32.mrb[95].mxu0 }
 0x26b   : > { %v6377_v26 = vpop.permute.xlu0 %6376  ;;  %v4671_v34 = vmax.f32 %v4581_v1, 0.0  ;;  %v4167_v25 = vadd.f32 %v13659_v28, %v4166_v29  ;;  %v4286_v49 = vmax.f32 %v13410_v14, %v4254_v37  ;;  %v4592_v62 = vadd.f32 %v13659_v28, %v10050_v4 }
 0x26c   : > { %v6379_v9 = vpop.permute.xlu1 %6378  ;;  %v6409_v42 = vsel %vm1995_vm1, %v15788_v5, %v6377_v26  ;;  %v4584_v19 = vadd.f32 %v13659_v28, %v4583_v35  ;;  %v13667_v22 = vmax.f32 %v4288_v23, %v4673_v40  ;;  %v4289_v44 = vmax.f32 %v13417_v53, %v4257_v60  ;;  %v15794_v26 = vld [vmem:[#allocation62_spill] sm:$0xff] }
 0x26d   : > { %v6411_v38 = vsel %vm1995_vm1, %v15789_v63, %v6379_v9  ;;  %10280 = vmatmul.mubr.msk.bf16.gmra.mrb[200].mxu1 %vm4842_vm2, %v6090_v43  ;;  %10323 = vmatprep.mubr.msk.bf16.mxu0 %vm4842_vm2, %v6409_v42  ;;  %v4255_v41 = vmax.f32 %v4167_v25, 0.0  ;;  %v13671_v16 = vmax.f32 %v4286_v49, %v4671_v34  ;;  %v4674_v43 = vmax.f32 %v4592_v62, 0.0  ;;  %v10013_v61 = vpop.f32.mrb[96].mxu1  ;;  %v15796_v25 = vld [vmem:[#allocation77_spill] sm:$0xff]  ;;  %v15797_v49 = vld [vmem:[#allocation78_spill] sm:$0xff] }
 0x26e   : > { %15790 = vst [vmem:[#allocation20_spill] sm:$0xff] %v13667_v22  ;;  %v4672_v48 = vmax.f32 %v4584_v19, 0.0  ;;  %v4188_v54 = vadd.f32 %v13659_v28, %v10013_v61  ;;  %v4179_v58 = vpop.f32.mrb[97].mxu1  ;;  %v10053_v1 = vpop.f32.mrb[96].mxu0 }
 0x26f   : > { %10324 = vmatmul.mubr.msk.bf16.gmra.mrb[200].mxu0 %vm4842_vm2, %v6411_v38  ;;  %15791 = vst [vmem:[#allocation3_spill] sm:$0xff] %v13671_v16  ;;  %v4287_v56 = vmax.f32 %v13423_v47, %v4255_v41  ;;  %v13678_v53 = vmax.f32 %v4289_v44, %v4674_v43  ;;  %v4180_v37 = vadd.f32 %v13659_v28, %v4179_v58  ;;  %v10014_v5 = vpop.f32.mrb[98].mxu1  ;;  %v4596_v42 = vpop.f32.mrb[97].mxu0 }
 0x270   : > { %v6060_v20 = vpop.permute.xlu0 %6059  ;;  %v6062_v27 = vpop.permute.xlu1 %6061  ;;  %v4605_v40 = vadd.f32 %v13659_v28, %v10053_v1  ;;  %v4260_v47 = vmax.f32 %v4188_v54, 0.0  ;;  %v4191_v38 = vadd.f32 %v13659_v28, %v10014_v5  ;;  %v4597_v29 = vadd.f32 %v13659_v28, %v4596_v42 }
 0x271   : > { %v6092_v14 = vsel %vm1995_vm1, %v15792_v57, %v6060_v20  ;;  %15793 = vst [vmem:[#allocation4_spill] sm:$0xff] %v13678_v53  ;;  %v6094_v9 = vsel %vm1995_vm1, %v15794_v26, %v6062_v27  ;;  %v13684_v63 = vmax.f32 %v4287_v56, %v4672_v48  ;;  %v4258_v60 = vmax.f32 %v4180_v37, 0.0  ;;  %v4182_v19 = vpop.f32.mrb[99].mxu1  ;;  %v10054_v44 = vpop.f32.mrb[98].mxu0 }
 0x272   : > { %10283 = vmatprep.mubr.msk.bf16.mxu1 %vm4842_vm2, %v6092_v14  ;;  %v4677_v34 = vmax.f32 %v4605_v40, 0.0  ;;  %v4292_v41 = vmax.f32 %v13438_v46, %v4260_v47  ;;  %v4261_v20 = vmax.f32 %v4191_v38, 0.0  ;;  %v4675_v27 = vmax.f32 %v4597_v29, 0.0  ;;  %v4599_v48 = vpop.f32.mrb[99].mxu0 }
 0x273   : > { %15795 = vst [vmem:[#allocation22_spill] sm:$0xff] %v13684_v63  ;;  %v4183_v43 = vadd.f32 %v13659_v28, %v4182_v19  ;;  %v4290_v57 = vmax.f32 %v13442_v11, %v4258_v60  ;;  %v4608_v14 = vadd.f32 %v13659_v28, %v10054_v44  ;;  %v4600_v61 = vadd.f32 %v13659_v28, %v4599_v48 }
 0x274   : > { %v6381_v4 = vpop.permute.xlu0 %6380  ;;  %v13699_v56 = vmax.f32 %v4292_v41, %v4677_v34  ;;  %v4293_v54 = vmax.f32 %v13449_v51, %v4261_v20 }
 0x275   : > { %v6383_v23 = vpop.permute.xlu1 %6382  ;;  %v6413_v35 = vsel %vm1995_vm1, %v15796_v25, %v6381_v4  ;;  %10284 = vmatmul.mubr.msk.bf16.gmra.mrb[204].mxu1 %vm4842_vm2, %v6094_v9  ;;  %v4259_v46 = vmax.f32 %v4183_v43, 0.0  ;;  %v13703_v58 = vmax.f32 %v4290_v57, %v4675_v27  ;;  %v4678_v1 = vmax.f32 %v4608_v14, 0.0  ;;  %v10017_v9 = vpop.f32.mrb[100].mxu1 }
 0x276   : > { %v6415_v62 = vsel %vm1995_vm1, %v15797_v49, %v6383_v23  ;;  %10327 = vmatprep.mubr.msk.bf16.mxu0 %vm4842_vm2, %v6413_v35  ;;  %15798 = vst [vmem:[#allocation24_spill] sm:$0xff] %v13699_v56  ;;  %v4676_v26 = vmax.f32 %v4600_v61, 0.0  ;;  %v4204_v11 = vadd.f32 %v13659_v28, %v10017_v9  ;;  %v4195_v40 = vpop.f32.mrb[101].mxu1  ;;  %v10057_v5 = vpop.f32.mrb[100].mxu0 }
 0x277   : > { %10328 = vmatmul.mubr.msk.bf16.gmra.mrb[204].mxu0 %vm4842_vm2, %v6415_v62  ;;  %15799 = vst [vmem:[#allocation5_spill] sm:$0xff] %v13703_v58  ;;  %v4291_v37 = vmax.f32 %v13455_v0, %v4259_v46  ;;  %v13707_v42 = vmax.f32 %v4293_v54, %v4678_v1  ;;  %v4196_v47 = vadd.f32 %v13659_v28, %v4195_v40  ;;  %v10018_v38 = vpop.f32.mrb[102].mxu1  ;;  %v4612_v29 = vpop.f32.mrb[101].mxu0 }
 0x278   : > { %v4621_v51 = vadd.f32 %v13659_v28, %v10057_v5  ;;  %v4264_v23 = vmax.f32 %v4204_v11, 0.0  ;;  %v4207_v60 = vadd.f32 %v13659_v28, %v10018_v38  ;;  %v4613_v34 = vadd.f32 %v13659_v28, %v4612_v29  ;;  %v4198_v0 = vpop.f32.mrb[103].mxu1  ;;  %v10058_v25 = vpop.f32.mrb[102].mxu0 }
 0x279   : > { %15800 = vst [vmem:[#allocation6_spill] sm:$0xff] %v13707_v42  ;;  %v13711_v4 = vmax.f32 %v4291_v37, %v4676_v26  ;;  %v4262_v35 = vmax.f32 %v4196_v47, 0.0  ;;  %v4199_v62 = vadd.f32 %v13659_v28, %v4198_v0  ;;  %v4624_v19 = vadd.f32 %v13659_v28, %v10058_v25  ;;  %v4615_v44 = vpop.f32.mrb[103].mxu0 }
 0x27a   : > { %v4681_v49 = vmax.f32 %v4621_v51, 0.0  ;;  %v4296_v41 = vmax.f32 %v13470_v31, %v4264_v23  ;;  %v4265_v20 = vmax.f32 %v4207_v60, 0.0  ;;  %v4679_v27 = vmax.f32 %v4613_v34, 0.0 }
 0x27b   : > { %15801 = vst [vmem:[#allocation26_spill] sm:$0xff] %v13711_v4  ;;  %v4616_v43 = vadd.f32 %v13659_v28, %v4615_v44  ;;  %v4294_v48 = vmax.f32 %v13474_v21, %v4262_v35  ;;  %v4263_v57 = vmax.f32 %v4199_v62, 0.0  ;;  %v4682_v14 = vmax.f32 %v4624_v19, 0.0 }
 0x27c   : > { %v13720_v61 = vmax.f32 %v4296_v41, %v4681_v49  ;;  %v4297_v54 = vmax.f32 %v13481_v32, %v4265_v20 }
 0x27d   : > { %v4680_v46 = vmax.f32 %v4616_v43, 0.0  ;;  %v13723_v1 = vmax.f32 %v4294_v48, %v4679_v27  ;;  %v4295_v26 = vmax.f32 %v13487_v59, %v4263_v57  ;;  %v10021_v9 = vpop.f32.mrb[104].mxu1 }
 0x27e   : > { %15802 = vst [vmem:[#allocation28_spill] sm:$0xff] %v13720_v61  ;;  %v13726_v37 = vmax.f32 %v4297_v54, %v4682_v14  ;;  %v4220_v31 = vadd.f32 %v13659_v28, %v10021_v9  ;;  %v4211_v11 = vpop.f32.mrb[105].mxu1  ;;  %v10061_v40 = vpop.f32.mrb[104].mxu0 }
 0x27f   : > { %15803 = vst [vmem:[#allocation7_spill] sm:$0xff] %v13723_v1  ;;  %v13729_v5 = vmax.f32 %v4295_v26, %v4680_v46  ;;  %v4212_v21 = vadd.f32 %v13659_v28, %v4211_v11  ;;  %v4637_v47 = vadd.f32 %v13659_v28, %v10061_v40  ;;  %v10022_v51 = vpop.f32.mrb[106].mxu1  ;;  %v4628_v32 = vpop.f32.mrb[105].mxu0 }
 0x280   : > { %15804 = vst [vmem:[#allocation8_spill] sm:$0xff] %v13726_v37  ;;  %v4268_v38 = vmax.f32 %v4220_v31, 0.0  ;;  %v4223_v29 = vadd.f32 %v13659_v28, %v10022_v51  ;;  %v4629_v59 = vadd.f32 %v13659_v28, %v4628_v32  ;;  %v4214_v23 = vpop.f32.mrb[107].mxu1  ;;  %v10062_v60 = vpop.f32.mrb[106].mxu0 }
 0x281   : > { %15805 = vst [vmem:[#allocation30_spill] sm:$0xff] %v13729_v5  ;;  %v4266_v34 = vmax.f32 %v4212_v21, 0.0  ;;  %v4685_v0 = vmax.f32 %v4637_v47, 0.0  ;;  %v4215_v25 = vadd.f32 %v13659_v28, %v4214_v23  ;;  %v4640_v35 = vadd.f32 %v13659_v28, %v10062_v60  ;;  %v4631_v49 = vpop.f32.mrb[107].mxu0 }
 0x282   : > { %v4300_v62 = vmax.f32 %v13502_v24, %v4268_v38  ;;  %v4269_v19 = vmax.f32 %v4223_v29, 0.0  ;;  %v4683_v44 = vmax.f32 %v4629_v59, 0.0  ;;  %v4632_v41 = vadd.f32 %v13659_v28, %v4631_v49 }
 0x283   : > { %v4298_v20 = vmax.f32 %v13506_v45, %v4266_v34  ;;  %v4267_v27 = vmax.f32 %v4215_v25, 0.0  ;;  %v4686_v43 = vmax.f32 %v4640_v35, 0.0 }
 0x284   : > { %v13740_v48 = vmax.f32 %v4300_v62, %v4685_v0  ;;  %v4301_v57 = vmax.f32 %v13513_v17, %v4269_v19  ;;  %v4684_v14 = vmax.f32 %v4632_v41, 0.0 }
 0x285   : > { %v13743_v54 = vmax.f32 %v4298_v20, %v4683_v44  ;;  %v4299_v46 = vmax.f32 %v13519_v39, %v4267_v27  ;;  %v10025_v26 = vpop.f32.mrb[108].mxu1  ;;  %v13763_v20 = vld [vmem:[%s15527_s4] ss:$0 sm:$0xff] }
 0x286   : > { %15806 = vst [vmem:[#allocation32_spill] sm:$0xff] %v13740_v48  ;;  %v13746_v9 = vmax.f32 %v4301_v57, %v4686_v43  ;;  %v4236_v24 = vadd.f32 %v13659_v28, %v10025_v26  ;;  %v4227_v31 = vpop.f32.mrb[109].mxu1  ;;  %v10065_v11 = vpop.f32.mrb[108].mxu0 }
 0x287   : > { %15807 = vst [vmem:[#allocation9_spill] sm:$0xff] %v13743_v54  ;;  %v13749_v40 = vmax.f32 %v4299_v46, %v4684_v14  ;;  %v4228_v45 = vadd.f32 %v13659_v28, %v4227_v31  ;;  %v4653_v21 = vadd.f32 %v13659_v28, %v10065_v11  ;;  %v10026_v47 = vpop.f32.mrb[110].mxu1  ;;  %v4644_v17 = vpop.f32.mrb[109].mxu0 }
 0x288   : > { %15808 = vst [vmem:[#allocation10_spill] sm:$0xff] %v13746_v9  ;;  %v4272_v51 = vmax.f32 %v4236_v24, 0.0  ;;  %v4239_v32 = vadd.f32 %v13659_v28, %v10026_v47  ;;  %v4645_v39 = vadd.f32 %v13659_v28, %v4644_v17  ;;  %v4230_v38 = vpop.f32.mrb[111].mxu1  ;;  %v10066_v29 = vpop.f32.mrb[110].mxu0 }
 0x289   : > { %15809 = vst [vmem:[#allocation34_spill] sm:$0xff] %v13749_v40  ;;  %v4270_v59 = vmax.f32 %v4228_v45, 0.0  ;;  %v4689_v23 = vmax.f32 %v4653_v21, 0.0  ;;  %v4231_v60 = vadd.f32 %v13659_v28, %v4230_v38  ;;  %v4656_v34 = vadd.f32 %v13659_v28, %v10066_v29  ;;  %v4647_v0 = vpop.f32.mrb[111].mxu0 }
 0x28a   : > { %v4304_v25 = vmax.f32 %v13534_v6, %v4272_v51  ;;  %v4273_v35 = vmax.f32 %v4239_v32, 0.0  ;;  %v4687_v49 = vmax.f32 %v4645_v39, 0.0  ;;  %v4648_v62 = vadd.f32 %v13659_v28, %v4647_v0 }
 0x28b   : > { %v4302_v19 = vmax.f32 %v13538_v10, %v4270_v59  ;;  %v4271_v44 = vmax.f32 %v4231_v60, 0.0  ;;  %v4690_v41 = vmax.f32 %v4656_v34, 0.0 }
 0x28c   : > { %v13765_v27 = vmax.f32 %v4304_v25, %v4689_v23  ;;  %v4305_v43 = vmax.f32 %v13545_v52, %v4273_v35  ;;  %v4688_v57 = vmax.f32 %v4648_v62, 0.0 }
 0x28d   : > { %v13768_v14 = vmax.f32 %v4302_v19, %v4687_v49  ;;  %v4303_v6 = vmax.f32 %v13551_v15, %v4271_v44  ;;  %v10081_v46 = vpop.f32.mrb[112].mxu1 }
 0x28e   : > { %15810 = vst [vmem:[#allocation36_spill] sm:$0xff] %v13765_v27  ;;  %v13771_v28 = vmax.f32 %v4305_v43, %v4690_v41  ;;  %v4918_v10 = vadd.f32 %v10081_v46, %v13763_v20  ;;  %v4909_v26 = vpop.f32.mrb[113].mxu1 }
 0x28f   : > { %15811 = vst [vmem:[#allocation12_spill] sm:$0xff] %v13768_v14  ;;  %v13774_v24 = vmax.f32 %v4303_v6, %v4688_v57  ;;  %v4910_v31 = vadd.f32 %v13763_v20, %v4909_v26  ;;  %v10125_v11 = vpop.f32.mrb[112].mxu0  ;;  %v10082_v45 = vpop.f32.mrb[114].mxu1 }
 0x290   : > { %15812 = vst [vmem:[#allocation13_spill] sm:$0xff] %v13771_v28  ;;  %v5038_v21 = vmax.f32 %v4918_v10, 0.0  ;;  %v5207_v52 = vadd.f32 %v10125_v11, %v13763_v20  ;;  %v4921_v47 = vadd.f32 %v10082_v45, %v13763_v20  ;;  %v5198_v17 = vpop.f32.mrb[113].mxu0  ;;  %v4912_v51 = vpop.f32.mrb[115].mxu1 }
 0x291   : > { %15813 = vst [vmem:[#allocation38_spill] sm:$0xff] %v13774_v24  ;;  %v5036_v15 = vmax.f32 %v4910_v31, 0.0  ;;  %v5199_v32 = vadd.f32 %v13763_v20, %v5198_v17  ;;  %v4913_v39 = vadd.f32 %v13763_v20, %v4912_v51  ;;  %v10126_v38 = vpop.f32.mrb[114].mxu0 }
 0x292   : > { %v5327_v29 = vmax.f32 %v5207_v52, 0.0  ;;  %v5039_v59 = vmax.f32 %v4921_v47, 0.0  ;;  %v5210_v23 = vadd.f32 %v10126_v38, %v13763_v20  ;;  %v5201_v60 = vpop.f32.mrb[115].mxu0 }
 0x293   : > { %v5325_v34 = vmax.f32 %v5199_v32, 0.0  ;;  %v5037_v0 = vmax.f32 %v4913_v39, 0.0  ;;  %v5202_v25 = vadd.f32 %v13763_v20, %v5201_v60 }
 0x294   : > { %v13783_v35 = vmax.f32 %v5038_v21, %v5327_v29  ;;  %v5328_v49 = vmax.f32 %v5210_v23, 0.0 }
 0x295   : > { %v13785_v62 = vmax.f32 %v5036_v15, %v5325_v34  ;;  %v5326_v19 = vmax.f32 %v5202_v25, 0.0  ;;  %v10085_v44 = vpop.f32.mrb[116].mxu1 }
 0x296   : > { %v13787_v41 = vmax.f32 %v5039_v59, %v5328_v49  ;;  %v4934_v43 = vadd.f32 %v10085_v44, %v13763_v20  ;;  %v4925_v57 = vpop.f32.mrb[117].mxu1 }
 0x297   : > { %v13790_v6 = vmax.f32 %v5037_v0, %v5326_v19  ;;  %v4926_v46 = vadd.f32 %v13763_v20, %v4925_v57  ;;  %v10129_v10 = vpop.f32.mrb[116].mxu0  ;;  %v10086_v26 = vpop.f32.mrb[118].mxu1 }
 0x298   : > { %v5042_v31 = vmax.f32 %v4934_v43, 0.0  ;;  %v5223_v11 = vadd.f32 %v10129_v10, %v13763_v20  ;;  %v4937_v45 = vadd.f32 %v10086_v26, %v13763_v20  ;;  %v5214_v21 = vpop.f32.mrb[117].mxu0  ;;  %v4928_v52 = vpop.f32.mrb[119].mxu1 }
 0x299   : > { %v5040_v47 = vmax.f32 %v4926_v46, 0.0  ;;  %v5215_v17 = vadd.f32 %v13763_v20, %v5214_v21  ;;  %v4929_v51 = vadd.f32 %v13763_v20, %v4928_v52  ;;  %v10130_v15 = vpop.f32.mrb[118].mxu0 }
 0x29a   : > { %v5331_v32 = vmax.f32 %v5223_v11, 0.0  ;;  %v5043_v39 = vmax.f32 %v4937_v45, 0.0  ;;  %v5226_v38 = vadd.f32 %v10130_v15, %v13763_v20  ;;  %v5217_v29 = vpop.f32.mrb[119].mxu0 }
 0x29b   : > { %v5329_v59 = vmax.f32 %v5215_v17, 0.0  ;;  %v5041_v23 = vmax.f32 %v4929_v51, 0.0  ;;  %v5218_v60 = vadd.f32 %v13763_v20, %v5217_v29 }
 0x29c   : > { %v13799_v34 = vmax.f32 %v5042_v31, %v5331_v32  ;;  %v5332_v0 = vmax.f32 %v5226_v38, 0.0 }
 0x29d   : > { %v13801_v25 = vmax.f32 %v5040_v47, %v5329_v59  ;;  %v5330_v49 = vmax.f32 %v5218_v60, 0.0  ;;  %v10089_v19 = vpop.f32.mrb[120].mxu1 }
 0x29e   : > { %v13803_v44 = vmax.f32 %v5043_v39, %v5332_v0  ;;  %v4950_v43 = vadd.f32 %v10089_v19, %v13763_v20  ;;  %v4941_v57 = vpop.f32.mrb[121].mxu1 }
 0x29f   : > { %v13806_v46 = vmax.f32 %v5041_v23, %v5330_v49  ;;  %v4942_v10 = vadd.f32 %v13763_v20, %v4941_v57  ;;  %v10133_v26 = vpop.f32.mrb[120].mxu0  ;;  %v10090_v11 = vpop.f32.mrb[122].mxu1 }
 0x2a0   : > { %v5046_v45 = vmax.f32 %v4950_v43, 0.0  ;;  %v5239_v31 = vadd.f32 %v10133_v26, %v13763_v20  ;;  %v4953_v21 = vadd.f32 %v10090_v11, %v13763_v20  ;;  %v5230_v52 = vpop.f32.mrb[121].mxu0  ;;  %v4944_v47 = vpop.f32.mrb[123].mxu1 }
 0x2a1   : > { %v5044_v17 = vmax.f32 %v4942_v10, 0.0  ;;  %v5231_v51 = vadd.f32 %v13763_v20, %v5230_v52  ;;  %v4945_v15 = vadd.f32 %v13763_v20, %v4944_v47  ;;  %v10134_v32 = vpop.f32.mrb[122].mxu0 }
 0x2a2   : > { %v5335_v39 = vmax.f32 %v5239_v31, 0.0  ;;  %v5047_v38 = vmax.f32 %v4953_v21, 0.0  ;;  %v5242_v29 = vadd.f32 %v10134_v32, %v13763_v20  ;;  %v5233_v59 = vpop.f32.mrb[123].mxu0 }
 0x2a3   : > { %v5333_v23 = vmax.f32 %v5231_v51, 0.0  ;;  %v5045_v60 = vmax.f32 %v4945_v15, 0.0  ;;  %v5234_v0 = vadd.f32 %v13763_v20, %v5233_v59 }
 0x2a4   : > { %v13815_v49 = vmax.f32 %v5046_v45, %v5335_v39  ;;  %v5336_v19 = vmax.f32 %v5242_v29, 0.0 }
 0x2a5   : > { %v13817_v43 = vmax.f32 %v5044_v17, %v5333_v23  ;;  %v5334_v57 = vmax.f32 %v5234_v0, 0.0  ;;  %v10093_v10 = vpop.f32.mrb[124].mxu1 }
 0x2a6   : > { %v13819_v26 = vmax.f32 %v5047_v38, %v5336_v19  ;;  %v4966_v11 = vadd.f32 %v10093_v10, %v13763_v20  ;;  %v4957_v31 = vpop.f32.mrb[125].mxu1 }
 0x2a7   : > { %v13822_v21 = vmax.f32 %v5045_v60, %v5334_v57  ;;  %v4958_v52 = vadd.f32 %v13763_v20, %v4957_v31  ;;  %v10137_v47 = vpop.f32.mrb[124].mxu0  ;;  %v10094_v51 = vpop.f32.mrb[126].mxu1 }
 0x2a8   : > { %v5050_v15 = vmax.f32 %v4966_v11, 0.0  ;;  %v5255_v45 = vadd.f32 %v10137_v47, %v13763_v20  ;;  %v4969_v32 = vadd.f32 %v10094_v51, %v13763_v20  ;;  %v5246_v17 = vpop.f32.mrb[125].mxu0  ;;  %v4960_v39 = vpop.f32.mrb[127].mxu1 }
 0x2a9   : > { %v5048_v29 = vmax.f32 %v4958_v52, 0.0  ;;  %v5247_v38 = vadd.f32 %v13763_v20, %v5246_v17  ;;  %v4961_v59 = vadd.f32 %v13763_v20, %v4960_v39  ;;  %v10138_v23 = vpop.f32.mrb[126].mxu0 }
 0x2aa   : > { %v5339_v0 = vmax.f32 %v5255_v45, 0.0  ;;  %v5051_v60 = vmax.f32 %v4969_v32, 0.0  ;;  %v5258_v19 = vadd.f32 %v10138_v23, %v13763_v20  ;;  %v5249_v57 = vpop.f32.mrb[127].mxu0 }
 0x2ab   : > { %v5337_v10 = vmax.f32 %v5247_v38, 0.0  ;;  %v5049_v31 = vmax.f32 %v4961_v59, 0.0  ;;  %v5250_v11 = vadd.f32 %v13763_v20, %v5249_v57 }
 0x2ac   : > { %v13831_v47 = vmax.f32 %v5050_v15, %v5339_v0  ;;  %v5340_v51 = vmax.f32 %v5258_v19, 0.0 }
 0x2ad   : > { %v13833_v28 = vmax.f32 %v5048_v29, %v5337_v10  ;;  %v5338_v52 = vmax.f32 %v5250_v11, 0.0  ;;  %v10097_v27 = vpop.f32.mrb[128].mxu1 }
 0x2ae   : > { %v13835_v17 = vmax.f32 %v5051_v60, %v5340_v51  ;;  %v4982_v39 = vadd.f32 %v10097_v27, %v13763_v20  ;;  %v4973_v45 = vpop.f32.mrb[129].mxu1 }
 0x2af   : > { %v13838_v32 = vmax.f32 %v5049_v31, %v5338_v52  ;;  %v4974_v23 = vadd.f32 %v13763_v20, %v4973_v45  ;;  %v10141_v38 = vpop.f32.mrb[128].mxu0  ;;  %v10098_v59 = vpop.f32.mrb[130].mxu1 }
 0x2b0   : > { %v5054_v24 = vmax.f32 %v4982_v39, 0.0  ;;  %v5271_v15 = vadd.f32 %v10141_v38, %v13763_v20  ;;  %v4985_v0 = vadd.f32 %v10098_v59, %v13763_v20  ;;  %v5262_v29 = vpop.f32.mrb[129].mxu0  ;;  %v4976_v19 = vpop.f32.mrb[131].mxu1 }
 0x2b1   : > { %v5052_v57 = vmax.f32 %v4974_v23, 0.0  ;;  %v5263_v60 = vadd.f32 %v13763_v20, %v5262_v29  ;;  %v4977_v10 = vadd.f32 %v13763_v20, %v4976_v19  ;;  %v10142_v27 = vpop.f32.mrb[130].mxu0 }
 0x2b2   : > { %v5343_v11 = vmax.f32 %v5271_v15, 0.0  ;;  %v5055_v31 = vmax.f32 %v4985_v0, 0.0  ;;  %v5274_v51 = vadd.f32 %v10142_v27, %v13763_v20  ;;  %v5265_v52 = vpop.f32.mrb[131].mxu0 }
 0x2b3   : > { %v5341_v45 = vmax.f32 %v5263_v60, 0.0  ;;  %v5053_v14 = vmax.f32 %v4977_v10, 0.0  ;;  %v5266_v39 = vadd.f32 %v13763_v20, %v5265_v52 }
 0x2b4   : > { %v13847_v38 = vmax.f32 %v5054_v24, %v5343_v11  ;;  %v5344_v59 = vmax.f32 %v5274_v51, 0.0 }
 0x2b5   : > { %v13849_v9 = vmax.f32 %v5052_v57, %v5341_v45  ;;  %v5342_v23 = vmax.f32 %v5266_v39, 0.0  ;;  %v10101_v48 = vpop.f32.mrb[132].mxu1 }
 0x2b6   : > { %v13851_v29 = vmax.f32 %v5055_v31, %v5344_v59  ;;  %v4998_v19 = vadd.f32 %v10101_v48, %v13763_v20  ;;  %v4989_v15 = vpop.f32.mrb[133].mxu1 }
 0x2b7   : > { %v13854_v0 = vmax.f32 %v5053_v14, %v5342_v23  ;;  %v4990_v27 = vadd.f32 %v13763_v20, %v4989_v15  ;;  %v10102_v10 = vpop.f32.mrb[134].mxu1 }
 0x2b8   : > { %v10145_v60 = vpop.f32.mrb[132].mxu0  ;;  %v5058_v40 = vmax.f32 %v4998_v19, 0.0  ;;  %v5001_v11 = vadd.f32 %v10102_v10, %v13763_v20  ;;  %v4992_v51 = vpop.f32.mrb[135].mxu1 }
 0x2b9   : > { %v5287_v24 = vadd.f32 %v10145_v60, %v13763_v20  ;;  %v5278_v57 = vpop.f32.mrb[133].mxu0  ;;  %v5056_v52 = vmax.f32 %v4990_v27, 0.0  ;;  %v4993_v45 = vadd.f32 %v13763_v20, %v4992_v51 }
 0x2ba   : > { %v5279_v31 = vadd.f32 %v13763_v20, %v5278_v57  ;;  %v10146_v48 = vpop.f32.mrb[134].mxu0  ;;  %v5059_v14 = vmax.f32 %v5001_v11, 0.0 }
 0x2bb   : > { %v5347_v39 = vmax.f32 %v5287_v24, 0.0  ;;  %v5290_v59 = vadd.f32 %v10146_v48, %v13763_v20  ;;  %v5281_v23 = vpop.f32.mrb[135].mxu0  ;;  %v5057_v54 = vmax.f32 %v4993_v45, 0.0 }
 0x2bc   : > { %v5345_v15 = vmax.f32 %v5279_v31, 0.0  ;;  %v5282_v19 = vadd.f32 %v13763_v20, %v5281_v23 }
 0x2bd   : > { %v13863_v60 = vmax.f32 %v5058_v40, %v5347_v39  ;;  %v5348_v10 = vmax.f32 %v5290_v59, 0.0  ;;  %v10105_v61 = vpop.f32.mrb[136].mxu1 }
 0x2be   : > { %v13865_v37 = vmax.f32 %v5056_v52, %v5345_v15  ;;  %v5346_v27 = vmax.f32 %v5282_v19, 0.0  ;;  %v5014_v51 = vadd.f32 %v10105_v61, %v13763_v20  ;;  %v5005_v24 = vpop.f32.mrb[137].mxu1 }
 0x2bf   : > { %v13867_v57 = vmax.f32 %v5059_v14, %v5348_v10  ;;  %v5006_v48 = vadd.f32 %v13763_v20, %v5005_v24  ;;  %v10106_v45 = vpop.f32.mrb[138].mxu1 }
 0x2c0   : > { %v13870_v11 = vmax.f32 %v5057_v54, %v5346_v27  ;;  %v5062_v5 = vmax.f32 %v5014_v51, 0.0  ;;  %v5017_v39 = vadd.f32 %v10106_v45, %v13763_v20  ;;  %v5008_v59 = vpop.f32.mrb[139].mxu1 }
 0x2c1   : > { %v10149_v31 = vpop.f32.mrb[136].mxu0  ;;  %v5060_v23 = vmax.f32 %v5006_v48, 0.0  ;;  %v5009_v15 = vadd.f32 %v13763_v20, %v5008_v59 }
 0x2c2   : > { %v5303_v40 = vadd.f32 %v10149_v31, %v13763_v20  ;;  %v5294_v52 = vpop.f32.mrb[137].mxu0  ;;  %v5063_v54 = vmax.f32 %v5017_v39, 0.0 }
 0x2c3   : > { %v5295_v14 = vadd.f32 %v13763_v20, %v5294_v52  ;;  %v10150_v61 = vpop.f32.mrb[138].mxu0  ;;  %v5061_v1 = vmax.f32 %v5009_v15, 0.0 }
 0x2c4   : > { %v5351_v19 = vmax.f32 %v5303_v40, 0.0  ;;  %v5306_v10 = vadd.f32 %v10150_v61, %v13763_v20  ;;  %v5297_v27 = vpop.f32.mrb[139].mxu0 }
 0x2c5   : > { %v5349_v24 = vmax.f32 %v5295_v14, 0.0  ;;  %v5298_v51 = vadd.f32 %v13763_v20, %v5297_v27  ;;  %v10109_v56 = vpop.f32.mrb[140].mxu1 }
 0x2c6   : > { %v13879_v31 = vmax.f32 %v5062_v5, %v5351_v19  ;;  %v5352_v45 = vmax.f32 %v5306_v10, 0.0  ;;  %v5030_v59 = vadd.f32 %v10109_v56, %v13763_v20  ;;  %v5021_v40 = vpop.f32.mrb[141].mxu1 }
 0x2c7   : > { %v13881_v42 = vmax.f32 %v5060_v23, %v5349_v24  ;;  %v5350_v48 = vmax.f32 %v5298_v51, 0.0  ;;  %v5022_v61 = vadd.f32 %v13763_v20, %v5021_v40  ;;  %v10110_v15 = vpop.f32.mrb[142].mxu1 }
 0x2c8   : > { %v13883_v52 = vmax.f32 %v5063_v54, %v5352_v45  ;;  %v5066_v4 = vmax.f32 %v5030_v59, 0.0  ;;  %v5033_v19 = vadd.f32 %v10110_v15, %v13763_v20  ;;  %v5024_v10 = vpop.f32.mrb[143].mxu1 }
 0x2c9   : > { %v13886_v39 = vmax.f32 %v5061_v1, %v5350_v48  ;;  %v10153_v14 = vpop.f32.mrb[140].mxu0  ;;  %v5064_v27 = vmax.f32 %v5022_v61, 0.0  ;;  %v5025_v24 = vadd.f32 %v13763_v20, %v5024_v10 }
 0x2ca   : > { %v5319_v5 = vadd.f32 %v10153_v14, %v13763_v20  ;;  %v5310_v23 = vpop.f32.mrb[141].mxu0  ;;  %v5067_v1 = vmax.f32 %v5033_v19, 0.0 }
 0x2cb   : > { %v5311_v54 = vadd.f32 %v13763_v20, %v5310_v23  ;;  %v10154_v56 = vpop.f32.mrb[142].mxu0  ;;  %v5065_v58 = vmax.f32 %v5025_v24, 0.0 }
 0x2cc   : > { %v5355_v51 = vmax.f32 %v5319_v5, 0.0  ;;  %v5322_v45 = vadd.f32 %v10154_v56, %v13763_v20  ;;  %v5313_v48 = vpop.f32.mrb[143].mxu0 }
 0x2cd   : > { %v5353_v40 = vmax.f32 %v5311_v54, 0.0  ;;  %v5314_v59 = vadd.f32 %v13763_v20, %v5313_v48 }
 0x2ce   : > { %v13895_v14 = vmax.f32 %v5066_v4, %v5355_v51  ;;  %v5356_v15 = vmax.f32 %v5322_v45, 0.0  ;;  %v10169_v22 = vpop.f32.mrb[144].mxu1  ;;  %v6834_v4 = vld [vmem:[%s15528_s5] sm:$0xff] }
 0x2cf   : > { %v13897_v53 = vmax.f32 %v5064_v27, %v5353_v40  ;;  %v5354_v61 = vmax.f32 %v5314_v59, 0.0  ;;  %v5528_v10 = vadd.f32 %v10169_v22, %v13763_v20  ;;  %v5519_v5 = vpop.f32.mrb[145].mxu1  ;;  %v6835_v27 = vld [vmem:[%s15528_s5 + $0x8] sm:$0xff] }
 0x2d0   : > { %v13899_v23 = vmax.f32 %v5067_v1, %v5356_v15  ;;  %v5520_v56 = vadd.f32 %v13763_v20, %v5519_v5  ;;  %v10170_v24 = vpop.f32.mrb[146].mxu1  ;;  %v10439_v48 = vpack.c.bf16 %v6835_v27, %v6834_v4 }
 0x2d1   : > { %v13902_v19 = vmax.f32 %v5065_v58, %v5354_v61  ;;  %v5648_v51 = vmax.f32 %v5528_v10, 0.0  ;;  %v5531_v22 = vadd.f32 %v10170_v24, %v13763_v20  ;;  %v5522_v58 = vpop.f32.mrb[147].mxu1 }
 0x2d2   : > { %v10213_v54 = vpop.f32.mrb[144].mxu0  ;;  %v5646_v40 = vmax.f32 %v5520_v56, 0.0  ;;  %v5523_v15 = vadd.f32 %v13763_v20, %v5522_v58  ;;  %10440 = vmatprep.subr.bf16.mxu1 %v10439_v48 }
 0x2d3   : > { %v5849_v1 = vadd.f32 %v10213_v54, %v13763_v20  ;;  %v5840_v45 = vpop.f32.mrb[145].mxu0  ;;  %v5680_v5 = vmax.f32 %v13783_v35, %v5648_v51  ;;  %v5649_v16 = vmax.f32 %v5531_v22, 0.0  ;;  %10442 = vmatpush3.bf16.msra.mxu1 %v10439_v48 }
 0x2d4   : > { %v5841_v59 = vadd.f32 %v13763_v20, %v5840_v45  ;;  %v10214_v61 = vpop.f32.mrb[146].mxu0  ;;  %v5678_v54 = vmax.f32 %v13785_v62, %v5646_v40  ;;  %v5647_v30 = vmax.f32 %v5523_v15, 0.0 }
 0x2d5   : > { %v5969_v63 = vmax.f32 %v5849_v1, 0.0  ;;  %v5852_v2 = vadd.f32 %v10214_v61, %v13763_v20  ;;  %v5843_v10 = vpop.f32.mrb[147].mxu0  ;;  %v5681_v27 = vmax.f32 %v13787_v41, %v5649_v16 }
 0x2d6   : > { %v5967_v24 = vmax.f32 %v5841_v59, 0.0  ;;  %v5844_v4 = vadd.f32 %v13763_v20, %v5843_v10  ;;  %v5679_v35 = vmax.f32 %v13790_v6, %v5647_v30 }
 0x2d7   : > { %v13919_v56 = vmax.f32 %v5680_v5, %v5969_v63  ;;  %v5970_v45 = vmax.f32 %v5852_v2, 0.0 }
 0x2d8   : > { %v13922_v58 = vmax.f32 %v5678_v54, %v5967_v24  ;;  %v5968_v51 = vmax.f32 %v5844_v4, 0.0  ;;  %v10173_v1 = vpop.f32.mrb[148].mxu1 }
 0x2d9   : > { %v13925_v22 = vmax.f32 %v5681_v27, %v5970_v45  ;;  %v5544_v62 = vadd.f32 %v10173_v1, %v13763_v20  ;;  %v5535_v40 = vpop.f32.mrb[149].mxu1 }
 0x2da   : > { %v13928_v59 = vmax.f32 %v5679_v35, %v5968_v51  ;;  %v5536_v48 = vadd.f32 %v13763_v20, %v5535_v40  ;;  %v10217_v63 = vpop.f32.mrb[148].mxu0  ;;  %v10174_v15 = vpop.f32.mrb[150].mxu1 }
 0x2db   : > { %v5652_v61 = vmax.f32 %v5544_v62, 0.0  ;;  %v5865_v2 = vadd.f32 %v10217_v63, %v13763_v20  ;;  %v5547_v16 = vadd.f32 %v10174_v15, %v13763_v20  ;;  %v5856_v41 = vpop.f32.mrb[149].mxu0  ;;  %v5538_v30 = vpop.f32.mrb[151].mxu1 }
 0x2dc   : > { %v5650_v6 = vmax.f32 %v5536_v48, 0.0  ;;  %v5857_v5 = vadd.f32 %v13763_v20, %v5856_v41  ;;  %v5539_v10 = vadd.f32 %v13763_v20, %v5538_v30  ;;  %v10218_v54 = vpop.f32.mrb[150].mxu0 }
 0x2dd   : > { %v5684_v24 = vmax.f32 %v13799_v34, %v5652_v61  ;;  %v5973_v4 = vmax.f32 %v5865_v2, 0.0  ;;  %v5653_v27 = vmax.f32 %v5547_v16, 0.0  ;;  %v5868_v45 = vadd.f32 %v10218_v54, %v13763_v20  ;;  %v5859_v35 = vpop.f32.mrb[151].mxu0 }
 0x2de   : > { %v5682_v51 = vmax.f32 %v13801_v25, %v5650_v6  ;;  %v5971_v1 = vmax.f32 %v5857_v5, 0.0  ;;  %v5651_v62 = vmax.f32 %v5539_v10, 0.0  ;;  %v5860_v40 = vadd.f32 %v13763_v20, %v5859_v35 }
 0x2df   : > { %v13939_v63 = vmax.f32 %v5684_v24, %v5973_v4  ;;  %v5685_v48 = vmax.f32 %v13803_v44, %v5653_v27  ;;  %v5974_v15 = vmax.f32 %v5868_v45, 0.0 }
 0x2e0   : > { %v13942_v41 = vmax.f32 %v5682_v51, %v5971_v1  ;;  %v5683_v34 = vmax.f32 %v13806_v46, %v5651_v62  ;;  %v5972_v61 = vmax.f32 %v5860_v40, 0.0  ;;  %v10177_v2 = vpop.f32.mrb[152].mxu1 }
 0x2e1   : > { %v13945_v16 = vmax.f32 %v5685_v48, %v5974_v15  ;;  %v5560_v30 = vadd.f32 %v10177_v2, %v13763_v20  ;;  %v5551_v25 = vpop.f32.mrb[153].mxu1 }
 0x2e2   : > { %v13948_v6 = vmax.f32 %v5683_v34, %v5972_v61  ;;  %v5552_v5 = vadd.f32 %v13763_v20, %v5551_v25  ;;  %v10221_v10 = vpop.f32.mrb[152].mxu0  ;;  %v10178_v54 = vpop.f32.mrb[154].mxu1 }
 0x2e3   : > { %v5656_v24 = vmax.f32 %v5560_v30, 0.0  ;;  %v5881_v44 = vadd.f32 %v10221_v10, %v13763_v20  ;;  %v5563_v4 = vadd.f32 %v10178_v54, %v13763_v20  ;;  %v5872_v27 = vpop.f32.mrb[153].mxu0  ;;  %v5554_v46 = vpop.f32.mrb[155].mxu1 }
 0x2e4   : > { %v5654_v45 = vmax.f32 %v5552_v5, 0.0  ;;  %v5873_v35 = vadd.f32 %v13763_v20, %v5872_v27  ;;  %v5555_v51 = vadd.f32 %v13763_v20, %v5554_v46  ;;  %v10222_v1 = vpop.f32.mrb[154].mxu0 }
 0x2e5   : > { %v5688_v62 = vmax.f32 %v13815_v49, %v5656_v24  ;;  %v5977_v40 = vmax.f32 %v5881_v44, 0.0  ;;  %v5657_v48 = vmax.f32 %v5563_v4, 0.0  ;;  %v5884_v15 = vadd.f32 %v10222_v1, %v13763_v20  ;;  %v5875_v34 = vpop.f32.mrb[155].mxu0 }
 0x2e6   : > { %v5686_v61 = vmax.f32 %v13817_v43, %v5654_v45  ;;  %v5975_v2 = vmax.f32 %v5873_v35, 0.0  ;;  %v5655_v30 = vmax.f32 %v5555_v51, 0.0  ;;  %v5876_v25 = vadd.f32 %v13763_v20, %v5875_v34 }
 0x2e7   : > { %v13959_v10 = vmax.f32 %v5688_v62, %v5977_v40  ;;  %v5689_v5 = vmax.f32 %v13819_v26, %v5657_v48  ;;  %v5978_v54 = vmax.f32 %v5884_v15, 0.0 }
 0x2e8   : > { %v13962_v27 = vmax.f32 %v5686_v61, %v5975_v2  ;;  %v5687_v49 = vmax.f32 %v13822_v21, %v5655_v30  ;;  %v5976_v24 = vmax.f32 %v5876_v25, 0.0  ;;  %v10181_v44 = vpop.f32.mrb[156].mxu1 }
 0x2e9   : > { %v13965_v4 = vmax.f32 %v5689_v5, %v5978_v54  ;;  %v5576_v46 = vadd.f32 %v10181_v44, %v13763_v20  ;;  %v5567_v43 = vpop.f32.mrb[157].mxu1 }
 0x2ea   : > { %v13968_v45 = vmax.f32 %v5687_v49, %v5976_v24  ;;  %v5568_v35 = vadd.f32 %v13763_v20, %v5567_v43  ;;  %v10225_v51 = vpop.f32.mrb[156].mxu0  ;;  %v10182_v1 = vpop.f32.mrb[158].mxu1 }
 0x2eb   : > { %v5660_v62 = vmax.f32 %v5576_v46, 0.0  ;;  %v5897_v26 = vadd.f32 %v10225_v51, %v13763_v20  ;;  %v5579_v40 = vadd.f32 %v10182_v1, %v13763_v20  ;;  %v5888_v48 = vpop.f32.mrb[157].mxu0  ;;  %v5570_v21 = vpop.f32.mrb[159].mxu1 }
 0x2ec   : > { %v5658_v15 = vmax.f32 %v5568_v35, 0.0  ;;  %v5889_v34 = vadd.f32 %v13763_v20, %v5888_v48  ;;  %v5571_v61 = vadd.f32 %v13763_v20, %v5570_v21  ;;  %v10226_v2 = vpop.f32.mrb[158].mxu0 }
 0x2ed   : > { %v5692_v30 = vmax.f32 %v13831_v47, %v5660_v62  ;;  %v5981_v25 = vmax.f32 %v5897_v26, 0.0  ;;  %v5661_v5 = vmax.f32 %v5579_v40, 0.0  ;;  %v5900_v54 = vadd.f32 %v10226_v2, %v13763_v20  ;;  %v5891_v49 = vpop.f32.mrb[159].mxu0 }
 0x2ee   : > { %v5690_v24 = vmax.f32 %v13833_v28, %v5658_v15  ;;  %v5979_v44 = vmax.f32 %v5889_v34, 0.0  ;;  %v5659_v46 = vmax.f32 %v5571_v61, 0.0  ;;  %v5892_v43 = vadd.f32 %v13763_v20, %v5891_v49 }
 0x2ef   : > { %v13979_v51 = vmax.f32 %v5692_v30, %v5981_v25  ;;  %v5693_v35 = vmax.f32 %v13835_v17, %v5661_v5  ;;  %v5982_v1 = vmax.f32 %v5900_v54, 0.0 }
 0x2f0   : > { %v13982_v48 = vmax.f32 %v5690_v24, %v5979_v44  ;;  %v5691_v47 = vmax.f32 %v13838_v32, %v5659_v46  ;;  %v5980_v62 = vmax.f32 %v5892_v43, 0.0  ;;  %v10185_v26 = vpop.f32.mrb[160].mxu1 }
 0x2f1   : > { %v13985_v40 = vmax.f32 %v5693_v35, %v5982_v1  ;;  %v5592_v21 = vadd.f32 %v10185_v26, %v13763_v20  ;;  %v5583_v28 = vpop.f32.mrb[161].mxu1 }
 0x2f2   : > { %v13988_v15 = vmax.f32 %v5691_v47, %v5980_v62  ;;  %v5584_v34 = vadd.f32 %v13763_v20, %v5583_v28  ;;  %v10229_v61 = vpop.f32.mrb[160].mxu0  ;;  %v10186_v2 = vpop.f32.mrb[162].mxu1 }
 0x2f3   : > { %v5664_v30 = vmax.f32 %v5592_v21, 0.0  ;;  %v5913_v17 = vadd.f32 %v10229_v61, %v13763_v20  ;;  %v5595_v25 = vadd.f32 %v10186_v2, %v13763_v20  ;;  %v5904_v5 = vpop.f32.mrb[161].mxu0  ;;  %v5586_v32 = vpop.f32.mrb[163].mxu1 }
 0x2f4   : > { %v5662_v54 = vmax.f32 %v5584_v34, 0.0  ;;  %v5905_v49 = vadd.f32 %v13763_v20, %v5904_v5  ;;  %v5587_v24 = vadd.f32 %v13763_v20, %v5586_v32  ;;  %v10230_v44 = vpop.f32.mrb[162].mxu0 }
 0x2f5   : > { %v5696_v46 = vmax.f32 %v13847_v38, %v5664_v30  ;;  %v5985_v43 = vmax.f32 %v5913_v17, 0.0  ;;  %v5665_v35 = vmax.f32 %v5595_v25, 0.0  ;;  %v5916_v1 = vadd.f32 %v10230_v44, %v13763_v20  ;;  %v5907_v47 = vpop.f32.mrb[163].mxu0 }
 0x2f6   : > { %v5694_v62 = vmax.f32 %v13849_v9, %v5662_v54  ;;  %v5983_v26 = vmax.f32 %v5905_v49, 0.0  ;;  %v5663_v21 = vmax.f32 %v5587_v24, 0.0  ;;  %v5908_v28 = vadd.f32 %v13763_v20, %v5907_v47 }
 0x2f7   : > { %v13999_v61 = vmax.f32 %v5696_v46, %v5985_v43  ;;  %v5697_v34 = vmax.f32 %v13851_v29, %v5665_v35  ;;  %v5986_v2 = vmax.f32 %v5916_v1, 0.0 }
 0x2f8   : > { %v14002_v5 = vmax.f32 %v5694_v62, %v5983_v26  ;;  %v5695_v38 = vmax.f32 %v13854_v0, %v5663_v21  ;;  %v5984_v30 = vmax.f32 %v5908_v28, 0.0  ;;  %v10189_v17 = vpop.f32.mrb[164].mxu1 }
 0x2f9   : > { %v14005_v25 = vmax.f32 %v5697_v34, %v5986_v2  ;;  %v5608_v32 = vadd.f32 %v10189_v17, %v13763_v20  ;;  %v5599_v9 = vpop.f32.mrb[165].mxu1 }
 0x2fa   : > { %v14008_v54 = vmax.f32 %v5695_v38, %v5984_v30  ;;  %v5600_v49 = vadd.f32 %v13763_v20, %v5599_v9  ;;  %v10233_v24 = vpop.f32.mrb[164].mxu0  ;;  %v10190_v44 = vpop.f32.mrb[166].mxu1 }
 0x2fb   : > { %v5668_v46 = vmax.f32 %v5608_v32, 0.0  ;;  %v5929_v29 = vadd.f32 %v10233_v24, %v13763_v20  ;;  %v5611_v43 = vadd.f32 %v10190_v44, %v13763_v20  ;;  %v5920_v35 = vpop.f32.mrb[165].mxu0  ;;  %v5602_v0 = vpop.f32.mrb[167].mxu1 }
 0x2fc   : > { %v5666_v1 = vmax.f32 %v5600_v49, 0.0  ;;  %v5921_v47 = vadd.f32 %v13763_v20, %v5920_v35  ;;  %v5603_v62 = vadd.f32 %v13763_v20, %v5602_v0  ;;  %v10234_v26 = vpop.f32.mrb[166].mxu0 }
 0x2fd   : > { %v5700_v21 = vmax.f32 %v13863_v60, %v5668_v46  ;;  %v5989_v28 = vmax.f32 %v5929_v29, 0.0  ;;  %v5669_v34 = vmax.f32 %v5611_v43, 0.0  ;;  %v5932_v2 = vadd.f32 %v10234_v26, %v13763_v20  ;;  %v5923_v38 = vpop.f32.mrb[167].mxu0 }
 0x2fe   : > { %v5698_v30 = vmax.f32 %v13865_v37, %v5666_v1  ;;  %v5987_v17 = vmax.f32 %v5921_v47, 0.0  ;;  %v5667_v32 = vmax.f32 %v5603_v62, 0.0  ;;  %v5924_v9 = vadd.f32 %v13763_v20, %v5923_v38 }
 0x2ff   : > { %v14019_v24 = vmax.f32 %v5700_v21, %v5989_v28  ;;  %v5701_v49 = vmax.f32 %v13867_v57, %v5669_v34  ;;  %v5990_v44 = vmax.f32 %v5932_v2, 0.0 }
 0x300   : > { %v14022_v35 = vmax.f32 %v5698_v30, %v5987_v17  ;;  %v5699_v60 = vmax.f32 %v13870_v11, %v5667_v32  ;;  %v5988_v46 = vmax.f32 %v5924_v9, 0.0  ;;  %v10193_v29 = vpop.f32.mrb[168].mxu1 }
 0x301   : > { %v14025_v43 = vmax.f32 %v5701_v49, %v5990_v44  ;;  %v5624_v0 = vadd.f32 %v10193_v29, %v13763_v20  ;;  %v5615_v37 = vpop.f32.mrb[169].mxu1 }
 0x302   : > { %v14028_v1 = vmax.f32 %v5699_v60, %v5988_v46  ;;  %v5616_v47 = vadd.f32 %v13763_v20, %v5615_v37  ;;  %v10237_v62 = vpop.f32.mrb[168].mxu0  ;;  %v10194_v26 = vpop.f32.mrb[170].mxu1 }
 0x303   : > { %v5672_v21 = vmax.f32 %v5624_v0, 0.0  ;;  %v5945_v57 = vadd.f32 %v10237_v62, %v13763_v20  ;;  %v5627_v28 = vadd.f32 %v10194_v26, %v13763_v20  ;;  %v5936_v34 = vpop.f32.mrb[169].mxu0  ;;  %v5618_v11 = vpop.f32.mrb[171].mxu1 }
 0x304   : > { %v5670_v2 = vmax.f32 %v5616_v47, 0.0  ;;  %v5937_v38 = vadd.f32 %v13763_v20, %v5936_v34  ;;  %v5619_v30 = vadd.f32 %v13763_v20, %v5618_v11  ;;  %v10238_v17 = vpop.f32.mrb[170].mxu0 }
 0x305   : > { %v5704_v32 = vmax.f32 %v13879_v31, %v5672_v21  ;;  %v5993_v9 = vmax.f32 %v5945_v57, 0.0  ;;  %v5673_v49 = vmax.f32 %v5627_v28, 0.0  ;;  %v5948_v44 = vadd.f32 %v10238_v17, %v13763_v20  ;;  %v5939_v60 = vpop.f32.mrb[171].mxu0 }
 0x306   : > { %v5702_v46 = vmax.f32 %v13881_v42, %v5670_v2  ;;  %v5991_v29 = vmax.f32 %v5937_v38, 0.0  ;;  %v5671_v0 = vmax.f32 %v5619_v30, 0.0  ;;  %v5940_v37 = vadd.f32 %v13763_v20, %v5939_v60 }
 0x307   : > { %v14039_v62 = vmax.f32 %v5704_v32, %v5993_v9  ;;  %v5705_v47 = vmax.f32 %v13883_v52, %v5673_v49  ;;  %v5994_v26 = vmax.f32 %v5948_v44, 0.0 }
 0x308   : > { %v14042_v34 = vmax.f32 %v5702_v46, %v5991_v29  ;;  %v5703_v31 = vmax.f32 %v13886_v39, %v5671_v0  ;;  %v5992_v21 = vmax.f32 %v5940_v37, 0.0  ;;  %v10197_v57 = vpop.f32.mrb[172].mxu1 }
 0x309   : > { %v14045_v28 = vmax.f32 %v5705_v47, %v5994_v26  ;;  %v5640_v11 = vadd.f32 %v10197_v57, %v13763_v20  ;;  %v5631_v42 = vpop.f32.mrb[173].mxu1 }
 0x30a   : > { %v14048_v2 = vmax.f32 %v5703_v31, %v5992_v21  ;;  %v5632_v38 = vadd.f32 %v13763_v20, %v5631_v42  ;;  %v10241_v30 = vpop.f32.mrb[172].mxu0  ;;  %v10198_v17 = vpop.f32.mrb[174].mxu1 }
 0x30b   : > { %v5676_v32 = vmax.f32 %v5640_v11, 0.0  ;;  %v5961_v52 = vadd.f32 %v10241_v30, %v13763_v20  ;;  %v5643_v9 = vadd.f32 %v10198_v17, %v13763_v20  ;;  %v5952_v49 = vpop.f32.mrb[173].mxu0  ;;  %v5634_v39 = vpop.f32.mrb[175].mxu1 }
 0x30c   : > { %v5674_v44 = vmax.f32 %v5632_v38, 0.0  ;;  %v5953_v60 = vadd.f32 %v13763_v20, %v5952_v49  ;;  %v5635_v46 = vadd.f32 %v13763_v20, %v5634_v39  ;;  %v10242_v29 = vpop.f32.mrb[174].mxu0 }
 0x30d   : > { %v5708_v0 = vmax.f32 %v13895_v14, %v5676_v32  ;;  %v5997_v37 = vmax.f32 %v5961_v52, 0.0  ;;  %v5677_v47 = vmax.f32 %v5643_v9, 0.0  ;;  %v5964_v26 = vadd.f32 %v10242_v29, %v13763_v20  ;;  %v5955_v31 = vpop.f32.mrb[175].mxu0 }
 0x30e   : > { %v5706_v21 = vmax.f32 %v13897_v53, %v5674_v44  ;;  %v5995_v57 = vmax.f32 %v5953_v60, 0.0  ;;  %v5675_v11 = vmax.f32 %v5635_v46, 0.0  ;;  %v5956_v42 = vadd.f32 %v13763_v20, %v5955_v31 }
 0x30f   : > { %v14059_v30 = vmax.f32 %v5708_v0, %v5997_v37  ;;  %v5709_v38 = vmax.f32 %v13899_v23, %v5677_v47  ;;  %v5998_v17 = vmax.f32 %v5964_v26, 0.0 }
 0x310   : > { %v14062_v49 = vmax.f32 %v5706_v21, %v5995_v57  ;;  %v5707_v14 = vmax.f32 %v13902_v19, %v5675_v11  ;;  %v5996_v32 = vmax.f32 %v5956_v42, 0.0  ;;  %v10257_v52 = vpop.f32.mrb[176].mxu1 }
 0x311   : > { %v14065_v9 = vmax.f32 %v5709_v38, %v5998_v17  ;;  %v6170_v39 = vadd.f32 %v10257_v52, %v13763_v20  ;;  %v6161_v53 = vpop.f32.mrb[177].mxu1 }
 0x312   : > { %v14068_v44 = vmax.f32 %v5707_v14, %v5996_v32  ;;  %v6162_v60 = vadd.f32 %v13763_v20, %v6161_v53  ;;  %v10301_v46 = vpop.f32.mrb[176].mxu0  ;;  %v10258_v29 = vpop.f32.mrb[178].mxu1  ;;  %v14081_v53 = vld [vmem:[%s15527_s4] ss:$0 sm:$0xff] }
 0x313   : > { %v6290_v0 = vmax.f32 %v6170_v39, 0.0  ;;  %v6491_v23 = vadd.f32 %v10301_v46, %v13763_v20  ;;  %v6173_v37 = vadd.f32 %v10258_v29, %v13763_v20  ;;  %v6482_v47 = vpop.f32.mrb[177].mxu0  ;;  %v6164_v19 = vpop.f32.mrb[179].mxu1 }
 0x314   : > { %v6288_v26 = vmax.f32 %v6162_v60, 0.0  ;;  %v6483_v31 = vadd.f32 %v13763_v20, %v6482_v47  ;;  %v6165_v21 = vadd.f32 %v13763_v20, %v6164_v19  ;;  %v10302_v57 = vpop.f32.mrb[178].mxu0 }
 0x315   : > { %v6322_v11 = vmax.f32 %v13919_v56, %v6290_v0  ;;  %v6611_v42 = vmax.f32 %v6491_v23, 0.0  ;;  %v6291_v38 = vmax.f32 %v6173_v37, 0.0  ;;  %v6494_v17 = vadd.f32 %v10302_v57, %v13763_v20  ;;  %v6485_v14 = vpop.f32.mrb[179].mxu0 }
 0x316   : > { %v6320_v32 = vmax.f32 %v13922_v58, %v6288_v26  ;;  %v6609_v52 = vmax.f32 %v6483_v31, 0.0  ;;  %v6289_v39 = vmax.f32 %v6165_v21, 0.0  ;;  %v6486_v60 = vadd.f32 %v14081_v53, %v6485_v14 }
 0x317   : > { %v6643_v46 = vmax.f32 %v6322_v11, %v6611_v42  ;;  %v6323_v29 = vmax.f32 %v13925_v22, %v6291_v38  ;;  %v6612_v56 = vmax.f32 %v6494_v17, 0.0 }
 0x318   : > { %v6641_v0 = vmax.f32 %v6320_v32, %v6609_v52  ;;  %v6321_v23 = vmax.f32 %v13928_v59, %v6289_v39  ;;  %v6610_v20 = vmax.f32 %v6486_v60, 0.0  ;;  %v10261_v37 = vpop.f32.mrb[180].mxu1 }
 0x319   : > { %v6644_v47 = vmax.f32 %v6323_v29, %v6612_v56  ;;  %v6186_v58 = vadd.f32 %v14081_v53, %v10261_v37  ;;  %v6177_v19 = vpop.f32.mrb[181].mxu1 }
 0x31a   : > { %v6642_v26 = vmax.f32 %v6321_v23, %v6610_v20  ;;  %v6178_v31 = vadd.f32 %v14081_v53, %v6177_v19  ;;  %v10305_v21 = vpop.f32.mrb[180].mxu0  ;;  %v10262_v57 = vpop.f32.mrb[182].mxu1  ;;  %6705 = vrot.lane.b32.xlu0 %v6641_v0, %s11016_s23 }
 0x31b   : > { %v6294_v11 = vmax.f32 %v6186_v58, 0.0  ;;  %v6507_v22 = vadd.f32 %v14081_v53, %v10305_v21  ;;  %v6189_v42 = vadd.f32 %v14081_v53, %v10262_v57  ;;  %v6498_v59 = vpop.f32.mrb[181].mxu0  ;;  %v6180_v38 = vpop.f32.mrb[183].mxu1 }
 0x31c   : > { %v6292_v17 = vmax.f32 %v6178_v31, 0.0  ;;  %v6499_v14 = vadd.f32 %v14081_v53, %v6498_v59  ;;  %v6181_v32 = vadd.f32 %v14081_v53, %v6180_v38  ;;  %v10306_v52 = vpop.f32.mrb[182].mxu0  ;;  %6707 = vrot.lane.b32.xlu1 %v6642_v26, %s11016_s23 }
 0x31d   : > { %v6326_v39 = vmax.f32 %v13939_v63, %v6294_v11  ;;  %v6615_v60 = vmax.f32 %v6507_v22, 0.0  ;;  %v6295_v29 = vmax.f32 %v6189_v42, 0.0  ;;  %v6510_v56 = vadd.f32 %v14081_v53, %v10306_v52  ;;  %v6501_v0 = vpop.f32.mrb[183].mxu0 }
 0x31e   : > { %v6324_v23 = vmax.f32 %v13942_v41, %v6292_v17  ;;  %v6613_v20 = vmax.f32 %v6499_v14, 0.0  ;;  %v6293_v37 = vmax.f32 %v6181_v32, 0.0  ;;  %v6502_v58 = vadd.f32 %v14081_v53, %v6501_v0  ;;  %6709 = vrot.lane.b32.xlu0 %v6643_v46, %s11016_s23 }
 0x31f   : > { %v6647_v19 = vmax.f32 %v6326_v39, %v6615_v60  ;;  %v6327_v31 = vmax.f32 %v13945_v16, %v6295_v29  ;;  %v6616_v21 = vmax.f32 %v6510_v56, 0.0 }
 0x320   : > { %v6645_v26 = vmax.f32 %v6324_v23, %v6613_v20  ;;  %v6325_v63 = vmax.f32 %v13948_v6, %v6293_v37  ;;  %v6614_v57 = vmax.f32 %v6502_v58, 0.0  ;;  %v10265_v11 = vpop.f32.mrb[184].mxu1  ;;  %6711 = vrot.lane.b32.xlu1 %v6644_v47, %s11016_s23 }
 0x321   : > { %v6648_v22 = vmax.f32 %v6327_v31, %v6616_v21  ;;  %v6202_v41 = vadd.f32 %v14081_v53, %v10265_v11  ;;  %v6193_v42 = vpop.f32.mrb[185].mxu1 }
 0x322   : > { %v6646_v59 = vmax.f32 %v6325_v63, %v6614_v57  ;;  %v6194_v38 = vadd.f32 %v14081_v53, %v6193_v42  ;;  %v10309_v17 = vpop.f32.mrb[184].mxu0  ;;  %v10266_v46 = vpop.f32.mrb[186].mxu1  ;;  %6713 = vrot.lane.b32.xlu0 %v6645_v26, %s11016_s23 }
 0x323   : > { %v6298_v16 = vmax.f32 %v6202_v41, 0.0  ;;  %v6523_v14 = vadd.f32 %v14081_v53, %v10309_v17  ;;  %v6205_v6 = vadd.f32 %v14081_v53, %v10266_v46  ;;  %v6514_v32 = vpop.f32.mrb[185].mxu0  ;;  %v6196_v52 = vpop.f32.mrb[187].mxu1 }
 0x324   : > { %v6296_v39 = vmax.f32 %v6194_v38, 0.0  ;;  %v6515_v47 = vadd.f32 %v14081_v53, %v6514_v32  ;;  %v6197_v60 = vadd.f32 %v14081_v53, %v6196_v52  ;;  %v10310_v29 = vpop.f32.mrb[186].mxu0  ;;  %6715 = vrot.lane.b32.xlu1 %v6646_v59, %s11016_s23 }
 0x325   : > { %v6330_v56 = vmax.f32 %v13959_v10, %v6298_v16  ;;  %v6619_v0 = vmax.f32 %v6523_v14, 0.0  ;;  %v6299_v23 = vmax.f32 %v6205_v6, 0.0  ;;  %v6526_v20 = vadd.f32 %v14081_v53, %v10310_v29  ;;  %v6517_v37 = vpop.f32.mrb[187].mxu0 }
 0x326   : > { %v6328_v58 = vmax.f32 %v13962_v27, %v6296_v39  ;;  %v6617_v31 = vmax.f32 %v6515_v47, 0.0  ;;  %v6297_v21 = vmax.f32 %v6197_v60, 0.0  ;;  %v6518_v26 = vadd.f32 %v14081_v53, %v6517_v37  ;;  %6717 = vrot.lane.b32.xlu0 %v6647_v19, %s11016_s23 }
 0x327   : > { %v6651_v63 = vmax.f32 %v6330_v56, %v6619_v0  ;;  %v6331_v57 = vmax.f32 %v13965_v4, %v6299_v23  ;;  %v6620_v11 = vmax.f32 %v6526_v20, 0.0 }
 0x328   : > { %v6649_v41 = vmax.f32 %v6328_v58, %v6617_v31  ;;  %v6329_v10 = vmax.f32 %v13968_v45, %v6297_v21  ;;  %v6618_v42 = vmax.f32 %v6518_v26, 0.0  ;;  %v10269_v59 = vpop.f32.mrb[188].mxu1  ;;  %6719 = vrot.lane.b32.xlu1 %v6648_v22, %s11016_s23 }
 0x329   : > { %v6652_v38 = vmax.f32 %v6331_v57, %v6620_v11  ;;  %v6218_v27 = vadd.f32 %v14081_v53, %v10269_v59  ;;  %v6209_v17 = vpop.f32.mrb[189].mxu1 }
 0x32a   : > { %v6650_v46 = vmax.f32 %v6329_v10, %v6618_v42  ;;  %v6210_v16 = vadd.f32 %v14081_v53, %v6209_v17  ;;  %v10313_v14 = vpop.f32.mrb[188].mxu0  ;;  %v10270_v19 = vpop.f32.mrb[190].mxu1  ;;  %6721 = vrot.lane.b32.xlu0 %v6649_v41, %s11016_s23 }
 0x32b   : > { %v6302_v4 = vmax.f32 %v6218_v27, 0.0  ;;  %v6539_v6 = vadd.f32 %v14081_v53, %v10313_v14  ;;  %v6221_v45 = vadd.f32 %v14081_v53, %v10270_v19  ;;  %v6530_v32 = vpop.f32.mrb[189].mxu0  ;;  %v6212_v52 = vpop.f32.mrb[191].mxu1 }
 0x32c   : > { %v6300_v39 = vmax.f32 %v6210_v16, 0.0  ;;  %v6531_v22 = vadd.f32 %v14081_v53, %v6530_v32  ;;  %v6213_v47 = vadd.f32 %v14081_v53, %v6212_v52  ;;  %v10314_v60 = vpop.f32.mrb[190].mxu0  ;;  %6723 = vrot.lane.b32.xlu1 %v6650_v46, %s11016_s23 }
 0x32d   : > { %v6334_v29 = vmax.f32 %v13979_v51, %v6302_v4  ;;  %v6623_v56 = vmax.f32 %v6539_v6, 0.0  ;;  %v6303_v0 = vmax.f32 %v6221_v45, 0.0  ;;  %v6542_v23 = vadd.f32 %v14081_v53, %v10314_v60  ;;  %v6533_v20 = vpop.f32.mrb[191].mxu0 }
 0x32e   : > { %v6332_v37 = vmax.f32 %v13982_v48, %v6300_v39  ;;  %v6621_v58 = vmax.f32 %v6531_v22, 0.0  ;;  %v6301_v31 = vmax.f32 %v6213_v47, 0.0  ;;  %v6534_v21 = vadd.f32 %v14081_v53, %v6533_v20  ;;  %6725 = vrot.lane.b32.xlu0 %v6651_v63, %s11016_s23 }
 0x32f   : > { %v6655_v26 = vmax.f32 %v6334_v29, %v6623_v56  ;;  %v6335_v57 = vmax.f32 %v13985_v40, %v6303_v0  ;;  %v6624_v11 = vmax.f32 %v6542_v23, 0.0 }
 0x330   : > { %v6653_v41 = vmax.f32 %v6332_v37, %v6621_v58  ;;  %v6333_v51 = vmax.f32 %v13988_v15, %v6301_v31  ;;  %v6622_v10 = vmax.f32 %v6534_v21, 0.0  ;;  %v10273_v42 = vpop.f32.mrb[192].mxu1  ;;  %6727 = vrot.lane.b32.xlu1 %v6652_v38, %s11016_s23 }
 0x331   : > { %v6656_v59 = vmax.f32 %v6335_v57, %v6624_v11  ;;  %v6234_v48 = vadd.f32 %v14081_v53, %v10273_v42  ;;  %v6225_v27 = vpop.f32.mrb[193].mxu1 }
 0x332   : > { %v6654_v17 = vmax.f32 %v6333_v51, %v6622_v10  ;;  %v6226_v46 = vadd.f32 %v14081_v53, %v6225_v27  ;;  %v10317_v16 = vpop.f32.mrb[192].mxu0  ;;  %v10274_v63 = vpop.f32.mrb[194].mxu1  ;;  %6729 = vrot.lane.b32.xlu0 %v6653_v41, %s11016_s23 }
 0x333   : > { %v6306_v40 = vmax.f32 %v6234_v48, 0.0  ;;  %v6555_v14 = vadd.f32 %v14081_v53, %v10317_v16  ;;  %v6237_v15 = vadd.f32 %v14081_v53, %v10274_v63  ;;  %v6546_v19 = vpop.f32.mrb[193].mxu0  ;;  %v6228_v4 = vpop.f32.mrb[195].mxu1 }
 0x334   : > { %v6304_v6 = vmax.f32 %v6226_v46, 0.0  ;;  %v6547_v38 = vadd.f32 %v14081_v53, %v6546_v19  ;;  %v6229_v45 = vadd.f32 %v14081_v53, %v6228_v4  ;;  %v10318_v32 = vpop.f32.mrb[194].mxu0  ;;  %6731 = vrot.lane.b32.xlu1 %v6654_v17, %s11016_s23 }
 0x335   : > { %v6338_v52 = vmax.f32 %v13999_v61, %v6306_v40  ;;  %v6627_v39 = vmax.f32 %v6555_v14, 0.0  ;;  %v6307_v22 = vmax.f32 %v6237_v15, 0.0  ;;  %v6558_v47 = vadd.f32 %v14081_v53, %v10318_v32  ;;  %v6549_v60 = vpop.f32.mrb[195].mxu0 }
 0x336   : > { %v6336_v29 = vmax.f32 %v14002_v5, %v6304_v6  ;;  %v6625_v56 = vmax.f32 %v6547_v38, 0.0  ;;  %v6305_v0 = vmax.f32 %v6229_v45, 0.0  ;;  %v6550_v23 = vadd.f32 %v14081_v53, %v6549_v60  ;;  %6733 = vrot.lane.b32.xlu0 %v6655_v26, %s11016_s23 }
 0x337   : > { %v6659_v20 = vmax.f32 %v6338_v52, %v6627_v39  ;;  %v6339_v37 = vmax.f32 %v14005_v25, %v6307_v22  ;;  %v6628_v58 = vmax.f32 %v6558_v47, 0.0 }
 0x338   : > { %v6657_v31 = vmax.f32 %v6336_v29, %v6625_v56  ;;  %v6337_v61 = vmax.f32 %v14008_v54, %v6305_v0  ;;  %v6626_v21 = vmax.f32 %v6550_v23, 0.0  ;;  %v10277_v57 = vpop.f32.mrb[196].mxu1  ;;  %6735 = vrot.lane.b32.xlu1 %v6656_v59, %s11016_s23 }
 0x339   : > { %v6660_v11 = vmax.f32 %v6339_v37, %v6628_v58  ;;  %v6250_v5 = vadd.f32 %v14081_v53, %v10277_v57  ;;  %v6241_v41 = vpop.f32.mrb[197].mxu1 }
 0x33a   : > { %v6658_v51 = vmax.f32 %v6337_v61, %v6626_v21  ;;  %v6242_v10 = vadd.f32 %v14081_v53, %v6241_v41  ;;  %v10321_v42 = vpop.f32.mrb[196].mxu0  ;;  %v10278_v26 = vpop.f32.mrb[198].mxu1  ;;  %6737 = vrot.lane.b32.xlu0 %v6657_v31, %s11016_s23 }
 0x33b   : > { %v6310_v25 = vmax.f32 %v6250_v5, 0.0  ;;  %v6571_v48 = vadd.f32 %v14081_v53, %v10321_v42  ;;  %v6253_v54 = vadd.f32 %v14081_v53, %v10278_v26  ;;  %v6562_v27 = vpop.f32.mrb[197].mxu0  ;;  %v6244_v17 = vpop.f32.mrb[199].mxu1 }
 0x33c   : > { %v6308_v46 = vmax.f32 %v6242_v10, 0.0  ;;  %v6563_v59 = vadd.f32 %v14081_v53, %v6562_v27  ;;  %v6245_v16 = vadd.f32 %v14081_v53, %v6244_v17  ;;  %v10322_v63 = vpop.f32.mrb[198].mxu0  ;;  %6739 = vrot.lane.b32.xlu1 %v6658_v51, %s11016_s23 }
 0x33d   : > { %v6342_v40 = vmax.f32 %v14019_v24, %v6310_v25  ;;  %v6631_v14 = vmax.f32 %v6571_v48, 0.0  ;;  %v6311_v15 = vmax.f32 %v6253_v54, 0.0  ;;  %v6574_v19 = vadd.f32 %v14081_v53, %v10322_v63  ;;  %v6565_v4 = vpop.f32.mrb[199].mxu0 }
 0x33e   : > { %v6340_v6 = vmax.f32 %v14022_v35, %v6308_v46  ;;  %v6629_v38 = vmax.f32 %v6563_v59, 0.0  ;;  %v6309_v45 = vmax.f32 %v6245_v16, 0.0  ;;  %v6566_v32 = vadd.f32 %v14081_v53, %v6565_v4  ;;  %6741 = vrot.lane.b32.xlu0 %v6659_v20, %s11016_s23 }
 0x33f   : > { %v6663_v52 = vmax.f32 %v6342_v40, %v6631_v14  ;;  %v6343_v39 = vmax.f32 %v14025_v43, %v6311_v15  ;;  %v6632_v22 = vmax.f32 %v6574_v19, 0.0 }
 0x340   : > { %v6661_v47 = vmax.f32 %v6340_v6, %v6629_v38  ;;  %v6341_v24 = vmax.f32 %v14028_v1, %v6309_v45  ;;  %v6630_v60 = vmax.f32 %v6566_v32, 0.0  ;;  %v10281_v29 = vpop.f32.mrb[200].mxu1  ;;  %6743 = vrot.lane.b32.xlu1 %v6660_v11, %s11016_s23 }
 0x341   : > { %v6664_v56 = vmax.f32 %v6343_v39, %v6632_v22  ;;  %v6266_v35 = vadd.f32 %v14081_v53, %v10281_v29  ;;  %v6257_v0 = vpop.f32.mrb[201].mxu1 }
 0x342   : > { %v6662_v23 = vmax.f32 %v6341_v24, %v6630_v60  ;;  %v6258_v37 = vadd.f32 %v14081_v53, %v6257_v0  ;;  %v10325_v58 = vpop.f32.mrb[200].mxu0  ;;  %v10282_v20 = vpop.f32.mrb[202].mxu1  ;;  %6745 = vrot.lane.b32.xlu0 %v6661_v47, %s11016_s23 }
 0x343   : > { %v6314_v43 = vmax.f32 %v6266_v35, 0.0  ;;  %v6587_v31 = vadd.f32 %v14081_v53, %v10325_v58  ;;  %v6269_v1 = vadd.f32 %v14081_v53, %v10282_v20  ;;  %v6578_v61 = vpop.f32.mrb[201].mxu0  ;;  %v6260_v21 = vpop.f32.mrb[203].mxu1 }
 0x344   : > { %v6312_v57 = vmax.f32 %v6258_v37, 0.0  ;;  %v6579_v11 = vadd.f32 %v14081_v53, %v6578_v61  ;;  %v6261_v5 = vadd.f32 %v14081_v53, %v6260_v21  ;;  %v10326_v41 = vpop.f32.mrb[202].mxu0  ;;  %6747 = vrot.lane.b32.xlu1 %v6662_v23, %s11016_s23 }
 0x345   : > { %v6346_v51 = vmax.f32 %v14039_v62, %v6314_v43  ;;  %v6635_v10 = vmax.f32 %v6587_v31, 0.0  ;;  %v6315_v42 = vmax.f32 %v6269_v1, 0.0  ;;  %v6590_v26 = vadd.f32 %v14081_v53, %v10326_v41  ;;  %v6581_v25 = vpop.f32.mrb[203].mxu0 }
 0x346   : > { %v6344_v48 = vmax.f32 %v14042_v34, %v6312_v57  ;;  %v6633_v54 = vmax.f32 %v6579_v11, 0.0  ;;  %v6313_v27 = vmax.f32 %v6261_v5, 0.0  ;;  %v6582_v17 = vadd.f32 %v14081_v53, %v6581_v25  ;;  %6749 = vrot.lane.b32.xlu0 %v6663_v52, %s11016_s23 }
 0x347   : > { %v6667_v46 = vmax.f32 %v6346_v51, %v6635_v10  ;;  %v6347_v59 = vmax.f32 %v14045_v28, %v6315_v42  ;;  %v6636_v16 = vmax.f32 %v6590_v26, 0.0 }
 0x348   : > { %v6665_v63 = vmax.f32 %v6344_v48, %v6633_v54  ;;  %v6345_v62 = vmax.f32 %v14048_v2, %v6313_v27  ;;  %v6634_v40 = vmax.f32 %v6582_v17, 0.0  ;;  %v10285_v14 = vpop.f32.mrb[204].mxu1  ;;  %6751 = vrot.lane.b32.xlu1 %v6664_v56, %s11016_s23 }
 0x349   : > { %v6668_v15 = vmax.f32 %v6347_v59, %v6636_v16  ;;  %v6282_v34 = vadd.f32 %v14081_v53, %v10285_v14  ;;  %v6273_v19 = vpop.f32.mrb[205].mxu1 }
 0x34a   : > { %v6666_v4 = vmax.f32 %v6345_v62, %v6634_v40  ;;  %v6274_v6 = vadd.f32 %v14081_v53, %v6273_v19  ;;  %v10329_v38 = vpop.f32.mrb[204].mxu0  ;;  %v10286_v45 = vpop.f32.mrb[206].mxu1  ;;  %6753 = vrot.lane.b32.xlu0 %v6665_v63, %s11016_s23  ;;  %v15818_v19 = vld [vmem:[#allocation20_spill] sm:$0xff] }
 0x34b   : > { %v6318_v28 = vmax.f32 %v6282_v34, 0.0  ;;  %v6603_v32 = vadd.f32 %v14081_v53, %v10329_v38  ;;  %v6285_v2 = vadd.f32 %v14081_v53, %v10286_v45  ;;  %v6594_v52 = vpop.f32.mrb[205].mxu0  ;;  %v6276_v39 = vpop.f32.mrb[207].mxu1  ;;  %v15819_v38 = vld [vmem:[#allocation4_spill] sm:$0xff] }
 0x34c   : > { %v6316_v22 = vmax.f32 %v6274_v6, 0.0  ;;  %v6595_v47 = vadd.f32 %v14081_v53, %v6594_v52  ;;  %v6277_v24 = vadd.f32 %v14081_v53, %v6276_v39  ;;  %v10330_v60 = vpop.f32.mrb[206].mxu0  ;;  %6755 = vrot.lane.b32.xlu1 %v6666_v4, %s11016_s23  ;;  %v15821_v39 = vld [vmem:[#allocation26_spill] sm:$0xff] }
 0x34d   : > { %v6350_v29 = vmax.f32 %v14059_v30, %v6318_v28  ;;  %v6639_v56 = vmax.f32 %v6603_v32, 0.0  ;;  %v6319_v35 = vmax.f32 %v6285_v2, 0.0  ;;  %v6606_v0 = vadd.f32 %v14081_v53, %v10330_v60  ;;  %v6597_v23 = vpop.f32.mrb[207].mxu0  ;;  %v15820_v32 = vld [vmem:[#allocation5_spill] sm:$0xff] }
 0x34e   : > { %v6348_v37 = vmax.f32 %v14062_v49, %v6316_v22  ;;  %v6637_v58 = vmax.f32 %v6595_v47, 0.0  ;;  %v6317_v20 = vmax.f32 %v6277_v24, 0.0  ;;  %v6598_v43 = vadd.f32 %v14081_v53, %v6597_v23  ;;  %6757 = vrot.lane.b32.xlu0 %v6667_v46, %s11016_s23  ;;  %v15822_v24 = vld [vmem:[#allocation24_spill] sm:$0xff]  ;;  %v15824_v23 = vld [vmem:[#allocation7_spill] sm:$0xff] }
 0x34f   : > { %v6671_v31 = vmax.f32 %v6350_v29, %v6639_v56  ;;  %v6351_v1 = vmax.f32 %v14065_v9, %v6319_v35  ;;  %v6640_v61 = vmax.f32 %v6606_v0, 0.0  ;;  %v15823_v56 = vld [vmem:[#allocation6_spill] sm:$0xff] }
 0x350   : > { %v6669_v21 = vmax.f32 %v6348_v37, %v6637_v58  ;;  %v6349_v30 = vmax.f32 %v14068_v44, %v6317_v20  ;;  %v6638_v57 = vmax.f32 %v6598_v43, 0.0  ;;  %6759 = vrot.lane.b32.xlu1 %v6668_v15, %s11016_s23  ;;  %v15825_v20 = vld [vmem:[#allocation30_spill] sm:$0xff] }
 0x351   : > { %v6672_v11 = vmax.f32 %v6351_v1, %v6640_v61  ;;  %v15826_v1 = vld [vmem:[#allocation28_spill] sm:$0xff] }
 0x352   : > { %v6670_v5 = vmax.f32 %v6349_v30, %v6638_v57  ;;  %6761 = vrot.lane.b32.xlu0 %v6669_v21, %s11016_s23  ;;  %v15827_v30 = vld [vmem:[#allocation8_spill] sm:$0xff] }
 0x354   : > { %6763 = vrot.lane.b32.xlu1 %v6670_v5, %s11016_s23  ;;  %v15828_v5 = vld [vmem:[#allocation9_spill] sm:$0xff] }
 0x356   : > { %6765 = vrot.lane.b32.xlu0 %v6671_v31, %s11016_s23 }
 0x358   : > { %6767 = vrot.lane.b32.xlu1 %v6672_v11, %s11016_s23 }
 0x38c   : > { %v6706_v49 = vpop.permute.xlu0 %6705 }
 0x38d   : > { %v6802_v9 = vsel %vm6801_vm3, %v13570_v18, %v6706_v49 }
 0x38e   : > { %v6708_v44 = vpop.permute.xlu1 %6707  ;;  %10335 = vmatprep.mubr.msk.f32.mxu1 %vm6843_vm4, %v6802_v9 }
 0x38f   : > { %v6803_v53 = vsel %vm6801_vm3, %v13583_v50, %v6708_v44  ;;  %v15829_v44 = vld [vmem:[#allocation34_spill] sm:$0xff] }
 0x390   : > { %v6710_v41 = vpop.permute.xlu0 %6709  ;;  %10336 = vmatmul.mubr.msk.f32.vlgmr.msra.gmra.mrb[208].mxu1 %vm6843_vm4, %v6803_v53 }
 0x391   : > { %v6804_v51 = vsel %vm6801_vm3, %v13566_v13, %v6710_v41 }
 0x392   : > { %v6712_v10 = vpop.permute.xlu1 %6711  ;;  %10338 = vmatprep.mubr.msk.f32.mxu1 %vm6843_vm4, %v6804_v51  ;;  %v15830_v51 = vld [vmem:[#allocation32_spill] sm:$0xff] }
 0x393   : > { %v6805_v42 = vsel %vm6801_vm3, %v13577_v8, %v6712_v10 }
 0x394   : > { %v6714_v26 = vpop.permute.xlu0 %6713  ;;  %10339 = vmatmul.mubr.msk.f32.gmra.mrb[210].mxu1 %vm6843_vm4, %v6805_v42 }
 0x395   : > { %v6806_v18 = vsel %vm6801_vm3, %v13602_v3, %v6714_v26  ;;  %v15831_v26 = vld [vmem:[#allocation10_spill] sm:$0xff] }
 0x396   : > { %v6716_v25 = vpop.permute.xlu1 %6715  ;;  %10341 = vmatprep.mubr.msk.f32.mxu1 %vm6843_vm4, %v6806_v18 }
 0x397   : > { %v6807_v50 = vsel %vm6801_vm3, %v13615_v55, %v6716_v25 }
 0x398   : > { %v6718_v48 = vpop.permute.xlu0 %6717  ;;  %10342 = vmatmul.mubr.msk.f32.gmra.mrb[212].mxu1 %vm6843_vm4, %v6807_v50  ;;  %v15832_v50 = vld [vmem:[#allocation12_spill] sm:$0xff] }
 0x399   : > { %v6808_v13 = vsel %vm6801_vm3, %v13598_v7, %v6718_v48  ;;  %v15814_v7 = vld [vmem:[#allocation11_spill] sm:$0xff] }
 0x39a   : > { %v6720_v54 = vpop.permute.xlu1 %6719  ;;  %10344 = vmatprep.mubr.msk.f32.mxu1 %vm6843_vm4, %v6808_v13 }
 0x39b   : > { %v6809_v8 = vsel %vm6801_vm3, %v13609_v12, %v6720_v54  ;;  %v15815_v12 = vld [vmem:[#allocation18_spill] sm:$0xff] }
 0x39c   : > { %v6722_v27 = vpop.permute.xlu0 %6721  ;;  %10345 = vmatmul.mubr.msk.f32.gmra.mrb[214].mxu1 %vm6843_vm4, %v6809_v8  ;;  %v15833_v54 = vld [vmem:[#allocation38_spill] sm:$0xff] }
 0x39d   : > { %v6810_v3 = vsel %vm6801_vm3, %v13634_v33, %v6722_v27  ;;  %v15816_v33 = vld [vmem:[#allocation3_spill] sm:$0xff] }
 0x39e   : > { %v6724_v17 = vpop.permute.xlu1 %6723  ;;  %10347 = vmatprep.mubr.msk.f32.mxu1 %vm6843_vm4, %v6810_v3  ;;  %v15834_v3 = vld [vmem:[#allocation36_spill] sm:$0xff] }
 0x39f   : > { %v6811_v55 = vsel %vm6801_vm3, %v13647_v36, %v6724_v17  ;;  %v15817_v36 = vld [vmem:[#allocation22_spill] sm:$0xff] }
 0x3a0   : > { %v6726_v46 = vpop.permute.xlu0 %6725  ;;  %10348 = vmatmul.mubr.msk.f32.gmra.mrb[216].mxu1 %vm6843_vm4, %v6811_v55 }
 0x3a1   : > { %v6812_v59 = vsel %vm6801_vm3, %v15814_v7, %v6726_v46  ;;  %v15835_v46 = vld [vmem:[#allocation13_spill] sm:$0xff] }
 0x3a2   : > { %v6728_v16 = vpop.permute.xlu1 %6727  ;;  %10350 = vmatprep.mubr.msk.f32.mxu1 %vm6843_vm4, %v6812_v59  ;;  %v14301_v59 = vld [vmem:[%s15529_s6] ss:$0 sm:$0xff] }
 0x3a3   : > { %v6813_v63 = vsel %vm6801_vm3, %v15815_v12, %v6728_v16 }
 0x3a4   : > { %v6730_v62 = vpop.permute.xlu0 %6729  ;;  %10351 = vmatmul.mubr.msk.f32.gmra.mrb[218].mxu1 %vm6843_vm4, %v6813_v63 }
 0x3a5   : > { %v6814_v40 = vsel %vm6801_vm3, %v15816_v33, %v6730_v62 }
 0x3a6   : > { %v6732_v14 = vpop.permute.xlu1 %6731  ;;  %10353 = vmatprep.mubr.msk.f32.mxu1 %vm6843_vm4, %v6814_v40 }
 0x3a7   : > { %v6815_v15 = vsel %vm6801_vm3, %v15817_v36, %v6732_v14 }
 0x3a8   : > { %v6734_v34 = vpop.permute.xlu0 %6733  ;;  %10354 = vmatmul.mubr.msk.f32.gmra.mrb[220].mxu1 %vm6843_vm4, %v6815_v15 }
 0x3a9   : > { %v6816_v4 = vsel %vm6801_vm3, %v15818_v19, %v6734_v34 }
 0x3aa   : > { %v6736_v6 = vpop.permute.xlu1 %6735  ;;  %10356 = vmatprep.mubr.msk.f32.mxu1 %vm6843_vm4, %v6816_v4 }
 0x3ab   : > { %v6817_v45 = vsel %vm6801_vm3, %v15819_v38, %v6736_v6 }
 0x3ac   : > { %v6738_v28 = vpop.permute.xlu0 %6737  ;;  %10357 = vmatmul.mubr.msk.f32.gmra.mrb[222].mxu1 %vm6843_vm4, %v6817_v45 }
 0x3ad   : > { %v6818_v2 = vsel %vm6801_vm3, %v15820_v32, %v6738_v28 }
 0x3ae   : > { %v6740_v52 = vpop.permute.xlu1 %6739  ;;  %10359 = vmatprep.mubr.msk.f32.mxu1 %vm6843_vm4, %v6818_v2 }
 0x3af   : > { %v6819_v22 = vsel %vm6801_vm3, %v15821_v39, %v6740_v52 }
 0x3b0   : > { %v6742_v47 = vpop.permute.xlu0 %6741  ;;  %10360 = vmatmul.mubr.msk.f32.gmra.mrb[224].mxu1 %vm6843_vm4, %v6819_v22 }
 0x3b1   : > { %v6820_v60 = vsel %vm6801_vm3, %v15822_v24, %v6742_v47 }
 0x3b2   : > { %v6744_v29 = vpop.permute.xlu1 %6743  ;;  %10362 = vmatprep.mubr.msk.f32.mxu1 %vm6843_vm4, %v6820_v60 }
 0x3b3   : > { %v6821_v35 = vsel %vm6801_vm3, %v15823_v56, %v6744_v29 }
 0x3b4   : > { %v6746_v0 = vpop.permute.xlu0 %6745  ;;  %10363 = vmatmul.mubr.msk.f32.gmra.mrb[226].mxu1 %vm6843_vm4, %v6821_v35 }
 0x3b5   : > { %v6822_v37 = vsel %vm6801_vm3, %v15824_v23, %v6746_v0 }
 0x3b6   : > { %v6748_v58 = vpop.permute.xlu1 %6747  ;;  %10365 = vmatprep.mubr.msk.f32.mxu1 %vm6843_vm4, %v6822_v37 }
 0x3b7   : > { %v6823_v43 = vsel %vm6801_vm3, %v15825_v20, %v6748_v58 }
 0x3b8   : > { %v6750_v31 = vpop.permute.xlu0 %6749  ;;  %10366 = vmatmul.mubr.msk.f32.gmra.mrb[228].mxu1 %vm6843_vm4, %v6823_v43 }
 0x3b9   : > { %v6824_v61 = vsel %vm6801_vm3, %v15826_v1, %v6750_v31 }
 0x3ba   : > { %v6752_v21 = vpop.permute.xlu1 %6751  ;;  %10368 = vmatprep.mubr.msk.f32.mxu1 %vm6843_vm4, %v6824_v61 }
 0x3bb   : > { %v6825_v57 = vsel %vm6801_vm3, %v15827_v30, %v6752_v21 }
 0x3bc   : > { %v6754_v11 = vpop.permute.xlu0 %6753  ;;  %10369 = vmatmul.mubr.msk.f32.gmra.mrb[230].mxu1 %vm6843_vm4, %v6825_v57 }
 0x3bd   : > { %v6826_v49 = vsel %vm6801_vm3, %v15828_v5, %v6754_v11 }
 0x3be   : > { %v6756_v9 = vpop.permute.xlu1 %6755  ;;  %10371 = vmatprep.mubr.msk.f32.mxu1 %vm6843_vm4, %v6826_v49 }
 0x3bf   : > { %v6827_v53 = vsel %vm6801_vm3, %v15829_v44, %v6756_v9 }
 0x3c0   : > { %v6758_v41 = vpop.permute.xlu0 %6757  ;;  %10372 = vmatmul.mubr.msk.f32.gmra.mrb[232].mxu1 %vm6843_vm4, %v6827_v53 }
 0x3c1   : > { %v6828_v10 = vsel %vm6801_vm3, %v15830_v51, %v6758_v41 }
 0x3c2   : > { %v6760_v42 = vpop.permute.xlu1 %6759  ;;  %10374 = vmatprep.mubr.msk.f32.mxu1 %vm6843_vm4, %v6828_v10 }
 0x3c3   : > { %v6829_v18 = vsel %vm6801_vm3, %v15831_v26, %v6760_v42 }
 0x3c4   : > { %v6762_v25 = vpop.permute.xlu0 %6761  ;;  %10375 = vmatmul.mubr.msk.f32.gmra.mrb[234].mxu1 %vm6843_vm4, %v6829_v18 }
 0x3c5   : > { %v6830_v48 = vsel %vm6801_vm3, %v15832_v50, %v6762_v25 }
 0x3c6   : > { %v6764_v13 = vpop.permute.xlu1 %6763  ;;  %10377 = vmatprep.mubr.msk.f32.mxu1 %vm6843_vm4, %v6830_v48 }
 0x3c7   : > { %v6831_v8 = vsel %vm6801_vm3, %v15833_v54, %v6764_v13 }
 0x3c8   : > { %v6766_v27 = vpop.permute.xlu0 %6765  ;;  %10378 = vmatmul.mubr.msk.f32.gmra.mrb[236].mxu1 %vm6843_vm4, %v6831_v8 }
 0x3c9   : > { %v6832_v17 = vsel %vm6801_vm3, %v15834_v3, %v6766_v27 }
 0x3ca   : > { %v6768_v55 = vpop.permute.xlu1 %6767  ;;  %10380 = vmatprep.mubr.msk.f32.mxu1 %vm6843_vm4, %v6832_v17 }
 0x3cb   : > { %v6833_v7 = vsel %vm6801_vm3, %v15835_v46, %v6768_v55 }
 0x3cc   : > { %10381 = vmatmul.mubr.msk.f32.gmra.mrb[238].mxu1 %vm6843_vm4, %v6833_v7 }
 0x463   : > { %v10337_v16 = vpop.f32.mrb[208].mxu1 }
 0x464   : > { %v7012_v12 = vadd.f32 %v10337_v16, %v14301_v59  ;;  %v7006_v63 = vpop.f32.mrb[209].mxu1 }
 0x465   : > { %v7007_v62 = vadd.f32 %v14301_v59, %v7006_v63 }
 0x466   : > { %v7198_v33 = vmul.f32 0.044715, %v7012_v12  ;;  %v7166_v55 = vmul.f32 0.5, %v7012_v12 }
 0x467   : > { %v7197_v40 = vmul.f32 0.044715, %v7007_v62  ;;  %v10340_v14 = vpop.f32.mrb[210].mxu1  ;;  %v7165_v46 = vmul.f32 0.5, %v7007_v62 }
 0x468   : > { %v7230_v36 = vmul.f32 %v7198_v33, %v7012_v12  ;;  %v14306_v15 = vadd.f32 %v10340_v14, %v14301_v59  ;;  %v7016_v34 = vpop.f32.mrb[211].mxu1 }
 0x469   : > { %v7229_v19 = vmul.f32 %v7197_v40, %v7007_v62  ;;  %v14309_v4 = vadd.f32 %v14301_v59, %v7016_v34 }
 0x46a   : > { %v7200_v6 = vmul.f32 0.044715, %v14306_v15  ;;  %v7262_v38 = vmul.f32 %v7230_v36, %v7012_v12  ;;  %v7168_v34 = vmul.f32 0.5, %v14306_v15 }
 0x46b   : > { %v7199_v45 = vmul.f32 0.044715, %v14309_v4  ;;  %v10343_v28 = vpop.f32.mrb[212].mxu1  ;;  %v7261_v32 = vmul.f32 %v7229_v19, %v7007_v62  ;;  %v7167_v36 = vmul.f32 0.5, %v14309_v4 }
 0x46c   : > { %v7232_v2 = vmul.f32 %v7200_v6, %v14306_v15  ;;  %v14315_v52 = vadd.f32 %v10343_v28, %v14301_v59  ;;  %v7026_v39 = vpop.f32.mrb[213].mxu1  ;;  %v7294_v22 = vadd.f32 %v7262_v38, %v7012_v12 }
 0x46d   : > { %v7231_v47 = vmul.f32 %v7199_v45, %v14309_v4  ;;  %v7027_v24 = vadd.f32 %v14301_v59, %v7026_v39  ;;  %v7293_v60 = vadd.f32 %v7261_v32, %v7007_v62 }
 0x46e   : > { %v7202_v29 = vmul.f32 0.044715, %v14315_v52  ;;  %v7326_v56 = vmul.f32 0.7978846, %v7294_v22  ;;  %v7264_v35 = vmul.f32 %v7232_v2, %v14306_v15  ;;  %v14359_v22 = vmul.f32 0.5, %v14315_v52 }
 0x46f   : > { %v7201_v0 = vmul.f32 0.044715, %v7027_v24  ;;  %v10346_v23 = vpop.f32.mrb[214].mxu1  ;;  %v7325_v37 = vmul.f32 0.7978846, %v7293_v60  ;;  %v7263_v58 = vmul.f32 %v7231_v47, %v14309_v4  ;;  %v7169_v39 = vmul.f32 0.5, %v7027_v24 }
 0x470   : > { %v7234_v20 = vmul.f32 %v7202_v29, %v14315_v52  ;;  %v14324_v43 = vadd.f32 %v10346_v23, %v14301_v59  ;;  %v7036_v31 = vpop.f32.mrb[215].mxu1  ;;  %10624 = vtanh.f32 %v7326_v56  ;;  %v7296_v1 = vadd.f32 %v7264_v35, %v14306_v15 }
 0x471   : > { %v7233_v61 = vmul.f32 %v7201_v0, %v7027_v24  ;;  %v14328_v21 = vadd.f32 %v14301_v59, %v7036_v31  ;;  %10626 = vtanh.f32 %v7325_v37  ;;  %v7295_v30 = vadd.f32 %v7263_v58, %v14309_v4 }
 0x472   : > { %v7204_v57 = vmul.f32 0.044715, %v14324_v43  ;;  %v7328_v11 = vmul.f32 0.7978846, %v7296_v1  ;;  %v7266_v5 = vmul.f32 %v7234_v20, %v14315_v52  ;;  %v14377_v58 = vmul.f32 0.5, %v14324_v43 }
 0x473   : > { %v7203_v49 = vmul.f32 0.044715, %v14328_v21  ;;  %v10349_v9 = vpop.f32.mrb[216].mxu1  ;;  %v7327_v44 = vmul.f32 0.7978846, %v7295_v30  ;;  %v7265_v53 = vmul.f32 %v7233_v61, %v7027_v24  ;;  %v7171_v30 = vmul.f32 0.5, %v14328_v21 }
 0x474   : > { %v7236_v41 = vmul.f32 %v7204_v57, %v14324_v43  ;;  %v14336_v51 = vadd.f32 %v10349_v9, %v14301_v59  ;;  %v7046_v10 = vpop.f32.mrb[217].mxu1  ;;  %10628 = vtanh.f32 %v7328_v11  ;;  %v7298_v42 = vadd.f32 %v7266_v5, %v14315_v52 }
 0x475   : > { %v7235_v26 = vmul.f32 %v7203_v49, %v14328_v21  ;;  %v14341_v18 = vadd.f32 %v14301_v59, %v7046_v10  ;;  %10630 = vtanh.f32 %v7327_v44  ;;  %v7297_v25 = vadd.f32 %v7265_v53, %v7027_v24 }
 0x476   : > { %v7206_v50 = vmul.f32 0.044715, %v14336_v51  ;;  %v7330_v48 = vmul.f32 0.7978846, %v7298_v42  ;;  %v7268_v13 = vmul.f32 %v7236_v41, %v14324_v43  ;;  %v14384_v57 = vmul.f32 0.5, %v14336_v51 }
 0x477   : > { %v7205_v54 = vmul.f32 0.044715, %v14341_v18  ;;  %v10352_v8 = vpop.f32.mrb[218].mxu1  ;;  %v7329_v27 = vmul.f32 0.7978846, %v7297_v25  ;;  %v7267_v3 = vmul.f32 %v7235_v26, %v14328_v21 }
 0x478   : > { %v7056_v17 = vpop.f32.mrb[219].mxu1  ;;  %10632 = vtanh.f32 %v7330_v48  ;;  %v7300_v7 = vadd.f32 %v7268_v13, %v14324_v43  ;;  %v7238_v14 = vmul.f32 %v7206_v50, %v14336_v51  ;;  %v14362_v4 = vadd.f32 %v10352_v8, %v14301_v59 }
 0x479   : > { %v7237_v16 = vmul.f32 %v7205_v54, %v14341_v18  ;;  %v14350_v63 = vadd.f32 %v14301_v59, %v7056_v17  ;;  %10634 = vtanh.f32 %v7329_v27  ;;  %v7299_v33 = vadd.f32 %v7267_v3, %v14328_v21 }
 0x47a   : > { %v10625_v40 = vpop.eup %10624  ;;  %v7332_v12 = vmul.f32 0.7978846, %v7300_v7  ;;  %v7270_v52 = vmul.f32 %v7238_v14, %v14336_v51  ;;  %v7208_v11 = vmul.f32 0.044715, %v14362_v4  ;;  %v14402_v50 = vmul.f32 0.5, %v14341_v18 }
 0x47b   : > { %v10627_v62 = vpop.eup %10626  ;;  %v7207_v19 = vmul.f32 0.044715, %v14350_v63  ;;  %v10355_v6 = vpop.f32.mrb[220].mxu1  ;;  %v7390_v38 = vadd.f32 1.0, %v10625_v40  ;;  %v7331_v45 = vmul.f32 0.7978846, %v7299_v33  ;;  %v7269_v28 = vmul.f32 %v7237_v16, %v14341_v18 }
 0x47c   : > { %v7066_v32 = vpop.f32.mrb[221].mxu1  ;;  %v7389_v2 = vadd.f32 1.0, %v10627_v62  ;;  %10636 = vtanh.f32 %v7332_v12  ;;  %v14388_v5 = vadd.f32 %v10355_v6, %v14301_v59  ;;  %v7302_v41 = vadd.f32 %v7270_v52, %v14336_v51 }
 0x47d   : > { %v7239_v15 = vmul.f32 %v7207_v19, %v14350_v63  ;;  %v14365_v47 = vmul.f32 %v7390_v38, %v7166_v55  ;;  %10638 = vtanh.f32 %v7331_v45  ;;  %v14368_v29 = vadd.f32 %v14301_v59, %v7066_v32 }
 0x47e   : > { %v10629_v60 = vpop.eup %10628  ;;  %v14370_v56 = vmul.f32 %v7389_v2, %v7165_v46  ;;  %v7301_v24 = vadd.f32 %v7269_v28, %v14341_v18  ;;  %v14407_v27 = vmul.f32 0.5, %v14362_v4  ;;  %v7240_v51 = vmul.f32 %v7208_v11, %v14362_v4 }
 0x47f   : > { %v10631_v35 = vpop.eup %10630  ;;  %v10358_v0 = vpop.f32.mrb[222].mxu1  ;;  %v7456_v23 = vsel %vm1916_vm0, %v14365_v47, 0.0  ;;  %v7392_v37 = vadd.f32 1.0, %v10629_v60  ;;  %v7271_v20 = vmul.f32 %v7239_v15, %v14350_v63  ;;  %v7209_v44 = vmul.f32 0.044715, %v14368_v29 }
 0x480   : > { %7457 = vadd.xlane.f32.xlu1 %v7456_v23  ;;  %v7076_v31 = vpop.f32.mrb[223].mxu1  ;;  %v7453_v1 = vsel %vm1916_vm0, %v14370_v56, 0.0  ;;  %v7391_v61 = vadd.f32 1.0, %v10631_v35  ;;  %v7333_v49 = vmul.f32 0.7978846, %v7301_v24  ;;  %v14411_v3 = vadd.f32 %v10358_v0, %v14301_v59 }
 0x481   : > { %v14391_v43 = vadd.f32 %v14301_v59, %v7076_v31  ;;  %7454 = vadd.xlane.f32.xlu0 %v7453_v1  ;;  %v7303_v21 = vadd.f32 %v7271_v20, %v14350_v63  ;;  %v14399_v25 = vmul.f32 %v7392_v37, %v7168_v34  ;;  %v7210_v46 = vmul.f32 0.044715, %v14388_v5 }
 0x482   : > { %v10633_v9 = vpop.eup %10632  ;;  %v14394_v53 = vmul.f32 %v7391_v61, %v7167_v36  ;;  %10640 = vtanh.f32 %v7333_v49  ;;  %v7241_v7 = vmul.f32 %v7209_v44, %v14368_v29  ;;  %v7334_v33 = vmul.f32 0.7978846, %v7302_v41 }
 0x483   : > { %v10635_v10 = vpop.eup %10634  ;;  %v7211_v42 = vmul.f32 0.044715, %v14391_v43  ;;  %v10361_v26 = vpop.f32.mrb[224].mxu1  ;;  %v7394_v8 = vadd.f32 1.0, %v10633_v9  ;;  %v7335_v18 = vmul.f32 0.7978846, %v7303_v21  ;;  %v7242_v24 = vmul.f32 %v7210_v46, %v14388_v5 }
 0x484   : > { %v7086_v48 = vpop.f32.mrb[225].mxu1  ;;  %v7459_v13 = vsel %vm1916_vm0, %v14394_v53, 0.0  ;;  %v7393_v54 = vadd.f32 1.0, %v10635_v10  ;;  %v14414_v17 = vadd.f32 %v10361_v26, %v14301_v59  ;;  %v7462_v12 = vsel %vm1916_vm0, %v14399_v25, 0.0 }
 0x485   : > { %7460 = vadd.xlane.f32.xlu0 %v7459_v13  ;;  %v7243_v14 = vmul.f32 %v7211_v42, %v14391_v43  ;;  %v14422_v36 = vadd.f32 %v14301_v59, %v7086_v48  ;;  %10642 = vtanh.f32 %v7335_v18  ;;  %v14429_v38 = vmul.f32 %v7394_v8, %v14359_v22 }
 0x486   : > { %v10637_v55 = vpop.eup %10636  ;;  %v14418_v16 = vmul.f32 %v7393_v54, %v7169_v39  ;;  %v7212_v28 = vmul.f32 0.044715, %v14411_v3  ;;  %v7214_v32 = vmul.f32 0.044715, %v14414_v17  ;;  %v7175_v2 = vmul.f32 0.5, %v14350_v63 }
 0x487   : > { %v10639_v40 = vpop.eup %10638  ;;  %v10364_v34 = vpop.f32.mrb[226].mxu1  ;;  %v7396_v45 = vadd.f32 1.0, %v10637_v55  ;;  %10644 = vtanh.f32 %v7334_v33  ;;  %v7273_v60 = vmul.f32 %v7241_v7, %v14368_v29  ;;  %v7272_v22 = vmul.f32 %v7240_v51, %v14362_v4 }
 0x488   : > { %v7096_v62 = vpop.f32.mrb[227].mxu1  ;;  %v7465_v19 = vsel %vm1916_vm0, %v14418_v16, 0.0  ;;  %v7395_v6 = vadd.f32 1.0, %v10639_v40  ;;  %v14435_v39 = vadd.f32 %v10364_v34, %v14301_v59  ;;  %v7213_v52 = vmul.f32 0.044715, %v14422_v36 }
 0x489   : > { %7466 = vadd.xlane.f32.xlu1 %v7465_v19  ;;  %7463 = vadd.xlane.f32.xlu0 %v7462_v12  ;;  %v14444_v35 = vadd.f32 %v14301_v59, %v7096_v62  ;;  %v7275_v63 = vmul.f32 %v7243_v14, %v14391_v43  ;;  %v7468_v20 = vsel %vm1916_vm0, %v14429_v38, 0.0  ;;  %v14452_v31 = vmul.f32 %v7396_v45, %v14377_v58 }
 0x48a   : > { %v14437_v15 = vmul.f32 %v7395_v6, %v7171_v30  ;;  %v7305_v1 = vadd.f32 %v7273_v60, %v14368_v29  ;;  %v7244_v30 = vmul.f32 %v7212_v28, %v14411_v3  ;;  %v14457_v11 = vmul.f32 %v7214_v32, %v14414_v17 }
 0x48b   : > { %v10367_v0 = vpop.f32.mrb[228].mxu1  ;;  %v14460_v49 = vmul.f32 0.5, %v14368_v29  ;;  %v7304_v9 = vadd.f32 %v7272_v22, %v14362_v4  ;;  %v7216_v44 = vmul.f32 0.044715, %v14435_v39  ;;  %v7307_v41 = vadd.f32 %v7275_v63, %v14391_v43 }
 0x48c   : > { %v7106_v23 = vpop.f32.mrb[229].mxu1  ;;  %v7471_v37 = vsel %vm1916_vm0, %v14437_v15, 0.0  ;;  %v10641_v61 = vpop.eup %10640  ;;  %v7337_v58 = vmul.f32 0.7978846, %v7305_v1  ;;  %v7245_v10 = vmul.f32 %v7213_v52, %v14422_v36  ;;  %v7215_v42 = vmul.f32 0.044715, %v14444_v35 }
 0x48d   : > { %7472 = vadd.xlane.f32.xlu1 %v7471_v37  ;;  %7469 = vadd.xlane.f32.xlu0 %v7468_v20  ;;  %v7397_v21 = vadd.f32 1.0, %v10641_v61  ;;  %v7336_v48 = vmul.f32 0.7978846, %v7304_v9  ;;  %v7274_v13 = vmul.f32 %v7242_v24, %v14388_v5  ;;  %v7474_v8 = vsel %vm1916_vm0, %v14452_v31, 0.0 }
 0x48e   : > { %10646 = vtanh.f32 %v7337_v58  ;;  %v14477_v18 = vadd.f32 %v10367_v0, %v14301_v59  ;;  %v14480_v55 = vmul.f32 0.5, %v14391_v43  ;;  %v7339_v46 = vmul.f32 0.7978846, %v7307_v41 }
 0x48f   : > { %v10370_v26 = vpop.f32.mrb[230].mxu1  ;;  %v14472_v4 = vmul.f32 %v7397_v21, %v14402_v50  ;;  %v10643_v51 = vpop.eup %10642  ;;  %10648 = vtanh.f32 %v7336_v48  ;;  %v14483_v7 = vadd.f32 %v14301_v59, %v7106_v23  ;;  %v7306_v40 = vadd.f32 %v7274_v13, %v14388_v5 }
 0x490   : > { %v14469_v54 = vadd.f32 %v10370_v26, %v14301_v59  ;;  %v7116_v29 = vpop.f32.mrb[231].mxu1  ;;  %v7399_v33 = vadd.f32 1.0, %v10643_v51  ;;  %v14489_v34 = vmul.f32 %v7216_v44, %v14435_v39  ;;  %v7247_v12 = vmul.f32 %v7215_v42, %v14444_v35 }
 0x491   : > { %7475 = vadd.xlane.f32.xlu0 %v7474_v8  ;;  %v7477_v50 = vsel %vm1916_vm0, %v14472_v4, 0.0  ;;  %v10645_v14 = vpop.eup %10644  ;;  %10650 = vtanh.f32 %v7339_v46  ;;  %v7277_v43 = vmul.f32 %v7245_v10, %v14422_v36  ;;  %v14494_v19 = vadd.f32 %v14301_v59, %v7116_v29 }
 0x492   : > { %7478 = vadd.xlane.f32.xlu1 %v7477_v50  ;;  %v14499_v28 = vmul.f32 %v7399_v33, %v7175_v2  ;;  %v7398_v32 = vadd.f32 1.0, %v10645_v14  ;;  %v7218_v60 = vmul.f32 0.044715, %v14477_v18  ;;  %v14503_v22 = vmul.f32 0.5, %v14388_v5 }
 0x493   : > { %v10373_v62 = vpop.f32.mrb[232].mxu1  ;;  %v7338_v24 = vmul.f32 0.7978846, %v7306_v40  ;;  %v7309_v52 = vadd.f32 %v7277_v43, %v14422_v36  ;;  %v7217_v0 = vmul.f32 0.044715, %v14483_v7  ;;  %v7276_v2 = vmul.f32 %v7244_v30, %v14411_v3 }
 0x494   : > { %v14497_v6 = vadd.f32 %v10373_v62, %v14301_v59  ;;  %v7126_v45 = vpop.f32.mrb[233].mxu1  ;;  %v7483_v63 = vsel %vm1916_vm0, %v14499_v28, 0.0  ;;  %v14510_v23 = vmul.f32 %v7398_v32, %v14384_v57  ;;  %v7220_v37 = vmul.f32 0.044715, %v14469_v54 }
 0x495   : > { %10652 = vtanh.f32 %v7338_v24  ;;  %v14515_v5 = vmul.f32 0.5, %v14422_v36  ;;  %v7341_v1 = vmul.f32 0.7978846, %v7309_v52  ;;  %v7219_v61 = vmul.f32 0.044715, %v14494_v19 }
 0x496   : > { %7484 = vadd.xlane.f32.xlu1 %v7483_v63  ;;  %v7480_v9 = vsel %vm1916_vm0, %v14510_v23, 0.0  ;;  %v7308_v30 = vadd.f32 %v7276_v2, %v14411_v3  ;;  %v14525_v21 = vmul.f32 %v7218_v60, %v14477_v18  ;;  %v7279_v36 = vmul.f32 %v7247_v12, %v14444_v35 }
 0x497   : > { %v10376_v20 = vpop.f32.mrb[234].mxu1  ;;  %7481 = vadd.xlane.f32.xlu0 %v7480_v9  ;;  %10654 = vtanh.f32 %v7341_v1  ;;  %v7249_v10 = vmul.f32 %v7217_v0, %v14483_v7  ;;  %v14533_v42 = vadd.f32 %v14301_v59, %v7126_v45  ;;  %v7278_v48 = vmul.f32 %v14457_v11, %v14414_v17 }
 0x498   : > { %v14521_v44 = vadd.f32 %v10376_v20, %v14301_v59  ;;  %v7136_v57 = vpop.f32.mrb[235].mxu1  ;;  %v10647_v41 = vpop.eup %10646  ;;  %v7340_v26 = vmul.f32 0.7978846, %v7308_v30  ;;  %v14538_v29 = vmul.f32 %v7220_v37, %v14469_v54  ;;  %v14541_v46 = vmul.f32 0.5, %v14411_v3 }
 0x499   : > { %v14528_v58 = vadd.f32 %v14301_v59, %v7136_v57  ;;  %v10649_v13 = vpop.eup %10648  ;;  %v7401_v8 = vadd.f32 1.0, %v10647_v41  ;;  %v7311_v50 = vadd.f32 %v7279_v36, %v14444_v35  ;;  %v7251_v33 = vmul.f32 %v7219_v61, %v14494_v19 }
 0x49a   : > { %v7400_v40 = vadd.f32 1.0, %v10649_v13  ;;  %10656 = vtanh.f32 %v7340_v26  ;;  %v7222_v62 = vmul.f32 0.044715, %v14497_v6  ;;  %v7221_v32 = vmul.f32 0.044715, %v14533_v42 }
 0x49b   : > { %v10379_v51 = vpop.f32.mrb[236].mxu1  ;;  %v10651_v11 = vpop.eup %10650  ;;  %v14550_v43 = vmul.f32 %v7401_v8, %v14460_v49  ;;  %v7343_v3 = vmul.f32 0.7978846, %v7311_v50  ;;  %v7310_v52 = vadd.f32 %v7278_v48, %v14414_v17  ;;  %v14563_v2 = vmul.f32 0.5, %v14444_v35 }
 0x49c   : > { %v14546_v14 = vadd.f32 %v10379_v51, %v14301_v59  ;;  %v7146_v12 = vpop.f32.mrb[237].mxu1  ;;  %v14557_v60 = vmul.f32 %v7400_v40, %v14407_v27  ;;  %v7403_v24 = vadd.f32 1.0, %v10651_v11  ;;  %v7281_v49 = vmul.f32 %v7249_v10, %v14483_v7 }
 0x49d   : > { %v14553_v45 = vadd.f32 %v14301_v59, %v7146_v12  ;;  %v7489_v0 = vsel %vm1916_vm0, %v14550_v43, 0.0  ;;  %10658 = vtanh.f32 %v7343_v3  ;;  %v7224_v37 = vmul.f32 0.044715, %v14521_v44 }
 0x49e   : > { %7490 = vadd.xlane.f32.xlu1 %v7489_v0  ;;  %v7486_v27 = vsel %vm1916_vm0, %v14557_v60, 0.0  ;;  %v14570_v20 = vmul.f32 %v7403_v24, %v14480_v55  ;;  %v7223_v35 = vmul.f32 0.044715, %v14528_v58  ;;  %v7342_v30 = vmul.f32 0.7978846, %v7310_v52 }
 0x49f   : > { %v10382_v63 = vpop.f32.mrb[238].mxu1  ;;  %v10653_v9 = vpop.eup %10652  ;;  %7487 = vadd.xlane.f32.xlu0 %v7486_v27  ;;  %v7313_v36 = vadd.f32 %v7281_v49, %v14483_v7  ;;  %v7254_v41 = vmul.f32 %v7222_v62, %v14497_v6  ;;  %v7253_v10 = vmul.f32 %v7221_v32, %v14533_v42  ;;  %v7182_v13 = vmul.f32 0.5, %v14414_v17 }
 0x4a0   : > { %v14573_v1 = vadd.f32 %v10382_v63, %v14301_v59  ;;  %v7156_v61 = vpop.f32.mrb[239].mxu1  ;;  %v7495_v55 = vsel %vm1916_vm0, %v14570_v20, 0.0  ;;  %v7402_v26 = vadd.f32 1.0, %v10653_v9  ;;  %10660 = vtanh.f32 %v7342_v30 }
 0x4a1   : > { %v14577_v57 = vadd.f32 %v14301_v59, %v7156_v61  ;;  %v10655_v48 = vpop.eup %10654  ;;  %v7345_v8 = vmul.f32 0.7978846, %v7313_v36  ;;  %v7280_v59 = vmul.f32 %v14489_v34, %v14435_v39  ;;  %v7256_v51 = vmul.f32 %v7224_v37, %v14521_v44 }
 0x4a2   : > { %7496 = vadd.xlane.f32.xlu1 %v7495_v55  ;;  %v14589_v50 = vmul.f32 %v7402_v26, %v14503_v22  ;;  %v7405_v40 = vadd.f32 1.0, %v10655_v48  ;;  %v7185_v12 = vmul.f32 0.5, %v14483_v7  ;;  %v7255_v11 = vmul.f32 %v7223_v35, %v14528_v58 }
 0x4a3   : > { %10662 = vtanh.f32 %v7345_v8  ;;  %v7312_v62 = vadd.f32 %v7280_v59, %v14435_v39  ;;  %v7283_v17 = vmul.f32 %v7251_v33, %v14494_v19  ;;  %v7225_v32 = vmul.f32 0.044715, %v14553_v45 }
 0x4a4   : > { %v10657_v3 = vpop.eup %10656  ;;  %v7492_v34 = vsel %vm1916_vm0, %v14589_v50, 0.0  ;;  %v14599_v24 = vmul.f32 %v7405_v40, %v14515_v5  ;;  %v7282_v22 = vmul.f32 %v14525_v21, %v14477_v18  ;;  %v7226_v7 = vmul.f32 0.044715, %v14546_v14 }
 0x4a5   : > { %7493 = vadd.xlane.f32.xlu0 %v7492_v34  ;;  %v7404_v52 = vadd.f32 1.0, %v10657_v3  ;;  %v7344_v0 = vmul.f32 0.7978846, %v7312_v62  ;;  %v7315_v63 = vadd.f32 %v7283_v17, %v14494_v19  ;;  %v7227_v33 = vmul.f32 0.044715, %v14577_v57 }
 0x4a6   : > { %v7501_v49 = vsel %vm1916_vm0, %v14599_v24, 0.0  ;;  %v7314_v37 = vadd.f32 %v7282_v22, %v14477_v18  ;;  %v7285_v5 = vmul.f32 %v7253_v10, %v14533_v42  ;;  %v7284_v9 = vmul.f32 %v14538_v29, %v14469_v54 }
 0x4a7   : > { %v10659_v27 = vpop.eup %10658  ;;  %7502 = vadd.xlane.f32.xlu1 %v7501_v49  ;;  %v14611_v21 = vmul.f32 %v7404_v52, %v14541_v46  ;;  %10664 = vtanh.f32 %v7344_v0  ;;  %v7347_v61 = vmul.f32 0.7978846, %v7315_v63  ;;  %v7257_v35 = vmul.f32 %v7225_v32, %v14553_v45 }
 0x4a8   : > { %v7407_v30 = vadd.f32 1.0, %v10659_v27  ;;  %v7346_v36 = vmul.f32 0.7978846, %v7314_v37  ;;  %v7317_v55 = vadd.f32 %v7285_v5, %v14533_v42  ;;  %v7316_v10 = vadd.f32 %v7284_v9, %v14469_v54 }
 0x4a9   : > { %v7498_v26 = vsel %vm1916_vm0, %v14611_v21, 0.0  ;;  %10666 = vtanh.f32 %v7347_v61  ;;  %v7287_v46 = vmul.f32 %v7255_v11, %v14528_v58  ;;  %v7228_v48 = vmul.f32 0.044715, %v14573_v1 }
 0x4aa   : > { %7499 = vadd.xlane.f32.xlu0 %v7498_v26  ;;  %v14623_v8 = vmul.f32 %v7407_v30, %v14563_v2  ;;  %10668 = vtanh.f32 %v7346_v36  ;;  %v7349_v29 = vmul.f32 0.7978846, %v7317_v55  ;;  %v10661_v59 = vpop.eup %10660  ;;  %v7259_v40 = vmul.f32 %v7227_v33, %v14577_v57 }
 0x4ab   : > { %v7348_v62 = vmul.f32 0.7978846, %v7316_v10  ;;  %v7319_v17 = vadd.f32 %v7287_v46, %v14528_v58  ;;  %v7286_v3 = vmul.f32 %v7254_v41, %v14497_v6  ;;  %v7406_v11 = vadd.f32 1.0, %v10661_v59 }
 0x4ac   : > { %v7507_v32 = vsel %vm1916_vm0, %v14623_v8, 0.0  ;;  %10670 = vtanh.f32 %v7349_v29  ;;  %v7289_v34 = vmul.f32 %v7257_v35, %v14553_v45  ;;  %v7258_v2 = vmul.f32 %v7226_v7, %v14546_v14 }
 0x4ad   : > { %v10663_v22 = vpop.eup %10662  ;;  %7508 = vadd.xlane.f32.xlu1 %v7507_v32  ;;  %10672 = vtanh.f32 %v7348_v62  ;;  %v7351_v52 = vmul.f32 0.7978846, %v7319_v17  ;;  %v7318_v0 = vadd.f32 %v7286_v3, %v14497_v6  ;;  %v14633_v63 = vmul.f32 %v7406_v11, %v7182_v13 }
 0x4ae   : > { %v7409_v33 = vadd.f32 1.0, %v10663_v22  ;;  %v7321_v41 = vadd.f32 %v7289_v34, %v14553_v45  ;;  %v7288_v49 = vmul.f32 %v7256_v51, %v14521_v44  ;;  %v7260_v37 = vmul.f32 %v7228_v48, %v14573_v1 }
 0x4af   : > { %10674 = vtanh.f32 %v7351_v52  ;;  %v7350_v5 = vmul.f32 0.7978846, %v7318_v0  ;;  %v7291_v27 = vmul.f32 %v7259_v40, %v14577_v57  ;;  %v7504_v7 = vsel %vm1916_vm0, %v14633_v63, 0.0 }
 0x4b0   : > { %v14641_v61 = vmul.f32 %v7409_v33, %v7185_v12  ;;  %v7353_v9 = vmul.f32 0.7978846, %v7321_v41  ;;  %v7320_v13 = vadd.f32 %v7288_v49, %v14521_v44  ;;  %7505 = vadd.xlane.f32.xlu0 %v7504_v7  ;;  %v7184_v30 = vmul.f32 0.5, %v14435_v39 }
 0x4b1   : > { %v10665_v35 = vpop.eup %10664  ;;  %10676 = vtanh.f32 %v7350_v5  ;;  %v7323_v51 = vadd.f32 %v7291_v27, %v14577_v57  ;;  %v7290_v36 = vmul.f32 %v7258_v2, %v14546_v14  ;;  %v7187_v46 = vmul.f32 0.5, %v14494_v19 }
 0x4b2   : > { %v7513_v55 = vsel %vm1916_vm0, %v14641_v61, 0.0  ;;  %v7408_v26 = vadd.f32 1.0, %v10665_v35  ;;  %10678 = vtanh.f32 %v7353_v9  ;;  %v7352_v10 = vmul.f32 0.7978846, %v7320_v13 }
 0x4b3   : > { %v10667_v12 = vpop.eup %10666  ;;  %7514 = vadd.xlane.f32.xlu1 %v7513_v55  ;;  %v7355_v48 = vmul.f32 0.7978846, %v7323_v51  ;;  %v7322_v29 = vadd.f32 %v7290_v36, %v14546_v14  ;;  %v7292_v39 = vmul.f32 %v7260_v37, %v14573_v1  ;;  %v7186_v17 = vmul.f32 0.5, %v14477_v18 }
 0x4b4   : > { %v10669_v59 = vpop.eup %10668  ;;  %v14652_v40 = vmul.f32 %v7408_v26, %v7184_v30  ;;  %v7411_v62 = vadd.f32 1.0, %v10667_v12  ;;  %10680 = vtanh.f32 %v7352_v10  ;;  %v7189_v2 = vmul.f32 0.5, %v14533_v42 }
 0x4b5   : > { %v7410_v3 = vadd.f32 1.0, %v10669_v59  ;;  %10682 = vtanh.f32 %v7355_v48  ;;  %v7354_v32 = vmul.f32 0.7978846, %v7322_v29  ;;  %v7324_v11 = vadd.f32 %v7292_v39, %v14573_v1 }
 0x4b6   : > { %v10671_v34 = vpop.eup %10670  ;;  %v7510_v19 = vsel %vm1916_vm0, %v14652_v40, 0.0  ;;  %v14658_v22 = vmul.f32 %v7411_v62, %v7187_v46  ;;  %v7188_v49 = vmul.f32 0.5, %v14469_v54  ;;  %v7191_v9 = vmul.f32 0.5, %v14528_v58 }
 0x4b7   : > { %v10673_v52 = vpop.eup %10672  ;;  %7511 = vadd.xlane.f32.xlu0 %v7510_v19  ;;  %v14661_v0 = vmul.f32 %v7410_v3, %v7186_v17  ;;  %v7413_v33 = vadd.f32 1.0, %v10671_v34  ;;  %10684 = vtanh.f32 %v7354_v32  ;;  %v7356_v18 = vmul.f32 0.7978846, %v7324_v11 }
 0x4b8   : > { %v7519_v41 = vsel %vm1916_vm0, %v14658_v22, 0.0  ;;  %v7412_v37 = vadd.f32 1.0, %v10673_v52  ;;  %v7190_v36 = vmul.f32 0.5, %v14497_v6  ;;  %v7193_v26 = vmul.f32 0.5, %v14553_v45 }
 0x4b9   : > { %v10675_v5 = vpop.eup %10674  ;;  %7520 = vadd.xlane.f32.xlu1 %v7519_v41  ;;  %v14666_v27 = vmul.f32 %v7413_v33, %v7189_v2  ;;  %10686 = vtanh.f32 %v7356_v18  ;;  %v7516_v42 = vsel %vm1916_vm0, %v14661_v0, 0.0  ;;  %v7192_v6 = vmul.f32 0.5, %v14521_v44 }
 0x4ba   : > { %v14670_v7 = vmul.f32 %v7412_v37, %v7188_v49  ;;  %v7415_v13 = vadd.f32 1.0, %v10675_v5  ;;  %v7195_v62 = vmul.f32 0.5, %v14577_v57  ;;  %v7194_v44 = vmul.f32 0.5, %v14546_v14  ;;  %v7948_v5 = vld [vmem:[%s15532_s9] sm:$0xff] }
 0x4bb   : > { %v10677_v35 = vpop.eup %10676  ;;  %7517 = vadd.xlane.f32.xlu0 %v7516_v42  ;;  %v7525_v30 = vsel %vm1916_vm0, %v14666_v27, 0.0  ;;  %v7196_v41 = vmul.f32 0.5, %v14573_v1  ;;  %v7949_v42 = vld [vmem:[%s15532_s9 + $0x8] sm:$0xff]  ;;  %v7950_v1 = vld [vmem:[%s15532_s9 + $0x10] sm:$0xff] }
 0x4bc   : > { %v10679_v54 = vpop.eup %10678  ;;  %v14675_v51 = vmul.f32 %v7415_v13, %v7191_v9  ;;  %v7414_v55 = vadd.f32 1.0, %v10677_v35  ;;  %v7522_v58 = vsel %vm1916_vm0, %v14670_v7, 0.0  ;;  %v10443_v9 = vpack.c.bf16 %v7949_v42, %v7948_v5  ;;  %v7951_v13 = vld [vmem:[%s15532_s9 + $0x18] sm:$0xff] }
 0x4bd   : > { %7526 = vadd.xlane.f32.xlu1 %v7525_v30  ;;  %v7417_v10 = vadd.f32 1.0, %v10679_v54  ;;  %v10447_v35 = vpack.c.bf16 %v7951_v13, %v7950_v1 }
 0x4be   : > { %v10681_v12 = vpop.eup %10680  ;;  %v7531_v46 = vsel %vm1916_vm0, %v14675_v51, 0.0  ;;  %v14683_v48 = vmul.f32 %v7414_v55, %v7190_v36  ;;  %10444 = vmatprep.subr.bf16.mxu0 %v10443_v9 }
 0x4bf   : > { %v10683_v29 = vpop.eup %10682  ;;  %7523 = vadd.xlane.f32.xlu0 %v7522_v58  ;;  %v14685_v39 = vmul.f32 %v7417_v10, %v7193_v26  ;;  %v7416_v59 = vadd.f32 1.0, %v10681_v12  ;;  %10446 = vmatpush3.bf16.msra.mxu0 %v10443_v9 }
 0x4c0   : > { %v7419_v45 = vadd.f32 1.0, %v10683_v29  ;;  %v7528_v3 = vsel %vm1916_vm0, %v14683_v48, 0.0  ;;  %10448 = vmatprep.subr.bf16.mxu0 %v10447_v35 }
 0x4c1   : > { %v10685_v17 = vpop.eup %10684  ;;  %7532 = vadd.xlane.f32.xlu1 %v7531_v46  ;;  %v7537_v32 = vsel %vm1916_vm0, %v14685_v39, 0.0  ;;  %v14693_v11 = vmul.f32 %v7416_v59, %v7192_v6 }
 0x4c2   : > { %v14695_v34 = vmul.f32 %v7419_v45, %v7195_v62  ;;  %v7418_v19 = vadd.f32 1.0, %v10685_v17 }
 0x4c3   : > { %v10687_v2 = vpop.eup %10686  ;;  %7529 = vadd.xlane.f32.xlu0 %v7528_v3  ;;  %v7534_v57 = vsel %vm1916_vm0, %v14693_v11, 0.0  ;;  %10450 = vmatpush3.bf16.msra.mxu0 %v10447_v35 }
 0x4c4   : > { %v7543_v52 = vsel %vm1916_vm0, %v14695_v34, 0.0  ;;  %v14702_v33 = vmul.f32 %v7418_v19, %v7194_v44  ;;  %v7420_v18 = vadd.f32 1.0, %v10687_v2 }
 0x4c5   : > { %7538 = vadd.xlane.f32.xlu1 %v7537_v32 }
 0x4c6   : > { %v7540_v49 = vsel %vm1916_vm0, %v14702_v33, 0.0  ;;  %v14707_v37 = vmul.f32 %v7420_v18, %v7196_v41 }
 0x4c7   : > { %7535 = vadd.xlane.f32.xlu0 %v7534_v57 }
 0x4c8   : > { %v7546_v14 = vsel %vm1916_vm0, %v14707_v37, 0.0 }
 0x4c9   : > { %7544 = vadd.xlane.f32.xlu1 %v7543_v52 }
 0x4cb   : > { %7541 = vadd.xlane.f32.xlu0 %v7540_v49 }
 0x4cf   : > { %7547 = vadd.xlane.f32.xlu0 %v7546_v14 }
 0x50d   : > { %v7458_v30 = vpop.xlane.xlu1 %7457 }
 0x50e   : > { %v7551_v54 = vmul.f32 0.03125, %v7458_v30  ;;  %v7455_v36 = vpop.xlane.xlu0 %7454 }
 0x50f   : > { %v7550_v55 = vmul.f32 0.03125, %v7455_v36 }
 0x510   : > { %v14724_v26 = vsub.f32 %v14365_v47, %v7551_v54 }
 0x511   : > { %v14727_v10 = vsub.f32 %v14370_v56, %v7550_v55 }
 0x512   : > { %v7461_v12 = vpop.xlane.xlu0 %7460  ;;  %v7615_v58 = vmul.f32 %v14724_v26, %v14724_v26 }
 0x513   : > { %v7552_v46 = vmul.f32 0.03125, %v7461_v12  ;;  %v7614_v29 = vmul.f32 %v14727_v10, %v14727_v10 }
 0x514   : > { %v7649_v59 = vsel %vm1916_vm0, %v7615_v58, 0.0 }
 0x515   : > { %v14735_v6 = vsub.f32 %v14394_v53, %v7552_v46  ;;  %7650 = vadd.xlane.f32.xlu0 %v7649_v59  ;;  %v7646_v47 = vsel %vm1916_vm0, %v7614_v29, 0.0 }
 0x516   : > { %v7467_v62 = vpop.xlane.xlu1 %7466  ;;  %7647 = vadd.xlane.f32.xlu1 %v7646_v47  ;;  %v7464_v56 = vpop.xlane.xlu0 %7463 }
 0x517   : > { %v7554_v45 = vmul.f32 0.03125, %v7467_v62  ;;  %v7553_v17 = vmul.f32 0.03125, %v7464_v56  ;;  %v7616_v3 = vmul.f32 %v14735_v6, %v14735_v6 }
 0x519   : > { %v14741_v32 = vsub.f32 %v14418_v16, %v7554_v45  ;;  %v14744_v19 = vsub.f32 %v14399_v25, %v7553_v17  ;;  %v7652_v53 = vsel %vm1916_vm0, %v7616_v3, 0.0 }
 0x51a   : > { %v7473_v2 = vpop.xlane.xlu1 %7472  ;;  %7653 = vadd.xlane.f32.xlu1 %v7652_v53  ;;  %v7470_v44 = vpop.xlane.xlu0 %7469 }
 0x51b   : > { %v7556_v57 = vmul.f32 0.03125, %v7473_v2  ;;  %v7555_v52 = vmul.f32 0.03125, %v7470_v44  ;;  %v7618_v18 = vmul.f32 %v14741_v32, %v14741_v32  ;;  %v7617_v41 = vmul.f32 %v14744_v19, %v14744_v19 }
 0x51d   : > { %v14752_v49 = vsub.f32 %v14437_v15, %v7556_v57  ;;  %v14755_v16 = vsub.f32 %v14429_v38, %v7555_v52  ;;  %v7658_v25 = vsel %vm1916_vm0, %v7618_v18, 0.0  ;;  %v7655_v14 = vsel %vm1916_vm0, %v7617_v41, 0.0 }
 0x51e   : > { %7659 = vadd.xlane.f32.xlu1 %v7658_v25  ;;  %7656 = vadd.xlane.f32.xlu0 %v7655_v14  ;;  %v7476_v5 = vpop.xlane.xlu0 %7475 }
 0x51f   : > { %v7557_v42 = vmul.f32 0.03125, %v7476_v5  ;;  %v7620_v1 = vmul.f32 %v14752_v49, %v14752_v49  ;;  %v7619_v9 = vmul.f32 %v14755_v16, %v14755_v16  ;;  %v7479_v13 = vpop.xlane.xlu1 %7478 }
 0x520   : > { %v7558_v15 = vmul.f32 0.03125, %v7479_v13 }
 0x521   : > { %v14764_v35 = vsub.f32 %v14452_v31, %v7557_v42  ;;  %v7664_v38 = vsel %vm1916_vm0, %v7620_v1, 0.0  ;;  %v7661_v30 = vsel %vm1916_vm0, %v7619_v9, 0.0 }
 0x522   : > { %7665 = vadd.xlane.f32.xlu1 %v7664_v38  ;;  %7662 = vadd.xlane.f32.xlu0 %v7661_v30  ;;  %v14769_v54 = vsub.f32 %v14472_v4, %v7558_v15 }
 0x523   : > { %v7621_v36 = vmul.f32 %v14764_v35, %v14764_v35  ;;  %v7485_v55 = vpop.xlane.xlu1 %7484 }
 0x524   : > { %v7560_v12 = vmul.f32 0.03125, %v7485_v55  ;;  %v7622_v58 = vmul.f32 %v14769_v54, %v14769_v54  ;;  %v7482_v46 = vpop.xlane.xlu0 %7481 }
 0x525   : > { %v7667_v31 = vsel %vm1916_vm0, %v7621_v36, 0.0  ;;  %v7559_v59 = vmul.f32 0.03125, %v7482_v46 }
 0x526   : > { %7668 = vadd.xlane.f32.xlu0 %v7667_v31  ;;  %v14777_v29 = vsub.f32 %v14499_v28, %v7560_v12  ;;  %v7670_v47 = vsel %vm1916_vm0, %v7622_v58, 0.0 }
 0x527   : > { %7671 = vadd.xlane.f32.xlu1 %v7670_v47  ;;  %v14781_v4 = vsub.f32 %v14510_v23, %v7559_v59 }
 0x528   : > { %v7624_v62 = vmul.f32 %v14777_v29, %v14777_v29 }
 0x529   : > { %v7623_v45 = vmul.f32 %v14781_v4, %v14781_v4 }
 0x52a   : > { %v7676_v56 = vsel %vm1916_vm0, %v7624_v62, 0.0 }
 0x52b   : > { %7677 = vadd.xlane.f32.xlu1 %v7676_v56  ;;  %v7491_v17 = vpop.xlane.xlu1 %7490  ;;  %v7673_v28 = vsel %vm1916_vm0, %v7623_v45, 0.0 }
 0x52c   : > { %v7562_v3 = vmul.f32 0.03125, %v7491_v17  ;;  %v7488_v53 = vpop.xlane.xlu0 %7487  ;;  %7674 = vadd.xlane.f32.xlu0 %v7673_v28 }
 0x52d   : > { %v7561_v2 = vmul.f32 0.03125, %v7488_v53 }
 0x52e   : > { %v14790_v44 = vsub.f32 %v14550_v43, %v7562_v3 }
 0x52f   : > { %v14793_v23 = vsub.f32 %v14557_v60, %v7561_v2  ;;  %v7497_v57 = vpop.xlane.xlu1 %7496 }
 0x530   : > { %v7564_v52 = vmul.f32 0.03125, %v7497_v57  ;;  %v7626_v18 = vmul.f32 %v14790_v44, %v14790_v44 }
 0x531   : > { %v7625_v41 = vmul.f32 %v14793_v23, %v14793_v23 }
 0x532   : > { %v14800_v25 = vsub.f32 %v14570_v20, %v7564_v52  ;;  %v7494_v14 = vpop.xlane.xlu0 %7493  ;;  %v7682_v5 = vsel %vm1916_vm0, %v7626_v18, 0.0 }
 0x533   : > { %v7563_v42 = vmul.f32 0.03125, %v7494_v14  ;;  %7683 = vadd.xlane.f32.xlu1 %v7682_v5  ;;  %v7679_v43 = vsel %vm1916_vm0, %v7625_v41, 0.0 }
 0x534   : > { %v7503_v60 = vpop.xlane.xlu1 %7502  ;;  %7680 = vadd.xlane.f32.xlu0 %v7679_v43  ;;  %v7628_v1 = vmul.f32 %v14800_v25, %v14800_v25 }
 0x535   : > { %v14807_v9 = vsub.f32 %v14589_v50, %v7563_v42  ;;  %v7566_v13 = vmul.f32 0.03125, %v7503_v60 }
 0x536   : > { %v7688_v15 = vsel %vm1916_vm0, %v7628_v1, 0.0 }
 0x537   : > { %v14811_v20 = vsub.f32 %v14599_v24, %v7566_v13  ;;  %v7500_v38 = vpop.xlane.xlu0 %7499  ;;  %7689 = vadd.xlane.f32.xlu1 %v7688_v15  ;;  %v7627_v30 = vmul.f32 %v14807_v9, %v14807_v9 }
 0x538   : > { %v7565_v36 = vmul.f32 0.03125, %v7500_v38 }
 0x539   : > { %v7685_v55 = vsel %vm1916_vm0, %v7627_v30, 0.0  ;;  %v7630_v12 = vmul.f32 %v14811_v20, %v14811_v20 }
 0x53a   : > { %v14819_v50 = vsub.f32 %v14611_v21, %v7565_v36  ;;  %v7509_v58 = vpop.xlane.xlu1 %7508  ;;  %7686 = vadd.xlane.f32.xlu0 %v7685_v55 }
 0x53b   : > { %v7568_v31 = vmul.f32 0.03125, %v7509_v58  ;;  %v7694_v24 = vsel %vm1916_vm0, %v7630_v12, 0.0 }
 0x53c   : > { %7695 = vadd.xlane.f32.xlu1 %v7694_v24  ;;  %v7629_v46 = vmul.f32 %v14819_v50, %v14819_v50 }
 0x53d   : > { %v14825_v59 = vsub.f32 %v14623_v8, %v7568_v31  ;;  %v7506_v47 = vpop.xlane.xlu0 %7505 }
 0x53e   : > { %v7691_v62 = vsel %vm1916_vm0, %v7629_v46, 0.0  ;;  %v7567_v56 = vmul.f32 0.03125, %v7506_v47 }
 0x53f   : > { %7692 = vadd.xlane.f32.xlu0 %v7691_v62  ;;  %v7632_v21 = vmul.f32 %v14825_v59, %v14825_v59 }
 0x540   : > { %v7515_v45 = vpop.xlane.xlu1 %7514  ;;  %v14831_v17 = vsub.f32 %v14633_v63, %v7567_v56 }
 0x541   : > { %v7570_v28 = vmul.f32 0.03125, %v7515_v45  ;;  %v7700_v3 = vsel %vm1916_vm0, %v7632_v21, 0.0 }
 0x542   : > { %7701 = vadd.xlane.f32.xlu1 %v7700_v3  ;;  %v7631_v8 = vmul.f32 %v14831_v17, %v14831_v17 }
 0x543   : > { %v14835_v53 = vsub.f32 %v14641_v61, %v7570_v28 }
 0x544   : > { %v7512_v2 = vpop.xlane.xlu0 %7511  ;;  %v7697_v52 = vsel %vm1916_vm0, %v7631_v8, 0.0 }
 0x545   : > { %v7569_v57 = vmul.f32 0.03125, %v7512_v2  ;;  %v7634_v18 = vmul.f32 %v14835_v53, %v14835_v53  ;;  %7698 = vadd.xlane.f32.xlu0 %v7697_v52 }
 0x546   : > { %v7521_v41 = vpop.xlane.xlu1 %7520 }
 0x547   : > { %v14843_v63 = vsub.f32 %v14652_v40, %v7569_v57  ;;  %v7572_v14 = vmul.f32 0.03125, %v7521_v41  ;;  %v7706_v5 = vsel %vm1916_vm0, %v7634_v18, 0.0 }
 0x548   : > { %v7518_v61 = vpop.xlane.xlu0 %7517  ;;  %7707 = vadd.xlane.f32.xlu1 %v7706_v5 }
 0x549   : > { %v14847_v42 = vsub.f32 %v14658_v22, %v7572_v14  ;;  %v7571_v43 = vmul.f32 0.03125, %v7518_v61  ;;  %v7633_v60 = vmul.f32 %v14843_v63, %v14843_v63 }
 0x54a   : > { %v7527_v1 = vpop.xlane.xlu1 %7526 }
 0x54b   : > { %v14852_v13 = vsub.f32 %v14661_v0, %v7571_v43  ;;  %v7574_v15 = vmul.f32 0.03125, %v7527_v1  ;;  %v7703_v40 = vsel %vm1916_vm0, %v7633_v60, 0.0  ;;  %v7636_v38 = vmul.f32 %v14847_v42, %v14847_v42 }
 0x54c   : > { %7704 = vadd.xlane.f32.xlu0 %v7703_v40  ;;  %v7524_v30 = vpop.xlane.xlu0 %7523 }
 0x54d   : > { %v14858_v36 = vsub.f32 %v14666_v27, %v7574_v15  ;;  %v7573_v22 = vmul.f32 0.03125, %v7524_v30  ;;  %v7712_v55 = vsel %vm1916_vm0, %v7636_v38, 0.0  ;;  %v7635_v12 = vmul.f32 %v14852_v13, %v14852_v13 }
 0x54e   : > { %v7533_v58 = vpop.xlane.xlu1 %7532  ;;  %7713 = vadd.xlane.f32.xlu1 %v7712_v55 }
 0x54f   : > { %v14864_v0 = vsub.f32 %v14670_v7, %v7573_v22  ;;  %v7576_v31 = vmul.f32 0.03125, %v7533_v58  ;;  %v7709_v24 = vsel %vm1916_vm0, %v7635_v12, 0.0  ;;  %v7638_v46 = vmul.f32 %v14858_v36, %v14858_v36 }
 0x550   : > { %7710 = vadd.xlane.f32.xlu0 %v7709_v24  ;;  %v7530_v27 = vpop.xlane.xlu0 %7529 }
 0x551   : > { %v14870_v47 = vsub.f32 %v14675_v51, %v7576_v31  ;;  %v7575_v62 = vmul.f32 0.03125, %v7530_v27  ;;  %v7718_v56 = vsel %vm1916_vm0, %v7638_v46, 0.0  ;;  %v7637_v21 = vmul.f32 %v14864_v0, %v14864_v0 }
 0x552   : > { %v7539_v45 = vpop.xlane.xlu1 %7538  ;;  %7719 = vadd.xlane.f32.xlu1 %v7718_v56 }
 0x553   : > { %v14876_v7 = vsub.f32 %v14683_v48, %v7575_v62  ;;  %v7578_v28 = vmul.f32 0.03125, %v7539_v45  ;;  %v7715_v3 = vsel %vm1916_vm0, %v7637_v21, 0.0  ;;  %v7640_v8 = vmul.f32 %v14870_v47, %v14870_v47 }
 0x554   : > { %7716 = vadd.xlane.f32.xlu0 %v7715_v3  ;;  %v7536_v51 = vpop.xlane.xlu0 %7535 }
 0x555   : > { %v14882_v2 = vsub.f32 %v14685_v39, %v7578_v28  ;;  %v7577_v57 = vmul.f32 0.03125, %v7536_v51  ;;  %v7724_v52 = vsel %vm1916_vm0, %v7640_v8, 0.0  ;;  %v7639_v18 = vmul.f32 %v14876_v7, %v14876_v7 }
 0x556   : > { %v7545_v41 = vpop.xlane.xlu1 %7544  ;;  %7725 = vadd.xlane.f32.xlu1 %v7724_v52 }
 0x557   : > { %v14888_v48 = vsub.f32 %v14693_v11, %v7577_v57  ;;  %v7580_v14 = vmul.f32 0.03125, %v7545_v41  ;;  %v7721_v5 = vsel %vm1916_vm0, %v7639_v18, 0.0  ;;  %v7642_v61 = vmul.f32 %v14882_v2, %v14882_v2 }
 0x558   : > { %7722 = vadd.xlane.f32.xlu0 %v7721_v5  ;;  %v7542_v39 = vpop.xlane.xlu0 %7541 }
 0x559   : > { %v14894_v43 = vsub.f32 %v14695_v34, %v7580_v14  ;;  %v7579_v60 = vmul.f32 0.03125, %v7542_v39  ;;  %v7730_v1 = vsel %vm1916_vm0, %v7642_v61, 0.0  ;;  %v7641_v15 = vmul.f32 %v14888_v48, %v14888_v48 }
 0x55a   : > { %7731 = vadd.xlane.f32.xlu1 %v7730_v1 }
 0x55b   : > { %v14900_v11 = vsub.f32 %v14702_v33, %v7579_v60  ;;  %v7727_v40 = vsel %vm1916_vm0, %v7641_v15, 0.0  ;;  %v7644_v38 = vmul.f32 %v14894_v43, %v14894_v43  ;;  %v14918_v60 = vld [vmem:[%s15530_s7] ss:$0 sm:$0xff] }
 0x55c   : > { %7728 = vadd.xlane.f32.xlu0 %v7727_v40  ;;  %v7548_v30 = vpop.xlane.xlu0 %7547 }
 0x55d   : > { %v7581_v22 = vmul.f32 0.03125, %v7548_v30  ;;  %v7736_v34 = vsel %vm1916_vm0, %v7644_v38, 0.0  ;;  %v7643_v55 = vmul.f32 %v14900_v11, %v14900_v11 }
 0x55e   : > { %7737 = vadd.xlane.f32.xlu1 %v7736_v34  ;;  %v14925_v34 = vld [vmem:[%s15531_s8] ss:$0 sm:$0xff] }
 0x55f   : > { %v14909_v12 = vsub.f32 %v14707_v37, %v7581_v22  ;;  %v7733_v33 = vsel %vm1916_vm0, %v7643_v55, 0.0 }
 0x560   : > { %7734 = vadd.xlane.f32.xlu0 %v7733_v33 }
 0x561   : > { %v7645_v58 = vmul.f32 %v14909_v12, %v14909_v12 }
 0x563   : > { %v7739_v31 = vsel %vm1916_vm0, %v7645_v58, 0.0 }
 0x564   : > { %7740 = vadd.xlane.f32.xlu0 %v7739_v31 }
 0x5a2   : > { %v7651_v24 = vpop.xlane.xlu0 %7650 }
 0x5a3   : > { %v7743_v46 = vmul.f32 0.03125, %v7651_v24  ;;  %v7648_v27 = vpop.xlane.xlu1 %7647 }
 0x5a4   : > { %v7742_v62 = vmul.f32 0.03125, %v7648_v27 }
 0x5a5   : > { %v7775_v56 = vadd.f32 1e-12, %v7743_v46 }
 0x5a6   : > { %v7774_v21 = vadd.f32 1e-12, %v7742_v62 }
 0x5a7   : > { %10688 = vrsqrt.f32 %v7775_v56  ;;  %v7654_v45 = vpop.xlane.xlu1 %7653 }
 0x5a8   : > { %10690 = vrsqrt.f32 %v7774_v21  ;;  %v7744_v37 = vmul.f32 0.03125, %v7654_v45 }
 0x5aa   : > { %v7776_v28 = vadd.f32 1e-12, %v7744_v37 }
 0x5ab   : > { %v7660_v3 = vpop.xlane.xlu1 %7659  ;;  %v7657_v8 = vpop.xlane.xlu0 %7656 }
 0x5ac   : > { %10692 = vrsqrt.f32 %v7776_v28  ;;  %v7746_v51 = vmul.f32 0.03125, %v7660_v3  ;;  %v7745_v57 = vmul.f32 0.03125, %v7657_v8 }
 0x5ae   : > { %v7778_v52 = vadd.f32 1e-12, %v7746_v51  ;;  %v7777_v18 = vadd.f32 1e-12, %v7745_v57 }
 0x5af   : > { %v7666_v41 = vpop.xlane.xlu1 %7665  ;;  %v7663_v14 = vpop.xlane.xlu0 %7662 }
 0x5b0   : > { %10694 = vrsqrt.f32 %v7778_v52  ;;  %v7748_v5 = vmul.f32 0.03125, %v7666_v41  ;;  %v7747_v61 = vmul.f32 0.03125, %v7663_v14 }
 0x5b1   : > { %v10689_v39 = vpop.eup %10688  ;;  %10696 = vrsqrt.f32 %v7777_v18 }
 0x5b2   : > { %v10691_v1 = vpop.eup %10690  ;;  %v7839_v15 = vmul.f32 %v10689_v39, %v14724_v26  ;;  %v7780_v40 = vadd.f32 1e-12, %v7748_v5  ;;  %v7779_v38 = vadd.f32 1e-12, %v7747_v61 }
 0x5b3   : > { %v7669_v30 = vpop.xlane.xlu0 %7668  ;;  %v7838_v22 = vmul.f32 %v10691_v1, %v14727_v10 }
 0x5b4   : > { %v7878_v55 = vmul.f32 %v14918_v60, %v7839_v15  ;;  %10698 = vrsqrt.f32 %v7780_v40  ;;  %v7749_v33 = vmul.f32 0.03125, %v7669_v30  ;;  %v7672_v58 = vpop.xlane.xlu1 %7671 }
 0x5b5   : > { %10700 = vrsqrt.f32 %v7779_v38  ;;  %v7877_v31 = vmul.f32 %v14918_v60, %v7838_v22  ;;  %v7750_v26 = vmul.f32 0.03125, %v7672_v58 }
 0x5b6   : > { %v10693_v24 = vpop.eup %10692  ;;  %v7781_v46 = vadd.f32 1e-12, %v7749_v33  ;;  %v7917_v62 = vadd.f32 %v14925_v34, %v7878_v55 }
 0x5b7   : > { %v7916_v27 = vadd.f32 %v14925_v34, %v7877_v31  ;;  %v7840_v10 = vmul.f32 %v10693_v24, %v14735_v6  ;;  %v7782_v56 = vadd.f32 1e-12, %v7750_v26 }
 0x5b8   : > { %10702 = vrsqrt.f32 %v7781_v46  ;;  %v7678_v21 = vpop.xlane.xlu1 %7677 }
 0x5b9   : > { %10391 = vmatprep.mubr.msk.f32.mxu0 %vm1916_vm0, %v7916_v27  ;;  %v7879_v45 = vmul.f32 %v14918_v60, %v7840_v10  ;;  %10704 = vrsqrt.f32 %v7782_v56  ;;  %v7752_v28 = vmul.f32 0.03125, %v7678_v21  ;;  %v7675_v8 = vpop.xlane.xlu0 %7674 }
 0x5ba   : > { %v10695_v37 = vpop.eup %10694  ;;  %10392 = vmatmul.mubr.msk.f32.vlgmr.msra.gmra.mrb[208].mxu0 %vm1916_vm0, %v7917_v62  ;;  %v7751_v52 = vmul.f32 0.03125, %v7675_v8 }
 0x5bb   : > { %v10697_v3 = vpop.eup %10696  ;;  %v7918_v51 = vadd.f32 %v14925_v34, %v7879_v45  ;;  %v7842_v6 = vmul.f32 %v10695_v37, %v14741_v32  ;;  %v7784_v57 = vadd.f32 1e-12, %v7752_v28 }
 0x5bc   : > { %v7841_v18 = vmul.f32 %v10697_v3, %v14744_v19  ;;  %v7783_v5 = vadd.f32 1e-12, %v7751_v52 }
 0x5bd   : > { %10394 = vmatprep.mubr.msk.f32.mxu0 %vm1916_vm0, %v7918_v51  ;;  %v7881_v41 = vmul.f32 %v14918_v60, %v7842_v6  ;;  %10706 = vrsqrt.f32 %v7784_v57 }
 0x5be   : > { %v10699_v14 = vpop.eup %10698  ;;  %v7880_v61 = vmul.f32 %v14918_v60, %v7841_v18  ;;  %10708 = vrsqrt.f32 %v7783_v5 }
 0x5bf   : > { %v10701_v39 = vpop.eup %10700  ;;  %v7920_v1 = vadd.f32 %v14925_v34, %v7881_v41  ;;  %v7844_v15 = vmul.f32 %v10699_v14, %v14752_v49 }
 0x5c0   : > { %v7919_v32 = vadd.f32 %v14925_v34, %v7880_v61  ;;  %v7843_v40 = vmul.f32 %v10701_v39, %v14755_v16  ;;  %v7684_v30 = vpop.xlane.xlu1 %7683 }
 0x5c1   : > { %v7883_v19 = vmul.f32 %v14918_v60, %v7844_v15  ;;  %v7754_v55 = vmul.f32 0.03125, %v7684_v30  ;;  %v7681_v33 = vpop.xlane.xlu0 %7680 }
 0x5c2   : > { %v10703_v38 = vpop.eup %10702  ;;  %10395 = vmatmul.mubr.msk.f32.gmra.mrb[210].mxu0 %vm1916_vm0, %v7919_v32  ;;  %v7882_v22 = vmul.f32 %v14918_v60, %v7843_v40  ;;  %v7753_v24 = vmul.f32 0.03125, %v7681_v33 }
 0x5c3   : > { %10397 = vmatprep.mubr.msk.f32.mxu0 %vm1916_vm0, %v7920_v1  ;;  %v7922_v58 = vadd.f32 %v14925_v34, %v7883_v19  ;;  %v7845_v49 = vmul.f32 %v10703_v38, %v14764_v35  ;;  %v10705_v31 = vpop.eup %10704  ;;  %v7786_v26 = vadd.f32 1e-12, %v7754_v55 }
 0x5c4   : > { %v7921_v16 = vadd.f32 %v14925_v34, %v7882_v22  ;;  %v7846_v27 = vmul.f32 %v10705_v31, %v14769_v54  ;;  %v7785_v10 = vadd.f32 1e-12, %v7753_v24  ;;  %v7690_v62 = vpop.xlane.xlu1 %7689 }
 0x5c5   : > { %v7884_v46 = vmul.f32 %v14918_v60, %v7845_v49  ;;  %10710 = vrsqrt.f32 %v7786_v26  ;;  %v7756_v56 = vmul.f32 0.03125, %v7690_v62 }
 0x5c6   : > { %10398 = vmatmul.mubr.msk.f32.gmra.mrb[212].mxu0 %vm1916_vm0, %v7921_v16  ;;  %v7885_v35 = vmul.f32 %v14918_v60, %v7846_v27  ;;  %10712 = vrsqrt.f32 %v7785_v10 }
 0x5c7   : > { %10400 = vmatprep.mubr.msk.f32.mxu0 %vm1916_vm0, %v7922_v58  ;;  %v7923_v21 = vadd.f32 %v14925_v34, %v7884_v46  ;;  %v10707_v45 = vpop.eup %10706  ;;  %v7788_v37 = vadd.f32 1e-12, %v7756_v56  ;;  %v7687_v28 = vpop.xlane.xlu0 %7686 }
 0x5c8   : > { %v7924_v3 = vadd.f32 %v14925_v34, %v7885_v35  ;;  %v7848_v54 = vmul.f32 %v10707_v45, %v14777_v29  ;;  %v10709_v8 = vpop.eup %10708  ;;  %v7755_v51 = vmul.f32 0.03125, %v7687_v28 }
 0x5c9   : > { %10714 = vrsqrt.f32 %v7788_v37  ;;  %v7696_v6 = vpop.xlane.xlu1 %7695  ;;  %v7847_v57 = vmul.f32 %v10709_v8, %v14781_v4 }
 0x5ca   : > { %10401 = vmatmul.mubr.msk.f32.gmra.mrb[214].mxu0 %vm1916_vm0, %v7923_v21  ;;  %v7887_v52 = vmul.f32 %v14918_v60, %v7848_v54  ;;  %v7787_v18 = vadd.f32 1e-12, %v7755_v51  ;;  %v7758_v41 = vmul.f32 0.03125, %v7696_v6 }
 0x5cb   : > { %10403 = vmatprep.mubr.msk.f32.mxu0 %vm1916_vm0, %v7924_v3  ;;  %v7886_v14 = vmul.f32 %v14918_v60, %v7847_v57 }
 0x5cc   : > { %10716 = vrsqrt.f32 %v7787_v18  ;;  %v7790_v5 = vadd.f32 1e-12, %v7758_v41  ;;  %v7693_v61 = vpop.xlane.xlu0 %7692  ;;  %v7926_v29 = vadd.f32 %v14925_v34, %v7887_v52 }
 0x5cd   : > { %v7757_v39 = vmul.f32 0.03125, %v7693_v61  ;;  %v7925_v1 = vadd.f32 %v14925_v34, %v7886_v14 }
 0x5ce   : > { %10718 = vrsqrt.f32 %v7790_v5 }
 0x5cf   : > { %v10711_v15 = vpop.eup %10710  ;;  %v7789_v32 = vadd.f32 1e-12, %v7757_v39  ;;  %v7702_v40 = vpop.xlane.xlu1 %7701  ;;  %10404 = vmatmul.mubr.msk.f32.gmra.mrb[216].mxu0 %vm1916_vm0, %v7925_v1 }
 0x5d0   : > { %v10713_v4 = vpop.eup %10712  ;;  %v7760_v19 = vmul.f32 0.03125, %v7702_v40  ;;  %10406 = vmatprep.mubr.msk.f32.mxu0 %vm1916_vm0, %v7926_v29  ;;  %v7850_v38 = vmul.f32 %v10711_v15, %v14790_v44 }
 0x5d1   : > { %10720 = vrsqrt.f32 %v7789_v32  ;;  %v7849_v30 = vmul.f32 %v10713_v4, %v14793_v23 }
 0x5d2   : > { %v7792_v22 = vadd.f32 1e-12, %v7760_v19  ;;  %v7889_v55 = vmul.f32 %v14918_v60, %v7850_v38  ;;  %v7699_v58 = vpop.xlane.xlu0 %7698 }
 0x5d3   : > { %v10715_v33 = vpop.eup %10714  ;;  %v7888_v49 = vmul.f32 %v14918_v60, %v7849_v30  ;;  %v7759_v31 = vmul.f32 0.03125, %v7699_v58 }
 0x5d4   : > { %10722 = vrsqrt.f32 %v7792_v22  ;;  %v7928_v24 = vadd.f32 %v14925_v34, %v7889_v55  ;;  %v7852_v16 = vmul.f32 %v10715_v33, %v14800_v25 }
 0x5d5   : > { %v7708_v26 = vpop.xlane.xlu1 %7707  ;;  %v7927_v46 = vadd.f32 %v14925_v34, %v7888_v49  ;;  %v7791_v27 = vadd.f32 1e-12, %v7759_v31 }
 0x5d6   : > { %v10717_v44 = vpop.eup %10716  ;;  %v7762_v10 = vmul.f32 0.03125, %v7708_v26  ;;  %v7891_v23 = vmul.f32 %v14918_v60, %v7852_v16 }
 0x5d7   : > { %10407 = vmatmul.mubr.msk.f32.gmra.mrb[218].mxu0 %vm1916_vm0, %v7927_v46  ;;  %v7851_v62 = vmul.f32 %v10717_v44, %v14807_v9  ;;  %10724 = vrsqrt.f32 %v7791_v27 }
 0x5d8   : > { %v10719_v56 = vpop.eup %10718  ;;  %v7794_v21 = vadd.f32 1e-12, %v7762_v10  ;;  %10409 = vmatprep.mubr.msk.f32.mxu0 %vm1916_vm0, %v7928_v24  ;;  %v7930_v28 = vadd.f32 %v14925_v34, %v7891_v23 }
 0x5d9   : > { %v7705_v35 = vpop.xlane.xlu0 %7704  ;;  %v7890_v25 = vmul.f32 %v14918_v60, %v7851_v62  ;;  %v7854_v45 = vmul.f32 %v10719_v56, %v14811_v20 }
 0x5da   : > { %10726 = vrsqrt.f32 %v7794_v21  ;;  %v7761_v37 = vmul.f32 0.03125, %v7705_v35 }
 0x5db   : > { %v10721_v3 = vpop.eup %10720  ;;  %v7714_v54 = vpop.xlane.xlu1 %7713  ;;  %v7929_v8 = vadd.f32 %v14925_v34, %v7890_v25  ;;  %v7893_v9 = vmul.f32 %v14918_v60, %v7854_v45 }
 0x5dc   : > { %v7793_v51 = vadd.f32 1e-12, %v7761_v37  ;;  %v7764_v6 = vmul.f32 0.03125, %v7714_v54  ;;  %v7853_v57 = vmul.f32 %v10721_v3, %v14819_v50 }
 0x5dd   : > { %v7711_v52 = vpop.xlane.xlu0 %7710  ;;  %10410 = vmatmul.mubr.msk.f32.gmra.mrb[220].mxu0 %vm1916_vm0, %v7929_v8  ;;  %v7932_v61 = vadd.f32 %v14925_v34, %v7893_v9 }
 0x5de   : > { %v10723_v18 = vpop.eup %10722  ;;  %10728 = vrsqrt.f32 %v7793_v51  ;;  %v7796_v20 = vadd.f32 1e-12, %v7764_v6  ;;  %v7763_v41 = vmul.f32 0.03125, %v7711_v52  ;;  %10412 = vmatprep.mubr.msk.f32.mxu0 %vm1916_vm0, %v7930_v28  ;;  %v7892_v14 = vmul.f32 %v14918_v60, %v7853_v57 }
 0x5df   : > { %v7720_v5 = vpop.xlane.xlu1 %7719  ;;  %v7856_v29 = vmul.f32 %v10723_v18, %v14825_v59 }
 0x5e0   : > { %10730 = vrsqrt.f32 %v7796_v20  ;;  %v7795_v39 = vadd.f32 1e-12, %v7763_v41  ;;  %v7766_v1 = vmul.f32 0.03125, %v7720_v5  ;;  %v7931_v50 = vadd.f32 %v14925_v34, %v7892_v14 }
 0x5e1   : > { %v7717_v15 = vpop.xlane.xlu0 %7716  ;;  %v10725_v32 = vpop.eup %10724  ;;  %v7895_v19 = vmul.f32 %v14918_v60, %v7856_v29 }
 0x5e2   : > { %10732 = vrsqrt.f32 %v7795_v39  ;;  %v7798_v40 = vadd.f32 1e-12, %v7766_v1  ;;  %v7765_v4 = vmul.f32 0.03125, %v7717_v15  ;;  %10413 = vmatmul.mubr.msk.f32.gmra.mrb[222].mxu0 %vm1916_vm0, %v7931_v50  ;;  %v7855_v30 = vmul.f32 %v10725_v32, %v14831_v17 }
 0x5e3   : > { %v7726_v38 = vpop.xlane.xlu1 %7725  ;;  %10415 = vmatprep.mubr.msk.f32.mxu0 %vm1916_vm0, %v7932_v61  ;;  %v7934_v16 = vadd.f32 %v14925_v34, %v7895_v19 }
 0x5e4   : > { %v10727_v59 = vpop.eup %10726  ;;  %10734 = vrsqrt.f32 %v7798_v40  ;;  %v7797_v22 = vadd.f32 1e-12, %v7765_v4  ;;  %v7768_v55 = vmul.f32 0.03125, %v7726_v38  ;;  %v7894_v58 = vmul.f32 %v14918_v60, %v7855_v30 }
 0x5e5   : > { %v7723_v33 = vpop.xlane.xlu0 %7722  ;;  %v7858_v49 = vmul.f32 %v10727_v59, %v14835_v53 }
 0x5e6   : > { %10736 = vrsqrt.f32 %v7797_v22  ;;  %v7800_v31 = vadd.f32 1e-12, %v7768_v55  ;;  %v7767_v24 = vmul.f32 0.03125, %v7723_v33  ;;  %v7933_v46 = vadd.f32 %v14925_v34, %v7894_v58 }
 0x5e7   : > { %v7732_v26 = vpop.xlane.xlu1 %7731  ;;  %v7897_v10 = vmul.f32 %v14918_v60, %v7858_v49 }
 0x5e8   : > { %v10729_v44 = vpop.eup %10728  ;;  %10738 = vrsqrt.f32 %v7800_v31  ;;  %v7799_v17 = vadd.f32 1e-12, %v7767_v24  ;;  %v7770_v27 = vmul.f32 0.03125, %v7732_v26  ;;  %10416 = vmatmul.mubr.msk.f32.gmra.mrb[224].mxu0 %vm1916_vm0, %v7933_v46 }
 0x5e9   : > { %v7729_v23 = vpop.xlane.xlu0 %7728  ;;  %v7857_v62 = vmul.f32 %v10729_v44, %v14843_v63  ;;  %10418 = vmatprep.mubr.msk.f32.mxu0 %vm1916_vm0, %v7934_v16  ;;  %v7936_v54 = vadd.f32 %v14925_v34, %v7897_v10 }
 0x5ea   : > { %v10731_v53 = vpop.eup %10730  ;;  %10740 = vrsqrt.f32 %v7799_v17  ;;  %v7802_v56 = vadd.f32 1e-12, %v7770_v27  ;;  %v7769_v21 = vmul.f32 0.03125, %v7729_v23  ;;  %v15056_v23 = vld [vmem:[%s15533_s10] ss:$0 sm:$0xff] }
 0x5eb   : > { %v7738_v35 = vpop.xlane.xlu1 %7737  ;;  %v7896_v25 = vmul.f32 %v14918_v60, %v7857_v62  ;;  %v7860_v45 = vmul.f32 %v10731_v53, %v14847_v42 }
 0x5ec   : > { %v10733_v37 = vpop.eup %10732  ;;  %10742 = vrsqrt.f32 %v7802_v56  ;;  %v7801_v28 = vadd.f32 1e-12, %v7769_v21  ;;  %v7772_v3 = vmul.f32 0.03125, %v7738_v35 }
 0x5ed   : > { %v7735_v8 = vpop.xlane.xlu0 %7734  ;;  %v7935_v63 = vadd.f32 %v14925_v34, %v7896_v25  ;;  %v7859_v9 = vmul.f32 %v10733_v37, %v14852_v13  ;;  %v7899_v51 = vmul.f32 %v14918_v60, %v7860_v45 }
 0x5ee   : > { %v10735_v6 = vpop.eup %10734  ;;  %10744 = vrsqrt.f32 %v7801_v28  ;;  %v7804_v57 = vadd.f32 1e-12, %v7772_v3  ;;  %v7771_v52 = vmul.f32 0.03125, %v7735_v8 }
 0x5ef   : > { %10419 = vmatmul.mubr.msk.f32.gmra.mrb[226].mxu0 %vm1916_vm0, %v7935_v63  ;;  %v7898_v42 = vmul.f32 %v14918_v60, %v7859_v9  ;;  %v7862_v18 = vmul.f32 %v10735_v6, %v14858_v36  ;;  %v7938_v14 = vadd.f32 %v14925_v34, %v7899_v51 }
 0x5f0   : > { %v10737_v20 = vpop.eup %10736  ;;  %10746 = vrsqrt.f32 %v7804_v57  ;;  %v7803_v41 = vadd.f32 1e-12, %v7771_v52  ;;  %10421 = vmatprep.mubr.msk.f32.mxu0 %vm1916_vm0, %v7936_v54 }
 0x5f1   : > { %v7741_v13 = vpop.xlane.xlu0 %7740  ;;  %v7937_v5 = vadd.f32 %v14925_v34, %v7898_v42  ;;  %v7861_v61 = vmul.f32 %v10737_v20, %v14864_v0  ;;  %v7901_v29 = vmul.f32 %v14918_v60, %v7862_v18 }
 0x5f2   : > { %v10739_v39 = vpop.eup %10738  ;;  %10748 = vrsqrt.f32 %v7803_v41  ;;  %v7773_v1 = vmul.f32 0.03125, %v7741_v13 }
 0x5f3   : > { %10422 = vmatmul.mubr.msk.f32.gmra.mrb[228].mxu0 %vm1916_vm0, %v7937_v5  ;;  %v7900_v36 = vmul.f32 %v14918_v60, %v7861_v61  ;;  %v7864_v50 = vmul.f32 %v10739_v39, %v14870_v47  ;;  %v7940_v40 = vadd.f32 %v14925_v34, %v7901_v29 }
 0x5f4   : > { %v10741_v15 = vpop.eup %10740  ;;  %v7805_v32 = vadd.f32 1e-12, %v7773_v1  ;;  %10424 = vmatprep.mubr.msk.f32.mxu0 %vm1916_vm0, %v7938_v14 }
 0x5f5   : > { %v7939_v4 = vadd.f32 %v14925_v34, %v7900_v36  ;;  %v7863_v0 = vmul.f32 %v10741_v15, %v14876_v7  ;;  %v7903_v19 = vmul.f32 %v14918_v60, %v7864_v50 }
 0x5f6   : > { %v10743_v38 = vpop.eup %10742  ;;  %10750 = vrsqrt.f32 %v7805_v32 }
 0x5f7   : > { %10425 = vmatmul.mubr.msk.f32.gmra.mrb[230].mxu0 %vm1916_vm0, %v7939_v4  ;;  %v7902_v30 = vmul.f32 %v14918_v60, %v7863_v0  ;;  %v7866_v47 = vmul.f32 %v10743_v38, %v14882_v2  ;;  %v7942_v22 = vadd.f32 %v14925_v34, %v7903_v19 }
 0x5f8   : > { %v10745_v59 = vpop.eup %10744  ;;  %10427 = vmatprep.mubr.msk.f32.mxu0 %vm1916_vm0, %v7940_v40 }
 0x5f9   : > { %v7941_v55 = vadd.f32 %v14925_v34, %v7902_v30  ;;  %v7865_v33 = vmul.f32 %v10745_v59, %v14888_v48  ;;  %v7905_v7 = vmul.f32 %v14918_v60, %v7866_v47 }
 0x5fa   : > { %v10747_v58 = vpop.eup %10746 }
 0x5fb   : > { %10428 = vmatmul.mubr.msk.f32.gmra.mrb[232].mxu0 %vm1916_vm0, %v7941_v55  ;;  %v7904_v49 = vmul.f32 %v14918_v60, %v7865_v33  ;;  %v7868_v31 = vmul.f32 %v10747_v58, %v14894_v43  ;;  %v7944_v2 = vadd.f32 %v14925_v34, %v7905_v7 }
 0x5fc   : > { %v10749_v24 = vpop.eup %10748  ;;  %10430 = vmatprep.mubr.msk.f32.mxu0 %vm1916_vm0, %v7942_v22 }
 0x5fd   : > { %v7943_v16 = vadd.f32 %v14925_v34, %v7904_v49  ;;  %v7867_v26 = vmul.f32 %v10749_v24, %v14900_v11  ;;  %v7907_v48 = vmul.f32 %v14918_v60, %v7868_v31 }
 0x5ff   : > { %10431 = vmatmul.mubr.msk.f32.gmra.mrb[234].mxu0 %vm1916_vm0, %v7943_v16  ;;  %v7906_v46 = vmul.f32 %v14918_v60, %v7867_v26  ;;  %v7946_v43 = vadd.f32 %v14925_v34, %v7907_v48 }
 0x600   : > { %v10751_v44 = vpop.eup %10750  ;;  %10433 = vmatprep.mubr.msk.f32.mxu0 %vm1916_vm0, %v7944_v2 }
 0x601   : > { %v7945_v17 = vadd.f32 %v14925_v34, %v7906_v46  ;;  %v7869_v27 = vmul.f32 %v10751_v44, %v14909_v12 }
 0x603   : > { %10434 = vmatmul.mubr.msk.f32.gmra.mrb[236].mxu0 %vm1916_vm0, %v7945_v17  ;;  %v7908_v10 = vmul.f32 %v14918_v60, %v7869_v27 }
 0x604   : > { %10436 = vmatprep.mubr.msk.f32.mxu0 %vm1916_vm0, %v7946_v43 }
 0x605   : > { %v7947_v11 = vadd.f32 %v14925_v34, %v7908_v10 }
 0x607   : > { %10437 = vmatmul.mubr.msk.f32.gmra.mrb[238].mxu0 %vm1916_vm0, %v7947_v11 }
 0x68d   : > { %v10393_v62 = vpop.f32.mrb[208].mxu0 }
 0x68e   : > { %v15059_v53 = vadd.f32 %v10393_v62, %v15056_v23  ;;  %v8121_v12 = vpop.f32.mrb[209].mxu0 }
 0x68f   : > { %v15062_v56 = vadd.f32 %v15056_v23, %v8121_v12 }
 0x690   : > { %v8284_v60 = vsel %vm8280_vm5, %v15059_v53, -inf }
 0x691   : > { %8285 = vmax.xlane.f32.xlu0 %v8284_v60  ;;  %v8281_v34 = vsel %vm8280_vm5, %v15062_v56, -inf }
 0x692   : > { %8282 = vmax.xlane.f32.xlu1 %v8281_v34 }
 0x695   : > { %v10396_v21 = vpop.f32.mrb[210].mxu0 }
 0x696   : > { %v15069_v35 = vadd.f32 %v10396_v21, %v15056_v23  ;;  %v8131_v25 = vpop.f32.mrb[211].mxu0 }
 0x697   : > { %v15072_v45 = vadd.f32 %v15056_v23, %v8131_v25 }
 0x698   : > { %v8290_v37 = vsel %vm8280_vm5, %v15069_v35, -inf }
 0x699   : > { %8291 = vmax.xlane.f32.xlu0 %v8290_v37  ;;  %v10399_v28 = vpop.f32.mrb[212].mxu0  ;;  %v8287_v3 = vsel %vm8280_vm5, %v15072_v45, -inf }
 0x69a   : > { %v15079_v54 = vadd.f32 %v10399_v28, %v15056_v23  ;;  %8288 = vmax.xlane.f32.xlu1 %v8287_v3  ;;  %v8141_v8 = vpop.f32.mrb[213].mxu0 }
 0x69b   : > { %v15082_v63 = vadd.f32 %v15056_v23, %v8141_v8 }
 0x69c   : > { %v8296_v9 = vsel %vm8280_vm5, %v15079_v54, -inf }
 0x69d   : > { %8297 = vmax.xlane.f32.xlu0 %v8296_v9  ;;  %v10402_v51 = vpop.f32.mrb[214].mxu0  ;;  %v8293_v6 = vsel %vm8280_vm5, %v15082_v63, -inf }
 0x69e   : > { %v15089_v57 = vadd.f32 %v10402_v51, %v15056_v23  ;;  %8294 = vmax.xlane.f32.xlu1 %v8293_v6  ;;  %v8151_v52 = vpop.f32.mrb[215].mxu0 }
 0x69f   : > { %v15092_v42 = vadd.f32 %v15056_v23, %v8151_v52 }
 0x6a0   : > { %v8302_v18 = vsel %vm8280_vm5, %v15089_v57, -inf }
 0x6a1   : > { %8303 = vmax.xlane.f32.xlu0 %v8302_v18  ;;  %v8299_v20 = vsel %vm8280_vm5, %v15092_v42, -inf }
 0x6a2   : > { %8300 = vmax.xlane.f32.xlu1 %v8299_v20  ;;  %v10405_v41 = vpop.f32.mrb[216].mxu0 }
 0x6a3   : > { %v15099_v14 = vadd.f32 %v10405_v41, %v15056_v23  ;;  %v8161_v13 = vpop.f32.mrb[217].mxu0 }
 0x6a4   : > { %v15102_v5 = vadd.f32 %v15056_v23, %v8161_v13 }
 0x6a5   : > { %v8308_v61 = vsel %vm8280_vm5, %v15099_v14, -inf }
 0x6a6   : > { %8309 = vmax.xlane.f32.xlu0 %v8308_v61  ;;  %v8305_v29 = vsel %vm8280_vm5, %v15102_v5, -inf }
 0x6a7   : > { %8306 = vmax.xlane.f32.xlu1 %v8305_v29 }
 0x6aa   : > { %v10408_v39 = vpop.f32.mrb[218].mxu0 }
 0x6ab   : > { %v15109_v1 = vadd.f32 %v10408_v39, %v15056_v23  ;;  %v8171_v36 = vpop.f32.mrb[219].mxu0 }
 0x6ac   : > { %v15112_v50 = vadd.f32 %v15056_v23, %v8171_v36 }
 0x6ad   : > { %v8314_v15 = vsel %vm8280_vm5, %v15109_v1, -inf }
 0x6ae   : > { %8315 = vmax.xlane.f32.xlu0 %v8314_v15  ;;  %v8311_v32 = vsel %vm8280_vm5, %v15112_v50, -inf }
 0x6af   : > { %8312 = vmax.xlane.f32.xlu1 %v8311_v32 }
 0x6b0   : > { %v10411_v40 = vpop.f32.mrb[220].mxu0 }
 0x6b1   : > { %v15119_v4 = vadd.f32 %v10411_v40, %v15056_v23  ;;  %v8181_v0 = vpop.f32.mrb[221].mxu0 }
 0x6b2   : > { %v15122_v19 = vadd.f32 %v15056_v23, %v8181_v0 }
 0x6b3   : > { %v8320_v38 = vsel %vm8280_vm5, %v15119_v4, -inf }
 0x6b4   : > { %8321 = vmax.xlane.f32.xlu0 %v8320_v38  ;;  %v8317_v30 = vsel %vm8280_vm5, %v15122_v19, -inf }
 0x6b5   : > { %v10414_v47 = vpop.f32.mrb[222].mxu0  ;;  %8318 = vmax.xlane.f32.xlu1 %v8317_v30 }
 0x6b6   : > { %v15129_v59 = vadd.f32 %v10414_v47, %v15056_v23  ;;  %v8191_v22 = vpop.f32.mrb[223].mxu0 }
 0x6b7   : > { %v15132_v55 = vadd.f32 %v15056_v23, %v8191_v22 }
 0x6b8   : > { %v8326_v33 = vsel %vm8280_vm5, %v15129_v59, -inf }
 0x6b9   : > { %8327 = vmax.xlane.f32.xlu0 %v8326_v33  ;;  %v8323_v7 = vsel %vm8280_vm5, %v15132_v55, -inf }
 0x6ba   : > { %8324 = vmax.xlane.f32.xlu1 %v8323_v7 }
 0x6bb   : > { %v10417_v58 = vpop.f32.mrb[224].mxu0 }
 0x6bc   : > { %v15139_v49 = vadd.f32 %v10417_v58, %v15056_v23  ;;  %v8201_v31 = vpop.f32.mrb[225].mxu0 }
 0x6bd   : > { %v15142_v24 = vadd.f32 %v15056_v23, %v8201_v31 }
 0x6be   : > { %v8332_v2 = vsel %vm8280_vm5, %v15139_v49, -inf }
 0x6bf   : > { %8333 = vmax.xlane.f32.xlu0 %v8332_v2  ;;  %v8329_v16 = vsel %vm8280_vm5, %v15142_v24, -inf }
 0x6c0   : > { %8330 = vmax.xlane.f32.xlu1 %v8329_v16 }
 0x6c2   : > { %v10420_v26 = vpop.f32.mrb[226].mxu0 }
 0x6c3   : > { %v15149_v48 = vadd.f32 %v10420_v26, %v15056_v23  ;;  %v8211_v46 = vpop.f32.mrb[227].mxu0 }
 0x6c4   : > { %v15152_v44 = vadd.f32 %v15056_v23, %v8211_v46 }
 0x6c5   : > { %v8338_v43 = vsel %vm8280_vm5, %v15149_v48, -inf }
 0x6c6   : > { %15836 = vst [vmem:[#allocation40_spill] sm:$0xff] %v15152_v44  ;;  %8339 = vmax.xlane.f32.xlu0 %v8338_v43  ;;  %v10423_v17 = vpop.f32.mrb[228].mxu0  ;;  %v8335_v27 = vsel %vm8280_vm5, %v15152_v44, -inf }
 0x6c7   : > { %v15159_v10 = vadd.f32 %v10423_v17, %v15056_v23  ;;  %8336 = vmax.xlane.f32.xlu1 %v8335_v27  ;;  %v8221_v11 = vpop.f32.mrb[229].mxu0 }
 0x6c8   : > { %v15162_v62 = vadd.f32 %v15056_v23, %v8221_v11 }
 0x6c9   : > { %15837 = vst [vmem:[#allocation14_spill] sm:$0xff] %v15159_v10  ;;  %v8344_v12 = vsel %vm8280_vm5, %v15159_v10, -inf }
 0x6ca   : > { %15838 = vst [vmem:[#allocation15_spill] sm:$0xff] %v15162_v62  ;;  %8345 = vmax.xlane.f32.xlu0 %v8344_v12  ;;  %v10426_v60 = vpop.f32.mrb[230].mxu0  ;;  %v8341_v34 = vsel %vm8280_vm5, %v15162_v62, -inf }
 0x6cb   : > { %v15169_v21 = vadd.f32 %v10426_v60, %v15056_v23  ;;  %8342 = vmax.xlane.f32.xlu1 %v8341_v34  ;;  %v8231_v25 = vpop.f32.mrb[231].mxu0 }
 0x6cc   : > { %v15172_v37 = vadd.f32 %v15056_v23, %v8231_v25 }
 0x6cd   : > { %15839 = vst [vmem:[#allocation42_spill] sm:$0xff] %v15169_v21  ;;  %v8350_v28 = vsel %vm8280_vm5, %v15169_v21, -inf }
 0x6ce   : > { %15840 = vst [vmem:[#allocation16_spill] sm:$0xff] %v15172_v37  ;;  %8351 = vmax.xlane.f32.xlu0 %v8350_v28  ;;  %v10429_v3 = vpop.f32.mrb[232].mxu0  ;;  %v8347_v8 = vsel %vm8280_vm5, %v15172_v37, -inf }
 0x6cf   : > { %v15179_v9 = vadd.f32 %v10429_v3, %v15056_v23  ;;  %8348 = vmax.xlane.f32.xlu1 %v8347_v8  ;;  %v8241_v51 = vpop.f32.mrb[233].mxu0 }
 0x6d0   : > { %v15182_v6 = vadd.f32 %v15056_v23, %v8241_v51 }
 0x6d1   : > { %15841 = vst [vmem:[#allocation17_spill] sm:$0xff] %v15179_v9  ;;  %v8356_v52 = vsel %vm8280_vm5, %v15179_v9, -inf }
 0x6d2   : > { %15842 = vst [vmem:[#allocation45_spill] sm:$0xff] %v15182_v6  ;;  %8357 = vmax.xlane.f32.xlu0 %v8356_v52  ;;  %v10432_v18 = vpop.f32.mrb[234].mxu0  ;;  %v8353_v20 = vsel %vm8280_vm5, %v15182_v6, -inf }
 0x6d3   : > { %v15189_v41 = vadd.f32 %v10432_v18, %v15056_v23  ;;  %8354 = vmax.xlane.f32.xlu1 %v8353_v20  ;;  %v8251_v13 = vpop.f32.mrb[235].mxu0 }
 0x6d4   : > { %v15192_v61 = vadd.f32 %v15056_v23, %v8251_v13 }
 0x6d5   : > { %15843 = vst [vmem:[#allocation19_spill] sm:$0xff] %v15189_v41  ;;  %v8362_v29 = vsel %vm8280_vm5, %v15189_v41, -inf }
 0x6d6   : > { %15844 = vst [vmem:[#allocation21_spill] sm:$0xff] %v15192_v61  ;;  %8363 = vmax.xlane.f32.xlu0 %v8362_v29  ;;  %v10435_v39 = vpop.f32.mrb[236].mxu0  ;;  %v8359_v36 = vsel %vm8280_vm5, %v15192_v61, -inf }
 0x6d7   : > { %v15199_v15 = vadd.f32 %v10435_v39, %v15056_v23  ;;  %8360 = vmax.xlane.f32.xlu1 %v8359_v36  ;;  %v8261_v32 = vpop.f32.mrb[237].mxu0 }
 0x6d8   : > { %v15202_v40 = vadd.f32 %v15056_v23, %v8261_v32 }
 0x6d9   : > { %v8368_v0 = vsel %vm8280_vm5, %v15199_v15, -inf }
 0x6da   : > { %15845 = vst [vmem:[#allocation23_spill] sm:$0xff] %v15202_v40  ;;  %8369 = vmax.xlane.f32.xlu0 %v8368_v0  ;;  %v10438_v38 = vpop.f32.mrb[238].mxu0  ;;  %v8365_v30 = vsel %vm8280_vm5, %v15202_v40, -inf }
 0x6db   : > { %v15209_v47 = vadd.f32 %v10438_v38, %v15056_v23  ;;  %8366 = vmax.xlane.f32.xlu1 %v8365_v30  ;;  %v8271_v22 = vpop.f32.mrb[239].mxu0 }
 0x6dc   : > { %v15212_v33 = vadd.f32 %v15056_v23, %v8271_v22 }
 0x6dd   : > { %15846 = vst [vmem:[#allocation25_spill] sm:$0xff] %v15209_v47  ;;  %v8374_v7 = vsel %vm8280_vm5, %v15209_v47, -inf }
 0x6de   : > { %8375 = vmax.xlane.f32.xlu0 %v8374_v7  ;;  %v8371_v58 = vsel %vm8280_vm5, %v15212_v33, -inf }
 0x6df   : > { %8372 = vmax.xlane.f32.xlu1 %v8371_v58 }
 0x71e   : > { %v15218_v31 = vpop.xlane.xlu0 %8285 }
 0x71f   : > { %v8378_v2 = vsub.f32 %v15059_v53, %v15218_v31  ;;  %v15222_v16 = vpop.xlane.xlu1 %8282 }
 0x720   : > { %v8377_v26 = vsub.f32 %v15062_v56, %v15222_v16 }
 0x721   : > { %v8411_v23 = vmul.f32 1.442695, %v8378_v2 }
 0x722   : > { %v8409_v46 = vmul.f32 1.442695, %v8377_v26 }
 0x723   : > { %10752 = vpow2.f32 %v8411_v23 }
 0x724   : > { %10754 = vpow2.f32 %v8409_v46 }
 0x726   : > { %v15226_v43 = vpop.xlane.xlu0 %8291 }
 0x727   : > { %v8380_v17 = vsub.f32 %v15069_v35, %v15226_v43  ;;  %v15230_v27 = vpop.xlane.xlu1 %8288 }
 0x728   : > { %v8379_v11 = vsub.f32 %v15072_v45, %v15230_v27 }
 0x729   : > { %v8415_v12 = vmul.f32 1.442695, %v8380_v17 }
 0x72a   : > { %v8413_v60 = vmul.f32 1.442695, %v8379_v11  ;;  %v15234_v34 = vpop.xlane.xlu0 %8297 }
 0x72b   : > { %10756 = vpow2.f32 %v8415_v12  ;;  %v8382_v25 = vsub.f32 %v15079_v54, %v15234_v34  ;;  %v15238_v28 = vpop.xlane.xlu1 %8294 }
 0x72c   : > { %10758 = vpow2.f32 %v8413_v60  ;;  %v8381_v3 = vsub.f32 %v15082_v63, %v15238_v28 }
 0x72d   : > { %v10753_v8 = vpop.eup %10752  ;;  %v8419_v51 = vmul.f32 1.442695, %v8382_v25 }
 0x72e   : > { %v10755_v52 = vpop.eup %10754  ;;  %v8417_v18 = vmul.f32 1.442695, %v8381_v3  ;;  %v15242_v20 = vpop.xlane.xlu0 %8303  ;;  %v8476_v13 = vsel %vm8280_vm5, %v10753_v8, 0.0 }
 0x72f   : > { %10760 = vpow2.f32 %v8419_v51  ;;  %v8384_v29 = vsub.f32 %v15089_v57, %v15242_v20  ;;  %v15247_v39 = vpop.xlane.xlu1 %8300  ;;  %8477 = vadd.xlane.f32.xlu0 %v8476_v13  ;;  %v8473_v36 = vsel %vm8280_vm5, %v10755_v52, 0.0 }
 0x730   : > { %10762 = vpow2.f32 %v8417_v18  ;;  %v8383_v32 = vsub.f32 %v15092_v42, %v15247_v39  ;;  %8474 = vadd.xlane.f32.xlu1 %v8473_v36 }
 0x731   : > { %v8423_v0 = vmul.f32 1.442695, %v8384_v29 }
 0x732   : > { %v8421_v38 = vmul.f32 1.442695, %v8383_v32 }
 0x733   : > { %10764 = vpow2.f32 %v8423_v0  ;;  %v15252_v22 = vpop.xlane.xlu0 %8309 }
 0x734   : > { %10766 = vpow2.f32 %v8421_v38  ;;  %v8386_v58 = vsub.f32 %v15099_v14, %v15252_v22  ;;  %v15256_v2 = vpop.xlane.xlu1 %8306 }
 0x735   : > { %v10757_v30 = vpop.eup %10756  ;;  %v8385_v23 = vsub.f32 %v15102_v5, %v15256_v2 }
 0x736   : > { %v10759_v7 = vpop.eup %10758  ;;  %v8482_v26 = vsel %vm8280_vm5, %v10757_v30, 0.0  ;;  %v8427_v17 = vmul.f32 1.442695, %v8386_v58 }
 0x737   : > { %8483 = vadd.xlane.f32.xlu0 %v8482_v26  ;;  %v8479_v46 = vsel %vm8280_vm5, %v10759_v7, 0.0  ;;  %v8425_v12 = vmul.f32 1.442695, %v8385_v23 }
 0x738   : > { %8480 = vadd.xlane.f32.xlu1 %v8479_v46  ;;  %10768 = vpow2.f32 %v8427_v17 }
 0x739   : > { %v10761_v11 = vpop.eup %10760  ;;  %10770 = vpow2.f32 %v8425_v12 }
 0x73a   : > { %v10763_v60 = vpop.eup %10762  ;;  %v8488_v25 = vsel %vm8280_vm5, %v10761_v11, 0.0 }
 0x73b   : > { %8489 = vadd.xlane.f32.xlu0 %v8488_v25  ;;  %v8485_v3 = vsel %vm8280_vm5, %v10763_v60, 0.0  ;;  %v15264_v51 = vpop.xlane.xlu0 %8315 }
 0x73c   : > { %8486 = vadd.xlane.f32.xlu1 %v8485_v3  ;;  %v8388_v18 = vsub.f32 %v15109_v1, %v15264_v51  ;;  %v15268_v13 = vpop.xlane.xlu1 %8312 }
 0x73d   : > { %v10765_v8 = vpop.eup %10764  ;;  %v8387_v36 = vsub.f32 %v15112_v50, %v15268_v13 }
 0x73e   : > { %v10767_v52 = vpop.eup %10766  ;;  %v8494_v29 = vsel %vm8280_vm5, %v10765_v8, 0.0  ;;  %v8431_v0 = vmul.f32 1.442695, %v8388_v18 }
 0x73f   : > { %8495 = vadd.xlane.f32.xlu0 %v8494_v29  ;;  %v8491_v32 = vsel %vm8280_vm5, %v10767_v52, 0.0  ;;  %v8429_v38 = vmul.f32 1.442695, %v8387_v36 }
 0x740   : > { %8492 = vadd.xlane.f32.xlu1 %v8491_v32  ;;  %10772 = vpow2.f32 %v8431_v0 }
 0x741   : > { %10774 = vpow2.f32 %v8429_v38  ;;  %v15274_v30 = vpop.xlane.xlu0 %8321 }
 0x742   : > { %v10769_v7 = vpop.eup %10768  ;;  %v8390_v58 = vsub.f32 %v15119_v4, %v15274_v30  ;;  %v15278_v26 = vpop.xlane.xlu1 %8318 }
 0x743   : > { %v10771_v23 = vpop.eup %10770  ;;  %v8389_v46 = vsub.f32 %v15122_v19, %v15278_v26  ;;  %v8500_v17 = vsel %vm8280_vm5, %v10769_v7, 0.0 }
 0x744   : > { %v8435_v11 = vmul.f32 1.442695, %v8390_v58  ;;  %8501 = vadd.xlane.f32.xlu0 %v8500_v17  ;;  %v8497_v12 = vsel %vm8280_vm5, %v10771_v23, 0.0 }
 0x745   : > { %v8433_v60 = vmul.f32 1.442695, %v8389_v46  ;;  %8498 = vadd.xlane.f32.xlu1 %v8497_v12 }
 0x746   : > { %10776 = vpow2.f32 %v8435_v11  ;;  %v15284_v25 = vpop.xlane.xlu0 %8327 }
 0x747   : > { %10778 = vpow2.f32 %v8433_v60  ;;  %v8392_v3 = vsub.f32 %v15129_v59, %v15284_v25  ;;  %v15288_v8 = vpop.xlane.xlu1 %8324 }
 0x748   : > { %v8391_v52 = vsub.f32 %v15132_v55, %v15288_v8 }
 0x749   : > { %v8439_v18 = vmul.f32 1.442695, %v8392_v3 }
 0x74a   : > { %v10773_v29 = vpop.eup %10772  ;;  %v8437_v36 = vmul.f32 1.442695, %v8391_v52 }
 0x74b   : > { %v10775_v32 = vpop.eup %10774  ;;  %10780 = vpow2.f32 %v8439_v18  ;;  %v8506_v0 = vsel %vm8280_vm5, %v10773_v29, 0.0 }
 0x74c   : > { %10782 = vpow2.f32 %v8437_v36  ;;  %8507 = vadd.xlane.f32.xlu0 %v8506_v0  ;;  %v8503_v38 = vsel %vm8280_vm5, %v10775_v32, 0.0  ;;  %v15294_v7 = vpop.xlane.xlu0 %8333 }
 0x74d   : > { %8504 = vadd.xlane.f32.xlu1 %v8503_v38  ;;  %v8394_v58 = vsub.f32 %v15139_v49, %v15294_v7  ;;  %v15298_v23 = vpop.xlane.xlu1 %8330 }
 0x74e   : > { %v8393_v46 = vsub.f32 %v15142_v24, %v15298_v23 }
 0x74f   : > { %v8443_v11 = vmul.f32 1.442695, %v8394_v58 }
 0x750   : > { %v10777_v17 = vpop.eup %10776  ;;  %v8441_v60 = vmul.f32 1.442695, %v8393_v46 }
 0x751   : > { %v10779_v12 = vpop.eup %10778  ;;  %v8512_v3 = vsel %vm8280_vm5, %v10777_v17, 0.0  ;;  %10784 = vpow2.f32 %v8443_v11 }
 0x752   : > { %8513 = vadd.xlane.f32.xlu0 %v8512_v3  ;;  %v8509_v52 = vsel %vm8280_vm5, %v10779_v12, 0.0  ;;  %10786 = vpow2.f32 %v8441_v60 }
 0x753   : > { %v15304_v18 = vpop.xlane.xlu0 %8339  ;;  %8510 = vadd.xlane.f32.xlu1 %v8509_v52 }
 0x754   : > { %v8396_v29 = vsub.f32 %v15149_v48, %v15304_v18  ;;  %v15308_v36 = vpop.xlane.xlu1 %8336 }
 0x755   : > { %v10781_v32 = vpop.eup %10780  ;;  %v8395_v0 = vsub.f32 %v15152_v44, %v15308_v36 }
 0x756   : > { %v10783_v38 = vpop.eup %10782  ;;  %v8447_v58 = vmul.f32 1.442695, %v8396_v29  ;;  %v8518_v46 = vsel %vm8280_vm5, %v10781_v32, 0.0 }
 0x757   : > { %v8445_v17 = vmul.f32 1.442695, %v8395_v0  ;;  %v15313_v11 = vpop.xlane.xlu0 %8345  ;;  %8519 = vadd.xlane.f32.xlu0 %v8518_v46  ;;  %v8515_v12 = vsel %vm8280_vm5, %v10783_v38, 0.0 }
 0x758   : > { %10788 = vpow2.f32 %v8447_v58  ;;  %v8398_v60 = vsub.f32 %v15159_v10, %v15313_v11  ;;  %v15318_v3 = vpop.xlane.xlu1 %8342  ;;  %8516 = vadd.xlane.f32.xlu1 %v8515_v12 }
 0x759   : > { %10790 = vpow2.f32 %v8445_v17  ;;  %v8397_v52 = vsub.f32 %v15162_v62, %v15318_v3 }
 0x75a   : > { %v8451_v29 = vmul.f32 1.442695, %v8398_v60 }
 0x75b   : > { %v8449_v44 = vmul.f32 1.442695, %v8397_v52  ;;  %v15322_v32 = vpop.xlane.xlu0 %8351  ;;  %v10785_v0 = vpop.eup %10784 }
 0x75c   : > { %10792 = vpow2.f32 %v8451_v29  ;;  %v8400_v38 = vsub.f32 %v15169_v21, %v15322_v32  ;;  %v15326_v58 = vpop.xlane.xlu1 %8348  ;;  %v10787_v46 = vpop.eup %10786  ;;  %v8524_v17 = vsel %vm8280_vm5, %v10785_v0, 0.0 }
 0x75d   : > { %15847 = vst [vmem:[#allocation27_spill] sm:$0xff] %v15326_v58  ;;  %10794 = vpow2.f32 %v8449_v44  ;;  %v8399_v12 = vsub.f32 %v15172_v37, %v15326_v58  ;;  %8525 = vadd.xlane.f32.xlu0 %v8524_v17  ;;  %v8521_v60 = vsel %vm8280_vm5, %v10787_v46, 0.0 }
 0x75e   : > { %v8455_v10 = vmul.f32 1.442695, %v8400_v38  ;;  %8522 = vadd.xlane.f32.xlu1 %v8521_v60 }
 0x75f   : > { %v8453_v52 = vmul.f32 1.442695, %v8399_v12  ;;  %v15332_v62 = vpop.xlane.xlu0 %8357 }
 0x760   : > { %10796 = vpow2.f32 %v8455_v10  ;;  %v8402_v29 = vsub.f32 %v15179_v9, %v15332_v62  ;;  %v15336_v21 = vpop.xlane.xlu1 %8354 }
 0x761   : > { %15848 = vst [vmem:[#allocation29_spill] sm:$0xff] %v15336_v21  ;;  %10798 = vpow2.f32 %v8453_v52  ;;  %v8401_v44 = vsub.f32 %v15182_v6, %v15336_v21 }
 0x762   : > { %v10789_v37 = vpop.eup %10788  ;;  %v8459_v0 = vmul.f32 1.442695, %v8402_v29 }
 0x763   : > { %v10791_v38 = vpop.eup %10790  ;;  %v8457_v17 = vmul.f32 1.442695, %v8401_v44  ;;  %v15340_v58 = vpop.xlane.xlu0 %8363  ;;  %v8530_v46 = vsel %vm8280_vm5, %v10789_v37, 0.0 }
 0x764   : > { %10800 = vpow2.f32 %v8459_v0  ;;  %v8404_v10 = vsub.f32 %v15189_v41, %v15340_v58  ;;  %v15345_v12 = vpop.xlane.xlu1 %8360  ;;  %8531 = vadd.xlane.f32.xlu0 %v8530_v46  ;;  %v8527_v60 = vsel %vm8280_vm5, %v10791_v38, 0.0 }
 0x765   : > { %10802 = vpow2.f32 %v8457_v17  ;;  %v8403_v52 = vsub.f32 %v15192_v61, %v15345_v12  ;;  %8528 = vadd.xlane.f32.xlu1 %v8527_v60 }
 0x766   : > { %v10793_v29 = vpop.eup %10792  ;;  %v8463_v44 = vmul.f32 1.442695, %v8404_v10 }
 0x767   : > { %v10795_v6 = vpop.eup %10794  ;;  %v8461_v9 = vmul.f32 1.442695, %v8403_v52  ;;  %v15350_v21 = vpop.xlane.xlu0 %8369  ;;  %v8536_v37 = vsel %vm8280_vm5, %v10793_v29, 0.0 }
 0x768   : > { %10804 = vpow2.f32 %v8463_v44  ;;  %v8406_v0 = vsub.f32 %v15199_v15, %v15350_v21  ;;  %v15355_v46 = vpop.xlane.xlu1 %8366  ;;  %8537 = vadd.xlane.f32.xlu0 %v8536_v37  ;;  %v8533_v38 = vsel %vm8280_vm5, %v10795_v6, 0.0 }
 0x769   : > { %10806 = vpow2.f32 %v8461_v9  ;;  %v8405_v17 = vsub.f32 %v15202_v40, %v15355_v46  ;;  %8534 = vadd.xlane.f32.xlu1 %v8533_v38 }
 0x76a   : > { %v10797_v10 = vpop.eup %10796  ;;  %v8467_v60 = vmul.f32 1.442695, %v8406_v0 }
 0x76b   : > { %v10799_v52 = vpop.eup %10798  ;;  %v8465_v61 = vmul.f32 1.442695, %v8405_v17  ;;  %v15360_v41 = vpop.xlane.xlu0 %8375  ;;  %v8542_v29 = vsel %vm8280_vm5, %v10797_v10, 0.0 }
 0x76c   : > { %10808 = vpow2.f32 %v8467_v60  ;;  %v8408_v44 = vsub.f32 %v15209_v47, %v15360_v41  ;;  %v15365_v37 = vpop.xlane.xlu1 %8372  ;;  %8543 = vadd.xlane.f32.xlu0 %v8542_v29  ;;  %v8539_v9 = vsel %vm8280_vm5, %v10799_v52, 0.0 }
 0x76d   : > { %10810 = vpow2.f32 %v8465_v61  ;;  %v8407_v6 = vsub.f32 %v15212_v33, %v15365_v37  ;;  %8540 = vadd.xlane.f32.xlu1 %v8539_v9 }
 0x76e   : > { %v10801_v0 = vpop.eup %10800  ;;  %v8471_v38 = vmul.f32 1.442695, %v8408_v44 }
 0x76f   : > { %v10803_v17 = vpop.eup %10802  ;;  %v8469_v40 = vmul.f32 1.442695, %v8407_v6  ;;  %v8548_v10 = vsel %vm8280_vm5, %v10801_v0, 0.0 }
 0x770   : > { %10812 = vpow2.f32 %v8471_v38  ;;  %8549 = vadd.xlane.f32.xlu0 %v8548_v10  ;;  %v8545_v60 = vsel %vm8280_vm5, %v10803_v17, 0.0 }
 0x771   : > { %10814 = vpow2.f32 %v8469_v40  ;;  %8546 = vadd.xlane.f32.xlu1 %v8545_v60 }
 0x772   : > { %v10805_v29 = vpop.eup %10804 }
 0x773   : > { %v10807_v47 = vpop.eup %10806  ;;  %v8554_v61 = vsel %vm8280_vm5, %v10805_v29, 0.0 }
 0x774   : > { %8555 = vadd.xlane.f32.xlu0 %v8554_v61  ;;  %v8551_v52 = vsel %vm8280_vm5, %v10807_v47, 0.0 }
 0x775   : > { %8552 = vadd.xlane.f32.xlu1 %v8551_v52 }
 0x776   : > { %v10809_v44 = vpop.eup %10808 }
 0x777   : > { %v10811_v9 = vpop.eup %10810  ;;  %v8560_v6 = vsel %vm8280_vm5, %v10809_v44, 0.0 }
 0x778   : > { %8561 = vadd.xlane.f32.xlu0 %v8560_v6  ;;  %v8557_v0 = vsel %vm8280_vm5, %v10811_v9, 0.0 }
 0x779   : > { %8558 = vadd.xlane.f32.xlu1 %v8557_v0 }
 0x77a   : > { %v10813_v38 = vpop.eup %10812 }
 0x77b   : > { %v10815_v40 = vpop.eup %10814  ;;  %v8566_v17 = vsel %vm8280_vm5, %v10813_v38, 0.0 }
 0x77c   : > { %8567 = vadd.xlane.f32.xlu0 %v8566_v17  ;;  %v8563_v10 = vsel %vm8280_vm5, %v10815_v40, 0.0 }
 0x77d   : > { %8564 = vadd.xlane.f32.xlu1 %v8563_v10 }
 0x7bc   : > { %v8478_v60 = vpop.xlane.xlu0 %8477 }
 0x7bd   : > { %10816 = vlog2.f32 %v8478_v60  ;;  %v8475_v47 = vpop.xlane.xlu1 %8474 }
 0x7be   : > { %10818 = vlog2.f32 %v8475_v47 }
 0x7c4   : > { %v8484_v29 = vpop.xlane.xlu0 %8483 }
 0x7c5   : > { %10820 = vlog2.f32 %v8484_v29  ;;  %v8481_v61 = vpop.xlane.xlu1 %8480 }
 0x7c6   : > { %10822 = vlog2.f32 %v8481_v61 }
 0x7c7   : > { %v10817_v52 = vpop.eup %10816 }
 0x7c8   : > { %v10819_v44 = vpop.eup %10818  ;;  %v8572_v9 = vmul.f32 0.6931472, %v10817_v52  ;;  %v8490_v6 = vpop.xlane.xlu0 %8489 }
 0x7c9   : > { %v8570_v0 = vmul.f32 0.6931472, %v10819_v44  ;;  %10824 = vlog2.f32 %v8490_v6  ;;  %v8487_v38 = vpop.xlane.xlu1 %8486 }
 0x7ca   : > { %v8634_v40 = vadd.f32 %v8572_v9, %v15218_v31  ;;  %10826 = vlog2.f32 %v8487_v38 }
 0x7cb   : > { %v8633_v17 = vadd.f32 %v8570_v0, %v15222_v16 }
 0x7cc   : > { %v8666_v10 = vsub.f32 %v15059_v53, %v8634_v40  ;;  %v8496_v60 = vpop.xlane.xlu0 %8495 }
 0x7cd   : > { %v8665_v47 = vsub.f32 %v15062_v56, %v8633_v17  ;;  %10828 = vlog2.f32 %v8496_v60  ;;  %v8493_v29 = vpop.xlane.xlu1 %8492 }
 0x7ce   : > { %8698 = vst.msk [vmem:[%s15384_s29 + $0x8] sm:$0xff] %vm8280_vm5, %v8666_v10  ;;  %10830 = vlog2.f32 %v8493_v29 }
 0x7cf   : > { %v10821_v31 = vpop.eup %10820  ;;  %8697 = vst.msk [vmem:[%s15384_s29] sm:$0xff] %vm8280_vm5, %v8665_v47 }
 0x7d0   : > { %v10823_v61 = vpop.eup %10822  ;;  %v8576_v52 = vmul.f32 0.6931472, %v10821_v31 }
 0x7d1   : > { %v8574_v44 = vmul.f32 0.6931472, %v10823_v61  ;;  %v8502_v6 = vpop.xlane.xlu0 %8501 }
 0x7d2   : > { %v8636_v16 = vadd.f32 %v8576_v52, %v15226_v43  ;;  %10832 = vlog2.f32 %v8502_v6  ;;  %v8499_v40 = vpop.xlane.xlu1 %8498 }
 0x7d3   : > { %v10825_v9 = vpop.eup %10824  ;;  %v8635_v53 = vadd.f32 %v8574_v44, %v15230_v27  ;;  %10834 = vlog2.f32 %v8499_v40 }
 0x7d4   : > { %v10827_v56 = vpop.eup %10826  ;;  %v8668_v0 = vsub.f32 %v15069_v35, %v8636_v16  ;;  %v8580_v38 = vmul.f32 0.6931472, %v10825_v9 }
 0x7d5   : > { %v8667_v17 = vsub.f32 %v15072_v45, %v8635_v53  ;;  %v8578_v10 = vmul.f32 0.6931472, %v10827_v56 }
 0x7d6   : > { %8700 = vst.msk [vmem:[%s15384_s29 + $0x18] sm:$0xff] %vm8280_vm5, %v8668_v0  ;;  %v8638_v43 = vadd.f32 %v8580_v38, %v15234_v34 }
 0x7d7   : > { %v10829_v60 = vpop.eup %10828  ;;  %8699 = vst.msk [vmem:[%s15384_s29 + $0x10] sm:$0xff] %vm8280_vm5, %v8667_v17  ;;  %v8637_v27 = vadd.f32 %v8578_v10, %v15238_v28 }
 0x7d8   : > { %v10831_v47 = vpop.eup %10830  ;;  %v8670_v35 = vsub.f32 %v15079_v54, %v8638_v43  ;;  %v8584_v29 = vmul.f32 0.6931472, %v10829_v60 }
 0x7d9   : > { %v8669_v31 = vsub.f32 %v15082_v63, %v8637_v27  ;;  %v8582_v45 = vmul.f32 0.6931472, %v10831_v47  ;;  %v8508_v52 = vpop.xlane.xlu0 %8507 }
 0x7da   : > { %8702 = vst.msk [vmem:[%s15384_s29 + $0x28] sm:$0xff] %vm8280_vm5, %v8670_v35  ;;  %v8640_v61 = vadd.f32 %v8584_v29, %v15242_v20  ;;  %10836 = vlog2.f32 %v8508_v52  ;;  %v8505_v44 = vpop.xlane.xlu1 %8504 }
 0x7db   : > { %8701 = vst.msk [vmem:[%s15384_s29 + $0x20] sm:$0xff] %vm8280_vm5, %v8669_v31  ;;  %v8639_v34 = vadd.f32 %v8582_v45, %v15247_v39  ;;  %10838 = vlog2.f32 %v8505_v44 }
 0x7dc   : > { %v8672_v28 = vsub.f32 %v15089_v57, %v8640_v61  ;;  %v10833_v16 = vpop.eup %10832 }
 0x7dd   : > { %v8671_v54 = vsub.f32 %v15092_v42, %v8639_v34  ;;  %v10835_v63 = vpop.eup %10834  ;;  %v8588_v20 = vmul.f32 0.6931472, %v10833_v16 }
 0x7de   : > { %8704 = vst.msk [vmem:[%s15384_s29 + $0x38] sm:$0xff] %vm8280_vm5, %v8672_v28  ;;  %v8586_v9 = vmul.f32 0.6931472, %v10835_v63 }
 0x7df   : > { %8703 = vst.msk [vmem:[%s15384_s29 + $0x30] sm:$0xff] %vm8280_vm5, %v8671_v54  ;;  %v8642_v39 = vadd.f32 %v8588_v20, %v15252_v22  ;;  %v8514_v53 = vpop.xlane.xlu0 %8513 }
 0x7e0   : > { %v8641_v57 = vadd.f32 %v8586_v9, %v15256_v2  ;;  %10840 = vlog2.f32 %v8514_v53  ;;  %v8511_v6 = vpop.xlane.xlu1 %8510 }
 0x7e1   : > { %v8674_v42 = vsub.f32 %v15099_v14, %v8642_v39  ;;  %10842 = vlog2.f32 %v8511_v6 }
 0x7e2   : > { %v8673_v56 = vsub.f32 %v15102_v5, %v8641_v57 }
 0x7e3   : > { %8706 = vst.msk [vmem:[%s15384_s29 + $0x48] sm:$0xff] %vm8280_vm5, %v8674_v42 }
 0x7e4   : > { %v10837_v0 = vpop.eup %10836  ;;  %8705 = vst.msk [vmem:[%s15384_s29 + $0x40] sm:$0xff] %vm8280_vm5, %v8673_v56  ;;  %v8520_v38 = vpop.xlane.xlu0 %8519 }
 0x7e5   : > { %v10839_v40 = vpop.eup %10838  ;;  %v8592_v22 = vmul.f32 0.6931472, %v10837_v0  ;;  %10844 = vlog2.f32 %v8520_v38  ;;  %v8517_v17 = vpop.xlane.xlu1 %8516 }
 0x7e6   : > { %v8590_v2 = vmul.f32 0.6931472, %v10839_v40  ;;  %10846 = vlog2.f32 %v8517_v17 }
 0x7e7   : > { %v8644_v10 = vadd.f32 %v8592_v22, %v15264_v51 }
 0x7e8   : > { %v8643_v14 = vadd.f32 %v8590_v2, %v15268_v13 }
 0x7e9   : > { %v8676_v5 = vsub.f32 %v15109_v1, %v8644_v10  ;;  %v15849_v10 = vld [vmem:[#allocation40_spill] sm:$0xff] }
 0x7ea   : > { %v10841_v43 = vpop.eup %10840  ;;  %v8675_v60 = vsub.f32 %v15112_v50, %v8643_v14  ;;  %v8526_v35 = vpop.xlane.xlu0 %8525 }
 0x7eb   : > { %v10843_v27 = vpop.eup %10842  ;;  %8708 = vst.msk [vmem:[%s15384_s29 + $0x58] sm:$0xff] %vm8280_vm5, %v8676_v5  ;;  %v8596_v47 = vmul.f32 0.6931472, %v10841_v43  ;;  %10848 = vlog2.f32 %v8526_v35  ;;  %v8523_v31 = vpop.xlane.xlu1 %8522 }
 0x7ec   : > { %8707 = vst.msk [vmem:[%s15384_s29 + $0x50] sm:$0xff] %vm8280_vm5, %v8675_v60  ;;  %v8594_v29 = vmul.f32 0.6931472, %v10843_v27  ;;  %10850 = vlog2.f32 %v8523_v31  ;;  %v15850_v27 = vld [vmem:[#allocation14_spill] sm:$0xff]  ;;  %v15851_v31 = vld [vmem:[#allocation15_spill] sm:$0xff] }
 0x7ed   : > { %v8646_v51 = vadd.f32 %v8596_v47, %v15274_v30 }
 0x7ee   : > { %v8645_v1 = vadd.f32 %v8594_v29, %v15278_v26 }
 0x7ef   : > { %v10845_v13 = vpop.eup %10844  ;;  %v8678_v50 = vsub.f32 %v15119_v4, %v8646_v51 }
 0x7f0   : > { %v10847_v45 = vpop.eup %10846  ;;  %v8677_v61 = vsub.f32 %v15122_v19, %v8645_v1  ;;  %v8600_v34 = vmul.f32 0.6931472, %v10845_v13 }
 0x7f1   : > { %8710 = vst.msk [vmem:[%s15384_s29 + $0x68] sm:$0xff] %vm8280_vm5, %v8678_v50  ;;  %v8598_v52 = vmul.f32 0.6931472, %v10847_v45  ;;  %v8532_v28 = vpop.xlane.xlu0 %8531 }
 0x7f2   : > { %8709 = vst.msk [vmem:[%s15384_s29 + $0x60] sm:$0xff] %vm8280_vm5, %v8677_v61  ;;  %v8648_v30 = vadd.f32 %v8600_v34, %v15284_v25  ;;  %10852 = vlog2.f32 %v8532_v28  ;;  %v8529_v44 = vpop.xlane.xlu1 %8528  ;;  %v15853_v34 = vld [vmem:[#allocation42_spill] sm:$0xff] }
 0x7f3   : > { %v8647_v26 = vadd.f32 %v8598_v52, %v15288_v8  ;;  %10854 = vlog2.f32 %v8529_v44  ;;  %v15854_v44 = vld [vmem:[#allocation16_spill] sm:$0xff] }
 0x7f4   : > { %v8680_v4 = vsub.f32 %v15129_v59, %v8648_v30 }
 0x7f5   : > { %v8679_v54 = vsub.f32 %v15132_v55, %v8647_v26  ;;  %v8538_v19 = vpop.xlane.xlu0 %8537  ;;  %v10849_v16 = vpop.eup %10848 }
 0x7f6   : > { %8712 = vst.msk [vmem:[%s15384_s29 + $0x78] sm:$0xff] %vm8280_vm5, %v8680_v4  ;;  %10856 = vlog2.f32 %v8538_v19  ;;  %v8535_v63 = vpop.xlane.xlu1 %8534  ;;  %v10851_v20 = vpop.eup %10850  ;;  %v8604_v25 = vmul.f32 0.6931472, %v10849_v16  ;;  %v15855_v16 = vld [vmem:[#allocation29_spill] sm:$0xff] }
 0x7f7   : > { %8711 = vst.msk [vmem:[%s15384_s29 + $0x70] sm:$0xff] %vm8280_vm5, %v8679_v54  ;;  %10858 = vlog2.f32 %v8535_v63  ;;  %v8602_v9 = vmul.f32 0.6931472, %v10851_v20 }
 0x7f8   : > { %v8650_v8 = vadd.f32 %v8604_v25, %v15294_v7  ;;  %v15856_v25 = vld [vmem:[#allocation17_spill] sm:$0xff] }
 0x7f9   : > { %v8544_v39 = vpop.xlane.xlu0 %8543  ;;  %v8649_v59 = vadd.f32 %v8602_v9, %v15298_v23 }
 0x7fa   : > { %10860 = vlog2.f32 %v8544_v39  ;;  %v8541_v55 = vpop.xlane.xlu1 %8540  ;;  %v8682_v53 = vsub.f32 %v15139_v49, %v8650_v8  ;;  %v15857_v39 = vld [vmem:[#allocation45_spill] sm:$0xff] }
 0x7fb   : > { %10862 = vlog2.f32 %v8541_v55  ;;  %v8681_v6 = vsub.f32 %v15142_v24, %v8649_v59 }
 0x7fc   : > { %v10853_v57 = vpop.eup %10852  ;;  %8714 = vst.msk [vmem:[%s15384_s29 + $0x88] sm:$0xff] %vm8280_vm5, %v8682_v53 }
 0x7fd   : > { %v10855_v42 = vpop.eup %10854  ;;  %v8608_v56 = vmul.f32 0.6931472, %v10853_v57  ;;  %v8550_v0 = vpop.xlane.xlu0 %8549  ;;  %8713 = vst.msk [vmem:[%s15384_s29 + $0x80] sm:$0xff] %vm8280_vm5, %v8681_v6 }
 0x7fe   : > { %v8606_v7 = vmul.f32 0.6931472, %v10855_v42  ;;  %10864 = vlog2.f32 %v8550_v0  ;;  %v8547_v38 = vpop.xlane.xlu1 %8546  ;;  %v15858_v42 = vld [vmem:[#allocation19_spill] sm:$0xff] }
 0x7ff   : > { %v8652_v23 = vadd.f32 %v8608_v56, %v15304_v18  ;;  %10866 = vlog2.f32 %v8547_v38 }
 0x800   : > { %v10857_v49 = vpop.eup %10856  ;;  %v8651_v40 = vadd.f32 %v8606_v7, %v15308_v36  ;;  %v15859_v7 = vld [vmem:[#allocation21_spill] sm:$0xff] }
 0x801   : > { %v10859_v22 = vpop.eup %10858  ;;  %v8684_v24 = vsub.f32 %v15149_v48, %v8652_v23  ;;  %v8612_v17 = vmul.f32 0.6931472, %v10857_v49  ;;  %v8556_v2 = vpop.xlane.xlu0 %8555 }
 0x802   : > { %v8683_v14 = vsub.f32 %v15849_v10, %v8651_v40  ;;  %v8610_v5 = vmul.f32 0.6931472, %v10859_v22  ;;  %10868 = vlog2.f32 %v8556_v2  ;;  %v8553_v43 = vpop.xlane.xlu1 %8552 }
 0x803   : > { %8716 = vst.msk [vmem:[%s15384_s29 + $0x98] sm:$0xff] %vm8280_vm5, %v8684_v24  ;;  %v8654_v18 = vadd.f32 %v8612_v17, %v15313_v11  ;;  %10870 = vlog2.f32 %v8553_v43  ;;  %v15860_v17 = vld [vmem:[#allocation23_spill] sm:$0xff] }
 0x804   : > { %v10861_v60 = vpop.eup %10860  ;;  %8715 = vst.msk [vmem:[%s15384_s29 + $0x90] sm:$0xff] %vm8280_vm5, %v8683_v14  ;;  %v8653_v36 = vadd.f32 %v8610_v5, %v15318_v3  ;;  %v15852_v3 = vld [vmem:[#allocation27_spill] sm:$0xff]  ;;  %v15861_v5 = vld [vmem:[#allocation25_spill] sm:$0xff] }
 0x805   : > { %v10863_v48 = vpop.eup %10862  ;;  %v8686_v47 = vsub.f32 %v15850_v27, %v8654_v18  ;;  %v8616_v35 = vmul.f32 0.6931472, %v10861_v60  ;;  %v8562_v29 = vpop.xlane.xlu0 %8561 }
 0x806   : > { %v8685_v51 = vsub.f32 %v15851_v31, %v8653_v36  ;;  %v8614_v1 = vmul.f32 0.6931472, %v10863_v48  ;;  %10872 = vlog2.f32 %v8562_v29  ;;  %v8559_v13 = vpop.xlane.xlu1 %8558 }
 0x807   : > { %8718 = vst.msk [vmem:[%s15384_s29 + $0xa8] sm:$0xff] %vm8280_vm5, %v8686_v47  ;;  %v8656_v11 = vadd.f32 %v8616_v35, %v15322_v32  ;;  %10874 = vlog2.f32 %v8559_v13 }
 0x808   : > { %v10865_v50 = vpop.eup %10864  ;;  %8717 = vst.msk [vmem:[%s15384_s29 + $0xa0] sm:$0xff] %vm8280_vm5, %v8685_v51  ;;  %v8655_v45 = vadd.f32 %v8614_v1, %v15852_v3 }
 0x809   : > { %v10867_v61 = vpop.eup %10866  ;;  %v8688_v52 = vsub.f32 %v15853_v34, %v8656_v11  ;;  %v8620_v28 = vmul.f32 0.6931472, %v10865_v50  ;;  %v8568_v30 = vpop.xlane.xlu0 %8567 }
 0x80a   : > { %v8687_v26 = vsub.f32 %v15854_v44, %v8655_v45  ;;  %v8618_v4 = vmul.f32 0.6931472, %v10867_v61  ;;  %10876 = vlog2.f32 %v8568_v30  ;;  %v8565_v54 = vpop.xlane.xlu1 %8564 }
 0x80b   : > { %8720 = vst.msk [vmem:[%s15384_s29 + $0xb8] sm:$0xff] %vm8280_vm5, %v8688_v52  ;;  %v8658_v32 = vadd.f32 %v8620_v28, %v15332_v62  ;;  %10878 = vlog2.f32 %v8565_v54 }
 0x80c   : > { %v10869_v19 = vpop.eup %10868  ;;  %8719 = vst.msk [vmem:[%s15384_s29 + $0xb0] sm:$0xff] %vm8280_vm5, %v8687_v26  ;;  %v8657_v63 = vadd.f32 %v8618_v4, %v15855_v16 }
 0x80d   : > { %v10871_v20 = vpop.eup %10870  ;;  %v8690_v9 = vsub.f32 %v15856_v25, %v8658_v32  ;;  %v8624_v8 = vmul.f32 0.6931472, %v10869_v19 }
 0x80e   : > { %v8689_v59 = vsub.f32 %v15857_v39, %v8657_v63  ;;  %v8622_v55 = vmul.f32 0.6931472, %v10871_v20 }
 0x80f   : > { %8722 = vst.msk [vmem:[%s15384_s29 + $0xc8] sm:$0xff] %vm8280_vm5, %v8690_v9  ;;  %v8660_v53 = vadd.f32 %v8624_v8, %v15340_v58 }
 0x810   : > { %v10873_v62 = vpop.eup %10872  ;;  %8721 = vst.msk [vmem:[%s15384_s29 + $0xc0] sm:$0xff] %vm8280_vm5, %v8689_v59  ;;  %v8659_v57 = vadd.f32 %v8622_v55, %v15345_v12 }
 0x811   : > { %v10875_v6 = vpop.eup %10874  ;;  %v8692_v56 = vsub.f32 %v15858_v42, %v8660_v53  ;;  %v8628_v0 = vmul.f32 0.6931472, %v10873_v62 }
 0x812   : > { %v8691_v38 = vsub.f32 %v15859_v7, %v8659_v57  ;;  %v8626_v23 = vmul.f32 0.6931472, %v10875_v6 }
 0x813   : > { %8724 = vst.msk [vmem:[%s15384_s29 + $0xd8] sm:$0xff] %vm8280_vm5, %v8692_v56  ;;  %v8662_v49 = vadd.f32 %v8628_v0, %v15350_v21 }
 0x814   : > { %v10877_v58 = vpop.eup %10876  ;;  %8723 = vst.msk [vmem:[%s15384_s29 + $0xd0] sm:$0xff] %vm8280_vm5, %v8691_v38  ;;  %v8661_v12 = vadd.f32 %v8626_v23, %v15355_v46 }
 0x815   : > { %v10879_v40 = vpop.eup %10878  ;;  %v8694_v22 = vsub.f32 %v15199_v15, %v8662_v49  ;;  %v8632_v24 = vmul.f32 0.6931472, %v10877_v58 }
 0x816   : > { %v8693_v2 = vsub.f32 %v15860_v17, %v8661_v12  ;;  %v8630_v10 = vmul.f32 0.6931472, %v10879_v40 }
 0x817   : > { %8726 = vst.msk [vmem:[%s15384_s29 + $0xe8] sm:$0xff] %vm8280_vm5, %v8694_v22  ;;  %v8664_v14 = vadd.f32 %v8632_v24, %v15360_v41 }
 0x818   : > { %8725 = vst.msk [vmem:[%s15384_s29 + $0xe0] sm:$0xff] %vm8280_vm5, %v8693_v2  ;;  %v8663_v21 = vadd.f32 %v8630_v10, %v15365_v37 }
 0x819   : > { %v8696_v43 = vsub.f32 %v15861_v5, %v8664_v14 }
 0x81a   : > { %v8695_v18 = vsub.f32 %v15212_v33, %v8663_v21 }
 0x81b   : > { %8728 = vst.msk [vmem:[%s15384_s29 + $0xf8] sm:$0xff] %vm8280_vm5, %v8696_v43 }
 0x81c   : > { %8727 = vst.msk [vmem:[%s15384_s29 + $0xf0] sm:$0xff] %vm8280_vm5, %v8695_v18 }
 0x81d PF: > { %p18_p9 = scmp.ge.s32.totalorder %s11094_s21, 4   ;;  %s15862_s17 = smov %s11008_s18 }
 0x81e   : > { %s15863_s18 = smov %s11103_s24  ;;  %s15864_s19 = smov %s11094_s21 }
 0x81f   :  { %20 = sbr.rel (!%p18_p9) target bundleno = 2 (0x2), region = 147 }

</bundles_post_ra>
